<compile_context>
chip_gen: v7x
topology: tpu7x:2x2x1
jax: 0.10.0
libtpu: 0.0.40
codegen_flags: <defaults>
</compile_context>

<pallas_src>
import functools

import jax
import jax.numpy as jnp
from jax import lax
from jax.experimental import pallas as pl
from jax.experimental.pallas import tpu as pltpu

NEG_SLOPE = 0.01   # nn.LeakyReLU default
BN_EPS = 1e-5      # nn.BatchNorm3d default


def _round_up(x, m):
    return ((x + m - 1) // m) * m


# ---------------------------------------------------------------------------
# Fused kernel: 3 x (Conv3d + BN(eval) + LeakyReLU) for both branches at once.
#
#   x_ref     : (CT, Wbuf)        bf16  guarded flat padded-volume input slab
#   w_ref     : (3, k^3, CT, CT)  bf16  BN-folded per-layer per-tap weights
#   shift_ref : (3, CT, 1)        f32   BN shifts
#   mask_ref  : (1, Mcomp)        f32   1 at interior positions, 0 at halo/pad
#   o_ref     : (CT, Mcomp)       f32   layer-3 activations (lane-dense)
#   act_a/b   : (CT, Wbuf)        bf16  VMEM-resident inter-layer activations
# ---------------------------------------------------------------------------
def _make_fused_kernel(CT, Mcomp, G, D0, tap_offsets):
    n_taps = len(tap_offsets)

    def kernel(x_ref, w_ref, shift_ref, mask_ref, o_ref, act_a, act_b):
        # Zero scratch once so guard / halo columns read as true zero padding.
        act_a[...] = jnp.zeros_like(act_a)
        act_b[...] = jnp.zeros_like(act_b)
        mask = mask_ref[...]                                    # (1, Mcomp) f32

        def layer(in_ref, l):
            acc = jnp.zeros((CT, Mcomp), jnp.float32)
            for k in range(n_taps):
                s = G - D0 + tap_offsets[k]                     # static lane offset
                xk = in_ref[:, s:s + Mcomp]                     # (CT, Mcomp) bf16
                wk = w_ref[l, k]                                # (CT, CT)    bf16
                acc = acc + jnp.dot(wk, xk,
                                    preferred_element_type=jnp.float32)
            y = acc + shift_ref[l]                              # BN shift
            y = jnp.maximum(y, NEG_SLOPE * y)                   # LeakyReLU
            return y * mask                                     # re-zero halos

        y = layer(x_ref, 0)
        act_a[:, G:G + Mcomp] = y.astype(act_a.dtype)           # bf16 intermediate
        y = layer(act_a, 1)
        act_b[:, G:G + Mcomp] = y.astype(act_b.dtype)
        o_ref[...] = layer(act_b, 2)                            # f32, lane-dense

    return kernel


# ---------------------------------------------------------------------------
# One-time parameter packing (hoisted out of the per-forward path).
#   layer 0 : shared input  -> concatenated (2*Cout, Cin) weights
#   layers 1/2 : per-branch -> block-diagonal (2*Cout, 2*Cout) weights
# Channel dims are zero-padded to CT (multiple of 16) for clean bf16 tiling.
# ---------------------------------------------------------------------------
def prepare_separate_bcn3d(params, in_channel, out_channel, kernel_size):
    b1, b2 = params["branch1"], params["branch2"]
    k3 = kernel_size ** 3
    CT = _round_up(max(in_channel, 2 * out_channel), 16)

    def fold(blk):  # BN scale folded into the conv weight
        return (blk["w"] * blk["scale"][:, None, None, None, None]).astype(jnp.float32)

    w_layers, s_layers = [], []
    for l in range(3):
        w1, w2 = fold(b1[l]), fold(b2[l])
        ci = w1.shape[1]
        # (Cout, ci, k, k, k) -> (k, k, k, Cout, ci) -> (k^3, Cout, ci)
        t1 = jnp.transpose(w1, (2, 3, 4, 0, 1)).reshape(k3, out_channel, ci)
        t2 = jnp.transpose(w2, (2, 3, 4, 0, 1)).reshape(k3, out_channel, ci)
        if l == 0:
            wt = jnp.concatenate([t1, t2], axis=1)                  # (k^3, 2Co, Cin)
            wt = jnp.pad(wt, ((0, 0), (0, CT - 2 * out_channel), (0, CT - ci)))
        else:
            top = jnp.pad(t1, ((0, 0), (0, 0), (0, CT - ci)))
            bot = jnp.pad(t2, ((0, 0), (0, 0),
                               (out_channel, CT - out_channel - ci)))
            wt = jnp.concatenate([top, bot], axis=1)                # block diagonal
            wt = jnp.pad(wt, ((0, 0), (0, CT - 2 * out_channel), (0, 0)))
        w_layers.append(wt.astype(jnp.bfloat16))

        sh = jnp.concatenate([b1[l]["shift"], b2[l]["shift"]]).astype(jnp.float32)
        sh = jnp.pad(sh, (0, CT - 2 * out_channel)).reshape(CT, 1)
        s_layers.append(sh)

    return dict(weights=jnp.stack(w_layers),       # (3, k^3, CT, CT) bf16
                shifts=jnp.stack(s_layers))        # (3, CT, 1)       f32


# ---------------------------------------------------------------------------
# Forward (matches Separate_BCN3D.forward).
# ---------------------------------------------------------------------------
def separate_bcn3d_forward(prepared, seqs, seqL=None, *, in_channel, out_channel,
                           kernel_size, stride, padding):
    del seqL  # unused by the reference forward
    assert stride == 1 and kernel_size == 2 * padding + 1, (
        "fused haloed-slab kernel supports stride-1 'same' convs only")
    N, C, T, H, W = seqs.shape
    assert C == in_channel

    k, p = kernel_size, padding
    CT = _round_up(max(in_channel, 2 * out_channel), 16)
    Tp, Hp, Wp = T + 2 * p, H + 2 * p, W + 2 * p
    Mflat = N * Tp * Hp * Wp
    Mcomp = _round_up(Mflat, 128)                   # lane-aligned compute width
    D0 = p * (Hp * Wp + Wp + 1)                     # center tap flat offset
    G = _round_up(max(D0, 1), 128)                  # left guard (lane aligned)
    Wbuf = _round_up(G + D0 + Mcomp, 128)           # guarded slab width
    tap_offsets = tuple(dt * Hp * Wp + dh * Wp + dw
                        for dt in range(k) for dh in range(k) for dw in range(k))

    # Guarded, channel-padded, flat padded-volume input slab (bf16, lane-dense).
    x_cf = jnp.transpose(seqs.astype(jnp.float32), (1, 0, 2, 3, 4))   # (Cin,N,T,H,W)
    x_pad = jnp.pad(x_cf, ((0, 0), (0, 0), (p, p), (p, p), (p, p)))
    x_flat = x_pad.reshape(in_channel, Mflat).astype(jnp.bfloat16)
    x_buf = jnp.pad(x_flat, ((0, CT - in_channel), (G, Wbuf - G - Mflat)))

    # 0/1 interior mask over flat padded positions; keeps halo columns exactly 0
    # so the next layer's taps see true zero padding.
    it = (jnp.arange(Tp) >= p) & (jnp.arange(Tp) < p + T)
    ih = (jnp.arange(Hp) >= p) & (jnp.arange(Hp) < p + H)
    iw = (jnp.arange(Wp) >= p) & (jnp.arange(Wp) < p + W)
    m_vol = it[:, None, None] & ih[None, :, None] & iw[None, None, :]
    m_flat = jnp.tile(m_vol.reshape(-1), N).astype(jnp.float32)
    mask = jnp.pad(m_flat, (0, Mcomp - Mflat)).reshape(1, Mcomp)

    kernel = _make_fused_kernel(CT, Mcomp, G, D0, tap_offsets)
    flops = 2 * 3 * len(tap_offsets) * CT * CT * Mcomp
    bytes_accessed = int(x_buf.size * 2 + prepared["weights"].size * 2
                         + prepared["shifts"].size * 4 + mask.size * 4
                         + CT * Mcomp * 4)

    out = pl.pallas_call(
        kernel,
        out_shape=jax.ShapeDtypeStruct((CT, Mcomp), jnp.float32),
        scratch_shapes=[pltpu.VMEM((CT, Wbuf), jnp.bfloat16),
                        pltpu.VMEM((CT, Wbuf), jnp.bfloat16)],
        cost_estimate=pl.CostEstimate(flops=flops, transcendentals=0,
                                      bytes_accessed=bytes_accessed),
    )(x_buf, prepared["weights"], prepared["shifts"], mask)

    # Un-pad the flat padded volume back to NCDHW and split the branches.
    vol = out[:2 * out_channel, :Mflat].reshape(2 * out_channel, N, Tp, Hp, Wp)
    vol = vol[:, :, p:p + T, p:p + H, p:p + W]
    feat1 = jnp.transpose(vol[:out_channel], (1, 0, 2, 3, 4))
    feat2 = jnp.transpose(vol[out_channel:2 * out_channel], (1, 0, 2, 3, 4))
    return feat1, feat2


# ---------------------------------------------------------------------------
# Parameter init (deterministic, synthetic — no checkpoint loading).
# ---------------------------------------------------------------------------
def _init_block(key, cin, cout, k):
    kw_, kg, kb, km, kv = jax.random.split(key, 5)
    w = jax.random.normal(kw_, (cout, cin, k, k, k), jnp.float32) * 0.1
    gamma = jax.random.uniform(kg, (cout,), jnp.float32, 0.5, 1.5)
    beta = jax.random.normal(kb, (cout,), jnp.float32) * 0.1
    mean = jax.random.normal(km, (cout,), jnp.float32) * 0.1
    var = jax.random.uniform(kv, (cout,), jnp.float32, 0.5, 1.5)
    scale = gamma / jnp.sqrt(var + BN_EPS)
    shift = beta - mean * scale
    return dict(w=w, scale=scale, shift=shift)


def init_separate_bcn3d(key, in_channel, out_channel, kernel_size):
    keys = jax.random.split(key, 6)
    chans = [(in_channel, out_channel), (out_channel, out_channel),
             (out_channel, out_channel)]
    branch1 = [_init_block(keys[i], chans[i][0], chans[i][1], kernel_size)
               for i in range(3)]
    branch2 = [_init_block(keys[3 + i], chans[i][0], chans[i][1], kernel_size)
               for i in range(3)]
    return dict(branch1=branch1, branch2=branch2)


# ---------------------------------------------------------------------------
# Pure-JAX references.
# ---------------------------------------------------------------------------
def _leaky(y):
    return jnp.maximum(y, NEG_SLOPE * y)


def _ref_block_f32(x, blk, stride, padding):
    y = lax.conv_general_dilated(
        x, blk["w"], (stride,) * 3, ((padding, padding),) * 3,
        dimension_numbers=("NCDHW", "OIDHW", "NCDHW"),
        precision=lax.Precision.HIGHEST)
    y = y * blk["scale"].reshape(1, -1, 1, 1, 1) + blk["shift"].reshape(1, -1, 1, 1, 1)
    return _leaky(y)


def _ref_block_bf16(x, blk, stride, padding):
    # Mirrors the kernel numerics: BN scale folded into bf16 weights, bf16
    # activations at the conv input, f32 accumulation, f32 shift + LeakyReLU.
    wf = (blk["w"] * blk["scale"][:, None, None, None, None]).astype(jnp.bfloat16)
    y = lax.conv_general_dilated(
        x.astype(jnp.bfloat16), wf, (stride,) * 3, ((padding, padding),) * 3,
        dimension_numbers=("NCDHW", "OIDHW", "NCDHW"),
        preferred_element_type=jnp.float32)
    y = y + blk["shift"].reshape(1, -1, 1, 1, 1)
    return _leaky(y)


def _ref_forward(params, seqs, stride, padding, block_fn):
    def run(blocks, x0):
        h = x0
        for blk in blocks:
            h = block_fn(h, blk, stride, padding)
        return h
    return (run(params["branch1"], seqs), run(params["branch2"], seqs))


# ---------------------------------------------------------------------------
if __name__ == "__main__":
    key = jax.random.PRNGKey(0)
    k_inp, k_par = jax.random.split(key)

    # cfg = "Separate_BCN3D-8"  -> out_channel = 8
    N, C_in, T, H, W = 2, 4, 4, 8, 8
    out_channel = 8
    kernel_size, stride, padding = 3, 1, 1

    seqs = jax.random.normal(k_inp, (N, C_in, T, H, W), jnp.float32)
    seqL = jnp.full((N,), T, jnp.int32)   # unused by the forward pass

    params = init_separate_bcn3d(k_par, C_in, out_channel, kernel_size)
    prepared = prepare_separate_bcn3d(params, C_in, out_channel, kernel_size)

    fwd = jax.jit(functools.partial(separate_bcn3d_forward,
                                    in_channel=C_in, out_channel=out_channel,
                                    kernel_size=kernel_size, stride=stride,
                                    padding=padding))
    feat1, feat2 = fwd(prepared, seqs, seqL)
    feat1 = jax.block_until_ready(feat1)
    feat2 = jax.block_until_ready(feat2)

    assert feat1.shape == (N, out_channel, T, H, W), feat1.shape
    assert feat2.shape == (N, out_channel, T, H, W), feat2.shape

    # 1) Strict elementwise check against a reference that mirrors the kernel's
    #    bf16-MXU / f32-accumulate numerics.
    rb1, rb2 = _ref_forward(params, seqs, stride, padding, _ref_block_bf16)
    assert jnp.allclose(feat1, rb1, atol=1e-2, rtol=1e-2), \
        float(jnp.max(jnp.abs(feat1 - rb1)))
    assert jnp.allclose(feat2, rb2, atol=1e-2, rtol=1e-2), \
        float(jnp.max(jnp.abs(feat2 - rb2)))

    # 2) Sanity check against the pure-f32 (HIGHEST) reference; bf16 MXU inputs
    #    make this a relative-norm check rather than a tight elementwise one.
    rf1, rf2 = _ref_forward(params, seqs, stride, padding, _ref_block_f32)
    for got, ref in ((feat1, rf1), (feat2, rf2)):
        rel = float(jnp.linalg.norm(got - ref) / (jnp.linalg.norm(ref) + 1e-12))
        assert rel < 5e-2, rel

    print("KERNEL_OK")
</pallas_src>

<mosaic_0001>
module attributes {stable_mosaic.version = 11 : i64} {
  func.func @kernel(%arg0: memref<16x1536xbf16, #tpu.memory_space<vmem>>, %arg1: memref<3x27x16x16xbf16, #tpu.memory_space<vmem>>, %arg2: memref<3x16x1xf32, #tpu.memory_space<vmem>>, %arg3: memref<1x1280xf32, #tpu.memory_space<vmem>>, %arg4: memref<16x1280xf32, #tpu.memory_space<vmem>>, %arg5: memref<16x1536xbf16, #tpu.memory_space<vmem>>, %arg6: memref<16x1536xbf16, #tpu.memory_space<vmem>>) attributes {dimension_semantics = [], scalar_prefetch = 0 : i64, scratch_operands = 2 : i64, tpu.core_type = #tpu.core_type<tc>} {
    %cst = arith.constant 0.000000e+00 : bf16
    %0 = vector.broadcast %cst : bf16 to vector<16x1536xbf16>
    %c0 = arith.constant 0 : index
    %c0_0 = arith.constant 0 : index
    %1 = vector.load %arg5[%c0, %c0_0] : memref<16x1536xbf16, #tpu.memory_space<vmem>>, vector<16x1536xbf16>
    tpu.vector_store %arg5[%c0, %c0_0], %0 {strides = array<i32>} : memref<16x1536xbf16, #tpu.memory_space<vmem>>, vector<16x1536xbf16>,
    %cst_1 = arith.constant 0.000000e+00 : bf16
    %2 = vector.broadcast %cst_1 : bf16 to vector<16x1536xbf16>
    %c0_2 = arith.constant 0 : index
    %c0_3 = arith.constant 0 : index
    %3 = vector.load %arg6[%c0_2, %c0_3] : memref<16x1536xbf16, #tpu.memory_space<vmem>>, vector<16x1536xbf16>
    tpu.vector_store %arg6[%c0_2, %c0_3], %2 {strides = array<i32>} : memref<16x1536xbf16, #tpu.memory_space<vmem>>, vector<16x1536xbf16>,
    %c0_4 = arith.constant 0 : index
    %c0_5 = arith.constant 0 : index
    %4 = vector.load %arg3[%c0_4, %c0_5] : memref<1x1280xf32, #tpu.memory_space<vmem>>, vector<1x1280xf32>
    %cst_6 = arith.constant 0.000000e+00 : f32
    %5 = vector.broadcast %cst_6 : f32 to vector<16x1280xf32>
    %c0_7 = arith.constant 0 : index
    %c17 = arith.constant 17 : index
    %6 = vector.load %arg0[%c0_7, %c17] : memref<16x1536xbf16, #tpu.memory_space<vmem>>, vector<16x1280xbf16>
    %c0_8 = arith.constant 0 : index
    %c0_9 = arith.constant 0 : index
    %c0_10 = arith.constant 0 : index
    %c0_11 = arith.constant 0 : index
    %7 = vector.load %arg1[%c0_8, %c0_9, %c0_10, %c0_11] : memref<3x27x16x16xbf16, #tpu.memory_space<vmem>>, vector<1x1x16x16xbf16>
    %8 = vector.shape_cast %7 : vector<1x1x16x16xbf16> to vector<16x16xbf16>
    %cst_12 = arith.constant dense<0.000000e+00> : vector<16x1280xf32>
    %9 = tpu.matmul %8, %6, %cst_12 {dimension_numbers = #tpu.dot_dimension_numbers<[1], [0], [0], [1], [0, 0, 1, 1], [], []>} : vector<16x16xbf16>, vector<16x1280xbf16>, vector<16x1280xf32> -> vector<16x1280xf32>
    %10 = arith.addf %5, %9 : vector<16x1280xf32>
    %c0_13 = arith.constant 0 : index
    %c18 = arith.constant 18 : index
    %11 = vector.load %arg0[%c0_13, %c18] : memref<16x1536xbf16, #tpu.memory_space<vmem>>, vector<16x1280xbf16>
    %c0_14 = arith.constant 0 : index
    %c1 = arith.constant 1 : index
    %c0_15 = arith.constant 0 : index
    %c0_16 = arith.constant 0 : index
    %12 = vector.load %arg1[%c0_14, %c1, %c0_15, %c0_16] : memref<3x27x16x16xbf16, #tpu.memory_space<vmem>>, vector<1x1x16x16xbf16>
    %13 = vector.shape_cast %12 : vector<1x1x16x16xbf16> to vector<16x16xbf16>
    %cst_17 = arith.constant dense<0.000000e+00> : vector<16x1280xf32>
    %14 = tpu.matmul %13, %11, %cst_17 {dimension_numbers = #tpu.dot_dimension_numbers<[1], [0], [0], [1], [0, 0, 1, 1], [], []>} : vector<16x16xbf16>, vector<16x1280xbf16>, vector<16x1280xf32> -> vector<16x1280xf32>
    %15 = arith.addf %10, %14 : vector<16x1280xf32>
    %c0_18 = arith.constant 0 : index
    %c19 = arith.constant 19 : index
    %16 = vector.load %arg0[%c0_18, %c19] : memref<16x1536xbf16, #tpu.memory_space<vmem>>, vector<16x1280xbf16>
    %c0_19 = arith.constant 0 : index
    %c2 = arith.constant 2 : index
    %c0_20 = arith.constant 0 : index
    %c0_21 = arith.constant 0 : index
    %17 = vector.load %arg1[%c0_19, %c2, %c0_20, %c0_21] : memref<3x27x16x16xbf16, #tpu.memory_space<vmem>>, vector<1x1x16x16xbf16>
    %18 = vector.shape_cast %17 : vector<1x1x16x16xbf16> to vector<16x16xbf16>
    %cst_22 = arith.constant dense<0.000000e+00> : vector<16x1280xf32>
    %19 = tpu.matmul %18, %16, %cst_22 {dimension_numbers = #tpu.dot_dimension_numbers<[1], [0], [0], [1], [0, 0, 1, 1], [], []>} : vector<16x16xbf16>, vector<16x1280xbf16>, vector<16x1280xf32> -> vector<16x1280xf32>
    %20 = arith.addf %15, %19 : vector<16x1280xf32>
    %c0_23 = arith.constant 0 : index
    %c27 = arith.constant 27 : index
    %21 = vector.load %arg0[%c0_23, %c27] : memref<16x1536xbf16, #tpu.memory_space<vmem>>, vector<16x1280xbf16>
    %c0_24 = arith.constant 0 : index
    %c3 = arith.constant 3 : index
    %c0_25 = arith.constant 0 : index
    %c0_26 = arith.constant 0 : index
    %22 = vector.load %arg1[%c0_24, %c3, %c0_25, %c0_26] : memref<3x27x16x16xbf16, #tpu.memory_space<vmem>>, vector<1x1x16x16xbf16>
    %23 = vector.shape_cast %22 : vector<1x1x16x16xbf16> to vector<16x16xbf16>
    %cst_27 = arith.constant dense<0.000000e+00> : vector<16x1280xf32>
    %24 = tpu.matmul %23, %21, %cst_27 {dimension_numbers = #tpu.dot_dimension_numbers<[1], [0], [0], [1], [0, 0, 1, 1], [], []>} : vector<16x16xbf16>, vector<16x1280xbf16>, vector<16x1280xf32> -> vector<16x1280xf32>
    %25 = arith.addf %20, %24 : vector<16x1280xf32>
    %c0_28 = arith.constant 0 : index
    %c28 = arith.constant 28 : index
    %26 = vector.load %arg0[%c0_28, %c28] : memref<16x1536xbf16, #tpu.memory_space<vmem>>, vector<16x1280xbf16>
    %c0_29 = arith.constant 0 : index
    %c4 = arith.constant 4 : index
    %c0_30 = arith.constant 0 : index
    %c0_31 = arith.constant 0 : index
    %27 = vector.load %arg1[%c0_29, %c4, %c0_30, %c0_31] : memref<3x27x16x16xbf16, #tpu.memory_space<vmem>>, vector<1x1x16x16xbf16>
    %28 = vector.shape_cast %27 : vector<1x1x16x16xbf16> to vector<16x16xbf16>
    %cst_32 = arith.constant dense<0.000000e+00> : vector<16x1280xf32>
    %29 = tpu.matmul %28, %26, %cst_32 {dimension_numbers = #tpu.dot_dimension_numbers<[1], [0], [0], [1], [0, 0, 1, 1], [], []>} : vector<16x16xbf16>, vector<16x1280xbf16>, vector<16x1280xf32> -> vector<16x1280xf32>
    %30 = arith.addf %25, %29 : vector<16x1280xf32>
    %c0_33 = arith.constant 0 : index
    %c29 = arith.constant 29 : index
    %31 = vector.load %arg0[%c0_33, %c29] : memref<16x1536xbf16, #tpu.memory_space<vmem>>, vector<16x1280xbf16>
    %c0_34 = arith.constant 0 : index
    %c5 = arith.constant 5 : index
    %c0_35 = arith.constant 0 : index
    %c0_36 = arith.constant 0 : index
    %32 = vector.load %arg1[%c0_34, %c5, %c0_35, %c0_36] : memref<3x27x16x16xbf16, #tpu.memory_space<vmem>>, vector<1x1x16x16xbf16>
    %33 = vector.shape_cast %32 : vector<1x1x16x16xbf16> to vector<16x16xbf16>
    %cst_37 = arith.constant dense<0.000000e+00> : vector<16x1280xf32>
    %34 = tpu.matmul %33, %31, %cst_37 {dimension_numbers = #tpu.dot_dimension_numbers<[1], [0], [0], [1], [0, 0, 1, 1], [], []>} : vector<16x16xbf16>, vector<16x1280xbf16>, vector<16x1280xf32> -> vector<16x1280xf32>
    %35 = arith.addf %30, %34 : vector<16x1280xf32>
    %c0_38 = arith.constant 0 : index
    %c37 = arith.constant 37 : index
    %36 = vector.load %arg0[%c0_38, %c37] : memref<16x1536xbf16, #tpu.memory_space<vmem>>, vector<16x1280xbf16>
    %c0_39 = arith.constant 0 : index
    %c6 = arith.constant 6 : index
    %c0_40 = arith.constant 0 : index
    %c0_41 = arith.constant 0 : index
    %37 = vector.load %arg1[%c0_39, %c6, %c0_40, %c0_41] : memref<3x27x16x16xbf16, #tpu.memory_space<vmem>>, vector<1x1x16x16xbf16>
    %38 = vector.shape_cast %37 : vector<1x1x16x16xbf16> to vector<16x16xbf16>
    %cst_42 = arith.constant dense<0.000000e+00> : vector<16x1280xf32>
    %39 = tpu.matmul %38, %36, %cst_42 {dimension_numbers = #tpu.dot_dimension_numbers<[1], [0], [0], [1], [0, 0, 1, 1], [], []>} : vector<16x16xbf16>, vector<16x1280xbf16>, vector<16x1280xf32> -> vector<16x1280xf32>
    %40 = arith.addf %35, %39 : vector<16x1280xf32>
    %c0_43 = arith.constant 0 : index
    %c38 = arith.constant 38 : index
    %41 = vector.load %arg0[%c0_43, %c38] : memref<16x1536xbf16, #tpu.memory_space<vmem>>, vector<16x1280xbf16>
    %c0_44 = arith.constant 0 : index
    %c7 = arith.constant 7 : index
    %c0_45 = arith.constant 0 : index
    %c0_46 = arith.constant 0 : index
    %42 = vector.load %arg1[%c0_44, %c7, %c0_45, %c0_46] : memref<3x27x16x16xbf16, #tpu.memory_space<vmem>>, vector<1x1x16x16xbf16>
    %43 = vector.shape_cast %42 : vector<1x1x16x16xbf16> to vector<16x16xbf16>
    %cst_47 = arith.constant dense<0.000000e+00> : vector<16x1280xf32>
    %44 = tpu.matmul %43, %41, %cst_47 {dimension_numbers = #tpu.dot_dimension_numbers<[1], [0], [0], [1], [0, 0, 1, 1], [], []>} : vector<16x16xbf16>, vector<16x1280xbf16>, vector<16x1280xf32> -> vector<16x1280xf32>
    %45 = arith.addf %40, %44 : vector<16x1280xf32>
    %c0_48 = arith.constant 0 : index
    %c39 = arith.constant 39 : index
    %46 = vector.load %arg0[%c0_48, %c39] : memref<16x1536xbf16, #tpu.memory_space<vmem>>, vector<16x1280xbf16>
    %c0_49 = arith.constant 0 : index
    %c8 = arith.constant 8 : index
    %c0_50 = arith.constant 0 : index
    %c0_51 = arith.constant 0 : index
    %47 = vector.load %arg1[%c0_49, %c8, %c0_50, %c0_51] : memref<3x27x16x16xbf16, #tpu.memory_space<vmem>>, vector<1x1x16x16xbf16>
    %48 = vector.shape_cast %47 : vector<1x1x16x16xbf16> to vector<16x16xbf16>
    %cst_52 = arith.constant dense<0.000000e+00> : vector<16x1280xf32>
    %49 = tpu.matmul %48, %46, %cst_52 {dimension_numbers = #tpu.dot_dimension_numbers<[1], [0], [0], [1], [0, 0, 1, 1], [], []>} : vector<16x16xbf16>, vector<16x1280xbf16>, vector<16x1280xf32> -> vector<16x1280xf32>
    %50 = arith.addf %45, %49 : vector<16x1280xf32>
    %c0_53 = arith.constant 0 : index
    %c117 = arith.constant 117 : index
    %51 = vector.load %arg0[%c0_53, %c117] : memref<16x1536xbf16, #tpu.memory_space<vmem>>, vector<16x1280xbf16>
    %c0_54 = arith.constant 0 : index
    %c9 = arith.constant 9 : index
    %c0_55 = arith.constant 0 : index
    %c0_56 = arith.constant 0 : index
    %52 = vector.load %arg1[%c0_54, %c9, %c0_55, %c0_56] : memref<3x27x16x16xbf16, #tpu.memory_space<vmem>>, vector<1x1x16x16xbf16>
    %53 = vector.shape_cast %52 : vector<1x1x16x16xbf16> to vector<16x16xbf16>
    %cst_57 = arith.constant dense<0.000000e+00> : vector<16x1280xf32>
    %54 = tpu.matmul %53, %51, %cst_57 {dimension_numbers = #tpu.dot_dimension_numbers<[1], [0], [0], [1], [0, 0, 1, 1], [], []>} : vector<16x16xbf16>, vector<16x1280xbf16>, vector<16x1280xf32> -> vector<16x1280xf32>
    %55 = arith.addf %50, %54 : vector<16x1280xf32>
    %c0_58 = arith.constant 0 : index
    %c118 = arith.constant 118 : index
    %56 = vector.load %arg0[%c0_58, %c118] : memref<16x1536xbf16, #tpu.memory_space<vmem>>, vector<16x1280xbf16>
    %c0_59 = arith.constant 0 : index
    %c10 = arith.constant 10 : index
    %c0_60 = arith.constant 0 : index
    %c0_61 = arith.constant 0 : index
    %57 = vector.load %arg1[%c0_59, %c10, %c0_60, %c0_61] : memref<3x27x16x16xbf16, #tpu.memory_space<vmem>>, vector<1x1x16x16xbf16>
    %58 = vector.shape_cast %57 : vector<1x1x16x16xbf16> to vector<16x16xbf16>
    %cst_62 = arith.constant dense<0.000000e+00> : vector<16x1280xf32>
    %59 = tpu.matmul %58, %56, %cst_62 {dimension_numbers = #tpu.dot_dimension_numbers<[1], [0], [0], [1], [0, 0, 1, 1], [], []>} : vector<16x16xbf16>, vector<16x1280xbf16>, vector<16x1280xf32> -> vector<16x1280xf32>
    %60 = arith.addf %55, %59 : vector<16x1280xf32>
    %c0_63 = arith.constant 0 : index
    %c119 = arith.constant 119 : index
    %61 = vector.load %arg0[%c0_63, %c119] : memref<16x1536xbf16, #tpu.memory_space<vmem>>, vector<16x1280xbf16>
    %c0_64 = arith.constant 0 : index
    %c11 = arith.constant 11 : index
    %c0_65 = arith.constant 0 : index
    %c0_66 = arith.constant 0 : index
    %62 = vector.load %arg1[%c0_64, %c11, %c0_65, %c0_66] : memref<3x27x16x16xbf16, #tpu.memory_space<vmem>>, vector<1x1x16x16xbf16>
    %63 = vector.shape_cast %62 : vector<1x1x16x16xbf16> to vector<16x16xbf16>
    %cst_67 = arith.constant dense<0.000000e+00> : vector<16x1280xf32>
    %64 = tpu.matmul %63, %61, %cst_67 {dimension_numbers = #tpu.dot_dimension_numbers<[1], [0], [0], [1], [0, 0, 1, 1], [], []>} : vector<16x16xbf16>, vector<16x1280xbf16>, vector<16x1280xf32> -> vector<16x1280xf32>
    %65 = arith.addf %60, %64 : vector<16x1280xf32>
    %c0_68 = arith.constant 0 : index
    %c127 = arith.constant 127 : index
    %66 = vector.load %arg0[%c0_68, %c127] : memref<16x1536xbf16, #tpu.memory_space<vmem>>, vector<16x1280xbf16>
    %c0_69 = arith.constant 0 : index
    %c12 = arith.constant 12 : index
    %c0_70 = arith.constant 0 : index
    %c0_71 = arith.constant 0 : index
    %67 = vector.load %arg1[%c0_69, %c12, %c0_70, %c0_71] : memref<3x27x16x16xbf16, #tpu.memory_space<vmem>>, vector<1x1x16x16xbf16>
    %68 = vector.shape_cast %67 : vector<1x1x16x16xbf16> to vector<16x16xbf16>
    %cst_72 = arith.constant dense<0.000000e+00> : vector<16x1280xf32>
    %69 = tpu.matmul %68, %66, %cst_72 {dimension_numbers = #tpu.dot_dimension_numbers<[1], [0], [0], [1], [0, 0, 1, 1], [], []>} : vector<16x16xbf16>, vector<16x1280xbf16>, vector<16x1280xf32> -> vector<16x1280xf32>
    %70 = arith.addf %65, %69 : vector<16x1280xf32>
    %c0_73 = arith.constant 0 : index
    %c128 = arith.constant 128 : index
    %71 = vector.load %arg0[%c0_73, %c128] : memref<16x1536xbf16, #tpu.memory_space<vmem>>, vector<16x1280xbf16>
    %c0_74 = arith.constant 0 : index
    %c13 = arith.constant 13 : index
    %c0_75 = arith.constant 0 : index
    %c0_76 = arith.constant 0 : index
    %72 = vector.load %arg1[%c0_74, %c13, %c0_75, %c0_76] : memref<3x27x16x16xbf16, #tpu.memory_space<vmem>>, vector<1x1x16x16xbf16>
    %73 = vector.shape_cast %72 : vector<1x1x16x16xbf16> to vector<16x16xbf16>
    %cst_77 = arith.constant dense<0.000000e+00> : vector<16x1280xf32>
    %74 = tpu.matmul %73, %71, %cst_77 {dimension_numbers = #tpu.dot_dimension_numbers<[1], [0], [0], [1], [0, 0, 1, 1], [], []>} : vector<16x16xbf16>, vector<16x1280xbf16>, vector<16x1280xf32> -> vector<16x1280xf32>
    %75 = arith.addf %70, %74 : vector<16x1280xf32>
    %c0_78 = arith.constant 0 : index
    %c129 = arith.constant 129 : index
    %76 = vector.load %arg0[%c0_78, %c129] : memref<16x1536xbf16, #tpu.memory_space<vmem>>, vector<16x1280xbf16>
    %c0_79 = arith.constant 0 : index
    %c14 = arith.constant 14 : index
    %c0_80 = arith.constant 0 : index
    %c0_81 = arith.constant 0 : index
    %77 = vector.load %arg1[%c0_79, %c14, %c0_80, %c0_81] : memref<3x27x16x16xbf16, #tpu.memory_space<vmem>>, vector<1x1x16x16xbf16>
    %78 = vector.shape_cast %77 : vector<1x1x16x16xbf16> to vector<16x16xbf16>
    %cst_82 = arith.constant dense<0.000000e+00> : vector<16x1280xf32>
    %79 = tpu.matmul %78, %76, %cst_82 {dimension_numbers = #tpu.dot_dimension_numbers<[1], [0], [0], [1], [0, 0, 1, 1], [], []>} : vector<16x16xbf16>, vector<16x1280xbf16>, vector<16x1280xf32> -> vector<16x1280xf32>
    %80 = arith.addf %75, %79 : vector<16x1280xf32>
    %c0_83 = arith.constant 0 : index
    %c137 = arith.constant 137 : index
    %81 = vector.load %arg0[%c0_83, %c137] : memref<16x1536xbf16, #tpu.memory_space<vmem>>, vector<16x1280xbf16>
    %c0_84 = arith.constant 0 : index
    %c15 = arith.constant 15 : index
    %c0_85 = arith.constant 0 : index
    %c0_86 = arith.constant 0 : index
    %82 = vector.load %arg1[%c0_84, %c15, %c0_85, %c0_86] : memref<3x27x16x16xbf16, #tpu.memory_space<vmem>>, vector<1x1x16x16xbf16>
    %83 = vector.shape_cast %82 : vector<1x1x16x16xbf16> to vector<16x16xbf16>
    %cst_87 = arith.constant dense<0.000000e+00> : vector<16x1280xf32>
    %84 = tpu.matmul %83, %81, %cst_87 {dimension_numbers = #tpu.dot_dimension_numbers<[1], [0], [0], [1], [0, 0, 1, 1], [], []>} : vector<16x16xbf16>, vector<16x1280xbf16>, vector<16x1280xf32> -> vector<16x1280xf32>
    %85 = arith.addf %80, %84 : vector<16x1280xf32>
    %c0_88 = arith.constant 0 : index
    %c138 = arith.constant 138 : index
    %86 = vector.load %arg0[%c0_88, %c138] : memref<16x1536xbf16, #tpu.memory_space<vmem>>, vector<16x1280xbf16>
    %c0_89 = arith.constant 0 : index
    %c16 = arith.constant 16 : index
    %c0_90 = arith.constant 0 : index
    %c0_91 = arith.constant 0 : index
    %87 = vector.load %arg1[%c0_89, %c16, %c0_90, %c0_91] : memref<3x27x16x16xbf16, #tpu.memory_space<vmem>>, vector<1x1x16x16xbf16>
    %88 = vector.shape_cast %87 : vector<1x1x16x16xbf16> to vector<16x16xbf16>
    %cst_92 = arith.constant dense<0.000000e+00> : vector<16x1280xf32>
    %89 = tpu.matmul %88, %86, %cst_92 {dimension_numbers = #tpu.dot_dimension_numbers<[1], [0], [0], [1], [0, 0, 1, 1], [], []>} : vector<16x16xbf16>, vector<16x1280xbf16>, vector<16x1280xf32> -> vector<16x1280xf32>
    %90 = arith.addf %85, %89 : vector<16x1280xf32>
    %c0_93 = arith.constant 0 : index
    %c139 = arith.constant 139 : index
    %91 = vector.load %arg0[%c0_93, %c139] : memref<16x1536xbf16, #tpu.memory_space<vmem>>, vector<16x1280xbf16>
    %c0_94 = arith.constant 0 : index
    %c17_95 = arith.constant 17 : index
    %c0_96 = arith.constant 0 : index
    %c0_97 = arith.constant 0 : index
    %92 = vector.load %arg1[%c0_94, %c17_95, %c0_96, %c0_97] : memref<3x27x16x16xbf16, #tpu.memory_space<vmem>>, vector<1x1x16x16xbf16>
    %93 = vector.shape_cast %92 : vector<1x1x16x16xbf16> to vector<16x16xbf16>
    %cst_98 = arith.constant dense<0.000000e+00> : vector<16x1280xf32>
    %94 = tpu.matmul %93, %91, %cst_98 {dimension_numbers = #tpu.dot_dimension_numbers<[1], [0], [0], [1], [0, 0, 1, 1], [], []>} : vector<16x16xbf16>, vector<16x1280xbf16>, vector<16x1280xf32> -> vector<16x1280xf32>
    %95 = arith.addf %90, %94 : vector<16x1280xf32>
    %c0_99 = arith.constant 0 : index
    %c217 = arith.constant 217 : index
    %96 = vector.load %arg0[%c0_99, %c217] : memref<16x1536xbf16, #tpu.memory_space<vmem>>, vector<16x1280xbf16>
    %c0_100 = arith.constant 0 : index
    %c18_101 = arith.constant 18 : index
    %c0_102 = arith.constant 0 : index
    %c0_103 = arith.constant 0 : index
    %97 = vector.load %arg1[%c0_100, %c18_101, %c0_102, %c0_103] : memref<3x27x16x16xbf16, #tpu.memory_space<vmem>>, vector<1x1x16x16xbf16>
    %98 = vector.shape_cast %97 : vector<1x1x16x16xbf16> to vector<16x16xbf16>
    %cst_104 = arith.constant dense<0.000000e+00> : vector<16x1280xf32>
    %99 = tpu.matmul %98, %96, %cst_104 {dimension_numbers = #tpu.dot_dimension_numbers<[1], [0], [0], [1], [0, 0, 1, 1], [], []>} : vector<16x16xbf16>, vector<16x1280xbf16>, vector<16x1280xf32> -> vector<16x1280xf32>
    %100 = arith.addf %95, %99 : vector<16x1280xf32>
    %c0_105 = arith.constant 0 : index
    %c218 = arith.constant 218 : index
    %101 = vector.load %arg0[%c0_105, %c218] : memref<16x1536xbf16, #tpu.memory_space<vmem>>, vector<16x1280xbf16>
    %c0_106 = arith.constant 0 : index
    %c19_107 = arith.constant 19 : index
    %c0_108 = arith.constant 0 : index
    %c0_109 = arith.constant 0 : index
    %102 = vector.load %arg1[%c0_106, %c19_107, %c0_108, %c0_109] : memref<3x27x16x16xbf16, #tpu.memory_space<vmem>>, vector<1x1x16x16xbf16>
    %103 = vector.shape_cast %102 : vector<1x1x16x16xbf16> to vector<16x16xbf16>
    %cst_110 = arith.constant dense<0.000000e+00> : vector<16x1280xf32>
    %104 = tpu.matmul %103, %101, %cst_110 {dimension_numbers = #tpu.dot_dimension_numbers<[1], [0], [0], [1], [0, 0, 1, 1], [], []>} : vector<16x16xbf16>, vector<16x1280xbf16>, vector<16x1280xf32> -> vector<16x1280xf32>
    %105 = arith.addf %100, %104 : vector<16x1280xf32>
    %c0_111 = arith.constant 0 : index
    %c219 = arith.constant 219 : index
    %106 = vector.load %arg0[%c0_111, %c219] : memref<16x1536xbf16, #tpu.memory_space<vmem>>, vector<16x1280xbf16>
    %c0_112 = arith.constant 0 : index
    %c20 = arith.constant 20 : index
    %c0_113 = arith.constant 0 : index
    %c0_114 = arith.constant 0 : index
    %107 = vector.load %arg1[%c0_112, %c20, %c0_113, %c0_114] : memref<3x27x16x16xbf16, #tpu.memory_space<vmem>>, vector<1x1x16x16xbf16>
    %108 = vector.shape_cast %107 : vector<1x1x16x16xbf16> to vector<16x16xbf16>
    %cst_115 = arith.constant dense<0.000000e+00> : vector<16x1280xf32>
    %109 = tpu.matmul %108, %106, %cst_115 {dimension_numbers = #tpu.dot_dimension_numbers<[1], [0], [0], [1], [0, 0, 1, 1], [], []>} : vector<16x16xbf16>, vector<16x1280xbf16>, vector<16x1280xf32> -> vector<16x1280xf32>
    %110 = arith.addf %105, %109 : vector<16x1280xf32>
    %c0_116 = arith.constant 0 : index
    %c227 = arith.constant 227 : index
    %111 = vector.load %arg0[%c0_116, %c227] : memref<16x1536xbf16, #tpu.memory_space<vmem>>, vector<16x1280xbf16>
    %c0_117 = arith.constant 0 : index
    %c21 = arith.constant 21 : index
    %c0_118 = arith.constant 0 : index
    %c0_119 = arith.constant 0 : index
    %112 = vector.load %arg1[%c0_117, %c21, %c0_118, %c0_119] : memref<3x27x16x16xbf16, #tpu.memory_space<vmem>>, vector<1x1x16x16xbf16>
    %113 = vector.shape_cast %112 : vector<1x1x16x16xbf16> to vector<16x16xbf16>
    %cst_120 = arith.constant dense<0.000000e+00> : vector<16x1280xf32>
    %114 = tpu.matmul %113, %111, %cst_120 {dimension_numbers = #tpu.dot_dimension_numbers<[1], [0], [0], [1], [0, 0, 1, 1], [], []>} : vector<16x16xbf16>, vector<16x1280xbf16>, vector<16x1280xf32> -> vector<16x1280xf32>
    %115 = arith.addf %110, %114 : vector<16x1280xf32>
    %c0_121 = arith.constant 0 : index
    %c228 = arith.constant 228 : index
    %116 = vector.load %arg0[%c0_121, %c228] : memref<16x1536xbf16, #tpu.memory_space<vmem>>, vector<16x1280xbf16>
    %c0_122 = arith.constant 0 : index
    %c22 = arith.constant 22 : index
    %c0_123 = arith.constant 0 : index
    %c0_124 = arith.constant 0 : index
    %117 = vector.load %arg1[%c0_122, %c22, %c0_123, %c0_124] : memref<3x27x16x16xbf16, #tpu.memory_space<vmem>>, vector<1x1x16x16xbf16>
    %118 = vector.shape_cast %117 : vector<1x1x16x16xbf16> to vector<16x16xbf16>
    %cst_125 = arith.constant dense<0.000000e+00> : vector<16x1280xf32>
    %119 = tpu.matmul %118, %116, %cst_125 {dimension_numbers = #tpu.dot_dimension_numbers<[1], [0], [0], [1], [0, 0, 1, 1], [], []>} : vector<16x16xbf16>, vector<16x1280xbf16>, vector<16x1280xf32> -> vector<16x1280xf32>
    %120 = arith.addf %115, %119 : vector<16x1280xf32>
    %c0_126 = arith.constant 0 : index
    %c229 = arith.constant 229 : index
    %121 = vector.load %arg0[%c0_126, %c229] : memref<16x1536xbf16, #tpu.memory_space<vmem>>, vector<16x1280xbf16>
    %c0_127 = arith.constant 0 : index
    %c23 = arith.constant 23 : index
    %c0_128 = arith.constant 0 : index
    %c0_129 = arith.constant 0 : index
    %122 = vector.load %arg1[%c0_127, %c23, %c0_128, %c0_129] : memref<3x27x16x16xbf16, #tpu.memory_space<vmem>>, vector<1x1x16x16xbf16>
    %123 = vector.shape_cast %122 : vector<1x1x16x16xbf16> to vector<16x16xbf16>
    %cst_130 = arith.constant dense<0.000000e+00> : vector<16x1280xf32>
    %124 = tpu.matmul %123, %121, %cst_130 {dimension_numbers = #tpu.dot_dimension_numbers<[1], [0], [0], [1], [0, 0, 1, 1], [], []>} : vector<16x16xbf16>, vector<16x1280xbf16>, vector<16x1280xf32> -> vector<16x1280xf32>
    %125 = arith.addf %120, %124 : vector<16x1280xf32>
    %c0_131 = arith.constant 0 : index
    %c237 = arith.constant 237 : index
    %126 = vector.load %arg0[%c0_131, %c237] : memref<16x1536xbf16, #tpu.memory_space<vmem>>, vector<16x1280xbf16>
    %c0_132 = arith.constant 0 : index
    %c24 = arith.constant 24 : index
    %c0_133 = arith.constant 0 : index
    %c0_134 = arith.constant 0 : index
    %127 = vector.load %arg1[%c0_132, %c24, %c0_133, %c0_134] : memref<3x27x16x16xbf16, #tpu.memory_space<vmem>>, vector<1x1x16x16xbf16>
    %128 = vector.shape_cast %127 : vector<1x1x16x16xbf16> to vector<16x16xbf16>
    %cst_135 = arith.constant dense<0.000000e+00> : vector<16x1280xf32>
    %129 = tpu.matmul %128, %126, %cst_135 {dimension_numbers = #tpu.dot_dimension_numbers<[1], [0], [0], [1], [0, 0, 1, 1], [], []>} : vector<16x16xbf16>, vector<16x1280xbf16>, vector<16x1280xf32> -> vector<16x1280xf32>
    %130 = arith.addf %125, %129 : vector<16x1280xf32>
    %c0_136 = arith.constant 0 : index
    %c238 = arith.constant 238 : index
    %131 = vector.load %arg0[%c0_136, %c238] : memref<16x1536xbf16, #tpu.memory_space<vmem>>, vector<16x1280xbf16>
    %c0_137 = arith.constant 0 : index
    %c25 = arith.constant 25 : index
    %c0_138 = arith.constant 0 : index
    %c0_139 = arith.constant 0 : index
    %132 = vector.load %arg1[%c0_137, %c25, %c0_138, %c0_139] : memref<3x27x16x16xbf16, #tpu.memory_space<vmem>>, vector<1x1x16x16xbf16>
    %133 = vector.shape_cast %132 : vector<1x1x16x16xbf16> to vector<16x16xbf16>
    %cst_140 = arith.constant dense<0.000000e+00> : vector<16x1280xf32>
    %134 = tpu.matmul %133, %131, %cst_140 {dimension_numbers = #tpu.dot_dimension_numbers<[1], [0], [0], [1], [0, 0, 1, 1], [], []>} : vector<16x16xbf16>, vector<16x1280xbf16>, vector<16x1280xf32> -> vector<16x1280xf32>
    %135 = arith.addf %130, %134 : vector<16x1280xf32>
    %c0_141 = arith.constant 0 : index
    %c239 = arith.constant 239 : index
    %136 = vector.load %arg0[%c0_141, %c239] : memref<16x1536xbf16, #tpu.memory_space<vmem>>, vector<16x1280xbf16>
    %c0_142 = arith.constant 0 : index
    %c26 = arith.constant 26 : index
    %c0_143 = arith.constant 0 : index
    %c0_144 = arith.constant 0 : index
    %137 = vector.load %arg1[%c0_142, %c26, %c0_143, %c0_144] : memref<3x27x16x16xbf16, #tpu.memory_space<vmem>>, vector<1x1x16x16xbf16>
    %138 = vector.shape_cast %137 : vector<1x1x16x16xbf16> to vector<16x16xbf16>
    %cst_145 = arith.constant dense<0.000000e+00> : vector<16x1280xf32>
    %139 = tpu.matmul %138, %136, %cst_145 {dimension_numbers = #tpu.dot_dimension_numbers<[1], [0], [0], [1], [0, 0, 1, 1], [], []>} : vector<16x16xbf16>, vector<16x1280xbf16>, vector<16x1280xf32> -> vector<16x1280xf32>
    %140 = arith.addf %135, %139 : vector<16x1280xf32>
    %c0_146 = arith.constant 0 : index
    %c0_147 = arith.constant 0 : index
    %c0_148 = arith.constant 0 : index
    %141 = vector.load %arg2[%c0_146, %c0_147, %c0_148] : memref<3x16x1xf32, #tpu.memory_space<vmem>>, vector<1x16x1xf32>
    %142 = vector.shape_cast %141 : vector<1x16x1xf32> to vector<16x1xf32>
    %143 = vector.broadcast %142 : vector<16x1xf32> to vector<16x1280xf32>
    %144 = arith.addf %140, %143 : vector<16x1280xf32>
    %cst_149 = arith.constant 0.00999999977 : f32
    %145 = vector.broadcast %cst_149 : f32 to vector<16x1280xf32>
    %146 = arith.mulf %145, %144 : vector<16x1280xf32>
    %147 = arith.maximumf %144, %146 : vector<16x1280xf32>
    %148 = vector.broadcast %4 : vector<1x1280xf32> to vector<16x1280xf32>
    %149 = arith.mulf %147, %148 : vector<16x1280xf32>
    %150 = arith.truncf %149 : vector<16x1280xf32> to vector<16x1280xbf16>
    %c0_150 = arith.constant 0 : index
    %c128_151 = arith.constant 128 : index
    %151 = vector.load %arg5[%c0_150, %c128_151] : memref<16x1536xbf16, #tpu.memory_space<vmem>>, vector<16x1280xbf16>
    tpu.vector_store %arg5[%c0_150, %c128_151], %150 {strides = array<i32>} : memref<16x1536xbf16, #tpu.memory_space<vmem>>, vector<16x1280xbf16>,
    %cst_152 = arith.constant 0.000000e+00 : f32
    %152 = vector.broadcast %cst_152 : f32 to vector<16x1280xf32>
    %c0_153 = arith.constant 0 : index
    %c17_154 = arith.constant 17 : index
    %153 = vector.load %arg5[%c0_153, %c17_154] : memref<16x1536xbf16, #tpu.memory_space<vmem>>, vector<16x1280xbf16>
    %c1_155 = arith.constant 1 : index
    %c0_156 = arith.constant 0 : index
    %c0_157 = arith.constant 0 : index
    %c0_158 = arith.constant 0 : index
    %154 = vector.load %arg1[%c1_155, %c0_156, %c0_157, %c0_158] : memref<3x27x16x16xbf16, #tpu.memory_space<vmem>>, vector<1x1x16x16xbf16>
    %155 = vector.shape_cast %154 : vector<1x1x16x16xbf16> to vector<16x16xbf16>
    %cst_159 = arith.constant dense<0.000000e+00> : vector<16x1280xf32>
    %156 = tpu.matmul %155, %153, %cst_159 {dimension_numbers = #tpu.dot_dimension_numbers<[1], [0], [0], [1], [0, 0, 1, 1], [], []>} : vector<16x16xbf16>, vector<16x1280xbf16>, vector<16x1280xf32> -> vector<16x1280xf32>
    %157 = arith.addf %152, %156 : vector<16x1280xf32>
    %c0_160 = arith.constant 0 : index
    %c18_161 = arith.constant 18 : index
    %158 = vector.load %arg5[%c0_160, %c18_161] : memref<16x1536xbf16, #tpu.memory_space<vmem>>, vector<16x1280xbf16>
    %c1_162 = arith.constant 1 : index
    %c1_163 = arith.constant 1 : index
    %c0_164 = arith.constant 0 : index
    %c0_165 = arith.constant 0 : index
    %159 = vector.load %arg1[%c1_162, %c1_163, %c0_164, %c0_165] : memref<3x27x16x16xbf16, #tpu.memory_space<vmem>>, vector<1x1x16x16xbf16>
    %160 = vector.shape_cast %159 : vector<1x1x16x16xbf16> to vector<16x16xbf16>
    %cst_166 = arith.constant dense<0.000000e+00> : vector<16x1280xf32>
    %161 = tpu.matmul %160, %158, %cst_166 {dimension_numbers = #tpu.dot_dimension_numbers<[1], [0], [0], [1], [0, 0, 1, 1], [], []>} : vector<16x16xbf16>, vector<16x1280xbf16>, vector<16x1280xf32> -> vector<16x1280xf32>
    %162 = arith.addf %157, %161 : vector<16x1280xf32>
    %c0_167 = arith.constant 0 : index
    %c19_168 = arith.constant 19 : index
    %163 = vector.load %arg5[%c0_167, %c19_168] : memref<16x1536xbf16, #tpu.memory_space<vmem>>, vector<16x1280xbf16>
    %c1_169 = arith.constant 1 : index
    %c2_170 = arith.constant 2 : index
    %c0_171 = arith.constant 0 : index
    %c0_172 = arith.constant 0 : index
    %164 = vector.load %arg1[%c1_169, %c2_170, %c0_171, %c0_172] : memref<3x27x16x16xbf16, #tpu.memory_space<vmem>>, vector<1x1x16x16xbf16>
    %165 = vector.shape_cast %164 : vector<1x1x16x16xbf16> to vector<16x16xbf16>
    %cst_173 = arith.constant dense<0.000000e+00> : vector<16x1280xf32>
    %166 = tpu.matmul %165, %163, %cst_173 {dimension_numbers = #tpu.dot_dimension_numbers<[1], [0], [0], [1], [0, 0, 1, 1], [], []>} : vector<16x16xbf16>, vector<16x1280xbf16>, vector<16x1280xf32> -> vector<16x1280xf32>
    %167 = arith.addf %162, %166 : vector<16x1280xf32>
    %c0_174 = arith.constant 0 : index
    %c27_175 = arith.constant 27 : index
    %168 = vector.load %arg5[%c0_174, %c27_175] : memref<16x1536xbf16, #tpu.memory_space<vmem>>, vector<16x1280xbf16>
    %c1_176 = arith.constant 1 : index
    %c3_177 = arith.constant 3 : index
    %c0_178 = arith.constant 0 : index
    %c0_179 = arith.constant 0 : index
    %169 = vector.load %arg1[%c1_176, %c3_177, %c0_178, %c0_179] : memref<3x27x16x16xbf16, #tpu.memory_space<vmem>>, vector<1x1x16x16xbf16>
    %170 = vector.shape_cast %169 : vector<1x1x16x16xbf16> to vector<16x16xbf16>
    %cst_180 = arith.constant dense<0.000000e+00> : vector<16x1280xf32>
    %171 = tpu.matmul %170, %168, %cst_180 {dimension_numbers = #tpu.dot_dimension_numbers<[1], [0], [0], [1], [0, 0, 1, 1], [], []>} : vector<16x16xbf16>, vector<16x1280xbf16>, vector<16x1280xf32> -> vector<16x1280xf32>
    %172 = arith.addf %167, %171 : vector<16x1280xf32>
    %c0_181 = arith.constant 0 : index
    %c28_182 = arith.constant 28 : index
    %173 = vector.load %arg5[%c0_181, %c28_182] : memref<16x1536xbf16, #tpu.memory_space<vmem>>, vector<16x1280xbf16>
    %c1_183 = arith.constant 1 : index
    %c4_184 = arith.constant 4 : index
    %c0_185 = arith.constant 0 : index
    %c0_186 = arith.constant 0 : index
    %174 = vector.load %arg1[%c1_183, %c4_184, %c0_185, %c0_186] : memref<3x27x16x16xbf16, #tpu.memory_space<vmem>>, vector<1x1x16x16xbf16>
    %175 = vector.shape_cast %174 : vector<1x1x16x16xbf16> to vector<16x16xbf16>
    %cst_187 = arith.constant dense<0.000000e+00> : vector<16x1280xf32>
    %176 = tpu.matmul %175, %173, %cst_187 {dimension_numbers = #tpu.dot_dimension_numbers<[1], [0], [0], [1], [0, 0, 1, 1], [], []>} : vector<16x16xbf16>, vector<16x1280xbf16>, vector<16x1280xf32> -> vector<16x1280xf32>
    %177 = arith.addf %172, %176 : vector<16x1280xf32>
    %c0_188 = arith.constant 0 : index
    %c29_189 = arith.constant 29 : index
    %178 = vector.load %arg5[%c0_188, %c29_189] : memref<16x1536xbf16, #tpu.memory_space<vmem>>, vector<16x1280xbf16>
    %c1_190 = arith.constant 1 : index
    %c5_191 = arith.constant 5 : index
    %c0_192 = arith.constant 0 : index
    %c0_193 = arith.constant 0 : index
    %179 = vector.load %arg1[%c1_190, %c5_191, %c0_192, %c0_193] : memref<3x27x16x16xbf16, #tpu.memory_space<vmem>>, vector<1x1x16x16xbf16>
    %180 = vector.shape_cast %179 : vector<1x1x16x16xbf16> to vector<16x16xbf16>
    %cst_194 = arith.constant dense<0.000000e+00> : vector<16x1280xf32>
    %181 = tpu.matmul %180, %178, %cst_194 {dimension_numbers = #tpu.dot_dimension_numbers<[1], [0], [0], [1], [0, 0, 1, 1], [], []>} : vector<16x16xbf16>, vector<16x1280xbf16>, vector<16x1280xf32> -> vector<16x1280xf32>
    %182 = arith.addf %177, %181 : vector<16x1280xf32>
    %c0_195 = arith.constant 0 : index
    %c37_196 = arith.constant 37 : index
    %183 = vector.load %arg5[%c0_195, %c37_196] : memref<16x1536xbf16, #tpu.memory_space<vmem>>, vector<16x1280xbf16>
    %c1_197 = arith.constant 1 : index
    %c6_198 = arith.constant 6 : index
    %c0_199 = arith.constant 0 : index
    %c0_200 = arith.constant 0 : index
    %184 = vector.load %arg1[%c1_197, %c6_198, %c0_199, %c0_200] : memref<3x27x16x16xbf16, #tpu.memory_space<vmem>>, vector<1x1x16x16xbf16>
    %185 = vector.shape_cast %184 : vector<1x1x16x16xbf16> to vector<16x16xbf16>
    %cst_201 = arith.constant dense<0.000000e+00> : vector<16x1280xf32>
    %186 = tpu.matmul %185, %183, %cst_201 {dimension_numbers = #tpu.dot_dimension_numbers<[1], [0], [0], [1], [0, 0, 1, 1], [], []>} : vector<16x16xbf16>, vector<16x1280xbf16>, vector<16x1280xf32> -> vector<16x1280xf32>
    %187 = arith.addf %182, %186 : vector<16x1280xf32>
    %c0_202 = arith.constant 0 : index
    %c38_203 = arith.constant 38 : index
    %188 = vector.load %arg5[%c0_202, %c38_203] : memref<16x1536xbf16, #tpu.memory_space<vmem>>, vector<16x1280xbf16>
    %c1_204 = arith.constant 1 : index
    %c7_205 = arith.constant 7 : index
    %c0_206 = arith.constant 0 : index
    %c0_207 = arith.constant 0 : index
    %189 = vector.load %arg1[%c1_204, %c7_205, %c0_206, %c0_207] : memref<3x27x16x16xbf16, #tpu.memory_space<vmem>>, vector<1x1x16x16xbf16>
    %190 = vector.shape_cast %189 : vector<1x1x16x16xbf16> to vector<16x16xbf16>
    %cst_208 = arith.constant dense<0.000000e+00> : vector<16x1280xf32>
    %191 = tpu.matmul %190, %188, %cst_208 {dimension_numbers = #tpu.dot_dimension_numbers<[1], [0], [0], [1], [0, 0, 1, 1], [], []>} : vector<16x16xbf16>, vector<16x1280xbf16>, vector<16x1280xf32> -> vector<16x1280xf32>
    %192 = arith.addf %187, %191 : vector<16x1280xf32>
    %c0_209 = arith.constant 0 : index
    %c39_210 = arith.constant 39 : index
    %193 = vector.load %arg5[%c0_209, %c39_210] : memref<16x1536xbf16, #tpu.memory_space<vmem>>, vector<16x1280xbf16>
    %c1_211 = arith.constant 1 : index
    %c8_212 = arith.constant 8 : index
    %c0_213 = arith.constant 0 : index
    %c0_214 = arith.constant 0 : index
    %194 = vector.load %arg1[%c1_211, %c8_212, %c0_213, %c0_214] : memref<3x27x16x16xbf16, #tpu.memory_space<vmem>>, vector<1x1x16x16xbf16>
    %195 = vector.shape_cast %194 : vector<1x1x16x16xbf16> to vector<16x16xbf16>
    %cst_215 = arith.constant dense<0.000000e+00> : vector<16x1280xf32>
    %196 = tpu.matmul %195, %193, %cst_215 {dimension_numbers = #tpu.dot_dimension_numbers<[1], [0], [0], [1], [0, 0, 1, 1], [], []>} : vector<16x16xbf16>, vector<16x1280xbf16>, vector<16x1280xf32> -> vector<16x1280xf32>
    %197 = arith.addf %192, %196 : vector<16x1280xf32>
    %c0_216 = arith.constant 0 : index
    %c117_217 = arith.constant 117 : index
    %198 = vector.load %arg5[%c0_216, %c117_217] : memref<16x1536xbf16, #tpu.memory_space<vmem>>, vector<16x1280xbf16>
    %c1_218 = arith.constant 1 : index
    %c9_219 = arith.constant 9 : index
    %c0_220 = arith.constant 0 : index
    %c0_221 = arith.constant 0 : index
    %199 = vector.load %arg1[%c1_218, %c9_219, %c0_220, %c0_221] : memref<3x27x16x16xbf16, #tpu.memory_space<vmem>>, vector<1x1x16x16xbf16>
    %200 = vector.shape_cast %199 : vector<1x1x16x16xbf16> to vector<16x16xbf16>
    %cst_222 = arith.constant dense<0.000000e+00> : vector<16x1280xf32>
    %201 = tpu.matmul %200, %198, %cst_222 {dimension_numbers = #tpu.dot_dimension_numbers<[1], [0], [0], [1], [0, 0, 1, 1], [], []>} : vector<16x16xbf16>, vector<16x1280xbf16>, vector<16x1280xf32> -> vector<16x1280xf32>
    %202 = arith.addf %197, %201 : vector<16x1280xf32>
    %c0_223 = arith.constant 0 : index
    %c118_224 = arith.constant 118 : index
    %203 = vector.load %arg5[%c0_223, %c118_224] : memref<16x1536xbf16, #tpu.memory_space<vmem>>, vector<16x1280xbf16>
    %c1_225 = arith.constant 1 : index
    %c10_226 = arith.constant 10 : index
    %c0_227 = arith.constant 0 : index
    %c0_228 = arith.constant 0 : index
    %204 = vector.load %arg1[%c1_225, %c10_226, %c0_227, %c0_228] : memref<3x27x16x16xbf16, #tpu.memory_space<vmem>>, vector<1x1x16x16xbf16>
    %205 = vector.shape_cast %204 : vector<1x1x16x16xbf16> to vector<16x16xbf16>
    %cst_229 = arith.constant dense<0.000000e+00> : vector<16x1280xf32>
    %206 = tpu.matmul %205, %203, %cst_229 {dimension_numbers = #tpu.dot_dimension_numbers<[1], [0], [0], [1], [0, 0, 1, 1], [], []>} : vector<16x16xbf16>, vector<16x1280xbf16>, vector<16x1280xf32> -> vector<16x1280xf32>
    %207 = arith.addf %202, %206 : vector<16x1280xf32>
    %c0_230 = arith.constant 0 : index
    %c119_231 = arith.constant 119 : index
    %208 = vector.load %arg5[%c0_230, %c119_231] : memref<16x1536xbf16, #tpu.memory_space<vmem>>, vector<16x1280xbf16>
    %c1_232 = arith.constant 1 : index
    %c11_233 = arith.constant 11 : index
    %c0_234 = arith.constant 0 : index
    %c0_235 = arith.constant 0 : index
    %209 = vector.load %arg1[%c1_232, %c11_233, %c0_234, %c0_235] : memref<3x27x16x16xbf16, #tpu.memory_space<vmem>>, vector<1x1x16x16xbf16>
    %210 = vector.shape_cast %209 : vector<1x1x16x16xbf16> to vector<16x16xbf16>
    %cst_236 = arith.constant dense<0.000000e+00> : vector<16x1280xf32>
    %211 = tpu.matmul %210, %208, %cst_236 {dimension_numbers = #tpu.dot_dimension_numbers<[1], [0], [0], [1], [0, 0, 1, 1], [], []>} : vector<16x16xbf16>, vector<16x1280xbf16>, vector<16x1280xf32> -> vector<16x1280xf32>
    %212 = arith.addf %207, %211 : vector<16x1280xf32>
    %c0_237 = arith.constant 0 : index
    %c127_238 = arith.constant 127 : index
    %213 = vector.load %arg5[%c0_237, %c127_238] : memref<16x1536xbf16, #tpu.memory_space<vmem>>, vector<16x1280xbf16>
    %c1_239 = arith.constant 1 : index
    %c12_240 = arith.constant 12 : index
    %c0_241 = arith.constant 0 : index
    %c0_242 = arith.constant 0 : index
    %214 = vector.load %arg1[%c1_239, %c12_240, %c0_241, %c0_242] : memref<3x27x16x16xbf16, #tpu.memory_space<vmem>>, vector<1x1x16x16xbf16>
    %215 = vector.shape_cast %214 : vector<1x1x16x16xbf16> to vector<16x16xbf16>
    %cst_243 = arith.constant dense<0.000000e+00> : vector<16x1280xf32>
    %216 = tpu.matmul %215, %213, %cst_243 {dimension_numbers = #tpu.dot_dimension_numbers<[1], [0], [0], [1], [0, 0, 1, 1], [], []>} : vector<16x16xbf16>, vector<16x1280xbf16>, vector<16x1280xf32> -> vector<16x1280xf32>
    %217 = arith.addf %212, %216 : vector<16x1280xf32>
    %c0_244 = arith.constant 0 : index
    %c128_245 = arith.constant 128 : index
    %218 = vector.load %arg5[%c0_244, %c128_245] : memref<16x1536xbf16, #tpu.memory_space<vmem>>, vector<16x1280xbf16>
    %c1_246 = arith.constant 1 : index
    %c13_247 = arith.constant 13 : index
    %c0_248 = arith.constant 0 : index
    %c0_249 = arith.constant 0 : index
    %219 = vector.load %arg1[%c1_246, %c13_247, %c0_248, %c0_249] : memref<3x27x16x16xbf16, #tpu.memory_space<vmem>>, vector<1x1x16x16xbf16>
    %220 = vector.shape_cast %219 : vector<1x1x16x16xbf16> to vector<16x16xbf16>
    %cst_250 = arith.constant dense<0.000000e+00> : vector<16x1280xf32>
    %221 = tpu.matmul %220, %218, %cst_250 {dimension_numbers = #tpu.dot_dimension_numbers<[1], [0], [0], [1], [0, 0, 1, 1], [], []>} : vector<16x16xbf16>, vector<16x1280xbf16>, vector<16x1280xf32> -> vector<16x1280xf32>
    %222 = arith.addf %217, %221 : vector<16x1280xf32>
    %c0_251 = arith.constant 0 : index
    %c129_252 = arith.constant 129 : index
    %223 = vector.load %arg5[%c0_251, %c129_252] : memref<16x1536xbf16, #tpu.memory_space<vmem>>, vector<16x1280xbf16>
    %c1_253 = arith.constant 1 : index
    %c14_254 = arith.constant 14 : index
    %c0_255 = arith.constant 0 : index
    %c0_256 = arith.constant 0 : index
    %224 = vector.load %arg1[%c1_253, %c14_254, %c0_255, %c0_256] : memref<3x27x16x16xbf16, #tpu.memory_space<vmem>>, vector<1x1x16x16xbf16>
    %225 = vector.shape_cast %224 : vector<1x1x16x16xbf16> to vector<16x16xbf16>
    %cst_257 = arith.constant dense<0.000000e+00> : vector<16x1280xf32>
    %226 = tpu.matmul %225, %223, %cst_257 {dimension_numbers = #tpu.dot_dimension_numbers<[1], [0], [0], [1], [0, 0, 1, 1], [], []>} : vector<16x16xbf16>, vector<16x1280xbf16>, vector<16x1280xf32> -> vector<16x1280xf32>
    %227 = arith.addf %222, %226 : vector<16x1280xf32>
    %c0_258 = arith.constant 0 : index
    %c137_259 = arith.constant 137 : index
    %228 = vector.load %arg5[%c0_258, %c137_259] : memref<16x1536xbf16, #tpu.memory_space<vmem>>, vector<16x1280xbf16>
    %c1_260 = arith.constant 1 : index
    %c15_261 = arith.constant 15 : index
    %c0_262 = arith.constant 0 : index
    %c0_263 = arith.constant 0 : index
    %229 = vector.load %arg1[%c1_260, %c15_261, %c0_262, %c0_263] : memref<3x27x16x16xbf16, #tpu.memory_space<vmem>>, vector<1x1x16x16xbf16>
    %230 = vector.shape_cast %229 : vector<1x1x16x16xbf16> to vector<16x16xbf16>
    %cst_264 = arith.constant dense<0.000000e+00> : vector<16x1280xf32>
    %231 = tpu.matmul %230, %228, %cst_264 {dimension_numbers = #tpu.dot_dimension_numbers<[1], [0], [0], [1], [0, 0, 1, 1], [], []>} : vector<16x16xbf16>, vector<16x1280xbf16>, vector<16x1280xf32> -> vector<16x1280xf32>
    %232 = arith.addf %227, %231 : vector<16x1280xf32>
    %c0_265 = arith.constant 0 : index
    %c138_266 = arith.constant 138 : index
    %233 = vector.load %arg5[%c0_265, %c138_266] : memref<16x1536xbf16, #tpu.memory_space<vmem>>, vector<16x1280xbf16>
    %c1_267 = arith.constant 1 : index
    %c16_268 = arith.constant 16 : index
    %c0_269 = arith.constant 0 : index
    %c0_270 = arith.constant 0 : index
    %234 = vector.load %arg1[%c1_267, %c16_268, %c0_269, %c0_270] : memref<3x27x16x16xbf16, #tpu.memory_space<vmem>>, vector<1x1x16x16xbf16>
    %235 = vector.shape_cast %234 : vector<1x1x16x16xbf16> to vector<16x16xbf16>
    %cst_271 = arith.constant dense<0.000000e+00> : vector<16x1280xf32>
    %236 = tpu.matmul %235, %233, %cst_271 {dimension_numbers = #tpu.dot_dimension_numbers<[1], [0], [0], [1], [0, 0, 1, 1], [], []>} : vector<16x16xbf16>, vector<16x1280xbf16>, vector<16x1280xf32> -> vector<16x1280xf32>
    %237 = arith.addf %232, %236 : vector<16x1280xf32>
    %c0_272 = arith.constant 0 : index
    %c139_273 = arith.constant 139 : index
    %238 = vector.load %arg5[%c0_272, %c139_273] : memref<16x1536xbf16, #tpu.memory_space<vmem>>, vector<16x1280xbf16>
    %c1_274 = arith.constant 1 : index
    %c17_275 = arith.constant 17 : index
    %c0_276 = arith.constant 0 : index
    %c0_277 = arith.constant 0 : index
    %239 = vector.load %arg1[%c1_274, %c17_275, %c0_276, %c0_277] : memref<3x27x16x16xbf16, #tpu.memory_space<vmem>>, vector<1x1x16x16xbf16>
    %240 = vector.shape_cast %239 : vector<1x1x16x16xbf16> to vector<16x16xbf16>
    %cst_278 = arith.constant dense<0.000000e+00> : vector<16x1280xf32>
    %241 = tpu.matmul %240, %238, %cst_278 {dimension_numbers = #tpu.dot_dimension_numbers<[1], [0], [0], [1], [0, 0, 1, 1], [], []>} : vector<16x16xbf16>, vector<16x1280xbf16>, vector<16x1280xf32> -> vector<16x1280xf32>
    %242 = arith.addf %237, %241 : vector<16x1280xf32>
    %c0_279 = arith.constant 0 : index
    %c217_280 = arith.constant 217 : index
    %243 = vector.load %arg5[%c0_279, %c217_280] : memref<16x1536xbf16, #tpu.memory_space<vmem>>, vector<16x1280xbf16>
    %c1_281 = arith.constant 1 : index
    %c18_282 = arith.constant 18 : index
    %c0_283 = arith.constant 0 : index
    %c0_284 = arith.constant 0 : index
    %244 = vector.load %arg1[%c1_281, %c18_282, %c0_283, %c0_284] : memref<3x27x16x16xbf16, #tpu.memory_space<vmem>>, vector<1x1x16x16xbf16>
    %245 = vector.shape_cast %244 : vector<1x1x16x16xbf16> to vector<16x16xbf16>
    %cst_285 = arith.constant dense<0.000000e+00> : vector<16x1280xf32>
    %246 = tpu.matmul %245, %243, %cst_285 {dimension_numbers = #tpu.dot_dimension_numbers<[1], [0], [0], [1], [0, 0, 1, 1], [], []>} : vector<16x16xbf16>, vector<16x1280xbf16>, vector<16x1280xf32> -> vector<16x1280xf32>
    %247 = arith.addf %242, %246 : vector<16x1280xf32>
    %c0_286 = arith.constant 0 : index
    %c218_287 = arith.constant 218 : index
    %248 = vector.load %arg5[%c0_286, %c218_287] : memref<16x1536xbf16, #tpu.memory_space<vmem>>, vector<16x1280xbf16>
    %c1_288 = arith.constant 1 : index
    %c19_289 = arith.constant 19 : index
    %c0_290 = arith.constant 0 : index
    %c0_291 = arith.constant 0 : index
    %249 = vector.load %arg1[%c1_288, %c19_289, %c0_290, %c0_291] : memref<3x27x16x16xbf16, #tpu.memory_space<vmem>>, vector<1x1x16x16xbf16>
    %250 = vector.shape_cast %249 : vector<1x1x16x16xbf16> to vector<16x16xbf16>
    %cst_292 = arith.constant dense<0.000000e+00> : vector<16x1280xf32>
    %251 = tpu.matmul %250, %248, %cst_292 {dimension_numbers = #tpu.dot_dimension_numbers<[1], [0], [0], [1], [0, 0, 1, 1], [], []>} : vector<16x16xbf16>, vector<16x1280xbf16>, vector<16x1280xf32> -> vector<16x1280xf32>
    %252 = arith.addf %247, %251 : vector<16x1280xf32>
    %c0_293 = arith.constant 0 : index
    %c219_294 = arith.constant 219 : index
    %253 = vector.load %arg5[%c0_293, %c219_294] : memref<16x1536xbf16, #tpu.memory_space<vmem>>, vector<16x1280xbf16>
    %c1_295 = arith.constant 1 : index
    %c20_296 = arith.constant 20 : index
    %c0_297 = arith.constant 0 : index
    %c0_298 = arith.constant 0 : index
    %254 = vector.load %arg1[%c1_295, %c20_296, %c0_297, %c0_298] : memref<3x27x16x16xbf16, #tpu.memory_space<vmem>>, vector<1x1x16x16xbf16>
    %255 = vector.shape_cast %254 : vector<1x1x16x16xbf16> to vector<16x16xbf16>
    %cst_299 = arith.constant dense<0.000000e+00> : vector<16x1280xf32>
    %256 = tpu.matmul %255, %253, %cst_299 {dimension_numbers = #tpu.dot_dimension_numbers<[1], [0], [0], [1], [0, 0, 1, 1], [], []>} : vector<16x16xbf16>, vector<16x1280xbf16>, vector<16x1280xf32> -> vector<16x1280xf32>
    %257 = arith.addf %252, %256 : vector<16x1280xf32>
    %c0_300 = arith.constant 0 : index
    %c227_301 = arith.constant 227 : index
    %258 = vector.load %arg5[%c0_300, %c227_301] : memref<16x1536xbf16, #tpu.memory_space<vmem>>, vector<16x1280xbf16>
    %c1_302 = arith.constant 1 : index
    %c21_303 = arith.constant 21 : index
    %c0_304 = arith.constant 0 : index
    %c0_305 = arith.constant 0 : index
    %259 = vector.load %arg1[%c1_302, %c21_303, %c0_304, %c0_305] : memref<3x27x16x16xbf16, #tpu.memory_space<vmem>>, vector<1x1x16x16xbf16>
    %260 = vector.shape_cast %259 : vector<1x1x16x16xbf16> to vector<16x16xbf16>
    %cst_306 = arith.constant dense<0.000000e+00> : vector<16x1280xf32>
    %261 = tpu.matmul %260, %258, %cst_306 {dimension_numbers = #tpu.dot_dimension_numbers<[1], [0], [0], [1], [0, 0, 1, 1], [], []>} : vector<16x16xbf16>, vector<16x1280xbf16>, vector<16x1280xf32> -> vector<16x1280xf32>
    %262 = arith.addf %257, %261 : vector<16x1280xf32>
    %c0_307 = arith.constant 0 : index
    %c228_308 = arith.constant 228 : index
    %263 = vector.load %arg5[%c0_307, %c228_308] : memref<16x1536xbf16, #tpu.memory_space<vmem>>, vector<16x1280xbf16>
    %c1_309 = arith.constant 1 : index
    %c22_310 = arith.constant 22 : index
    %c0_311 = arith.constant 0 : index
    %c0_312 = arith.constant 0 : index
    %264 = vector.load %arg1[%c1_309, %c22_310, %c0_311, %c0_312] : memref<3x27x16x16xbf16, #tpu.memory_space<vmem>>, vector<1x1x16x16xbf16>
    %265 = vector.shape_cast %264 : vector<1x1x16x16xbf16> to vector<16x16xbf16>
    %cst_313 = arith.constant dense<0.000000e+00> : vector<16x1280xf32>
    %266 = tpu.matmul %265, %263, %cst_313 {dimension_numbers = #tpu.dot_dimension_numbers<[1], [0], [0], [1], [0, 0, 1, 1], [], []>} : vector<16x16xbf16>, vector<16x1280xbf16>, vector<16x1280xf32> -> vector<16x1280xf32>
    %267 = arith.addf %262, %266 : vector<16x1280xf32>
    %c0_314 = arith.constant 0 : index
    %c229_315 = arith.constant 229 : index
    %268 = vector.load %arg5[%c0_314, %c229_315] : memref<16x1536xbf16, #tpu.memory_space<vmem>>, vector<16x1280xbf16>
    %c1_316 = arith.constant 1 : index
    %c23_317 = arith.constant 23 : index
    %c0_318 = arith.constant 0 : index
    %c0_319 = arith.constant 0 : index
    %269 = vector.load %arg1[%c1_316, %c23_317, %c0_318, %c0_319] : memref<3x27x16x16xbf16, #tpu.memory_space<vmem>>, vector<1x1x16x16xbf16>
    %270 = vector.shape_cast %269 : vector<1x1x16x16xbf16> to vector<16x16xbf16>
    %cst_320 = arith.constant dense<0.000000e+00> : vector<16x1280xf32>
    %271 = tpu.matmul %270, %268, %cst_320 {dimension_numbers = #tpu.dot_dimension_numbers<[1], [0], [0], [1], [0, 0, 1, 1], [], []>} : vector<16x16xbf16>, vector<16x1280xbf16>, vector<16x1280xf32> -> vector<16x1280xf32>
    %272 = arith.addf %267, %271 : vector<16x1280xf32>
    %c0_321 = arith.constant 0 : index
    %c237_322 = arith.constant 237 : index
    %273 = vector.load %arg5[%c0_321, %c237_322] : memref<16x1536xbf16, #tpu.memory_space<vmem>>, vector<16x1280xbf16>
    %c1_323 = arith.constant 1 : index
    %c24_324 = arith.constant 24 : index
    %c0_325 = arith.constant 0 : index
    %c0_326 = arith.constant 0 : index
    %274 = vector.load %arg1[%c1_323, %c24_324, %c0_325, %c0_326] : memref<3x27x16x16xbf16, #tpu.memory_space<vmem>>, vector<1x1x16x16xbf16>
    %275 = vector.shape_cast %274 : vector<1x1x16x16xbf16> to vector<16x16xbf16>
    %cst_327 = arith.constant dense<0.000000e+00> : vector<16x1280xf32>
    %276 = tpu.matmul %275, %273, %cst_327 {dimension_numbers = #tpu.dot_dimension_numbers<[1], [0], [0], [1], [0, 0, 1, 1], [], []>} : vector<16x16xbf16>, vector<16x1280xbf16>, vector<16x1280xf32> -> vector<16x1280xf32>
    %277 = arith.addf %272, %276 : vector<16x1280xf32>
    %c0_328 = arith.constant 0 : index
    %c238_329 = arith.constant 238 : index
    %278 = vector.load %arg5[%c0_328, %c238_329] : memref<16x1536xbf16, #tpu.memory_space<vmem>>, vector<16x1280xbf16>
    %c1_330 = arith.constant 1 : index
    %c25_331 = arith.constant 25 : index
    %c0_332 = arith.constant 0 : index
    %c0_333 = arith.constant 0 : index
    %279 = vector.load %arg1[%c1_330, %c25_331, %c0_332, %c0_333] : memref<3x27x16x16xbf16, #tpu.memory_space<vmem>>, vector<1x1x16x16xbf16>
    %280 = vector.shape_cast %279 : vector<1x1x16x16xbf16> to vector<16x16xbf16>
    %cst_334 = arith.constant dense<0.000000e+00> : vector<16x1280xf32>
    %281 = tpu.matmul %280, %278, %cst_334 {dimension_numbers = #tpu.dot_dimension_numbers<[1], [0], [0], [1], [0, 0, 1, 1], [], []>} : vector<16x16xbf16>, vector<16x1280xbf16>, vector<16x1280xf32> -> vector<16x1280xf32>
    %282 = arith.addf %277, %281 : vector<16x1280xf32>
    %c0_335 = arith.constant 0 : index
    %c239_336 = arith.constant 239 : index
    %283 = vector.load %arg5[%c0_335, %c239_336] : memref<16x1536xbf16, #tpu.memory_space<vmem>>, vector<16x1280xbf16>
    %c1_337 = arith.constant 1 : index
    %c26_338 = arith.constant 26 : index
    %c0_339 = arith.constant 0 : index
    %c0_340 = arith.constant 0 : index
    %284 = vector.load %arg1[%c1_337, %c26_338, %c0_339, %c0_340] : memref<3x27x16x16xbf16, #tpu.memory_space<vmem>>, vector<1x1x16x16xbf16>
    %285 = vector.shape_cast %284 : vector<1x1x16x16xbf16> to vector<16x16xbf16>
    %cst_341 = arith.constant dense<0.000000e+00> : vector<16x1280xf32>
    %286 = tpu.matmul %285, %283, %cst_341 {dimension_numbers = #tpu.dot_dimension_numbers<[1], [0], [0], [1], [0, 0, 1, 1], [], []>} : vector<16x16xbf16>, vector<16x1280xbf16>, vector<16x1280xf32> -> vector<16x1280xf32>
    %287 = arith.addf %282, %286 : vector<16x1280xf32>
    %c1_342 = arith.constant 1 : index
    %c0_343 = arith.constant 0 : index
    %c0_344 = arith.constant 0 : index
    %288 = vector.load %arg2[%c1_342, %c0_343, %c0_344] : memref<3x16x1xf32, #tpu.memory_space<vmem>>, vector<1x16x1xf32>
    %289 = vector.shape_cast %288 : vector<1x16x1xf32> to vector<16x1xf32>
    %290 = vector.broadcast %289 : vector<16x1xf32> to vector<16x1280xf32>
    %291 = arith.addf %287, %290 : vector<16x1280xf32>
    %cst_345 = arith.constant 0.00999999977 : f32
    %292 = vector.broadcast %cst_345 : f32 to vector<16x1280xf32>
    %293 = arith.mulf %292, %291 : vector<16x1280xf32>
    %294 = arith.maximumf %291, %293 : vector<16x1280xf32>
    %295 = vector.broadcast %4 : vector<1x1280xf32> to vector<16x1280xf32>
    %296 = arith.mulf %294, %295 : vector<16x1280xf32>
    %297 = arith.truncf %296 : vector<16x1280xf32> to vector<16x1280xbf16>
    %c0_346 = arith.constant 0 : index
    %c128_347 = arith.constant 128 : index
    %298 = vector.load %arg6[%c0_346, %c128_347] : memref<16x1536xbf16, #tpu.memory_space<vmem>>, vector<16x1280xbf16>
    tpu.vector_store %arg6[%c0_346, %c128_347], %297 {strides = array<i32>} : memref<16x1536xbf16, #tpu.memory_space<vmem>>, vector<16x1280xbf16>,
    %cst_348 = arith.constant 0.000000e+00 : f32
    %299 = vector.broadcast %cst_348 : f32 to vector<16x1280xf32>
    %c0_349 = arith.constant 0 : index
    %c17_350 = arith.constant 17 : index
    %300 = vector.load %arg6[%c0_349, %c17_350] : memref<16x1536xbf16, #tpu.memory_space<vmem>>, vector<16x1280xbf16>
    %c2_351 = arith.constant 2 : index
    %c0_352 = arith.constant 0 : index
    %c0_353 = arith.constant 0 : index
    %c0_354 = arith.constant 0 : index
    %301 = vector.load %arg1[%c2_351, %c0_352, %c0_353, %c0_354] : memref<3x27x16x16xbf16, #tpu.memory_space<vmem>>, vector<1x1x16x16xbf16>
    %302 = vector.shape_cast %301 : vector<1x1x16x16xbf16> to vector<16x16xbf16>
    %cst_355 = arith.constant dense<0.000000e+00> : vector<16x1280xf32>
    %303 = tpu.matmul %302, %300, %cst_355 {dimension_numbers = #tpu.dot_dimension_numbers<[1], [0], [0], [1], [0, 0, 1, 1], [], []>} : vector<16x16xbf16>, vector<16x1280xbf16>, vector<16x1280xf32> -> vector<16x1280xf32>
    %304 = arith.addf %299, %303 : vector<16x1280xf32>
    %c0_356 = arith.constant 0 : index
    %c18_357 = arith.constant 18 : index
    %305 = vector.load %arg6[%c0_356, %c18_357] : memref<16x1536xbf16, #tpu.memory_space<vmem>>, vector<16x1280xbf16>
    %c2_358 = arith.constant 2 : index
    %c1_359 = arith.constant 1 : index
    %c0_360 = arith.constant 0 : index
    %c0_361 = arith.constant 0 : index
    %306 = vector.load %arg1[%c2_358, %c1_359, %c0_360, %c0_361] : memref<3x27x16x16xbf16, #tpu.memory_space<vmem>>, vector<1x1x16x16xbf16>
    %307 = vector.shape_cast %306 : vector<1x1x16x16xbf16> to vector<16x16xbf16>
    %cst_362 = arith.constant dense<0.000000e+00> : vector<16x1280xf32>
    %308 = tpu.matmul %307, %305, %cst_362 {dimension_numbers = #tpu.dot_dimension_numbers<[1], [0], [0], [1], [0, 0, 1, 1], [], []>} : vector<16x16xbf16>, vector<16x1280xbf16>, vector<16x1280xf32> -> vector<16x1280xf32>
    %309 = arith.addf %304, %308 : vector<16x1280xf32>
    %c0_363 = arith.constant 0 : index
    %c19_364 = arith.constant 19 : index
    %310 = vector.load %arg6[%c0_363, %c19_364] : memref<16x1536xbf16, #tpu.memory_space<vmem>>, vector<16x1280xbf16>
    %c2_365 = arith.constant 2 : index
    %c2_366 = arith.constant 2 : index
    %c0_367 = arith.constant 0 : index
    %c0_368 = arith.constant 0 : index
    %311 = vector.load %arg1[%c2_365, %c2_366, %c0_367, %c0_368] : memref<3x27x16x16xbf16, #tpu.memory_space<vmem>>, vector<1x1x16x16xbf16>
    %312 = vector.shape_cast %311 : vector<1x1x16x16xbf16> to vector<16x16xbf16>
    %cst_369 = arith.constant dense<0.000000e+00> : vector<16x1280xf32>
    %313 = tpu.matmul %312, %310, %cst_369 {dimension_numbers = #tpu.dot_dimension_numbers<[1], [0], [0], [1], [0, 0, 1, 1], [], []>} : vector<16x16xbf16>, vector<16x1280xbf16>, vector<16x1280xf32> -> vector<16x1280xf32>
    %314 = arith.addf %309, %313 : vector<16x1280xf32>
    %c0_370 = arith.constant 0 : index
    %c27_371 = arith.constant 27 : index
    %315 = vector.load %arg6[%c0_370, %c27_371] : memref<16x1536xbf16, #tpu.memory_space<vmem>>, vector<16x1280xbf16>
    %c2_372 = arith.constant 2 : index
    %c3_373 = arith.constant 3 : index
    %c0_374 = arith.constant 0 : index
    %c0_375 = arith.constant 0 : index
    %316 = vector.load %arg1[%c2_372, %c3_373, %c0_374, %c0_375] : memref<3x27x16x16xbf16, #tpu.memory_space<vmem>>, vector<1x1x16x16xbf16>
    %317 = vector.shape_cast %316 : vector<1x1x16x16xbf16> to vector<16x16xbf16>
    %cst_376 = arith.constant dense<0.000000e+00> : vector<16x1280xf32>
    %318 = tpu.matmul %317, %315, %cst_376 {dimension_numbers = #tpu.dot_dimension_numbers<[1], [0], [0], [1], [0, 0, 1, 1], [], []>} : vector<16x16xbf16>, vector<16x1280xbf16>, vector<16x1280xf32> -> vector<16x1280xf32>
    %319 = arith.addf %314, %318 : vector<16x1280xf32>
    %c0_377 = arith.constant 0 : index
    %c28_378 = arith.constant 28 : index
    %320 = vector.load %arg6[%c0_377, %c28_378] : memref<16x1536xbf16, #tpu.memory_space<vmem>>, vector<16x1280xbf16>
    %c2_379 = arith.constant 2 : index
    %c4_380 = arith.constant 4 : index
    %c0_381 = arith.constant 0 : index
    %c0_382 = arith.constant 0 : index
    %321 = vector.load %arg1[%c2_379, %c4_380, %c0_381, %c0_382] : memref<3x27x16x16xbf16, #tpu.memory_space<vmem>>, vector<1x1x16x16xbf16>
    %322 = vector.shape_cast %321 : vector<1x1x16x16xbf16> to vector<16x16xbf16>
    %cst_383 = arith.constant dense<0.000000e+00> : vector<16x1280xf32>
    %323 = tpu.matmul %322, %320, %cst_383 {dimension_numbers = #tpu.dot_dimension_numbers<[1], [0], [0], [1], [0, 0, 1, 1], [], []>} : vector<16x16xbf16>, vector<16x1280xbf16>, vector<16x1280xf32> -> vector<16x1280xf32>
    %324 = arith.addf %319, %323 : vector<16x1280xf32>
    %c0_384 = arith.constant 0 : index
    %c29_385 = arith.constant 29 : index
    %325 = vector.load %arg6[%c0_384, %c29_385] : memref<16x1536xbf16, #tpu.memory_space<vmem>>, vector<16x1280xbf16>
    %c2_386 = arith.constant 2 : index
    %c5_387 = arith.constant 5 : index
    %c0_388 = arith.constant 0 : index
    %c0_389 = arith.constant 0 : index
    %326 = vector.load %arg1[%c2_386, %c5_387, %c0_388, %c0_389] : memref<3x27x16x16xbf16, #tpu.memory_space<vmem>>, vector<1x1x16x16xbf16>
    %327 = vector.shape_cast %326 : vector<1x1x16x16xbf16> to vector<16x16xbf16>
    %cst_390 = arith.constant dense<0.000000e+00> : vector<16x1280xf32>
    %328 = tpu.matmul %327, %325, %cst_390 {dimension_numbers = #tpu.dot_dimension_numbers<[1], [0], [0], [1], [0, 0, 1, 1], [], []>} : vector<16x16xbf16>, vector<16x1280xbf16>, vector<16x1280xf32> -> vector<16x1280xf32>
    %329 = arith.addf %324, %328 : vector<16x1280xf32>
    %c0_391 = arith.constant 0 : index
    %c37_392 = arith.constant 37 : index
    %330 = vector.load %arg6[%c0_391, %c37_392] : memref<16x1536xbf16, #tpu.memory_space<vmem>>, vector<16x1280xbf16>
    %c2_393 = arith.constant 2 : index
    %c6_394 = arith.constant 6 : index
    %c0_395 = arith.constant 0 : index
    %c0_396 = arith.constant 0 : index
    %331 = vector.load %arg1[%c2_393, %c6_394, %c0_395, %c0_396] : memref<3x27x16x16xbf16, #tpu.memory_space<vmem>>, vector<1x1x16x16xbf16>
    %332 = vector.shape_cast %331 : vector<1x1x16x16xbf16> to vector<16x16xbf16>
    %cst_397 = arith.constant dense<0.000000e+00> : vector<16x1280xf32>
    %333 = tpu.matmul %332, %330, %cst_397 {dimension_numbers = #tpu.dot_dimension_numbers<[1], [0], [0], [1], [0, 0, 1, 1], [], []>} : vector<16x16xbf16>, vector<16x1280xbf16>, vector<16x1280xf32> -> vector<16x1280xf32>
    %334 = arith.addf %329, %333 : vector<16x1280xf32>
    %c0_398 = arith.constant 0 : index
    %c38_399 = arith.constant 38 : index
    %335 = vector.load %arg6[%c0_398, %c38_399] : memref<16x1536xbf16, #tpu.memory_space<vmem>>, vector<16x1280xbf16>
    %c2_400 = arith.constant 2 : index
    %c7_401 = arith.constant 7 : index
    %c0_402 = arith.constant 0 : index
    %c0_403 = arith.constant 0 : index
    %336 = vector.load %arg1[%c2_400, %c7_401, %c0_402, %c0_403] : memref<3x27x16x16xbf16, #tpu.memory_space<vmem>>, vector<1x1x16x16xbf16>
    %337 = vector.shape_cast %336 : vector<1x1x16x16xbf16> to vector<16x16xbf16>
    %cst_404 = arith.constant dense<0.000000e+00> : vector<16x1280xf32>
    %338 = tpu.matmul %337, %335, %cst_404 {dimension_numbers = #tpu.dot_dimension_numbers<[1], [0], [0], [1], [0, 0, 1, 1], [], []>} : vector<16x16xbf16>, vector<16x1280xbf16>, vector<16x1280xf32> -> vector<16x1280xf32>
    %339 = arith.addf %334, %338 : vector<16x1280xf32>
    %c0_405 = arith.constant 0 : index
    %c39_406 = arith.constant 39 : index
    %340 = vector.load %arg6[%c0_405, %c39_406] : memref<16x1536xbf16, #tpu.memory_space<vmem>>, vector<16x1280xbf16>
    %c2_407 = arith.constant 2 : index
    %c8_408 = arith.constant 8 : index
    %c0_409 = arith.constant 0 : index
    %c0_410 = arith.constant 0 : index
    %341 = vector.load %arg1[%c2_407, %c8_408, %c0_409, %c0_410] : memref<3x27x16x16xbf16, #tpu.memory_space<vmem>>, vector<1x1x16x16xbf16>
    %342 = vector.shape_cast %341 : vector<1x1x16x16xbf16> to vector<16x16xbf16>
    %cst_411 = arith.constant dense<0.000000e+00> : vector<16x1280xf32>
    %343 = tpu.matmul %342, %340, %cst_411 {dimension_numbers = #tpu.dot_dimension_numbers<[1], [0], [0], [1], [0, 0, 1, 1], [], []>} : vector<16x16xbf16>, vector<16x1280xbf16>, vector<16x1280xf32> -> vector<16x1280xf32>
    %344 = arith.addf %339, %343 : vector<16x1280xf32>
    %c0_412 = arith.constant 0 : index
    %c117_413 = arith.constant 117 : index
    %345 = vector.load %arg6[%c0_412, %c117_413] : memref<16x1536xbf16, #tpu.memory_space<vmem>>, vector<16x1280xbf16>
    %c2_414 = arith.constant 2 : index
    %c9_415 = arith.constant 9 : index
    %c0_416 = arith.constant 0 : index
    %c0_417 = arith.constant 0 : index
    %346 = vector.load %arg1[%c2_414, %c9_415, %c0_416, %c0_417] : memref<3x27x16x16xbf16, #tpu.memory_space<vmem>>, vector<1x1x16x16xbf16>
    %347 = vector.shape_cast %346 : vector<1x1x16x16xbf16> to vector<16x16xbf16>
    %cst_418 = arith.constant dense<0.000000e+00> : vector<16x1280xf32>
    %348 = tpu.matmul %347, %345, %cst_418 {dimension_numbers = #tpu.dot_dimension_numbers<[1], [0], [0], [1], [0, 0, 1, 1], [], []>} : vector<16x16xbf16>, vector<16x1280xbf16>, vector<16x1280xf32> -> vector<16x1280xf32>
    %349 = arith.addf %344, %348 : vector<16x1280xf32>
    %c0_419 = arith.constant 0 : index
    %c118_420 = arith.constant 118 : index
    %350 = vector.load %arg6[%c0_419, %c118_420] : memref<16x1536xbf16, #tpu.memory_space<vmem>>, vector<16x1280xbf16>
    %c2_421 = arith.constant 2 : index
    %c10_422 = arith.constant 10 : index
    %c0_423 = arith.constant 0 : index
    %c0_424 = arith.constant 0 : index
    %351 = vector.load %arg1[%c2_421, %c10_422, %c0_423, %c0_424] : memref<3x27x16x16xbf16, #tpu.memory_space<vmem>>, vector<1x1x16x16xbf16>
    %352 = vector.shape_cast %351 : vector<1x1x16x16xbf16> to vector<16x16xbf16>
    %cst_425 = arith.constant dense<0.000000e+00> : vector<16x1280xf32>
    %353 = tpu.matmul %352, %350, %cst_425 {dimension_numbers = #tpu.dot_dimension_numbers<[1], [0], [0], [1], [0, 0, 1, 1], [], []>} : vector<16x16xbf16>, vector<16x1280xbf16>, vector<16x1280xf32> -> vector<16x1280xf32>
    %354 = arith.addf %349, %353 : vector<16x1280xf32>
    %c0_426 = arith.constant 0 : index
    %c119_427 = arith.constant 119 : index
    %355 = vector.load %arg6[%c0_426, %c119_427] : memref<16x1536xbf16, #tpu.memory_space<vmem>>, vector<16x1280xbf16>
    %c2_428 = arith.constant 2 : index
    %c11_429 = arith.constant 11 : index
    %c0_430 = arith.constant 0 : index
    %c0_431 = arith.constant 0 : index
    %356 = vector.load %arg1[%c2_428, %c11_429, %c0_430, %c0_431] : memref<3x27x16x16xbf16, #tpu.memory_space<vmem>>, vector<1x1x16x16xbf16>
    %357 = vector.shape_cast %356 : vector<1x1x16x16xbf16> to vector<16x16xbf16>
    %cst_432 = arith.constant dense<0.000000e+00> : vector<16x1280xf32>
    %358 = tpu.matmul %357, %355, %cst_432 {dimension_numbers = #tpu.dot_dimension_numbers<[1], [0], [0], [1], [0, 0, 1, 1], [], []>} : vector<16x16xbf16>, vector<16x1280xbf16>, vector<16x1280xf32> -> vector<16x1280xf32>
    %359 = arith.addf %354, %358 : vector<16x1280xf32>
    %c0_433 = arith.constant 0 : index
    %c127_434 = arith.constant 127 : index
    %360 = vector.load %arg6[%c0_433, %c127_434] : memref<16x1536xbf16, #tpu.memory_space<vmem>>, vector<16x1280xbf16>
    %c2_435 = arith.constant 2 : index
    %c12_436 = arith.constant 12 : index
    %c0_437 = arith.constant 0 : index
    %c0_438 = arith.constant 0 : index
    %361 = vector.load %arg1[%c2_435, %c12_436, %c0_437, %c0_438] : memref<3x27x16x16xbf16, #tpu.memory_space<vmem>>, vector<1x1x16x16xbf16>
    %362 = vector.shape_cast %361 : vector<1x1x16x16xbf16> to vector<16x16xbf16>
    %cst_439 = arith.constant dense<0.000000e+00> : vector<16x1280xf32>
    %363 = tpu.matmul %362, %360, %cst_439 {dimension_numbers = #tpu.dot_dimension_numbers<[1], [0], [0], [1], [0, 0, 1, 1], [], []>} : vector<16x16xbf16>, vector<16x1280xbf16>, vector<16x1280xf32> -> vector<16x1280xf32>
    %364 = arith.addf %359, %363 : vector<16x1280xf32>
    %c0_440 = arith.constant 0 : index
    %c128_441 = arith.constant 128 : index
    %365 = vector.load %arg6[%c0_440, %c128_441] : memref<16x1536xbf16, #tpu.memory_space<vmem>>, vector<16x1280xbf16>
    %c2_442 = arith.constant 2 : index
    %c13_443 = arith.constant 13 : index
    %c0_444 = arith.constant 0 : index
    %c0_445 = arith.constant 0 : index
    %366 = vector.load %arg1[%c2_442, %c13_443, %c0_444, %c0_445] : memref<3x27x16x16xbf16, #tpu.memory_space<vmem>>, vector<1x1x16x16xbf16>
    %367 = vector.shape_cast %366 : vector<1x1x16x16xbf16> to vector<16x16xbf16>
    %cst_446 = arith.constant dense<0.000000e+00> : vector<16x1280xf32>
    %368 = tpu.matmul %367, %365, %cst_446 {dimension_numbers = #tpu.dot_dimension_numbers<[1], [0], [0], [1], [0, 0, 1, 1], [], []>} : vector<16x16xbf16>, vector<16x1280xbf16>, vector<16x1280xf32> -> vector<16x1280xf32>
    %369 = arith.addf %364, %368 : vector<16x1280xf32>
    %c0_447 = arith.constant 0 : index
    %c129_448 = arith.constant 129 : index
    %370 = vector.load %arg6[%c0_447, %c129_448] : memref<16x1536xbf16, #tpu.memory_space<vmem>>, vector<16x1280xbf16>
    %c2_449 = arith.constant 2 : index
    %c14_450 = arith.constant 14 : index
    %c0_451 = arith.constant 0 : index
    %c0_452 = arith.constant 0 : index
    %371 = vector.load %arg1[%c2_449, %c14_450, %c0_451, %c0_452] : memref<3x27x16x16xbf16, #tpu.memory_space<vmem>>, vector<1x1x16x16xbf16>
    %372 = vector.shape_cast %371 : vector<1x1x16x16xbf16> to vector<16x16xbf16>
    %cst_453 = arith.constant dense<0.000000e+00> : vector<16x1280xf32>
    %373 = tpu.matmul %372, %370, %cst_453 {dimension_numbers = #tpu.dot_dimension_numbers<[1], [0], [0], [1], [0, 0, 1, 1], [], []>} : vector<16x16xbf16>, vector<16x1280xbf16>, vector<16x1280xf32> -> vector<16x1280xf32>
    %374 = arith.addf %369, %373 : vector<16x1280xf32>
    %c0_454 = arith.constant 0 : index
    %c137_455 = arith.constant 137 : index
    %375 = vector.load %arg6[%c0_454, %c137_455] : memref<16x1536xbf16, #tpu.memory_space<vmem>>, vector<16x1280xbf16>
    %c2_456 = arith.constant 2 : index
    %c15_457 = arith.constant 15 : index
    %c0_458 = arith.constant 0 : index
    %c0_459 = arith.constant 0 : index
    %376 = vector.load %arg1[%c2_456, %c15_457, %c0_458, %c0_459] : memref<3x27x16x16xbf16, #tpu.memory_space<vmem>>, vector<1x1x16x16xbf16>
    %377 = vector.shape_cast %376 : vector<1x1x16x16xbf16> to vector<16x16xbf16>
    %cst_460 = arith.constant dense<0.000000e+00> : vector<16x1280xf32>
    %378 = tpu.matmul %377, %375, %cst_460 {dimension_numbers = #tpu.dot_dimension_numbers<[1], [0], [0], [1], [0, 0, 1, 1], [], []>} : vector<16x16xbf16>, vector<16x1280xbf16>, vector<16x1280xf32> -> vector<16x1280xf32>
    %379 = arith.addf %374, %378 : vector<16x1280xf32>
    %c0_461 = arith.constant 0 : index
    %c138_462 = arith.constant 138 : index
    %380 = vector.load %arg6[%c0_461, %c138_462] : memref<16x1536xbf16, #tpu.memory_space<vmem>>, vector<16x1280xbf16>
    %c2_463 = arith.constant 2 : index
    %c16_464 = arith.constant 16 : index
    %c0_465 = arith.constant 0 : index
    %c0_466 = arith.constant 0 : index
    %381 = vector.load %arg1[%c2_463, %c16_464, %c0_465, %c0_466] : memref<3x27x16x16xbf16, #tpu.memory_space<vmem>>, vector<1x1x16x16xbf16>
    %382 = vector.shape_cast %381 : vector<1x1x16x16xbf16> to vector<16x16xbf16>
    %cst_467 = arith.constant dense<0.000000e+00> : vector<16x1280xf32>
    %383 = tpu.matmul %382, %380, %cst_467 {dimension_numbers = #tpu.dot_dimension_numbers<[1], [0], [0], [1], [0, 0, 1, 1], [], []>} : vector<16x16xbf16>, vector<16x1280xbf16>, vector<16x1280xf32> -> vector<16x1280xf32>
    %384 = arith.addf %379, %383 : vector<16x1280xf32>
    %c0_468 = arith.constant 0 : index
    %c139_469 = arith.constant 139 : index
    %385 = vector.load %arg6[%c0_468, %c139_469] : memref<16x1536xbf16, #tpu.memory_space<vmem>>, vector<16x1280xbf16>
    %c2_470 = arith.constant 2 : index
    %c17_471 = arith.constant 17 : index
    %c0_472 = arith.constant 0 : index
    %c0_473 = arith.constant 0 : index
    %386 = vector.load %arg1[%c2_470, %c17_471, %c0_472, %c0_473] : memref<3x27x16x16xbf16, #tpu.memory_space<vmem>>, vector<1x1x16x16xbf16>
    %387 = vector.shape_cast %386 : vector<1x1x16x16xbf16> to vector<16x16xbf16>
    %cst_474 = arith.constant dense<0.000000e+00> : vector<16x1280xf32>
    %388 = tpu.matmul %387, %385, %cst_474 {dimension_numbers = #tpu.dot_dimension_numbers<[1], [0], [0], [1], [0, 0, 1, 1], [], []>} : vector<16x16xbf16>, vector<16x1280xbf16>, vector<16x1280xf32> -> vector<16x1280xf32>
    %389 = arith.addf %384, %388 : vector<16x1280xf32>
    %c0_475 = arith.constant 0 : index
    %c217_476 = arith.constant 217 : index
    %390 = vector.load %arg6[%c0_475, %c217_476] : memref<16x1536xbf16, #tpu.memory_space<vmem>>, vector<16x1280xbf16>
    %c2_477 = arith.constant 2 : index
    %c18_478 = arith.constant 18 : index
    %c0_479 = arith.constant 0 : index
    %c0_480 = arith.constant 0 : index
    %391 = vector.load %arg1[%c2_477, %c18_478, %c0_479, %c0_480] : memref<3x27x16x16xbf16, #tpu.memory_space<vmem>>, vector<1x1x16x16xbf16>
    %392 = vector.shape_cast %391 : vector<1x1x16x16xbf16> to vector<16x16xbf16>
    %cst_481 = arith.constant dense<0.000000e+00> : vector<16x1280xf32>
    %393 = tpu.matmul %392, %390, %cst_481 {dimension_numbers = #tpu.dot_dimension_numbers<[1], [0], [0], [1], [0, 0, 1, 1], [], []>} : vector<16x16xbf16>, vector<16x1280xbf16>, vector<16x1280xf32> -> vector<16x1280xf32>
    %394 = arith.addf %389, %393 : vector<16x1280xf32>
    %c0_482 = arith.constant 0 : index
    %c218_483 = arith.constant 218 : index
    %395 = vector.load %arg6[%c0_482, %c218_483] : memref<16x1536xbf16, #tpu.memory_space<vmem>>, vector<16x1280xbf16>
    %c2_484 = arith.constant 2 : index
    %c19_485 = arith.constant 19 : index
    %c0_486 = arith.constant 0 : index
    %c0_487 = arith.constant 0 : index
    %396 = vector.load %arg1[%c2_484, %c19_485, %c0_486, %c0_487] : memref<3x27x16x16xbf16, #tpu.memory_space<vmem>>, vector<1x1x16x16xbf16>
    %397 = vector.shape_cast %396 : vector<1x1x16x16xbf16> to vector<16x16xbf16>
    %cst_488 = arith.constant dense<0.000000e+00> : vector<16x1280xf32>
    %398 = tpu.matmul %397, %395, %cst_488 {dimension_numbers = #tpu.dot_dimension_numbers<[1], [0], [0], [1], [0, 0, 1, 1], [], []>} : vector<16x16xbf16>, vector<16x1280xbf16>, vector<16x1280xf32> -> vector<16x1280xf32>
    %399 = arith.addf %394, %398 : vector<16x1280xf32>
    %c0_489 = arith.constant 0 : index
    %c219_490 = arith.constant 219 : index
    %400 = vector.load %arg6[%c0_489, %c219_490] : memref<16x1536xbf16, #tpu.memory_space<vmem>>, vector<16x1280xbf16>
    %c2_491 = arith.constant 2 : index
    %c20_492 = arith.constant 20 : index
    %c0_493 = arith.constant 0 : index
    %c0_494 = arith.constant 0 : index
    %401 = vector.load %arg1[%c2_491, %c20_492, %c0_493, %c0_494] : memref<3x27x16x16xbf16, #tpu.memory_space<vmem>>, vector<1x1x16x16xbf16>
    %402 = vector.shape_cast %401 : vector<1x1x16x16xbf16> to vector<16x16xbf16>
    %cst_495 = arith.constant dense<0.000000e+00> : vector<16x1280xf32>
    %403 = tpu.matmul %402, %400, %cst_495 {dimension_numbers = #tpu.dot_dimension_numbers<[1], [0], [0], [1], [0, 0, 1, 1], [], []>} : vector<16x16xbf16>, vector<16x1280xbf16>, vector<16x1280xf32> -> vector<16x1280xf32>
    %404 = arith.addf %399, %403 : vector<16x1280xf32>
    %c0_496 = arith.constant 0 : index
    %c227_497 = arith.constant 227 : index
    %405 = vector.load %arg6[%c0_496, %c227_497] : memref<16x1536xbf16, #tpu.memory_space<vmem>>, vector<16x1280xbf16>
    %c2_498 = arith.constant 2 : index
    %c21_499 = arith.constant 21 : index
    %c0_500 = arith.constant 0 : index
    %c0_501 = arith.constant 0 : index
    %406 = vector.load %arg1[%c2_498, %c21_499, %c0_500, %c0_501] : memref<3x27x16x16xbf16, #tpu.memory_space<vmem>>, vector<1x1x16x16xbf16>
    %407 = vector.shape_cast %406 : vector<1x1x16x16xbf16> to vector<16x16xbf16>
    %cst_502 = arith.constant dense<0.000000e+00> : vector<16x1280xf32>
    %408 = tpu.matmul %407, %405, %cst_502 {dimension_numbers = #tpu.dot_dimension_numbers<[1], [0], [0], [1], [0, 0, 1, 1], [], []>} : vector<16x16xbf16>, vector<16x1280xbf16>, vector<16x1280xf32> -> vector<16x1280xf32>
    %409 = arith.addf %404, %408 : vector<16x1280xf32>
    %c0_503 = arith.constant 0 : index
    %c228_504 = arith.constant 228 : index
    %410 = vector.load %arg6[%c0_503, %c228_504] : memref<16x1536xbf16, #tpu.memory_space<vmem>>, vector<16x1280xbf16>
    %c2_505 = arith.constant 2 : index
    %c22_506 = arith.constant 22 : index
    %c0_507 = arith.constant 0 : index
    %c0_508 = arith.constant 0 : index
    %411 = vector.load %arg1[%c2_505, %c22_506, %c0_507, %c0_508] : memref<3x27x16x16xbf16, #tpu.memory_space<vmem>>, vector<1x1x16x16xbf16>
    %412 = vector.shape_cast %411 : vector<1x1x16x16xbf16> to vector<16x16xbf16>
    %cst_509 = arith.constant dense<0.000000e+00> : vector<16x1280xf32>
    %413 = tpu.matmul %412, %410, %cst_509 {dimension_numbers = #tpu.dot_dimension_numbers<[1], [0], [0], [1], [0, 0, 1, 1], [], []>} : vector<16x16xbf16>, vector<16x1280xbf16>, vector<16x1280xf32> -> vector<16x1280xf32>
    %414 = arith.addf %409, %413 : vector<16x1280xf32>
    %c0_510 = arith.constant 0 : index
    %c229_511 = arith.constant 229 : index
    %415 = vector.load %arg6[%c0_510, %c229_511] : memref<16x1536xbf16, #tpu.memory_space<vmem>>, vector<16x1280xbf16>
    %c2_512 = arith.constant 2 : index
    %c23_513 = arith.constant 23 : index
    %c0_514 = arith.constant 0 : index
    %c0_515 = arith.constant 0 : index
    %416 = vector.load %arg1[%c2_512, %c23_513, %c0_514, %c0_515] : memref<3x27x16x16xbf16, #tpu.memory_space<vmem>>, vector<1x1x16x16xbf16>
    %417 = vector.shape_cast %416 : vector<1x1x16x16xbf16> to vector<16x16xbf16>
    %cst_516 = arith.constant dense<0.000000e+00> : vector<16x1280xf32>
    %418 = tpu.matmul %417, %415, %cst_516 {dimension_numbers = #tpu.dot_dimension_numbers<[1], [0], [0], [1], [0, 0, 1, 1], [], []>} : vector<16x16xbf16>, vector<16x1280xbf16>, vector<16x1280xf32> -> vector<16x1280xf32>
    %419 = arith.addf %414, %418 : vector<16x1280xf32>
    %c0_517 = arith.constant 0 : index
    %c237_518 = arith.constant 237 : index
    %420 = vector.load %arg6[%c0_517, %c237_518] : memref<16x1536xbf16, #tpu.memory_space<vmem>>, vector<16x1280xbf16>
    %c2_519 = arith.constant 2 : index
    %c24_520 = arith.constant 24 : index
    %c0_521 = arith.constant 0 : index
    %c0_522 = arith.constant 0 : index
    %421 = vector.load %arg1[%c2_519, %c24_520, %c0_521, %c0_522] : memref<3x27x16x16xbf16, #tpu.memory_space<vmem>>, vector<1x1x16x16xbf16>
    %422 = vector.shape_cast %421 : vector<1x1x16x16xbf16> to vector<16x16xbf16>
    %cst_523 = arith.constant dense<0.000000e+00> : vector<16x1280xf32>
    %423 = tpu.matmul %422, %420, %cst_523 {dimension_numbers = #tpu.dot_dimension_numbers<[1], [0], [0], [1], [0, 0, 1, 1], [], []>} : vector<16x16xbf16>, vector<16x1280xbf16>, vector<16x1280xf32> -> vector<16x1280xf32>
    %424 = arith.addf %419, %423 : vector<16x1280xf32>
    %c0_524 = arith.constant 0 : index
    %c238_525 = arith.constant 238 : index
    %425 = vector.load %arg6[%c0_524, %c238_525] : memref<16x1536xbf16, #tpu.memory_space<vmem>>, vector<16x1280xbf16>
    %c2_526 = arith.constant 2 : index
    %c25_527 = arith.constant 25 : index
    %c0_528 = arith.constant 0 : index
    %c0_529 = arith.constant 0 : index
    %426 = vector.load %arg1[%c2_526, %c25_527, %c0_528, %c0_529] : memref<3x27x16x16xbf16, #tpu.memory_space<vmem>>, vector<1x1x16x16xbf16>
    %427 = vector.shape_cast %426 : vector<1x1x16x16xbf16> to vector<16x16xbf16>
    %cst_530 = arith.constant dense<0.000000e+00> : vector<16x1280xf32>
    %428 = tpu.matmul %427, %425, %cst_530 {dimension_numbers = #tpu.dot_dimension_numbers<[1], [0], [0], [1], [0, 0, 1, 1], [], []>} : vector<16x16xbf16>, vector<16x1280xbf16>, vector<16x1280xf32> -> vector<16x1280xf32>
    %429 = arith.addf %424, %428 : vector<16x1280xf32>
    %c0_531 = arith.constant 0 : index
    %c239_532 = arith.constant 239 : index
    %430 = vector.load %arg6[%c0_531, %c239_532] : memref<16x1536xbf16, #tpu.memory_space<vmem>>, vector<16x1280xbf16>
    %c2_533 = arith.constant 2 : index
    %c26_534 = arith.constant 26 : index
    %c0_535 = arith.constant 0 : index
    %c0_536 = arith.constant 0 : index
    %431 = vector.load %arg1[%c2_533, %c26_534, %c0_535, %c0_536] : memref<3x27x16x16xbf16, #tpu.memory_space<vmem>>, vector<1x1x16x16xbf16>
    %432 = vector.shape_cast %431 : vector<1x1x16x16xbf16> to vector<16x16xbf16>
    %cst_537 = arith.constant dense<0.000000e+00> : vector<16x1280xf32>
    %433 = tpu.matmul %432, %430, %cst_537 {dimension_numbers = #tpu.dot_dimension_numbers<[1], [0], [0], [1], [0, 0, 1, 1], [], []>} : vector<16x16xbf16>, vector<16x1280xbf16>, vector<16x1280xf32> -> vector<16x1280xf32>
    %434 = arith.addf %429, %433 : vector<16x1280xf32>
    %c2_538 = arith.constant 2 : index
    %c0_539 = arith.constant 0 : index
    %c0_540 = arith.constant 0 : index
    %435 = vector.load %arg2[%c2_538, %c0_539, %c0_540] : memref<3x16x1xf32, #tpu.memory_space<vmem>>, vector<1x16x1xf32>
    %436 = vector.shape_cast %435 : vector<1x16x1xf32> to vector<16x1xf32>
    %437 = vector.broadcast %436 : vector<16x1xf32> to vector<16x1280xf32>
    %438 = arith.addf %434, %437 : vector<16x1280xf32>
    %cst_541 = arith.constant 0.00999999977 : f32
    %439 = vector.broadcast %cst_541 : f32 to vector<16x1280xf32>
    %440 = arith.mulf %439, %438 : vector<16x1280xf32>
    %441 = arith.maximumf %438, %440 : vector<16x1280xf32>
    %442 = vector.broadcast %4 : vector<1x1280xf32> to vector<16x1280xf32>
    %443 = arith.mulf %441, %442 : vector<16x1280xf32>
    %c0_542 = arith.constant 0 : index
    %c0_543 = arith.constant 0 : index
    %444 = vector.load %arg4[%c0_542, %c0_543] : memref<16x1280xf32, #tpu.memory_space<vmem>>, vector<16x1280xf32>
    tpu.vector_store %arg4[%c0_542, %c0_543], %443 {strides = array<i32>} : memref<16x1280xf32, #tpu.memory_space<vmem>>, vector<16x1280xf32>,
    return
  }
}

</mosaic_0001>

<bundles_post_ra>
// kernel: separate_bcn3d_forward.1
= control target key start
LH: loop header
LB: loop body
LE: loop exit
PB: predicated region body
PF: predicated region fallthrough
CT: control target
= control target key end

     0   :  { %v32152_v1 = vmov 0   ;;  %s26223_s19 = smov 100   ;;  %s26224_s6 = smov 110   ;;  %vm1247_vm0 = vcmask 818176   ;;  %vm154_vm1 = vcmask 130048   ;;  %vm133_vm2 = vcmask 900096   ;;  %s32126_s0 = inlined_call_operand.vmem [shape: bf16[16,1536], index: 0, kind: input, shape index: {}]   ;;  %s32127_s1 = inlined_call_operand.vmem [shape: bf16[3,27,16,16], index: 1, kind: input, shape index: {}]   ;;  %s32128_s2 = inlined_call_operand.vmem [shape: f32[3,16,1], index: 2, kind: input, shape index: {}]   ;;  %s32129_s3 = inlined_call_operand.vmem [shape: f32[1,1280], index: 3, kind: input, shape index: {}]   ;;  %s32130_s4 = inlined_call_operand.vmem [shape: f32[16,1280], index: 4, kind: output, shape index: {}]  }
   0x1   :  { %v26277_v0 = vld [vmem:[%s32126_s0 + $0x14] ss:$48 sps:$4 sm:$0xff]   ;;  %1389 = vmatprep.mubr.bf16.mxu0 %v32152_v1  ;;  %190 = vmatprep.mubr.bf16.mxu1 %v32152_v1  ;;  %v26284_v2 = vld [vmem:[%s32126_s0 + $0x10] ss:$48 sps:$4 sm:$0xff]   ;;  %v26293_v3 = vld [vmem:[%s32126_s0 + $0x18] ss:$48 sps:$4 sm:$0xff]  }
   0x2   :  { %26077 = vset.pattern.permute.xlu0 %v32152_v1  ;;  %26078 = vset.pattern.permute.xlu1 %v32152_v1  ;;  %v26300_v4 = vld [vmem:[%s32126_s0 + $0x24] ss:$48 sps:$4 sm:$0xff]   ;;  %v26307_v5 = vld [vmem:[%s32126_s0 + $0x28] ss:$48 sps:$4 sm:$0xff]   ;;  %v26314_v6 = vld [vmem:[%s32126_s0 + $0x20] ss:$48 sps:$4 sm:$0xff]  }
   0x3   :  { %1235 = vrot.lane.b32.xlu0 %v26277_v0, %s26223_s19  ;;  %1233 = vrot.lane.b32.xlu1 %v26284_v2, %s26223_s19  ;;  %v26319_v7 = vld [vmem:[%s32126_s0 + $0x4] ss:$48 sps:$4 sm:$0xff]   ;;  %v26324_v8 = vld [vmem:[%s32126_s0 + $0x8] ss:$48 sps:$4 sm:$0xff]   ;;  %s26225_s9 = smov 99   ;;  %s26226_s14 = smov 91  }
   0x4   :  { %v26335_v9 = vld [vmem:[%s32126_s0] ss:$48 sps:$4 sm:$0xff]   ;;  %v26346_v10 = vld [vmem:[%s32126_s0 + $0xc] ss:$48 sps:$4 sm:$0xff]   ;;  %s26227_s15 = smov 111   ;;  %s26228_s16 = smov 90  }
   0x5   :  { %v26371_v11 = vld [vmem:[%s32126_s0 + $0x1c] ss:$48 sps:$4 sm:$0xff]   ;;  %s26229_s17 = smov 89   ;;  %s26230_s18 = smov 109   ;;  %v26095_v18 = vld [vmem:[%s32127_s1 + $0x20] sm:$0xff]   ;;  %vm32194_vm3 = vcmask 809984  }
   0x6   :  { %v26488_v29 = vld [vmem:[%s32127_s1 + $0x8] sm:$0xff]   ;;  %s26231_s26 = smov 11   ;;  %vm32177_vm4 = vcmask 744448   ;;  %v26098_v63 = vld [vmem:[%s32127_s1 + $0x30] sm:$0xff]   ;;  %s26232_s29 = smov 101   ;;  %vm400_vm5 = vcmask 908288  }
   0x7   :  { %1237 = vrot.lane.b32.xlu0 %v26293_v3, %s26223_s19  ;;  %1243 = vrot.lane.b32.xlu1 %v26300_v4, %s26223_s19  ;;  %v26097_v35 = vld [vmem:[%s32127_s1 + $0x28] sm:$0xff]   ;;  %s26233_s30 = smov 10   ;;  %vm32178_vm6 = vcmask 736256   ;;  %s26234_s11 = smov 9   ;;  %vm32131_vm7 = vcmask 728064   ;;  %vm669_vm8 = vcmask 891904  }
   0x8   :  { %s26235_s22 = smov 1   ;;  %vm32193_vm9 = vcmask 89088   ;;  %s26236_s20 = smov 127   ;;  %vm958_vm10 = vcmask 826368   ;;  %vm32132_vm11 = vcmask 80896   ;;  %vm32135_vm12 = vcmask 72704  }
   0x9   :  { %s26237_s5 = smov 119   ;;  %s26238_s10 = smov 118   ;;  %vm32140_vm13 = vcmask 7168   ;;  %vm32141_vm14 = vcmask 1039360   ;;  %vm4500_vm15 = vcmask 973824  }
   0xa   :  { %s26239_s21 = smov 117   ;;  %s32138_s28 = smov 39  }
   0xb   :  { %1245 = vrot.lane.b32.xlu0 %v26307_v5, %s26223_s19  ;;  %1241 = vrot.lane.b32.xlu1 %v26314_v6, %s26223_s19  ;;  %s32136_s7 = smov 38   ;;  %s32133_s24 = smov 37  }
   0xc   :  { %s26243_s8 = smov 29   ;;  %s26244_s23 = smov 28  }
   0xd   :  { %s32190_s25 = smov 27   ;;  %s32143_s27 = smov 18  }
   0xe   :  { %s32230_s12 = smov 39   ;;  %s32232_s13 = smov 38  }
   0xf   :  { %113 = vrot.lane.b32.xlu0 %v26319_v7, %s26224_s6  ;;  %115 = vrot.lane.b32.xlu1 %v26324_v8, %s26224_s6 }
  0x13   :  { %111 = vrot.lane.b32.xlu0 %v26335_v9, %s26224_s6  ;;  %1516 = vrot.lane.b32.xlu1 %v26319_v7, %s26225_s9 }
  0x17   :  { %1518 = vrot.lane.b32.xlu0 %v26324_v8, %s26225_s9  ;;  %1514 = vrot.lane.b32.xlu1 %v26335_v9, %s26225_s9 }
  0x1b   :  { %117 = vrot.lane.b32.xlu0 %v26346_v10, %s26224_s6  ;;  %119 = vrot.lane.b32.xlu1 %v26284_v2, %s26224_s6 }
  0x1f   :  { %1524 = vrot.lane.b32.xlu0 %v26277_v0, %s26225_s9  ;;  %1526 = vrot.lane.b32.xlu1 %v26293_v3, %s26225_s9 }
  0x23   :  { %1522 = vrot.lane.b32.xlu0 %v26284_v2, %s26225_s9  ;;  %121 = vrot.lane.b32.xlu1 %v26277_v0, %s26224_s6 }
  0x27   :  { %123 = vrot.lane.b32.xlu0 %v26293_v3, %s26224_s6  ;;  %1532 = vrot.lane.b32.xlu1 %v26300_v4, %s26225_s9 }
  0x2b   :  { %1534 = vrot.lane.b32.xlu0 %v26307_v5, %s26225_s9  ;;  %1530 = vrot.lane.b32.xlu1 %v26314_v6, %s26225_s9 }
  0x2f   :  { %125 = vrot.lane.b32.xlu0 %v26371_v11, %s26224_s6  ;;  %127 = vrot.lane.b32.xlu1 %v26314_v6, %s26224_s6 }
  0x33   :  { %1805 = vrot.lane.b32.xlu0 %v26319_v7, %s26226_s14  ;;  %1807 = vrot.lane.b32.xlu1 %v26324_v8, %s26226_s14 }
  0x37   :  { %1803 = vrot.lane.b32.xlu0 %v26335_v9, %s26226_s14  ;;  %129 = vrot.lane.b32.xlu1 %v26300_v4, %s26224_s6 }
  0x3b   :  { %131 = vrot.lane.b32.xlu0 %v26307_v5, %s26224_s6  ;;  %1813 = vrot.lane.b32.xlu1 %v26277_v0, %s26226_s14 }
  0x3f   :  { %1815 = vrot.lane.b32.xlu0 %v26293_v3, %s26226_s14  ;;  %1811 = vrot.lane.b32.xlu1 %v26284_v2, %s26226_s14 }
  0x43   :  { %380 = vrot.lane.b32.xlu0 %v26319_v7, %s26227_s15  ;;  %382 = vrot.lane.b32.xlu1 %v26324_v8, %s26227_s15 }
  0x47   :  { %378 = vrot.lane.b32.xlu0 %v26335_v9, %s26227_s15  ;;  %1821 = vrot.lane.b32.xlu1 %v26300_v4, %s26226_s14 }
  0x4b   :  { %1823 = vrot.lane.b32.xlu0 %v26307_v5, %s26226_s14  ;;  %1819 = vrot.lane.b32.xlu1 %v26314_v6, %s26226_s14 }
  0x4f   :  { %384 = vrot.lane.b32.xlu0 %v26346_v10, %s26227_s15  ;;  %386 = vrot.lane.b32.xlu1 %v26284_v2, %s26227_s15 }
  0x53   :  { %2094 = vrot.lane.b32.xlu0 %v26319_v7, %s26228_s16  ;;  %2096 = vrot.lane.b32.xlu1 %v26324_v8, %s26228_s16 }
  0x57   :  { %2092 = vrot.lane.b32.xlu0 %v26335_v9, %s26228_s16  ;;  %388 = vrot.lane.b32.xlu1 %v26277_v0, %s26227_s15 }
  0x5b   :  { %390 = vrot.lane.b32.xlu0 %v26293_v3, %s26227_s15  ;;  %2102 = vrot.lane.b32.xlu1 %v26277_v0, %s26228_s16 }
  0x5f   :  { %2104 = vrot.lane.b32.xlu0 %v26293_v3, %s26228_s16  ;;  %2100 = vrot.lane.b32.xlu1 %v26284_v2, %s26228_s16 }
  0x63   :  { %392 = vrot.lane.b32.xlu0 %v26371_v11, %s26227_s15  ;;  %394 = vrot.lane.b32.xlu1 %v26314_v6, %s26227_s15 }
  0x67   :  { %2110 = vrot.lane.b32.xlu0 %v26300_v4, %s26228_s16  ;;  %2112 = vrot.lane.b32.xlu1 %v26307_v5, %s26228_s16 }
  0x6b   :  { %2108 = vrot.lane.b32.xlu0 %v26314_v6, %s26228_s16  ;;  %396 = vrot.lane.b32.xlu1 %v26300_v4, %s26227_s15 }
  0x6f   :  { %398 = vrot.lane.b32.xlu0 %v26307_v5, %s26227_s15  ;;  %2383 = vrot.lane.b32.xlu1 %v26319_v7, %s26229_s17 }
  0x73   :  { %2385 = vrot.lane.b32.xlu0 %v26324_v8, %s26229_s17  ;;  %2381 = vrot.lane.b32.xlu1 %v26335_v9, %s26229_s17 }
  0x75   :  { %v1236_v12 = vpop.permute.xlu0 %1235  ;;  %v26449_v13 = vpop.permute.xlu1 %1233 }
  0x76   :  { %v1252_v17 = vsel %vm1247_vm0, %v26449_v13, %v1236_v12 }
  0x77   :  { %649 = vrot.lane.b32.xlu0 %v26319_v7, %s26230_s18  ;;  %651 = vrot.lane.b32.xlu1 %v26324_v8, %s26230_s18 }
  0x79   :  { %v26455_v14 = vpop.permute.xlu0 %1237  ;;  %v1244_v15 = vpop.permute.xlu1 %1243 }
  0x7a   :  { %v1253_v16 = vsel %vm1247_vm0, %v1236_v12, %v26455_v14 }
  0x7b   :  { %1357 = vmatprep.subr.bf16.mxu0 %v1253_v16  ;;  %647 = vrot.lane.b32.xlu0 %v26335_v9, %s26230_s18 }
  0x7c   :  { %2391 = vrot.lane.b32.xlu1 %v26277_v0, %s26229_s17  ;;  %1358 = vmatpush1.bf16.msra.mxu0 %v1252_v17 }
  0x7d   :  { %v1246_v19 = vpop.permute.xlu0 %1245  ;;  %v26468_v20 = vpop.permute.xlu1 %1241 }
  0x7e   :  { %v1257_v21 = vsel %vm1247_vm0, %v1244_v15, %v1246_v19  ;;  %v1256_v22 = vsel %vm1247_vm0, %v26468_v20, %v1244_v15 }
  0x7f   :  { %1443 = vmatprep.subr.bf16.mxu0 %v1257_v21  ;;  %2393 = vrot.lane.b32.xlu0 %v26293_v3, %s26229_s17 }
  0x80   :  { %2389 = vrot.lane.b32.xlu1 %v26284_v2, %s26229_s17  ;;  %23854 = vmatmul.mubr.msk.bf16.vlgmr.msra.gmra.mrb[0].mxu0 %vm154_vm1, %v26095_v18 }
  0x81   :  { %1444 = vmatpush1.bf16.msra.mxu0 %v1256_v22  ;;  %v114_v23 = vpop.permute.xlu0 %113  ;;  %1475 = vmatprep.mubr.bf16.mxu0 %v32152_v1  ;;  %v116_v24 = vpop.permute.xlu1 %115 }
  0x82   :  { %v135_v25 = vsel %vm133_vm2, %v114_v23, %v116_v24 }
  0x83   :  { %653 = vrot.lane.b32.xlu0 %v26346_v10, %s26230_s18  ;;  %158 = vmatprep.subr.bf16.mxu1 %v135_v25 }
  0x84   :  { %655 = vrot.lane.b32.xlu1 %v26284_v2, %s26230_s18 }
  0x85   :  { %v112_v26 = vpop.permute.xlu0 %111  ;;  %v1517_v27 = vpop.permute.xlu1 %1516 }
  0x86   :  { %v134_v28 = vsel %vm133_vm2, %v112_v26, %v114_v23 }
  0x87   :  { %2399 = vrot.lane.b32.xlu0 %v26300_v4, %s26229_s17  ;;  %159 = vmatpush1.bf16.msra.mxu1 %v134_v28 }
  0x88   :  { %2401 = vrot.lane.b32.xlu1 %v26307_v5, %s26229_s17  ;;  %23856 = vmatmul.mubr.msk.bf16.vlgmr.msra.gmra.mrb[4].mxu0 %vm154_vm1, %v26095_v18 }
  0x89   :  { %v26495_v30 = vpop.permute.xlu0 %1518  ;;  %1592 = vmatprep.mubr.bf16.mxu0 %v32152_v1  ;;  %v1515_v31 = vpop.permute.xlu1 %1514 }
  0x8a   :  { %v1538_v32 = vsel %vm32194_vm3, %v1517_v27, %v26495_v30  ;;  %23822 = vmatmul.mubr.msk.bf16.vlgmr.msra.gmra.mrb[0].mxu1 %vm154_vm1, %v26488_v29  ;;  %v1537_v33 = vsel %vm32194_vm3, %v1515_v31, %v1517_v27 }
  0x8b   :  { %2397 = vrot.lane.b32.xlu0 %v26314_v6, %s26229_s17  ;;  %1560 = vmatprep.subr.bf16.mxu0 %v1538_v32 }
  0x8c   :  { %657 = vrot.lane.b32.xlu1 %v26277_v0, %s26230_s18  ;;  %1561 = vmatpush1.bf16.msra.mxu0 %v1537_v33 }
  0x8d   :  { %v118_v34 = vpop.permute.xlu0 %117  ;;  %233 = vmatprep.mubr.bf16.mxu1 %v32152_v1  ;;  %v120_v36 = vpop.permute.xlu1 %119 }
  0x8e   :  { %v136_v37 = vsel %vm133_vm2, %v116_v24, %v118_v34  ;;  %v137_v38 = vsel %vm133_vm2, %v118_v34, %v120_v36 }
  0x8f   :  { %659 = vrot.lane.b32.xlu0 %v26293_v3, %s26230_s18  ;;  %201 = vmatprep.subr.bf16.mxu1 %v137_v38 }
  0x90   :  { %2672 = vrot.lane.b32.xlu1 %v26319_v7, %s26231_s26  ;;  %202 = vmatpush1.bf16.msra.mxu1 %v136_v37 }
  0x91   :  { %v1525_v39 = vpop.permute.xlu0 %1524  ;;  %23860 = vmatmul.mubr.msk.bf16.vlgmr.msra.gmra.mrb[8].mxu0 %vm154_vm1, %v26097_v35  ;;  %v26518_v40 = vpop.permute.xlu1 %1526 }
  0x92   :  { %1678 = vmatprep.mubr.bf16.mxu0 %v32152_v1  ;;  %v1542_v41 = vsel %vm32194_vm3, %v1525_v39, %v26518_v40 }
  0x93   :  { %2674 = vrot.lane.b32.xlu0 %v26324_v8, %s26231_s26  ;;  %1646 = vmatprep.subr.bf16.mxu0 %v1542_v41 }
  0x94   :  { %2670 = vrot.lane.b32.xlu1 %v26335_v9, %s26231_s26  ;;  %23823 = vmatmul.mubr.msk.bf16.vlgmr.msra.gmra.mrb[4].mxu1 %vm154_vm1, %v26488_v29 }
  0x95   :  { %v26527_v42 = vpop.permute.xlu0 %1522  ;;  %v122_v43 = vpop.permute.xlu1 %121  ;;  %276 = vmatprep.mubr.bf16.mxu1 %v32152_v1 }
  0x96   :  { %v1541_v44 = vsel %vm32194_vm3, %v26527_v42, %v1525_v39  ;;  %v138_v48 = vsel %vm133_vm2, %v120_v36, %v122_v43 }
  0x97   :  { %661 = vrot.lane.b32.xlu0 %v26371_v11, %s26230_s18  ;;  %1647 = vmatpush1.bf16.msra.mxu0 %v1541_v44 }
  0x98   :  { %663 = vrot.lane.b32.xlu1 %v26314_v6, %s26230_s18 }
  0x99   :  { %v124_v45 = vpop.permute.xlu0 %123  ;;  %v1533_v46 = vpop.permute.xlu1 %1532 }
  0x9a   :  { %v139_v47 = vsel %vm133_vm2, %v122_v43, %v124_v45  ;;  %23862 = vmatmul.mubr.msk.bf16.vlgmr.msra.gmra.mrb[0].mxu0 %vm154_vm1, %v26097_v35 }
  0x9b   :  { %2680 = vrot.lane.b32.xlu0 %v26277_v0, %s26231_s26  ;;  %244 = vmatprep.subr.bf16.mxu1 %v139_v47  ;;  %v26659_v47 = vld [vmem:[%s32127_s1 + $0x38] sm:$0xff]  }
  0x9c   :  { %2682 = vrot.lane.b32.xlu1 %v26293_v3, %s26231_s26  ;;  %245 = vmatpush1.bf16.msra.mxu1 %v138_v48 }
  0x9d   :  { %v1535_v49 = vpop.permute.xlu0 %1534  ;;  %1764 = vmatprep.mubr.bf16.mxu0 %v32152_v1  ;;  %v26546_v50 = vpop.permute.xlu1 %1530 }
  0x9e   :  { %v1546_v51 = vsel %vm32194_vm3, %v1533_v46, %v1535_v49  ;;  %v1545_v52 = vsel %vm32194_vm3, %v26546_v50, %v1533_v46 }
  0x9f   :  { %2678 = vrot.lane.b32.xlu0 %v26284_v2, %s26231_s26  ;;  %1732 = vmatprep.subr.bf16.mxu0 %v1546_v51 }
  0xa0   :  { %665 = vrot.lane.b32.xlu1 %v26300_v4, %s26230_s18  ;;  %1733 = vmatpush1.bf16.msra.mxu0 %v1545_v52 }
  0xa1   :  { %v126_v53 = vpop.permute.xlu0 %125  ;;  %23824 = vmatmul.mubr.msk.bf16.vlgmr.msra.gmra.mrb[8].mxu1 %vm154_vm1, %v26488_v29  ;;  %v128_v54 = vpop.permute.xlu1 %127 }
  0xa2   :  { %v140_v55 = vsel %vm133_vm2, %v124_v45, %v126_v53  ;;  %319 = vmatprep.mubr.bf16.mxu1 %v32152_v1  ;;  %v141_v56 = vsel %vm133_vm2, %v126_v53, %v128_v54 }
  0xa3   :  { %667 = vrot.lane.b32.xlu0 %v26307_v5, %s26230_s18  ;;  %23864 = vmatmul.mubr.msk.bf16.vlgmr.msra.gmra.mrb[4].mxu0 %vm154_vm1, %v26097_v35 }
  0xa4   :  { %2688 = vrot.lane.b32.xlu1 %v26300_v4, %s26231_s26  ;;  %287 = vmatprep.subr.bf16.mxu1 %v141_v56 }
  0xa5   :  { %288 = vmatpush1.bf16.msra.mxu1 %v140_v55  ;;  %v1806_v57 = vpop.permute.xlu0 %1805  ;;  %1881 = vmatprep.mubr.bf16.mxu0 %v32152_v1  ;;  %v26566_v58 = vpop.permute.xlu1 %1807 }
  0xa6   :  { %v1827_v59 = vsel %vm32177_vm4, %v1806_v57, %v26566_v58 }
  0xa7   :  { %2690 = vrot.lane.b32.xlu0 %v26307_v5, %s26231_s26  ;;  %1849 = vmatprep.subr.bf16.mxu0 %v1827_v59 }
  0xa8   :  { %2686 = vrot.lane.b32.xlu1 %v26314_v6, %s26231_s26 }
  0xa9   :  { %v1804_v60 = vpop.permute.xlu0 %1803  ;;  %23825 = vmatmul.mubr.msk.bf16.vlgmr.msra.gmra.mrb[12].mxu1 %vm154_vm1, %v26488_v29  ;;  %v130_v61 = vpop.permute.xlu1 %129 }
  0xaa   :  { %v1826_v62 = vsel %vm32177_vm4, %v1804_v60, %v1806_v57  ;;  %362 = vmatprep.mubr.bf16.mxu1 %v32152_v1  ;;  %v142_v17 = vsel %vm133_vm2, %v128_v54, %v130_v61 }
  0xab   :  { %938 = vrot.lane.b32.xlu0 %v26319_v7, %s26232_s29  ;;  %1850 = vmatpush1.bf16.msra.mxu0 %v1826_v62 }
  0xac   :  { %940 = vrot.lane.b32.xlu1 %v26324_v8, %s26232_s29 }
  0xad   :  { %v132_v12 = vpop.permute.xlu0 %131  ;;  %v1814_v15 = vpop.permute.xlu1 %1813 }
  0xae   :  { %v143_v16 = vsel %vm133_vm2, %v130_v61, %v132_v12  ;;  %23868 = vmatmul.mubr.msk.bf16.vlgmr.msra.gmra.mrb[8].mxu0 %vm154_vm1, %v26098_v63 }
  0xaf   :  { %936 = vrot.lane.b32.xlu0 %v26335_v9, %s26232_s29  ;;  %330 = vmatprep.subr.bf16.mxu1 %v143_v16 }
  0xb0   :  { %2961 = vrot.lane.b32.xlu1 %v26319_v7, %s26233_s30  ;;  %331 = vmatpush1.bf16.msra.mxu1 %v142_v17 }
  0xb1   :  { %v26592_v18 = vpop.permute.xlu0 %1815  ;;  %1967 = vmatprep.mubr.bf16.mxu0 %v32152_v1  ;;  %v26595_v19 = vpop.permute.xlu1 %1811 }
  0xb2   :  { %v1831_v21 = vsel %vm32177_vm4, %v1814_v15, %v26592_v18  ;;  %v1830_v22 = vsel %vm32177_vm4, %v26595_v19, %v1814_v15 }
  0xb3   :  { %2963 = vrot.lane.b32.xlu0 %v26324_v8, %s26233_s30  ;;  %1935 = vmatprep.subr.bf16.mxu0 %v1831_v21 }
  0xb4   :  { %2959 = vrot.lane.b32.xlu1 %v26335_v9, %s26233_s30  ;;  %1936 = vmatpush1.bf16.msra.mxu0 %v1830_v22 }
  0xb5   :  { %v381_v23 = vpop.permute.xlu0 %380  ;;  %23826 = vmatmul.mubr.msk.bf16.vlgmr.msra.gmra.mrb[16].mxu1 %vm154_vm1, %v26488_v29  ;;  %v383_v24 = vpop.permute.xlu1 %382  ;;  %v26619_v29 = vld [vmem:[%s32127_s1] sm:$0xff]  }
  0xb6   :  { %456 = vmatprep.mubr.bf16.mxu1 %v32152_v1  ;;  %v402_v25 = vsel %vm400_vm5, %v381_v23, %v383_v24 }
  0xb7   :  { %942 = vrot.lane.b32.xlu0 %v26346_v10, %s26232_s29  ;;  %23870 = vmatmul.mubr.msk.bf16.vlgmr.msra.gmra.mrb[0].mxu0 %vm154_vm1, %v26098_v63 }
  0xb8   :  { %944 = vrot.lane.b32.xlu1 %v26284_v2, %s26232_s29  ;;  %424 = vmatprep.subr.bf16.mxu1 %v402_v25 }
  0xb9   :  { %v379_v26 = vpop.permute.xlu0 %378  ;;  %2053 = vmatprep.mubr.bf16.mxu0 %v32152_v1  ;;  %v1822_v27 = vpop.permute.xlu1 %1821 }
  0xba   :  { %v401_v28 = vsel %vm400_vm5, %v379_v26, %v381_v23 }
  0xbb   :  { %2969 = vrot.lane.b32.xlu0 %v26277_v0, %s26233_s30  ;;  %425 = vmatpush1.bf16.msra.mxu1 %v401_v28 }
  0xbc   :  { %2971 = vrot.lane.b32.xlu1 %v26293_v3, %s26233_s30 }
  0xbd   :  { %v1824_v31 = vpop.permute.xlu0 %1823  ;;  %v26625_v32 = vpop.permute.xlu1 %1819 }
  0xbe   :  { %v1835_v33 = vsel %vm32177_vm4, %v1822_v27, %v1824_v31  ;;  %23828 = vmatmul.mubr.msk.bf16.vlgmr.msra.gmra.mrb[0].mxu1 %vm154_vm1, %v26619_v29  ;;  %v1834_v34 = vsel %vm32177_vm4, %v26625_v32, %v1822_v27  ;;  %v26199_v31 = vld [vmem:[%s32126_s0 + $0x8] ss:$48 sps:$4 sm:$0xff]  }
  0xbf   :  { %2967 = vrot.lane.b32.xlu0 %v26284_v2, %s26233_s30  ;;  %2021 = vmatprep.subr.bf16.mxu0 %v1835_v33 }
  0xc0   :  { %946 = vrot.lane.b32.xlu1 %v26277_v0, %s26232_s29  ;;  %2022 = vmatpush1.bf16.msra.mxu0 %v1834_v34 }
  0xc1   :  { %v385_v35 = vpop.permute.xlu0 %384  ;;  %499 = vmatprep.mubr.bf16.mxu1 %v32152_v1  ;;  %v387_v36 = vpop.permute.xlu1 %386 }
  0xc2   :  { %v403_v37 = vsel %vm400_vm5, %v383_v24, %v385_v35  ;;  %v404_v38 = vsel %vm400_vm5, %v385_v35, %v387_v36  ;;  %v26734_v24 = vld [vmem:[%s32127_s1 + $0x40] sm:$0xff]  }
  0xc3   :  { %948 = vrot.lane.b32.xlu0 %v26293_v3, %s26232_s29  ;;  %23872 = vmatmul.mubr.msk.bf16.vlgmr.msra.gmra.mrb[4].mxu0 %vm154_vm1, %v26098_v63 }
  0xc4   :  { %2977 = vrot.lane.b32.xlu1 %v26300_v4, %s26233_s30  ;;  %467 = vmatprep.subr.bf16.mxu1 %v404_v38 }
  0xc5   :  { %468 = vmatpush1.bf16.msra.mxu1 %v403_v37  ;;  %v2095_v39 = vpop.permute.xlu0 %2094  ;;  %2170 = vmatprep.mubr.bf16.mxu0 %v32152_v1  ;;  %v26645_v41 = vpop.permute.xlu1 %2096 }
  0xc6   :  { %v2116_v43 = vsel %vm32178_vm6, %v2095_v39, %v26645_v41 }
  0xc7   :  { %2979 = vrot.lane.b32.xlu0 %v26307_v5, %s26233_s30  ;;  %2138 = vmatprep.subr.bf16.mxu0 %v2116_v43  ;;  %v26201_v43 = vld [vmem:[%s32126_s0 + $0x18] ss:$48 sps:$4 sm:$0xff]  }
  0xc8   :  { %2975 = vrot.lane.b32.xlu1 %v26314_v6, %s26233_s30  ;;  %23829 = vmatmul.mubr.msk.bf16.vlgmr.msra.gmra.mrb[4].mxu1 %vm154_vm1, %v26619_v29 }
  0xc9   :  { %v2093_v44 = vpop.permute.xlu0 %2092  ;;  %v389_v45 = vpop.permute.xlu1 %388  ;;  %542 = vmatprep.mubr.bf16.mxu1 %v32152_v1 }
  0xca   :  { %v2115_v46 = vsel %vm32178_vm6, %v2093_v44, %v2095_v39  ;;  %v405_v52 = vsel %vm400_vm5, %v387_v36, %v389_v45 }
  0xcb   :  { %950 = vrot.lane.b32.xlu0 %v26371_v11, %s26232_s29  ;;  %2139 = vmatpush1.bf16.msra.mxu0 %v2115_v46 }
  0xcc   :  { %952 = vrot.lane.b32.xlu1 %v26314_v6, %s26232_s29 }
  0xcd   :  { %v391_v48 = vpop.permute.xlu0 %390  ;;  %v2103_v49 = vpop.permute.xlu1 %2102 }
  0xce   :  { %v406_v51 = vsel %vm400_vm5, %v389_v45, %v391_v48  ;;  %23876 = vmatmul.mubr.msk.bf16.vlgmr.msra.gmra.mrb[8].mxu0 %vm154_vm1, %v26659_v47  ;;  %v26202_v45 = vld [vmem:[%s32126_s0 + $0x10] ss:$48 sps:$4 sm:$0xff]  }
  0xcf   :  { %3250 = vrot.lane.b32.xlu0 %v26319_v7, %s26234_s11  ;;  %510 = vmatprep.subr.bf16.mxu1 %v406_v51  ;;  %v26203_v51 = vld [vmem:[%s32126_s0 + $0x24] ss:$48 sps:$4 sm:$0xff]  }
  0xd0   :  { %3252 = vrot.lane.b32.xlu1 %v26324_v8, %s26234_s11  ;;  %511 = vmatpush1.bf16.msra.mxu1 %v405_v52 }
  0xd1   :  { %v26674_v53 = vpop.permute.xlu0 %2104  ;;  %2256 = vmatprep.mubr.bf16.mxu0 %v32152_v1  ;;  %v26677_v54 = vpop.permute.xlu1 %2100 }
  0xd2   :  { %v2120_v55 = vsel %vm32178_vm6, %v2103_v49, %v26674_v53  ;;  %v2119_v56 = vsel %vm32178_vm6, %v26677_v54, %v2103_v49 }
  0xd3   :  { %3248 = vrot.lane.b32.xlu0 %v26335_v9, %s26234_s11  ;;  %2224 = vmatprep.subr.bf16.mxu0 %v2120_v55 }
  0xd4   :  { %954 = vrot.lane.b32.xlu1 %v26300_v4, %s26232_s29  ;;  %2225 = vmatpush1.bf16.msra.mxu0 %v2119_v56 }
  0xd5   :  { %v393_v57 = vpop.permute.xlu0 %392  ;;  %23830 = vmatmul.mubr.msk.bf16.vlgmr.msra.gmra.mrb[8].mxu1 %vm154_vm1, %v26619_v29  ;;  %v395_v59 = vpop.permute.xlu1 %394 }
  0xd6   :  { %v407_v60 = vsel %vm400_vm5, %v391_v48, %v393_v57  ;;  %585 = vmatprep.mubr.bf16.mxu1 %v32152_v1  ;;  %v408_v61 = vsel %vm400_vm5, %v393_v57, %v395_v59  ;;  %v26205_v57 = vld [vmem:[%s32126_s0 + $0x20] ss:$48 sps:$4 sm:$0xff]  }
  0xd7   :  { %956 = vrot.lane.b32.xlu0 %v26307_v5, %s26232_s29  ;;  %23878 = vmatmul.mubr.msk.bf16.vlgmr.msra.gmra.mrb[0].mxu0 %vm154_vm1, %v26659_v47 }
  0xd8   :  { %3258 = vrot.lane.b32.xlu1 %v26277_v0, %s26234_s11  ;;  %553 = vmatprep.subr.bf16.mxu1 %v408_v61 }
  0xd9   :  { %554 = vmatpush1.bf16.msra.mxu1 %v407_v60  ;;  %v2111_v62 = vpop.permute.xlu0 %2110  ;;  %2342 = vmatprep.mubr.bf16.mxu0 %v32152_v1  ;;  %v2113_v63 = vpop.permute.xlu1 %2112 }
  0xda   :  { %v2124_v12 = vsel %vm32178_vm6, %v2111_v62, %v2113_v63  ;;  %v26824_v63 = vld [vmem:[%s32126_s0 + $0xc] ss:$48 sps:$4 sm:$0xff]  }
  0xdb   :  { %3260 = vrot.lane.b32.xlu0 %v26293_v3, %s26234_s11  ;;  %2310 = vmatprep.subr.bf16.mxu0 %v2124_v12 }
  0xdc   :  { %3256 = vrot.lane.b32.xlu1 %v26284_v2, %s26234_s11 }
  0xdd   :  { %v26704_v15 = vpop.permute.xlu0 %2108  ;;  %23831 = vmatmul.mubr.msk.bf16.vlgmr.msra.gmra.mrb[12].mxu1 %vm154_vm1, %v26619_v29  ;;  %v397_v0 = vpop.permute.xlu1 %396 }
  0xde   :  { %v2123_v16 = vsel %vm32178_vm6, %v26704_v15, %v2111_v62  ;;  %628 = vmatprep.mubr.bf16.mxu1 %v32152_v1  ;;  %v409_v21 = vsel %vm400_vm5, %v395_v59, %v397_v0 }
  0xdf   :  { %1227 = vrot.lane.b32.xlu0 %v26319_v7, %s26223_s19  ;;  %2311 = vmatpush1.bf16.msra.mxu0 %v2123_v16 }
  0xe0   :  { %1229 = vrot.lane.b32.xlu1 %v26324_v8, %s26223_s19 }
  0xe1   :  { %v399_v2 = vpop.permute.xlu0 %398  ;;  %v2384_v3 = vpop.permute.xlu1 %2383 }
  0xe2   :  { %v410_v17 = vsel %vm400_vm5, %v397_v0, %v399_v2  ;;  %23880 = vmatmul.mubr.msk.bf16.vlgmr.msra.gmra.mrb[4].mxu0 %vm154_vm1, %v26659_v47 }
  0xe3   :  { %1225 = vrot.lane.b32.xlu0 %v26335_v9, %s26223_s19  ;;  %596 = vmatprep.subr.bf16.mxu1 %v410_v17  ;;  %v26844_v17 = vld [vmem:[%s32126_s0 + $0x8] ss:$48 sps:$4 sm:$0xff]  }
  0xe4   :  { %3266 = vrot.lane.b32.xlu1 %v26300_v4, %s26234_s11  ;;  %597 = vmatpush1.bf16.msra.mxu1 %v409_v21  ;;  %v26851_v21 = vld [vmem:[%s32126_s0 + $0xc] ss:$48 sps:$4 sm:$0xff]  }
  0xe5   :  { %v26723_v7 = vpop.permute.xlu0 %2385  ;;  %2459 = vmatprep.mubr.bf16.mxu0 %v32152_v1  ;;  %v2382_v8 = vpop.permute.xlu1 %2381 }
  0xe6   :  { %v2405_v22 = vsel %vm32131_vm7, %v2384_v3, %v26723_v7  ;;  %v2404_v23 = vsel %vm32131_vm7, %v2382_v8, %v2384_v3  ;;  %v26839_v3 = vld [vmem:[%s32127_s1 + $0x48] sm:$0xff]  }
  0xe7   :  { %3268 = vrot.lane.b32.xlu0 %v26307_v5, %s26234_s11  ;;  %2427 = vmatprep.subr.bf16.mxu0 %v2405_v22 }
  0xe8   :  { %3264 = vrot.lane.b32.xlu1 %v26314_v6, %s26234_s11  ;;  %2428 = vmatpush1.bf16.msra.mxu0 %v2404_v23  ;;  %v26198_v6 = vld [vmem:[%s32126_s0 + $0x4] ss:$48 sps:$4 sm:$0xff]  }
  0xe9   :  { %v650_v4 = vpop.permute.xlu0 %649  ;;  %23832 = vmatmul.mubr.msk.bf16.vlgmr.msra.gmra.mrb[16].mxu1 %vm154_vm1, %v26619_v29  ;;  %v652_v25 = vpop.permute.xlu1 %651  ;;  %v26755_v29 = vld [vmem:[%s32127_s1 + $0x10] sm:$0xff]  }
  0xea   :  { %725 = vmatprep.mubr.bf16.mxu1 %v32152_v1  ;;  %v671_v5 = vsel %vm669_vm8, %v650_v4, %v652_v25 }
  0xeb   :  { %1231 = vrot.lane.b32.xlu0 %v26346_v10, %s26223_s19  ;;  %23884 = vmatmul.mubr.msk.bf16.vlgmr.msra.gmra.mrb[8].mxu0 %vm154_vm1, %v26734_v24 }
  0xec   :  { %3539 = vrot.lane.b32.xlu1 %v26198_v6, %s26235_s22  ;;  %693 = vmatprep.subr.bf16.mxu1 %v671_v5 }
  0xed   :  { %v648_v26 = vpop.permute.xlu0 %647  ;;  %2545 = vmatprep.mubr.bf16.mxu0 %v32152_v1 }
  0xee   :  { %v2392_v27 = vpop.permute.xlu1 %2391  ;;  %v670_v28 = vsel %vm669_vm8, %v648_v26, %v650_v4 }
  0xef   :  { %3541 = vrot.lane.b32.xlu0 %v26199_v31, %s26235_s22  ;;  %694 = vmatpush1.bf16.msra.mxu1 %v670_v28  ;;  %v26886_v28 = vld [vmem:[%s32126_s0 + $0x1c] ss:$48 sps:$4 sm:$0xff]  }
  0xf0   :  { %3537 = vrot.lane.b32.xlu1 %v26335_v9, %s26235_s22  ;;  %v26200_v9 = vld [vmem:[%s32126_s0 + $0x14] ss:$48 sps:$4 sm:$0xff]  }
  0xf1   :  { %v26763_v33 = vpop.permute.xlu0 %2393 }
  0xf2   :  { %v26765_v34 = vpop.permute.xlu1 %2389  ;;  %v2409_v35 = vsel %vm32131_vm7, %v2392_v27, %v26763_v33  ;;  %23836 = vmatmul.mubr.msk.bf16.vlgmr.msra.gmra.mrb[0].mxu1 %vm154_vm1, %v26755_v29 }
  0xf3   :  { %1239 = vrot.lane.b32.xlu0 %v26371_v11, %s26223_s19  ;;  %2513 = vmatprep.subr.bf16.mxu0 %v2409_v35  ;;  %v2408_v36 = vsel %vm32131_vm7, %v26765_v34, %v2392_v27  ;;  %v26879_v27 = vld [vmem:[%s32126_s0 + $0x18] ss:$48 sps:$4 sm:$0xff]  }
  0xf4   :  { %3547 = vrot.lane.b32.xlu1 %v26200_v9, %s26235_s22  ;;  %2514 = vmatpush1.bf16.msra.mxu0 %v2408_v36 }
  0xf5   :  { %v654_v37 = vpop.permute.xlu0 %653  ;;  %768 = vmatprep.mubr.bf16.mxu1 %v32152_v1 }
  0xf6   :  { %v656_v38 = vpop.permute.xlu1 %655  ;;  %v672_v39 = vsel %vm669_vm8, %v652_v25, %v654_v37  ;;  %v26865_v25 = vld [vmem:[%s32126_s0 + $0x4] ss:$48 sps:$4 sm:$0xff]  }
  0xf7   :  { %3549 = vrot.lane.b32.xlu0 %v26201_v43, %s26235_s22  ;;  %v673_v44 = vsel %vm669_vm8, %v654_v37, %v656_v38  ;;  %23886 = vmatmul.mubr.msk.bf16.vlgmr.msra.gmra.mrb[0].mxu0 %vm154_vm1, %v26734_v24  ;;  %v26915_v43 = vld [vmem:[%s32126_s0 + $0x2c] ss:$48 sps:$4 sm:$0xff]  }
  0xf8   :  { %3545 = vrot.lane.b32.xlu1 %v26202_v45, %s26235_s22  ;;  %736 = vmatprep.subr.bf16.mxu1 %v673_v44  ;;  %v26921_v45 = vld [vmem:[%s32126_s0 + $0x28] ss:$48 sps:$4 sm:$0xff]  }
  0xf9   :  { %737 = vmatpush1.bf16.msra.mxu1 %v672_v39  ;;  %v2400_v46 = vpop.permute.xlu0 %2399  ;;  %2631 = vmatprep.mubr.bf16.mxu0 %v32152_v1 }
  0xfa   :  { %v2402_v48 = vpop.permute.xlu1 %2401 }
  0xfb   :  { %1520 = vrot.lane.b32.xlu0 %v26346_v10, %s26225_s9  ;;  %v2413_v49 = vsel %vm32131_vm7, %v2400_v46, %v2402_v48  ;;  %v26204_v10 = vld [vmem:[%s32126_s0 + $0x28] ss:$48 sps:$4 sm:$0xff]  }
  0xfc   :  { %3555 = vrot.lane.b32.xlu1 %v26203_v51, %s26235_s22  ;;  %2599 = vmatprep.subr.bf16.mxu0 %v2413_v49 }
  0xfd   :  { %v26800_v52 = vpop.permute.xlu0 %2397  ;;  %23837 = vmatmul.mubr.msk.bf16.vlgmr.msra.gmra.mrb[4].mxu1 %vm154_vm1, %v26755_v29 }
  0xfe   :  { %v658_v55 = vpop.permute.xlu1 %657  ;;  %v2412_v56 = vsel %vm32131_vm7, %v26800_v52, %v2400_v46  ;;  %811 = vmatprep.mubr.bf16.mxu1 %v32152_v1 }
  0xff   :  { %3557 = vrot.lane.b32.xlu0 %v26204_v10, %s26235_s22  ;;  %2600 = vmatpush1.bf16.msra.mxu0 %v2412_v56  ;;  %v674_v62 = vsel %vm669_vm8, %v656_v38, %v658_v55 }
 0x100   :  { %3553 = vrot.lane.b32.xlu1 %v26205_v57, %s26235_s22 }
 0x101   :  { %v660_v59 = vpop.permute.xlu0 %659 }
 0x102   :  { %v2673_v60 = vpop.permute.xlu1 %2672  ;;  %v675_v61 = vsel %vm669_vm8, %v658_v55, %v660_v59  ;;  %23888 = vmatmul.mubr.msk.bf16.vlgmr.msra.gmra.mrb[4].mxu0 %vm154_vm1, %v26734_v24  ;;  %v26938_v55 = vld [vmem:[%s32126_s0 + $0x24] ss:$48 sps:$4 sm:$0xff]  }
 0x103   :  { %1528 = vrot.lane.b32.xlu0 %v26371_v11, %s26225_s9  ;;  %779 = vmatprep.subr.bf16.mxu1 %v675_v61  ;;  %v26957_v61 = vld [vmem:[%s32127_s1 + $0x18] sm:$0xff]  }
 0x104   :  { %1809 = vrot.lane.b32.xlu1 %v26824_v63, %s26226_s14  ;;  %780 = vmatpush1.bf16.msra.mxu1 %v674_v62 }
 0x105   :  { %v26828_v12 = vpop.permute.xlu0 %2674  ;;  %2748 = vmatprep.mubr.bf16.mxu0 %v32152_v1 }
 0x106   :  { %v2671_v0 = vpop.permute.xlu1 %2670  ;;  %v2694_v16 = vsel %vm32193_vm9, %v2673_v60, %v26828_v12 }
 0x107   :  { %v2693_v2 = vsel %vm32193_vm9, %v2671_v0, %v2673_v60  ;;  %1817 = vrot.lane.b32.xlu0 %v26371_v11, %s26226_s14  ;;  %2716 = vmatprep.subr.bf16.mxu0 %v2694_v16 }
 0x108   :  { %2098 = vrot.lane.b32.xlu1 %v26824_v63, %s26228_s16  ;;  %2717 = vmatpush1.bf16.msra.mxu0 %v2693_v2 }
 0x109   :  { %v662_v8 = vpop.permute.xlu0 %661  ;;  %23838 = vmatmul.mubr.msk.bf16.vlgmr.msra.gmra.mrb[8].mxu1 %vm154_vm1, %v26755_v29 }
 0x10a   :  { %v664_v22 = vpop.permute.xlu1 %663  ;;  %v676_v23 = vsel %vm669_vm8, %v660_v59, %v662_v8  ;;  %854 = vmatprep.mubr.bf16.mxu1 %v32152_v1 }
 0x10b   :  { %v677_v4 = vsel %vm669_vm8, %v662_v8, %v664_v22  ;;  %23892 = vmatmul.mubr.msk.bf16.vlgmr.msra.gmra.mrb[8].mxu0 %vm154_vm1, %v26839_v3  ;;  %4191 = vrot.lane.b32.xlu0 %v26844_v17, %s26236_s20  ;;  %v26974_v8 = vld [vmem:[%s32127_s1 + $0x50] sm:$0xff]  }
 0x10c   :  { %4193 = vrot.lane.b32.xlu1 %v26851_v21, %s26236_s20  ;;  %822 = vmatprep.subr.bf16.mxu1 %v677_v4 }
 0x10d   :  { %823 = vmatpush1.bf16.msra.mxu1 %v676_v23  ;;  %v2681_v5 = vpop.permute.xlu0 %2680  ;;  %2834 = vmatprep.mubr.bf16.mxu0 %v32152_v1 }
 0x10e   :  { %v26870_v6 = vpop.permute.xlu1 %2682 }
 0x10f   :  { %v2698_v26 = vsel %vm32193_vm9, %v2681_v5, %v26870_v6  ;;  %4189 = vrot.lane.b32.xlu0 %v26865_v25, %s26236_s20 }
 0x110   :  { %2106 = vrot.lane.b32.xlu1 %v26371_v11, %s26228_s16  ;;  %2802 = vmatprep.subr.bf16.mxu0 %v2698_v26  ;;  %v26900_v11 = vld [vmem:[%s32126_s0 + $0x14] ss:$48 sps:$4 sm:$0xff]  }
 0x111   :  { %v26888_v31 = vpop.permute.xlu0 %2678  ;;  %23839 = vmatmul.mubr.msk.bf16.vlgmr.msra.gmra.mrb[12].mxu1 %vm154_vm1, %v26755_v29 }
 0x112   :  { %v666_v35 = vpop.permute.xlu1 %665  ;;  %v2697_v36 = vsel %vm32193_vm9, %v26888_v31, %v2681_v5  ;;  %897 = vmatprep.mubr.bf16.mxu1 %v32152_v1 }
 0x113   :  { %2803 = vmatpush1.bf16.msra.mxu0 %v2697_v36  ;;  %4199 = vrot.lane.b32.xlu0 %v26879_v27, %s26236_s20  ;;  %v678_v39 = vsel %vm669_vm8, %v664_v22, %v666_v35 }
 0x114   :  { %4201 = vrot.lane.b32.xlu1 %v26886_v28, %s26236_s20 }
 0x115   :  { %v668_v9 = vpop.permute.xlu0 %667 }
 0x116   :  { %v2689_v37 = vpop.permute.xlu1 %2688  ;;  %v679_v38 = vsel %vm669_vm8, %v666_v35, %v668_v9  ;;  %23894 = vmatmul.mubr.msk.bf16.vlgmr.msra.gmra.mrb[0].mxu0 %vm154_vm1, %v26839_v3 }
 0x117   :  { %865 = vmatprep.subr.bf16.mxu1 %v679_v38  ;;  %4197 = vrot.lane.b32.xlu0 %v26900_v11, %s26236_s20 }
 0x118   :  { %2387 = vrot.lane.b32.xlu1 %v26824_v63, %s26229_s17  ;;  %866 = vmatpush1.bf16.msra.mxu1 %v678_v39 }
 0x119   :  { %v2691_v44 = vpop.permute.xlu0 %2690  ;;  %2920 = vmatprep.mubr.bf16.mxu0 %v32152_v1 }
 0x11a   :  { %v26923_v46 = vpop.permute.xlu1 %2686  ;;  %v2702_v48 = vsel %vm32193_vm9, %v2689_v37, %v2691_v44 }
 0x11b   :  { %2888 = vmatprep.subr.bf16.mxu0 %v2702_v48  ;;  %v2701_v49 = vsel %vm32193_vm9, %v26923_v46, %v2689_v37  ;;  %23840 = vmatmul.mubr.msk.bf16.vlgmr.msra.gmra.mrb[16].mxu1 %vm154_vm1, %v26755_v29  ;;  %v26946_v29 = vld [vmem:[%s32126_s0 + $0x1c] ss:$48 sps:$4 sm:$0xff]  }
 0x11c   :  { %4209 = vrot.lane.b32.xlu1 %v26915_v43, %s26236_s20  ;;  %2889 = vmatpush1.bf16.msra.mxu0 %v2701_v49 }
 0x11d   :  { %v939_v51 = vpop.permute.xlu0 %938  ;;  %4207 = vrot.lane.b32.xlu0 %v26921_v45, %s26236_s20  ;;  %1014 = vmatprep.mubr.bf16.mxu1 %v32152_v1 }
 0x11e   :  { %v941_v56 = vpop.permute.xlu1 %940 }
 0x11f   :  { %v960_v10 = vsel %vm958_vm10, %v939_v51, %v941_v56  ;;  %23896 = vmatmul.mubr.msk.bf16.vlgmr.msra.gmra.mrb[4].mxu0 %vm154_vm1, %v26839_v3 }
 0x120   :  { %2395 = vrot.lane.b32.xlu1 %v26946_v29, %s26229_s17  ;;  %982 = vmatprep.subr.bf16.mxu1 %v960_v10 }
 0x121   :  { %v937_v57 = vpop.permute.xlu0 %936  ;;  %4205 = vrot.lane.b32.xlu0 %v26938_v55, %s26236_s20  ;;  %3037 = vmatprep.mubr.bf16.mxu0 %v32152_v1 }
 0x122   :  { %v2962_v59 = vpop.permute.xlu1 %2961  ;;  %v959_v60 = vsel %vm958_vm10, %v937_v57, %v939_v51 }
 0x123   :  { %983 = vmatpush1.bf16.msra.mxu1 %v959_v60 }
 0x124   :  { %4482 = vrot.lane.b32.xlu1 %v26851_v21, %s26237_s5 }
 0x125   :  { %v26961_v62 = vpop.permute.xlu0 %2963  ;;  %4480 = vrot.lane.b32.xlu0 %v26844_v17, %s26237_s5 }
 0x126   :  { %v2960_v0 = vpop.permute.xlu1 %2959  ;;  %v2983_v16 = vsel %vm32132_vm11, %v2962_v59, %v26961_v62  ;;  %23844 = vmatmul.mubr.msk.bf16.vlgmr.msra.gmra.mrb[0].mxu1 %vm154_vm1, %v26957_v61 }
 0x127   :  { %v2982_v2 = vsel %vm32132_vm11, %v2960_v0, %v2962_v59  ;;  %3005 = vmatprep.subr.bf16.mxu0 %v2983_v16  ;;  %1057 = vmatprep.mubr.bf16.mxu1 %v32152_v1 }
 0x128   :  { %2676 = vrot.lane.b32.xlu1 %v26824_v63, %s26231_s26  ;;  %3006 = vmatpush1.bf16.msra.mxu0 %v2982_v2 }
 0x129   :  { %v943_v22 = vpop.permute.xlu0 %942  ;;  %4478 = vrot.lane.b32.xlu0 %v26865_v25, %s26237_s5 }
 0x12a   :  { %v945_v23 = vpop.permute.xlu1 %944  ;;  %v961_v4 = vsel %vm958_vm10, %v941_v56, %v943_v22 }
 0x12b   :  { %v962_v5 = vsel %vm958_vm10, %v943_v22, %v945_v23  ;;  %23900 = vmatmul.mubr.msk.bf16.vlgmr.msra.gmra.mrb[8].mxu0 %vm154_vm1, %v26974_v8 }
 0x12c   :  { %4490 = vrot.lane.b32.xlu1 %v26886_v28, %s26237_s5  ;;  %1025 = vmatprep.subr.bf16.mxu1 %v962_v5 }
 0x12d   :  { %1026 = vmatpush1.bf16.msra.mxu1 %v961_v4  ;;  %v2970_v26 = vpop.permute.xlu0 %2969  ;;  %4488 = vrot.lane.b32.xlu0 %v26879_v27, %s26237_s5 }
 0x12e   :  { %v26988_v35 = vpop.permute.xlu1 %2971  ;;  %3123 = vmatprep.mubr.bf16.mxu0 %v32152_v1 }
 0x12f   :  { %v2987_v36 = vsel %vm32132_vm11, %v2970_v26, %v26988_v35 }
 0x130   :  { %2684 = vrot.lane.b32.xlu1 %v26946_v29, %s26231_s26  ;;  %3091 = vmatprep.subr.bf16.mxu0 %v2987_v36  ;;  %v27053_v36 = vld [vmem:[%s32127_s1 + $0x58] sm:$0xff]  }
 0x131   :  { %v26995_v9 = vpop.permute.xlu0 %2967  ;;  %23845 = vmatmul.mubr.msk.bf16.vlgmr.msra.gmra.mrb[4].mxu1 %vm154_vm1, %v26957_v61  ;;  %4486 = vrot.lane.b32.xlu0 %v26900_v11, %s26237_s5 }
 0x132   :  { %v947_v37 = vpop.permute.xlu1 %946  ;;  %v2986_v38 = vsel %vm32132_vm11, %v26995_v9, %v2970_v26  ;;  %1100 = vmatprep.mubr.bf16.mxu1 %v32152_v1 }
 0x133   :  { %3092 = vmatpush1.bf16.msra.mxu0 %v2986_v38  ;;  %v963_v49 = vsel %vm958_vm10, %v945_v23, %v947_v37 }
 0x134   :  { %4498 = vrot.lane.b32.xlu1 %v26915_v43, %s26237_s5 }
 0x135   :  { %v949_v39 = vpop.permute.xlu0 %948  ;;  %4496 = vrot.lane.b32.xlu0 %v26921_v45, %s26237_s5 }
 0x136   :  { %v2978_v44 = vpop.permute.xlu1 %2977  ;;  %v964_v48 = vsel %vm958_vm10, %v947_v37, %v949_v39  ;;  %23902 = vmatmul.mubr.msk.bf16.vlgmr.msra.gmra.mrb[0].mxu0 %vm154_vm1, %v26974_v8 }
 0x137   :  { %1068 = vmatprep.subr.bf16.mxu1 %v964_v48  ;;  %3209 = vmatprep.mubr.bf16.mxu0 %v32152_v1 }
 0x138   :  { %2965 = vrot.lane.b32.xlu1 %v26824_v63, %s26233_s30  ;;  %1069 = vmatpush1.bf16.msra.mxu1 %v963_v49 }
 0x139   :  { %v2980_v51 = vpop.permute.xlu0 %2979  ;;  %4494 = vrot.lane.b32.xlu0 %v26938_v55, %s26237_s5 }
 0x13a   :  { %v27017_v56 = vpop.permute.xlu1 %2975  ;;  %v2991_v10 = vsel %vm32132_vm11, %v2978_v44, %v2980_v51 }
 0x13b   :  { %23846 = vmatmul.mubr.msk.bf16.vlgmr.msra.gmra.mrb[8].mxu1 %vm154_vm1, %v26957_v61  ;;  %3177 = vmatprep.subr.bf16.mxu0 %v2991_v10  ;;  %v2990_v57 = vsel %vm32132_vm11, %v27017_v56, %v2978_v44 }
 0x13c   :  { %4771 = vrot.lane.b32.xlu1 %v26851_v21, %s26238_s10  ;;  %3178 = vmatpush1.bf16.msra.mxu0 %v2990_v57 }
 0x13d   :  { %v951_v59 = vpop.permute.xlu0 %950  ;;  %1143 = vmatprep.mubr.bf16.mxu1 %v32152_v1  ;;  %4769 = vrot.lane.b32.xlu0 %v26844_v17, %s26238_s10 }
 0x13e   :  { %v953_v60 = vpop.permute.xlu1 %952  ;;  %v965_v0 = vsel %vm958_vm10, %v949_v39, %v951_v59 }
 0x13f   :  { %v966_v16 = vsel %vm958_vm10, %v951_v59, %v953_v60  ;;  %23904 = vmatmul.mubr.msk.bf16.vlgmr.msra.gmra.mrb[4].mxu0 %vm154_vm1, %v26974_v8 }
 0x140   :  { %2973 = vrot.lane.b32.xlu1 %v26946_v29, %s26233_s30  ;;  %1111 = vmatprep.subr.bf16.mxu1 %v966_v16 }
 0x141   :  { %1112 = vmatpush1.bf16.msra.mxu1 %v965_v0  ;;  %v3251_v2 = vpop.permute.xlu0 %3250  ;;  %4767 = vrot.lane.b32.xlu0 %v26865_v25, %s26238_s10 }
 0x142   :  { %v27037_v22 = vpop.permute.xlu1 %3252  ;;  %3326 = vmatprep.mubr.bf16.mxu0 %v32152_v1 }
 0x143   :  { %v3272_v23 = vsel %vm32135_vm12, %v3251_v2, %v27037_v22 }
 0x144   :  { %4779 = vrot.lane.b32.xlu1 %v26886_v28, %s26238_s10  ;;  %3294 = vmatprep.subr.bf16.mxu0 %v3272_v23 }
 0x145   :  { %v3249_v4 = vpop.permute.xlu0 %3248  ;;  %23847 = vmatmul.mubr.msk.bf16.vlgmr.msra.gmra.mrb[12].mxu1 %vm154_vm1, %v26957_v61  ;;  %4777 = vrot.lane.b32.xlu0 %v26879_v27, %s26238_s10 }
 0x146   :  { %v955_v5 = vpop.permute.xlu1 %954  ;;  %v3271_v26 = vsel %vm32135_vm12, %v3249_v4, %v3251_v2  ;;  %1186 = vmatprep.mubr.bf16.mxu1 %v32152_v1  ;;  %v26208_v4 = vld [vmem:[%s32127_s1 + $0x20] sm:$0xff]  }
 0x147   :  { %3295 = vmatpush1.bf16.msra.mxu0 %v3271_v26  ;;  %v967_v44 = vsel %vm958_vm10, %v953_v60, %v955_v5 }
 0x148   :  { %3254 = vrot.lane.b32.xlu1 %v26824_v63, %s26234_s11 }
 0x149   :  { %v957_v37 = vpop.permute.xlu0 %956  ;;  %4775 = vrot.lane.b32.xlu0 %v26900_v11, %s26238_s10 }
 0x14a   :  { %v3259_v38 = vpop.permute.xlu1 %3258  ;;  %v968_v39 = vsel %vm958_vm10, %v955_v5, %v957_v37  ;;  %23908 = vmatmul.mubr.msk.bf16.vlgmr.msra.gmra.mrb[8].mxu0 %vm154_vm1, %v27053_v36 }
 0x14b   :  { %1154 = vmatprep.subr.bf16.mxu1 %v968_v39  ;;  %3412 = vmatprep.mubr.bf16.mxu0 %v32152_v1 }
 0x14c   :  { %4787 = vrot.lane.b32.xlu1 %v26915_v43, %s26238_s10  ;;  %1155 = vmatpush1.bf16.msra.mxu1 %v967_v44 }
 0x14d   :  { %v27066_v48 = vpop.permute.xlu0 %3260  ;;  %4785 = vrot.lane.b32.xlu0 %v26921_v45, %s26238_s10 }
 0x14e   :  { %v27070_v49 = vpop.permute.xlu1 %3256  ;;  %v3276_v51 = vsel %vm32135_vm12, %v3259_v38, %v27066_v48 }
 0x14f   :  { %23848 = vmatmul.mubr.msk.bf16.vlgmr.msra.gmra.mrb[16].mxu1 %vm154_vm1, %v26957_v61  ;;  %3380 = vmatprep.subr.bf16.mxu0 %v3276_v51  ;;  %v3275_v10 = vsel %vm32135_vm12, %v27070_v49, %v3259_v38 }
 0x150   :  { %3262 = vrot.lane.b32.xlu1 %v26946_v29, %s26234_s11  ;;  %3381 = vmatpush1.bf16.msra.mxu0 %v3275_v10 }
 0x151   :  { %v1228_v57 = vpop.permute.xlu0 %1227  ;;  %1303 = vmatprep.mubr.bf16.mxu1 %v32152_v1  ;;  %4783 = vrot.lane.b32.xlu0 %v26938_v55, %s26238_s10 }
 0x152   :  { %v1230_v59 = vpop.permute.xlu1 %1229 }
 0x153   :  { %v1249_v60 = vsel %vm1247_vm0, %v1228_v57, %v1230_v59  ;;  %23910 = vmatmul.mubr.msk.bf16.vlgmr.msra.gmra.mrb[0].mxu0 %vm154_vm1, %v27053_v36 }
 0x154   :  { %5060 = vrot.lane.b32.xlu1 %v26851_v21, %s26239_s21  ;;  %1271 = vmatprep.subr.bf16.mxu1 %v1249_v60 }
 0x155   :  { %v1226_v61 = vpop.permute.xlu0 %1225  ;;  %3498 = vmatprep.mubr.bf16.mxu0 %v32152_v1  ;;  %5058 = vrot.lane.b32.xlu0 %v26844_v17, %s26239_s21 }
 0x156   :  { %v3267_v0 = vpop.permute.xlu1 %3266  ;;  %v1248_v16 = vsel %vm1247_vm0, %v1226_v61, %v1228_v57 }
 0x157   :  { %1272 = vmatpush1.bf16.msra.mxu1 %v1248_v16 }
 0x158   :  { %3543 = vrot.lane.b32.xlu1 %v26824_v63, %s26235_s22 }
 0x159   :  { %v3269_v2 = vpop.permute.xlu0 %3268  ;;  %5056 = vrot.lane.b32.xlu0 %v26865_v25, %s26239_s21 }
 0x15a   :  { %v27096_v23 = vpop.permute.xlu1 %3264  ;;  %23852 = vmatmul.mubr.msk.bf16.vlgmr.msra.gmra.mrb[0].mxu1 %vm154_vm1, %v26208_v4  ;;  %v3280_v5 = vsel %vm32135_vm12, %v3267_v0, %v3269_v2 }
 0x15b   :  { %3466 = vmatprep.subr.bf16.mxu0 %v3280_v5  ;;  %v3279_v26 = vsel %vm32135_vm12, %v27096_v23, %v3267_v0  ;;  %1346 = vmatprep.mubr.bf16.mxu1 %v32152_v1 }
 0x15c   :  { %5068 = vrot.lane.b32.xlu1 %v26886_v28, %s26239_s21  ;;  %3467 = vmatpush1.bf16.msra.mxu0 %v3279_v26 }
 0x15d   :  { %v1232_v63 = vpop.permute.xlu0 %1231  ;;  %5066 = vrot.lane.b32.xlu0 %v26879_v27, %s26239_s21 }
 0x15e   :  { %v3540_v37 = vpop.permute.xlu1 %3539  ;;  %v1251_v38 = vsel %vm1247_vm0, %v1232_v63, %v26449_v13  ;;  %v1250_v39 = vsel %vm1247_vm0, %v1230_v59, %v1232_v63  ;;  %v27172_v63 = vld [vmem:[%s32126_s0 + $0x10] ss:$48 sps:$4 sm:$0xff]  }
 0x15f   :  { %1314 = vmatprep.subr.bf16.mxu1 %v1251_v38  ;;  %23912 = vmatmul.mubr.msk.bf16.vlgmr.msra.gmra.mrb[4].mxu0 %vm154_vm1, %v27053_v36  ;;  %v26209_v38 = vld [vmem:[%s32127_s1 + $0x28] sm:$0xff]  }
 0x160   :  { %3551 = vrot.lane.b32.xlu1 %v26946_v29, %s26235_s22  ;;  %1315 = vmatpush1.bf16.msra.mxu1 %v1250_v39  ;;  %v27129_v29 = vld [vmem:[%s32127_s1 + $0x60] sm:$0xff]  }
 0x161   :  { %v27117_v44 = vpop.permute.xlu0 %3541  ;;  %3615 = vmatprep.mubr.bf16.mxu0 %v32152_v1  ;;  %5064 = vrot.lane.b32.xlu0 %v26900_v11, %s26239_s21 }
 0x162   :  { %v3538_v51 = vpop.permute.xlu1 %3537  ;;  %v3561_v13 = vsel %vm32140_vm13, %v3540_v37, %v27117_v44 }
 0x163   :  { %v3560_v10 = vsel %vm32140_vm13, %v3538_v51, %v3540_v37  ;;  %23853 = vmatmul.mubr.msk.bf16.vlgmr.msra.gmra.mrb[4].mxu1 %vm154_vm1, %v26208_v4  ;;  %3583 = vmatprep.subr.bf16.mxu0 %v3561_v13 }
 0x164   :  { %5076 = vrot.lane.b32.xlu1 %v26915_v43, %s26239_s21  ;;  %3584 = vmatpush1.bf16.msra.mxu0 %v3560_v10 }
 0x165   :  { %v1240_v57 = vpop.permute.xlu0 %1239  ;;  %1432 = vmatprep.mubr.bf16.mxu1 %v32152_v1  ;;  %5074 = vrot.lane.b32.xlu0 %v26921_v45, %s26239_s21 }
 0x166   :  { %v3548_v59 = vpop.permute.xlu1 %3547  ;;  %v1255_v60 = vsel %vm1247_vm0, %v1240_v57, %v26468_v20  ;;  %v1254_v61 = vsel %vm1247_vm0, %v26455_v14, %v1240_v57 }
 0x167   :  { %1400 = vmatprep.subr.bf16.mxu1 %v1255_v60  ;;  %23916 = vmatmul.mubr.msk.bf16.vlgmr.msra.gmra.mrb[8].mxu0 %vm154_vm1, %v27129_v29 }
 0x168   :  { %5347 = vrot.lane.b32.xlu1 %v26844_v17, %s32138_s28  ;;  %1401 = vmatpush1.bf16.msra.mxu1 %v1254_v61 }
 0x169   :  { %v27144_v0 = vpop.permute.xlu0 %3549  ;;  %3701 = vmatprep.mubr.bf16.mxu0 %v32152_v1  ;;  %5072 = vrot.lane.b32.xlu0 %v26938_v55, %s26239_s21 }
 0x16a   :  { %v27149_v20 = vpop.permute.xlu1 %3545  ;;  %v3565_v14 = vsel %vm32140_vm13, %v3548_v59, %v27144_v0 }
 0x16b   :  { %23855 = vmatmul.mubr.msk.bf16.vlgmr.msra.gmra.mrb[12].mxu1 %vm154_vm1, %v26208_v4  ;;  %3669 = vmatprep.subr.bf16.mxu0 %v3565_v14  ;;  %v3564_v16 = vsel %vm32140_vm13, %v27149_v20, %v3548_v59 }
 0x16c   :  { %5345 = vrot.lane.b32.xlu1 %v26865_v25, %s32138_s28  ;;  %3670 = vmatpush1.bf16.msra.mxu0 %v3564_v16 }
 0x16d   :  { %v1521_v2 = vpop.permute.xlu0 %1520  ;;  %1635 = vmatprep.mubr.bf16.mxu1 %v32152_v1  ;;  %5349 = vrot.lane.b32.xlu0 %v26851_v21, %s32138_s28 }
 0x16e   :  { %v3556_v5 = vpop.permute.xlu1 %3555  ;;  %v1540_v26 = vsel %vm32194_vm3, %v1521_v2, %v26527_v42  ;;  %v1539_v4 = vsel %vm32194_vm3, %v26495_v30, %v1521_v2 }
 0x16f   :  { %1603 = vmatprep.subr.bf16.mxu1 %v1540_v26  ;;  %23918 = vmatmul.mubr.msk.bf16.vlgmr.msra.gmra.mrb[0].mxu0 %vm154_vm1, %v27129_v29 }
 0x170   :  { %5357 = vrot.lane.b32.xlu1 %v26886_v28, %s32138_s28  ;;  %1604 = vmatpush1.bf16.msra.mxu1 %v1539_v4 }
 0x171   :  { %v3558_v37 = vpop.permute.xlu0 %3557  ;;  %3787 = vmatprep.mubr.bf16.mxu0 %v32152_v1  ;;  %5355 = vrot.lane.b32.xlu0 %v26879_v27, %s32138_s28 }
 0x172   :  { %v27177_v30 = vpop.permute.xlu1 %3553  ;;  %v3569_v42 = vsel %vm32140_vm13, %v3556_v5, %v3558_v37 }
 0x173   :  { %23861 = vmatmul.mubr.msk.bf16.vlgmr.msra.gmra.mrb[4].mxu1 %vm154_vm1, %v26209_v38  ;;  %3755 = vmatprep.subr.bf16.mxu0 %v3569_v42  ;;  %v3568_v39 = vsel %vm32140_vm13, %v27177_v30, %v3556_v5  ;;  %v26210_v5 = vld [vmem:[%s32127_s1 + $0x30] sm:$0xff]  }
 0x174   :  { %4195 = vrot.lane.b32.xlu1 %v27172_v63, %s26236_s20  ;;  %3756 = vmatpush1.bf16.msra.mxu0 %v3568_v39 }
 0x175   :  { %v1529_v51 = vpop.permute.xlu0 %1528  ;;  %1721 = vmatprep.mubr.bf16.mxu1 %v32152_v1  ;;  %3889 = vmatprep.subr.bf16.mxu0 %v26844_v17 }
 0x176   :  { %v1810_v13 = vpop.permute.xlu1 %1809  ;;  %v1544_v10 = vsel %vm32194_vm3, %v1529_v51, %v26546_v50  ;;  %v1543_v57 = vsel %vm32194_vm3, %v26518_v40, %v1529_v51  ;;  %5353 = vrot.lane.b32.xlu0 %v26900_v11, %s32138_s28  ;;  %v27205_v50 = vld [vmem:[%s32126_s0 + $0x20] ss:$48 sps:$4 sm:$0xff]  }
 0x177   :  { %1689 = vmatprep.subr.bf16.mxu1 %v1544_v10  ;;  %23920 = vmatmul.mubr.msk.bf16.vlgmr.msra.gmra.mrb[4].mxu0 %vm154_vm1, %v27129_v29  ;;  %v1829_v59 = vsel %vm32177_vm4, %v1810_v13, %v26595_v19  ;;  %v1828_v61 = vsel %vm32177_vm4, %v26566_v58, %v1810_v13  ;;  %v27216_v19 = vld [vmem:[%s32127_s1 + $0x68] sm:$0xff]  }
 0x178   :  { %5365 = vrot.lane.b32.xlu1 %v26915_v43, %s32138_s28  ;;  %1690 = vmatpush1.bf16.msra.mxu1 %v1543_v57 }
 0x179   :  { %1892 = vmatprep.subr.bf16.mxu1 %v1829_v59  ;;  %v1818_v40 = vpop.permute.xlu0 %1817  ;;  %3890 = vmatpush1.bf16.msra.mxu0 %v26865_v25 }
 0x17a   :  { %v2099_v60 = vpop.permute.xlu1 %2098  ;;  %3921 = vmatprep.mubr.bf16.mxu0 %v32152_v1  ;;  %3975 = vmatprep.subr.bf16.mxu0 %v26879_v27  ;;  %v1833_v14 = vsel %vm32177_vm4, %v1818_v40, %v26625_v32  ;;  %v1832_v26 = vsel %vm32177_vm4, %v26592_v18, %v1818_v40  ;;  %v27290_v40 = vld [vmem:[%s32127_s1 + $0x70] sm:$0xff]  }
 0x17b   :  { %23863 = vmatmul.mubr.msk.bf16.vlgmr.msra.gmra.mrb[12].mxu1 %vm154_vm1, %v26209_v38  ;;  %5363 = vrot.lane.b32.xlu0 %v26921_v45, %s32138_s28  ;;  %v2118_v4 = vsel %vm32178_vm6, %v2099_v60, %v26677_v54  ;;  %v2117_v39 = vsel %vm32178_vm6, %v26645_v41, %v2099_v60 }
 0x17c   :  { %4203 = vrot.lane.b32.xlu1 %v27205_v50, %s26236_s20  ;;  %1893 = vmatpush1.bf16.msra.mxu1 %v1828_v61 }
 0x17d   :  { %1978 = vmatprep.subr.bf16.mxu1 %v1833_v14  ;;  %1924 = vmatprep.mubr.bf16.mxu1 %v32152_v1  ;;  %v4192_v16 = vpop.permute.xlu0 %4191 }
 0x17e   :  { %v27225_v58 = vpop.permute.xlu1 %4193 }
 0x17f   :  { %23934 = vmatmul.mubr.msk.bf16.vlgmr.msra.gmra.mrb[8].mxu0 %vm154_vm1, %v27216_v19  ;;  %5361 = vrot.lane.b32.xlu0 %v26938_v55, %s32138_s28  ;;  %v4213_v18 = vsel %vm32141_vm14, %v4192_v16, %v27225_v58 }
 0x180   :  { %5638 = vrot.lane.b32.xlu1 %v26851_v21, %s32136_s7  ;;  %3976 = vmatpush1.bf16.msra.mxu0 %v26900_v11 }
 0x181   :  { %4007 = vmatprep.mubr.bf16.mxu0 %v32152_v1  ;;  %4061 = vmatprep.subr.bf16.mxu0 %v26921_v45  ;;  %v4190_v32 = vpop.permute.xlu0 %4189 }
 0x182   :  { %v2107_v2 = vpop.permute.xlu1 %2106  ;;  %v4212_v13 = vsel %vm32141_vm14, %v4190_v32, %v4192_v16 }
 0x183   :  { %23869 = vmatmul.mubr.msk.bf16.vlgmr.msra.gmra.mrb[4].mxu1 %vm154_vm1, %v26210_v5  ;;  %5636 = vrot.lane.b32.xlu0 %v26844_v17, %s32136_s7  ;;  %v2122_v51 = vsel %vm32178_vm6, %v2107_v2, %v26704_v15  ;;  %v2121_v59 = vsel %vm32178_vm6, %v26674_v53, %v2107_v2 }
 0x184   :  { %4484 = vrot.lane.b32.xlu1 %v27172_v63, %s26237_s5  ;;  %1979 = vmatpush1.bf16.msra.mxu1 %v1832_v26 }
 0x185   :  { %2181 = vmatprep.subr.bf16.mxu1 %v2118_v4  ;;  %2010 = vmatprep.mubr.bf16.mxu1 %v32152_v1  ;;  %v4200_v37 = vpop.permute.xlu0 %4199 }
 0x186   :  { %v27249_v42 = vpop.permute.xlu1 %4201 }
 0x187   :  { %23936 = vmatmul.mubr.msk.bf16.vlgmr.msra.gmra.mrb[0].mxu0 %vm154_vm1, %v27216_v19  ;;  %5634 = vrot.lane.b32.xlu0 %v26865_v25, %s32136_s7  ;;  %v4217_v57 = vsel %vm32141_vm14, %v4200_v37, %v27249_v42 }
 0x188   :  { %5646 = vrot.lane.b32.xlu1 %v26886_v28, %s32136_s7  ;;  %4062 = vmatpush1.bf16.msra.mxu0 %v26938_v55 }
 0x189   :  { %4093 = vmatprep.mubr.bf16.mxu0 %v32152_v1  ;;  %4235 = vmatprep.subr.bf16.mxu0 %v4213_v18  ;;  %v27261_v54 = vpop.permute.xlu0 %4197 }
 0x18a   :  { %v2388_v38 = vpop.permute.xlu1 %2387  ;;  %v4216_v53 = vsel %vm32141_vm14, %v27261_v54, %v4200_v37 }
 0x18b   :  { %23871 = vmatmul.mubr.msk.bf16.vlgmr.msra.gmra.mrb[12].mxu1 %vm154_vm1, %v26210_v5  ;;  %5644 = vrot.lane.b32.xlu0 %v26879_v27, %s32136_s7  ;;  %v2407_v61 = vsel %vm32131_vm7, %v2388_v38, %v26765_v34  ;;  %v2406_v2 = vsel %vm32131_vm7, %v26723_v7, %v2388_v38 }
 0x18c   :  { %4492 = vrot.lane.b32.xlu1 %v27205_v50, %s26237_s5  ;;  %2182 = vmatpush1.bf16.msra.mxu1 %v2117_v39 }
 0x18d   :  { %2267 = vmatprep.subr.bf16.mxu1 %v2122_v51  ;;  %2213 = vmatprep.mubr.bf16.mxu1 %v32152_v1 }
 0x18e   :  { %v4210_v10 = vpop.permute.xlu1 %4209 }
 0x18f   :  { %23938 = vmatmul.mubr.msk.bf16.vlgmr.msra.gmra.mrb[4].mxu0 %vm154_vm1, %v27216_v19  ;;  %v4208_v41 = vpop.permute.xlu0 %4207  ;;  %5642 = vrot.lane.b32.xlu0 %v26900_v11, %s32136_s7 }
 0x190   :  { %5654 = vrot.lane.b32.xlu1 %v26915_v43, %s32136_s7  ;;  %4236 = vmatpush1.bf16.msra.mxu0 %v4212_v13  ;;  %v4221_v16 = vsel %vm32141_vm14, %v4208_v41, %v4210_v10 }
 0x191   :  { %4267 = vmatprep.mubr.bf16.mxu0 %v32152_v1  ;;  %4321 = vmatprep.subr.bf16.mxu0 %v4217_v57 }
 0x192   :  { %v2396_v15 = vpop.permute.xlu1 %2395 }
 0x193   :  { %23877 = vmatmul.mubr.msk.bf16.vlgmr.msra.gmra.mrb[4].mxu1 %vm154_vm1, %v26659_v47  ;;  %v27292_v60 = vpop.permute.xlu0 %4205  ;;  %5652 = vrot.lane.b32.xlu0 %v26921_v45, %s32136_s7  ;;  %v2411_v26 = vsel %vm32131_vm7, %v2396_v15, %v26800_v52  ;;  %v2410_v18 = vsel %vm32131_vm7, %v26763_v33, %v2396_v15  ;;  %vm32142_vm7 = vcmask 965632  }
 0x194   :  { %4773 = vrot.lane.b32.xlu1 %v27172_v63, %s26238_s10  ;;  %2268 = vmatpush1.bf16.msra.mxu1 %v2121_v59  ;;  %v4220_v4 = vsel %vm32141_vm14, %v27292_v60, %v4208_v41  ;;  %v27367_v41 = vld [vmem:[%s32127_s1 + $0x78] sm:$0xff]  }
 0x195   :  { %2470 = vmatprep.subr.bf16.mxu1 %v2407_v61  ;;  %2299 = vmatprep.mubr.bf16.mxu1 %v32152_v1 }
 0x196   :  { %v27303_v14 = vpop.permute.xlu1 %4482 }
 0x197   :  { %23953 = vmatmul.mubr.msk.bf16.vlgmr.msra.gmra.mrb[8].mxu0 %vm154_vm1, %v27290_v40  ;;  %v4481_v32 = vpop.permute.xlu0 %4480  ;;  %5650 = vrot.lane.b32.xlu0 %v26938_v55, %s32136_s7 }
 0x198   :  { %5927 = vrot.lane.b32.xlu1 %v26851_v21, %s32133_s24  ;;  %4322 = vmatpush1.bf16.msra.mxu0 %v4216_v53  ;;  %v4502_v7 = vsel %vm4500_vm15, %v4481_v32, %v27303_v14 }
 0x199   :  { %4353 = vmatprep.mubr.bf16.mxu0 %v32152_v1  ;;  %4407 = vmatprep.subr.bf16.mxu0 %v4221_v16 }
 0x19a   :  { %v2677_v34 = vpop.permute.xlu1 %2676 }
 0x19b   :  { %23879 = vmatmul.mubr.msk.bf16.vlgmr.msra.gmra.mrb[12].mxu1 %vm154_vm1, %v26659_v47  ;;  %v4479_v5 = vpop.permute.xlu0 %4478  ;;  %5925 = vrot.lane.b32.xlu0 %v26844_v17, %s32133_s24  ;;  %v2696_v39 = vsel %vm32193_vm9, %v2677_v34, %v26888_v31  ;;  %v2695_v57 = vsel %vm32193_vm9, %v26828_v12, %v2677_v34 }
 0x19c   :  { %4781 = vrot.lane.b32.xlu1 %v27205_v50, %s26238_s10  ;;  %2471 = vmatpush1.bf16.msra.mxu1 %v2406_v2  ;;  %v4501_v51 = vsel %vm4500_vm15, %v4479_v5, %v4481_v32 }
 0x19d   :  { %2556 = vmatprep.subr.bf16.mxu1 %v2411_v26  ;;  %2502 = vmatprep.mubr.bf16.mxu1 %v32152_v1 }
 0x19e   :  { %v27326_v47 = vpop.permute.xlu1 %4490 }
 0x19f   :  { %23955 = vmatmul.mubr.msk.bf16.vlgmr.msra.gmra.mrb[0].mxu0 %vm154_vm1, %v27290_v40  ;;  %v4489_v37 = vpop.permute.xlu0 %4488  ;;  %5923 = vrot.lane.b32.xlu0 %v26865_v25, %s32133_s24 }
 0x1a0   :  { %5935 = vrot.lane.b32.xlu1 %v26886_v28, %s32133_s24  ;;  %4408 = vmatpush1.bf16.msra.mxu0 %v4220_v4  ;;  %v4506_v33 = vsel %vm4500_vm15, %v4489_v37, %v27326_v47 }
 0x1a1   :  { %4439 = vmatprep.mubr.bf16.mxu0 %v32152_v1  ;;  %4524 = vmatprep.subr.bf16.mxu0 %v4502_v7 }
 0x1a2   :  { %v2685_v52 = vpop.permute.xlu1 %2684 }
 0x1a3   :  { %23885 = vmatmul.mubr.msk.bf16.vlgmr.msra.gmra.mrb[4].mxu1 %vm154_vm1, %v26734_v24  ;;  %v27341_v38 = vpop.permute.xlu0 %4486  ;;  %5933 = vrot.lane.b32.xlu0 %v26879_v27, %s32133_s24  ;;  %v2699_v16 = vsel %vm32193_vm9, %v26870_v6, %v2685_v52 }
 0x1a4   :  { %5062 = vrot.lane.b32.xlu1 %v27172_v63, %s26239_s21  ;;  %2557 = vmatpush1.bf16.msra.mxu1 %v2410_v18  ;;  %v4505_v12 = vsel %vm4500_vm15, %v27341_v38, %v4489_v37 }
 0x1a5   :  { %2759 = vmatprep.subr.bf16.mxu1 %v2696_v39  ;;  %2588 = vmatprep.mubr.bf16.mxu1 %v32152_v1 }
 0x1a6   :  { %v4499_v13 = vpop.permute.xlu1 %4498 }
 0x1a7   :  { %23957 = vmatmul.mubr.msk.bf16.vlgmr.msra.gmra.mrb[4].mxu0 %vm154_vm1, %v27290_v40  ;;  %v4497_v10 = vpop.permute.xlu0 %4496  ;;  %5931 = vrot.lane.b32.xlu0 %v26900_v11, %s32133_s24 }
 0x1a8   :  { %5943 = vrot.lane.b32.xlu1 %v26915_v43, %s32133_s24  ;;  %4525 = vmatpush1.bf16.msra.mxu0 %v4501_v51  ;;  %v4510_v61 = vsel %vm4500_vm15, %v4497_v10, %v4499_v13  ;;  %v27444_v51 = vld [vmem:[%s32127_s1 + $0x80] sm:$0xff]  }
 0x1a9   :  { %4556 = vmatprep.mubr.bf16.mxu0 %v32152_v1  ;;  %4610 = vmatprep.subr.bf16.mxu0 %v4506_v33 }
 0x1aa   :  { %v2966_v31 = vpop.permute.xlu1 %2965 }
 0x1ab   :  { %23887 = vmatmul.mubr.msk.bf16.vlgmr.msra.gmra.mrb[12].mxu1 %vm154_vm1, %v26734_v24  ;;  %v27369_v15 = vpop.permute.xlu0 %4494  ;;  %5941 = vrot.lane.b32.xlu0 %v26921_v45, %s32133_s24  ;;  %v2700_v24 = vsel %vm32193_vm9, %v2685_v52, %v26923_v46  ;;  %v2985_v34 = vsel %vm32132_vm11, %v2966_v31, %v26995_v9  ;;  %v2984_v4 = vsel %vm32132_vm11, %v26961_v62, %v2966_v31 }
 0x1ac   :  { %5070 = vrot.lane.b32.xlu1 %v27205_v50, %s26239_s21  ;;  %2760 = vmatpush1.bf16.msra.mxu1 %v2695_v57  ;;  %v4509_v2 = vsel %vm4500_vm15, %v27369_v15, %v4497_v10 }
 0x1ad   :  { %2845 = vmatprep.subr.bf16.mxu1 %v2700_v24  ;;  %2791 = vmatprep.mubr.bf16.mxu1 %v32152_v1 }
 0x1ae   :  { %v27380_v59 = vpop.permute.xlu1 %4771 }
 0x1af   :  { %23961 = vmatmul.mubr.msk.bf16.vlgmr.msra.gmra.mrb[8].mxu0 %vm154_vm1, %v27367_v41  ;;  %v4770_v53 = vpop.permute.xlu0 %4769  ;;  %5939 = vrot.lane.b32.xlu0 %v26938_v55, %s32133_s24 }
 0x1b0   :  { %6216 = vrot.lane.b32.xlu1 %v26851_v21, %s26243_s8  ;;  %4611 = vmatpush1.bf16.msra.mxu0 %v4505_v12  ;;  %v4791_v6 = vsel %vm32142_vm7, %v4770_v53, %v27380_v59 }
 0x1b1   :  { %4642 = vmatprep.mubr.bf16.mxu0 %v32152_v1  ;;  %4696 = vmatprep.subr.bf16.mxu0 %v4510_v61 }
 0x1b2   :  { %v2974_v46 = vpop.permute.xlu1 %2973 }
 0x1b3   :  { %23893 = vmatmul.mubr.msk.bf16.vlgmr.msra.gmra.mrb[4].mxu1 %vm154_vm1, %v26839_v3  ;;  %v4768_v32 = vpop.permute.xlu0 %4767  ;;  %6214 = vrot.lane.b32.xlu0 %v26844_v17, %s26243_s8  ;;  %v2989_v37 = vsel %vm32132_vm11, %v2974_v46, %v27017_v56  ;;  %v2988_v39 = vsel %vm32132_vm11, %v26988_v35, %v2974_v46  ;;  %vm32145_vm11 = vcmask 957440  }
 0x1b4   :  { %5351 = vrot.lane.b32.xlu1 %v27172_v63, %s32138_s28  ;;  %2846 = vmatpush1.bf16.msra.mxu1 %v2699_v16  ;;  %v4790_v52 = vsel %vm32142_vm7, %v4768_v32, %v4770_v53 }
 0x1b5   :  { %3048 = vmatprep.subr.bf16.mxu1 %v2985_v34  ;;  %2877 = vmatprep.mubr.bf16.mxu1 %v32152_v1  ;;  %v27521_v34 = vld [vmem:[%s32127_s1 + $0x88] sm:$0xff]  }
 0x1b6   :  { %v27403_v5 = vpop.permute.xlu1 %4779 }
 0x1b7   :  { %23963 = vmatmul.mubr.msk.bf16.vlgmr.msra.gmra.mrb[0].mxu0 %vm154_vm1, %v27367_v41  ;;  %v4778_v26 = vpop.permute.xlu0 %4777  ;;  %6212 = vrot.lane.b32.xlu0 %v26865_v25, %s26243_s8 }
 0x1b8   :  { %6224 = vrot.lane.b32.xlu1 %v26886_v28, %s26243_s8  ;;  %4697 = vmatpush1.bf16.msra.mxu0 %v4509_v2  ;;  %v4795_v62 = vsel %vm32142_vm7, %v4778_v26, %v27403_v5 }
 0x1b9   :  { %4728 = vmatprep.mubr.bf16.mxu0 %v32152_v1  ;;  %4813 = vmatprep.subr.bf16.mxu0 %v4791_v6  ;;  %v26131_v6 = vld [vmem:[%s32126_s0 + $0x10] ss:$48 sps:$4 sm:$0xff]  }
 0x1ba   :  { %v3255_v9 = vpop.permute.xlu1 %3254 }
 0x1bb   :  { %23895 = vmatmul.mubr.msk.bf16.vlgmr.msra.gmra.mrb[12].mxu1 %vm154_vm1, %v26839_v3  ;;  %v27418_v7 = vpop.permute.xlu0 %4775  ;;  %6222 = vrot.lane.b32.xlu0 %v26879_v27, %s26243_s8  ;;  %v3274_v33 = vsel %vm32135_vm12, %v3255_v9, %v27070_v49  ;;  %v3273_v24 = vsel %vm32135_vm12, %v27037_v22, %v3255_v9  ;;  %v27561_v9 = vld [vmem:[%s32126_s0 + $0x8] ss:$48 sps:$4 sm:$0xff]  }
 0x1bc   :  { %5359 = vrot.lane.b32.xlu1 %v27205_v50, %s32138_s28  ;;  %3049 = vmatpush1.bf16.msra.mxu1 %v2984_v4  ;;  %v4794_v35 = vsel %vm32142_vm7, %v27418_v7, %v4778_v26  ;;  %s32188_s28 = smov 19  }
 0x1bd   :  { %3134 = vmatprep.subr.bf16.mxu1 %v2989_v37  ;;  %3080 = vmatprep.mubr.bf16.mxu1 %v32152_v1 }
 0x1be   :  { %v4788_v3 = vpop.permute.xlu1 %4787 }
 0x1bf   :  { %23965 = vmatmul.mubr.msk.bf16.vlgmr.msra.gmra.mrb[4].mxu0 %vm154_vm1, %v27367_v41  ;;  %v4786_v18 = vpop.permute.xlu0 %4785  ;;  %6220 = vrot.lane.b32.xlu0 %v26900_v11, %s26243_s8 }
 0x1c0   :  { %6232 = vrot.lane.b32.xlu1 %v26915_v43, %s26243_s8  ;;  %4814 = vmatpush1.bf16.msra.mxu0 %v4790_v52  ;;  %v4799_v31 = vsel %vm32142_vm7, %v4786_v18, %v4788_v3  ;;  %v27577_v3 = vld [vmem:[%s32126_s0 + $0x4] ss:$48 sps:$4 sm:$0xff]  }
 0x1c1   :  { %4845 = vmatprep.mubr.bf16.mxu0 %v32152_v1  ;;  %4899 = vmatprep.subr.bf16.mxu0 %v4795_v62  ;;  %v27584_v62 = vld [vmem:[%s32126_s0 + $0x1c] ss:$48 sps:$4 sm:$0xff]  }
 0x1c2   :  { %v3263_v56 = vpop.permute.xlu1 %3262 }
 0x1c3   :  { %23901 = vmatmul.mubr.msk.bf16.vlgmr.msra.gmra.mrb[4].mxu1 %vm154_vm1, %v26974_v8  ;;  %v27446_v13 = vpop.permute.xlu0 %4783  ;;  %6230 = vrot.lane.b32.xlu0 %v26921_v45, %s26243_s8  ;;  %v3277_v53 = vsel %vm32135_vm12, %v27066_v48, %v3263_v56 }
 0x1c4   :  { %5640 = vrot.lane.b32.xlu1 %v27172_v63, %s32136_s7  ;;  %3135 = vmatpush1.bf16.msra.mxu1 %v2988_v39  ;;  %v4798_v61 = vsel %vm32142_vm7, %v27446_v13, %v4786_v18  ;;  %v26129_v18 = vld [vmem:[%s32126_s0 + $0xc] ss:$48 sps:$4 sm:$0xff]   ;;  %v26134_v39 = vld [vmem:[%s32126_s0 + $0x20] ss:$48 sps:$4 sm:$0xff]  }
 0x1c5   :  { %3337 = vmatprep.subr.bf16.mxu1 %v3274_v33  ;;  %3166 = vmatprep.mubr.bf16.mxu1 %v32152_v1 }
 0x1c6   :  { %v27457_v10 = vpop.permute.xlu1 %5060 }
 0x1c7   :  { %23969 = vmatmul.mubr.msk.bf16.vlgmr.msra.gmra.mrb[8].mxu0 %vm154_vm1, %v27444_v51  ;;  %v5059_v57 = vpop.permute.xlu0 %5058  ;;  %6228 = vrot.lane.b32.xlu0 %v26938_v55, %s26243_s8 }
 0x1c8   :  { %6505 = vrot.lane.b32.xlu1 %v26851_v21, %s26244_s23  ;;  %4900 = vmatpush1.bf16.msra.mxu0 %v4794_v35  ;;  %v3278_v21 = vsel %vm32135_vm12, %v3263_v56, %v27096_v23  ;;  %v5080_v22 = vsel %vm32145_vm11, %v5059_v57, %v27457_v10  ;;  %vm5367_vm12 = vcmask 318464   ;;  %v27602_v35 = vld [vmem:[%s32126_s0 + $0x18] ss:$48 sps:$4 sm:$0xff]  }
 0x1c9   :  { %4931 = vmatprep.mubr.bf16.mxu0 %v32152_v1  ;;  %4985 = vmatprep.subr.bf16.mxu0 %v4799_v31 }
 0x1ca   :  { %v3544_v49 = vpop.permute.xlu1 %3543 }
 0x1cb   :  { %23903 = vmatmul.mubr.msk.bf16.vlgmr.msra.gmra.mrb[12].mxu1 %vm154_vm1, %v26974_v8  ;;  %v5057_v12 = vpop.permute.xlu0 %5056  ;;  %6503 = vrot.lane.b32.xlu0 %v26844_v17, %s26244_s23  ;;  %v3562_v32 = vsel %vm32140_vm13, %v27117_v44, %v3544_v49 }
 0x1cc   :  { %5648 = vrot.lane.b32.xlu1 %v27205_v50, %s32136_s7  ;;  %3338 = vmatpush1.bf16.msra.mxu1 %v3273_v24  ;;  %v27617_v24 = vld [vmem:[%s32126_s0 + $0x14] ss:$48 sps:$4 sm:$0xff]   ;;  %s26248_s7 = smov 17  }
 0x1cd   :  { %3423 = vmatprep.subr.bf16.mxu1 %v3278_v21  ;;  %3369 = vmatprep.mubr.bf16.mxu1 %v32152_v1  ;;  %v26132_v21 = vld [vmem:[%s32126_s0 + $0x1c] ss:$48 sps:$4 sm:$0xff]  }
 0x1ce   :  { %v27480_v8 = vpop.permute.xlu1 %5068 }
 0x1cf   :  { %23971 = vmatmul.mubr.msk.bf16.vlgmr.msra.gmra.mrb[0].mxu0 %vm154_vm1, %v27444_v51  ;;  %v5067_v17 = vpop.permute.xlu0 %5066  ;;  %6501 = vrot.lane.b32.xlu0 %v26865_v25, %s26244_s23  ;;  %v3563_v25 = vsel %vm32140_vm13, %v3544_v49, %v27149_v20 }
 0x1d0   :  { %6513 = vrot.lane.b32.xlu1 %v26886_v28, %s26244_s23  ;;  %4986 = vmatpush1.bf16.msra.mxu0 %v4798_v61  ;;  %v5079_v28 = vsel %vm32145_vm11, %v5057_v12, %v5059_v57  ;;  %v5084_v48 = vsel %vm32145_vm11, %v5067_v17, %v27480_v8  ;;  %v27624_v12 = vld [vmem:[%s32126_s0 + $0x2c] ss:$48 sps:$4 sm:$0xff]  }
 0x1d1   :  { %5017 = vmatprep.mubr.bf16.mxu0 %v32152_v1  ;;  %5102 = vmatprep.subr.bf16.mxu0 %v5080_v22 }
 0x1d2   :  { %v3552_v23 = vpop.permute.xlu1 %3551 }
 0x1d3   :  { %23909 = vmatmul.mubr.msk.bf16.vlgmr.msra.gmra.mrb[4].mxu1 %vm154_vm1, %v27053_v36  ;;  %v27495_v46 = vpop.permute.xlu0 %5064  ;;  %6511 = vrot.lane.b32.xlu0 %v26879_v27, %s26244_s23  ;;  %v3566_v26 = vsel %vm32140_vm13, %v27144_v0, %v3552_v23 }
 0x1d4   :  { %5929 = vrot.lane.b32.xlu1 %v27172_v63, %s32133_s24  ;;  %3424 = vmatpush1.bf16.msra.mxu1 %v3277_v53 }
 0x1d5   :  { %3626 = vmatprep.subr.bf16.mxu1 %v3563_v25  ;;  %3455 = vmatprep.mubr.bf16.mxu1 %v32152_v1 }
 0x1d6   :  { %v5077_v16 = vpop.permute.xlu1 %5076 }
 0x1d7   :  { %23973 = vmatmul.mubr.msk.bf16.vlgmr.msra.gmra.mrb[4].mxu0 %vm154_vm1, %v27444_v51  ;;  %v5075_v27 = vpop.permute.xlu0 %5074  ;;  %6509 = vrot.lane.b32.xlu0 %v26900_v11, %s26244_s23 }
 0x1d8   :  { %6521 = vrot.lane.b32.xlu1 %v26915_v43, %s26244_s23  ;;  %5103 = vmatpush1.bf16.msra.mxu0 %v5079_v28  ;;  %v3567_v43 = vsel %vm32140_vm13, %v3552_v23, %v27177_v30  ;;  %v5088_v2 = vsel %vm32145_vm11, %v5075_v27, %v5077_v16  ;;  %v27544_v30 = vld [vmem:[%s32126_s0 + $0xc] ss:$48 sps:$4 sm:$0xff]   ;;  %v27646_v23 = vld [vmem:[%s32126_s0 + $0x28] ss:$48 sps:$4 sm:$0xff]   ;;  %vm32146_vm13 = vcmask 310272  }
 0x1d9   :  { %5134 = vmatprep.mubr.bf16.mxu0 %v32152_v1  ;;  %5188 = vmatprep.subr.bf16.mxu0 %v5084_v48 }
 0x1da   :  { %v5348_v20 = vpop.permute.xlu1 %5347 }
 0x1db   :  { %23911 = vmatmul.mubr.msk.bf16.vlgmr.msra.gmra.mrb[12].mxu1 %vm154_vm1, %v27053_v36  ;;  %v27523_v11 = vpop.permute.xlu0 %5072  ;;  %6519 = vrot.lane.b32.xlu0 %v26921_v45, %s26244_s23  ;;  %v5083_v36 = vsel %vm32145_vm11, %v27495_v46, %v5067_v17  ;;  %v27641_v17 = vld [vmem:[%s32127_s1 + $0x90] sm:$0xff]  }
 0x1dc   :  { %5937 = vrot.lane.b32.xlu1 %v27205_v50, %s32133_s24  ;;  %3627 = vmatpush1.bf16.msra.mxu1 %v3562_v32  ;;  %v5087_v37 = vsel %vm32145_vm11, %v27523_v11, %v5075_v27  ;;  %v27663_v27 = vld [vmem:[%s32126_s0 + $0x24] ss:$48 sps:$4 sm:$0xff]   ;;  %s32254_s24 = smov 18  }
 0x1dd   :  { %3712 = vmatprep.subr.bf16.mxu1 %v3567_v43  ;;  %3658 = vmatprep.mubr.bf16.mxu1 %v32152_v1 }
 0x1de   :  { %v5346_v44 = vpop.permute.xlu1 %5345 }
 0x1df   :  { %23977 = vmatmul.mubr.msk.bf16.vlgmr.msra.gmra.mrb[8].mxu0 %vm154_vm1, %v27521_v34  ;;  %6517 = vrot.lane.b32.xlu0 %v26938_v55, %s26244_s23  ;;  %v27539_v45 = vpop.permute.xlu0 %5349  ;;  %v5368_v31 = vsel %vm5367_vm12, %v5346_v44, %v5348_v20 }
 0x1e0   :  { %6794 = vrot.lane.b32.xlu1 %v27544_v30, %s32190_s25  ;;  %5189 = vmatpush1.bf16.msra.mxu0 %v5083_v36  ;;  %v5369_v52 = vsel %vm5367_vm12, %v5348_v20, %v27539_v45 }
 0x1e1   :  { %5220 = vmatprep.mubr.bf16.mxu0 %v32152_v1  ;;  %5274 = vmatprep.subr.bf16.mxu0 %v5088_v2 }
 0x1e2   :  { %v27552_v55 = vpop.permute.xlu1 %5357 }
 0x1e3   :  { %23917 = vmatmul.mubr.msk.bf16.vlgmr.msra.gmra.mrb[4].mxu1 %vm154_vm1, %v27129_v29  ;;  %6792 = vrot.lane.b32.xlu0 %v27561_v9, %s32190_s25  ;;  %v5356_v4 = vpop.permute.xlu0 %5355 }
 0x1e4   :  { %6218 = vrot.lane.b32.xlu1 %v27172_v63, %s26243_s8  ;;  %3713 = vmatpush1.bf16.msra.mxu1 %v3566_v26 }
 0x1e5   :  { %3744 = vmatprep.mubr.bf16.mxu1 %v32152_v1  ;;  %3932 = vmatprep.subr.bf16.mxu1 %v26131_v6 }
 0x1e6   :  { %v4196_v0 = vpop.permute.xlu1 %4195 }
 0x1e7   :  { %23979 = vmatmul.mubr.msk.bf16.vlgmr.msra.gmra.mrb[0].mxu0 %vm154_vm1, %v27521_v34  ;;  %6790 = vrot.lane.b32.xlu0 %v27577_v3, %s32190_s25  ;;  %v4215_v53 = vsel %vm32141_vm14, %v4196_v0, %v27261_v54  ;;  %v4214_v32 = vsel %vm32141_vm14, %v27225_v58, %v4196_v0 }
 0x1e8   :  { %6802 = vrot.lane.b32.xlu1 %v27584_v62, %s32190_s25  ;;  %5275 = vmatpush1.bf16.msra.mxu0 %v5087_v37  ;;  %v27591_v56 = vpop.permute.xlu0 %5353 }
 0x1e9   :  { %5306 = vmatprep.mubr.bf16.mxu0 %v32152_v1  ;;  %5391 = vmatprep.subr.bf16.mxu0 %v5369_v52  ;;  %v5372_v25 = vsel %vm5367_vm12, %v27591_v56, %v5356_v4 }
 0x1ea   :  { %v5366_v33 = vpop.permute.xlu1 %5365 }
 0x1eb   :  { %23919 = vmatmul.mubr.msk.bf16.vlgmr.msra.gmra.mrb[12].mxu1 %vm154_vm1, %v27129_v29  ;;  %6800 = vrot.lane.b32.xlu0 %v27602_v35, %s32190_s25  ;;  %v5373_v29 = vsel %vm5367_vm12, %v5356_v4, %v27552_v55 }
 0x1ec   :  { %6226 = vrot.lane.b32.xlu1 %v27205_v50, %s26243_s8  ;;  %3933 = vmatpush1.bf16.msra.mxu1 %v26129_v18 }
 0x1ed   :  { %3964 = vmatprep.mubr.bf16.mxu1 %v32152_v1  ;;  %4018 = vmatprep.subr.bf16.mxu1 %v26134_v39  ;;  %v5364_v57 = vpop.permute.xlu0 %5363  ;;  %v27728_v39 = vld [vmem:[%s32127_s1 + $0x98] sm:$0xff]  }
 0x1ee   :  { %v4204_v49 = vpop.permute.xlu1 %4203  ;;  %v5377_v48 = vsel %vm5367_vm12, %v5364_v57, %v5366_v33 }
 0x1ef   :  { %23981 = vmatmul.mubr.msk.bf16.vlgmr.msra.gmra.mrb[4].mxu0 %vm154_vm1, %v27521_v34  ;;  %6798 = vrot.lane.b32.xlu0 %v27617_v24, %s32190_s25  ;;  %v4219_v43 = vsel %vm32141_vm14, %v4204_v49, %v27292_v60  ;;  %v4218_v6 = vsel %vm32141_vm14, %v27249_v42, %v4204_v49  ;;  %vm32147_vm14 = vcmask 302080  }
 0x1f0   :  { %6810 = vrot.lane.b32.xlu1 %v27624_v12, %s32190_s25  ;;  %5392 = vmatpush1.bf16.msra.mxu0 %v5368_v31 }
 0x1f1   :  { %5423 = vmatprep.mubr.bf16.mxu0 %v32152_v1  ;;  %5477 = vmatprep.subr.bf16.mxu0 %v5373_v29  ;;  %v27632_v61 = vpop.permute.xlu0 %5361 }
 0x1f2   :  { %v27634_v22 = vpop.permute.xlu1 %5638  ;;  %v5376_v36 = vsel %vm5367_vm12, %v27632_v61, %v5364_v57 }
 0x1f3   :  { %23935 = vmatmul.mubr.msk.bf16.vlgmr.msra.gmra.mrb[4].mxu1 %vm154_vm1, %v27216_v19  ;;  %6808 = vrot.lane.b32.xlu0 %v27646_v23, %s32190_s25 }
 0x1f4   :  { %6507 = vrot.lane.b32.xlu1 %v27172_v63, %s26244_s23  ;;  %4019 = vmatpush1.bf16.msra.mxu1 %v26132_v21 }
 0x1f5   :  { %4278 = vmatprep.subr.bf16.mxu1 %v4215_v53  ;;  %4050 = vmatprep.mubr.bf16.mxu1 %v32152_v1  ;;  %v5637_v28 = vpop.permute.xlu0 %5636 }
 0x1f6   :  { %v4485_v16 = vpop.permute.xlu1 %4484  ;;  %v5658_v58 = vsel %vm32146_vm13, %v5637_v28, %v27634_v22 }
 0x1f7   :  { %23985 = vmatmul.mubr.msk.bf16.vlgmr.msra.gmra.mrb[8].mxu0 %vm154_vm1, %v27641_v17  ;;  %6806 = vrot.lane.b32.xlu0 %v27663_v27, %s32190_s25  ;;  %v4504_v26 = vsel %vm4500_vm15, %v4485_v16, %v27341_v38  ;;  %v4503_v18 = vsel %vm4500_vm15, %v27303_v14, %v4485_v16 }
 0x1f8   :  { %7083 = vrot.lane.b32.xlu1 %v27544_v30, %s32188_s28  ;;  %5478 = vmatpush1.bf16.msra.mxu0 %v5372_v25 }
 0x1f9   :  { %5509 = vmatprep.mubr.bf16.mxu0 %v32152_v1  ;;  %5563 = vmatprep.subr.bf16.mxu0 %v5377_v48  ;;  %v5635_v54 = vpop.permute.xlu0 %5634 }
 0x1fa   :  { %v27670_v20 = vpop.permute.xlu1 %5646  ;;  %v5657_v4 = vsel %vm32146_vm13, %v5635_v54, %v5637_v28 }
 0x1fb   :  { %23937 = vmatmul.mubr.msk.bf16.vlgmr.msra.gmra.mrb[12].mxu1 %vm154_vm1, %v27216_v19  ;;  %7081 = vrot.lane.b32.xlu0 %v27561_v9, %s32188_s28 }
 0x1fc   :  { %6515 = vrot.lane.b32.xlu1 %v27205_v50, %s26244_s23  ;;  %4279 = vmatpush1.bf16.msra.mxu1 %v4214_v32 }
 0x1fd   :  { %4364 = vmatprep.subr.bf16.mxu1 %v4219_v43  ;;  %4310 = vmatprep.mubr.bf16.mxu1 %v32152_v1  ;;  %v5645_v19 = vpop.permute.xlu0 %5644 }
 0x1fe   :  { %v4493_v44 = vpop.permute.xlu1 %4492  ;;  %v5662_v42 = vsel %vm32146_vm13, %v5645_v19, %v27670_v20 }
 0x1ff   :  { %23987 = vmatmul.mubr.msk.bf16.vlgmr.msra.gmra.mrb[0].mxu0 %vm154_vm1, %v27641_v17  ;;  %7079 = vrot.lane.b32.xlu0 %v27577_v3, %s32188_s28  ;;  %v4508_v33 = vsel %vm4500_vm15, %v4493_v44, %v27369_v15  ;;  %v4507_v28 = vsel %vm4500_vm15, %v27326_v47, %v4493_v44 }
 0x200   :  { %7091 = vrot.lane.b32.xlu1 %v27584_v62, %s32188_s28  ;;  %5564 = vmatpush1.bf16.msra.mxu0 %v5376_v36 }
 0x201   :  { %5595 = vmatprep.mubr.bf16.mxu0 %v32152_v1  ;;  %5680 = vmatprep.subr.bf16.mxu0 %v5658_v58  ;;  %v27694_v60 = vpop.permute.xlu0 %5642 }
 0x202   :  { %v5655_v2 = vpop.permute.xlu1 %5654 }
 0x203   :  { %23954 = vmatmul.mubr.msk.bf16.vlgmr.msra.gmra.mrb[4].mxu1 %vm154_vm1, %v27290_v40  ;;  %7089 = vrot.lane.b32.xlu0 %v27602_v35, %s32188_s28 }
 0x204   :  { %6796 = vrot.lane.b32.xlu1 %v27172_v63, %s32190_s25  ;;  %4365 = vmatpush1.bf16.msra.mxu1 %v4218_v6 }
 0x205   :  { %4567 = vmatprep.subr.bf16.mxu1 %v4504_v26  ;;  %4396 = vmatprep.mubr.bf16.mxu1 %v32152_v1  ;;  %v5653_v37 = vpop.permute.xlu0 %5652 }
 0x206   :  { %v4774_v0 = vpop.permute.xlu1 %4773  ;;  %v5666_v49 = vsel %vm32146_vm13, %v5653_v37, %v5655_v2 }
 0x207   :  { %23989 = vmatmul.mubr.msk.bf16.vlgmr.msra.gmra.mrb[4].mxu0 %vm154_vm1, %v27641_v17  ;;  %7087 = vrot.lane.b32.xlu0 %v27617_v24, %s32188_s28  ;;  %v4793_v16 = vsel %vm32142_vm7, %v4774_v0, %v27418_v7  ;;  %v4792_v36 = vsel %vm32142_vm7, %v27380_v59, %v4774_v0 }
 0x208   :  { %7099 = vrot.lane.b32.xlu1 %v27624_v12, %s32188_s28  ;;  %5681 = vmatpush1.bf16.msra.mxu0 %v5657_v4 }
 0x209   :  { %5712 = vmatprep.mubr.bf16.mxu0 %v32152_v1  ;;  %5766 = vmatprep.subr.bf16.mxu0 %v5662_v42  ;;  %v27717_v38 = vpop.permute.xlu0 %5650 }
 0x20a   :  { %v27719_v52 = vpop.permute.xlu1 %5927  ;;  %v5665_v48 = vsel %vm32146_vm13, %v27717_v38, %v5653_v37  ;;  %v27819_v37 = vld [vmem:[%s32127_s1 + $0xa0] sm:$0xff]  }
 0x20b   :  { %23956 = vmatmul.mubr.msk.bf16.vlgmr.msra.gmra.mrb[12].mxu1 %vm154_vm1, %v27290_v40  ;;  %7097 = vrot.lane.b32.xlu0 %v27646_v23, %s32188_s28  ;;  %v5661_v40 = vsel %vm32146_vm13, %v27694_v60, %v5645_v19 }
 0x20c   :  { %6804 = vrot.lane.b32.xlu1 %v27205_v50, %s32190_s25  ;;  %4568 = vmatpush1.bf16.msra.mxu1 %v4503_v18 }
 0x20d   :  { %4653 = vmatprep.subr.bf16.mxu1 %v4508_v33  ;;  %4599 = vmatprep.mubr.bf16.mxu1 %v32152_v1  ;;  %v5926_v14 = vpop.permute.xlu0 %5925 }
 0x20e   :  { %v4782_v31 = vpop.permute.xlu1 %4781  ;;  %v27739_v57 = vpop.f32.mrb[8].mxu1  ;;  %v5947_v47 = vsel %vm32147_vm14, %v5926_v14, %v27719_v52 }
 0x20f   :  { %v27742_v29 = vpop.f32.mrb[9].mxu1  ;;  %23993 = vmatmul.mubr.msk.bf16.vlgmr.msra.gmra.mrb[8].mxu0 %vm154_vm1, %v27728_v39  ;;  %7095 = vrot.lane.b32.xlu0 %v27663_v27, %s32188_s28  ;;  %v4797_v19 = vsel %vm32142_vm7, %v4782_v31, %v27446_v13  ;;  %v4796_v4 = vsel %vm32142_vm7, %v27403_v5, %v4782_v31  ;;  %vm6234_vm7 = vcmask 236544  }
 0x210   :  { %7372 = vrot.lane.b32.xlu1 %v27544_v30, %s32143_s27  ;;  %v27750_v15 = vpop.f32.mrb[10].mxu1  ;;  %5767 = vmatpush1.bf16.msra.mxu0 %v5661_v40 }
 0x211   :  { %v27752_v21 = vpop.f32.mrb[11].mxu1  ;;  %5798 = vmatprep.mubr.bf16.mxu0 %v32152_v1  ;;  %5852 = vmatprep.subr.bf16.mxu0 %v5666_v49  ;;  %v5924_v53 = vpop.permute.xlu0 %5923 }
 0x212   :  { %v27755_v25 = vpop.permute.xlu1 %5935  ;;  %v5946_v44 = vsel %vm32147_vm14, %v5924_v53, %v5926_v14 }
 0x213   :  { %23962 = vmatmul.mubr.msk.bf16.vlgmr.msra.gmra.mrb[4].mxu1 %vm154_vm1, %v27367_v41  ;;  %7370 = vrot.lane.b32.xlu0 %v27561_v9, %s32143_s27 }
 0x214   :  { %7085 = vrot.lane.b32.xlu1 %v27172_v63, %s32188_s28  ;;  %4654 = vmatpush1.bf16.msra.mxu1 %v4507_v28 }
 0x215   :  { %4856 = vmatprep.subr.bf16.mxu1 %v4793_v16  ;;  %4685 = vmatprep.mubr.bf16.mxu1 %v32152_v1  ;;  %v5934_v54 = vpop.permute.xlu0 %5933 }
 0x216   :  { %v5063_v32 = vpop.permute.xlu1 %5062  ;;  %v5951_v59 = vsel %vm32147_vm14, %v5934_v54, %v27755_v25 }
 0x217   :  { %23995 = vmatmul.mubr.msk.bf16.vlgmr.msra.gmra.mrb[0].mxu0 %vm154_vm1, %v27728_v39  ;;  %7368 = vrot.lane.b32.xlu0 %v27577_v3, %s32143_s27  ;;  %v5082_v42 = vsel %vm32145_vm11, %v5063_v32, %v27495_v46  ;;  %v5081_v31 = vsel %vm32145_vm11, %v27457_v10, %v5063_v32 }
 0x218   :  { %7380 = vrot.lane.b32.xlu1 %v27584_v62, %s32143_s27  ;;  %5853 = vmatpush1.bf16.msra.mxu0 %v5665_v48 }
 0x219   :  { %5884 = vmatprep.mubr.bf16.mxu0 %v32152_v1  ;;  %5969 = vmatprep.subr.bf16.mxu0 %v5947_v47  ;;  %v27779_v7 = vpop.permute.xlu0 %5931 }
 0x21a   :  { %v5944_v43 = vpop.permute.xlu1 %5943  ;;  %v5950_v5 = vsel %vm32147_vm14, %v27779_v7, %v5934_v54 }
 0x21b   :  { %23964 = vmatmul.mubr.msk.bf16.vlgmr.msra.gmra.mrb[12].mxu1 %vm154_vm1, %v27367_v41  ;;  %7378 = vrot.lane.b32.xlu0 %v27602_v35, %s32143_s27 }
 0x21c   :  { %7093 = vrot.lane.b32.xlu1 %v27205_v50, %s32188_s28  ;;  %4857 = vmatpush1.bf16.msra.mxu1 %v4792_v36 }
 0x21d   :  { %4942 = vmatprep.subr.bf16.mxu1 %v4797_v19  ;;  %4888 = vmatprep.mubr.bf16.mxu1 %v32152_v1  ;;  %v5942_v58 = vpop.permute.xlu0 %5941  ;;  %v26221_v19 = vld [vmem:[%s32126_s0 + $0x20] ss:$48 sps:$4 sm:$0xff]  }
 0x21e   :  { %v27793_v41 = vpop.permute.xlu1 %5070  ;;  %v5955_v14 = vsel %vm32147_vm14, %v5942_v58, %v5944_v43 }
 0x21f   :  { %23997 = vmatmul.mubr.msk.bf16.vlgmr.msra.gmra.mrb[4].mxu0 %vm154_vm1, %v27728_v39  ;;  %7376 = vrot.lane.b32.xlu0 %v27617_v24, %s32143_s27  ;;  %v5085_v54 = vsel %vm32145_vm11, %v27480_v8, %v27793_v41 }
 0x220   :  { %5970 = vmatpush1.bf16.msra.mxu0 %v5946_v44  ;;  %7388 = vrot.lane.b32.xlu1 %v27624_v12, %s32143_s27 }
 0x221   :  { %6001 = vmatprep.mubr.bf16.mxu0 %v32152_v1  ;;  %6055 = vmatprep.subr.bf16.mxu0 %v5951_v59  ;;  %v27804_v13 = vpop.permute.xlu0 %5939 }
 0x222   :  { %v27806_v2 = vpop.permute.xlu1 %6216  ;;  %v27808_v6 = vpop.f32.mrb[16].mxu1 }
 0x223   :  { %v27810_v26 = vpop.f32.mrb[17].mxu1  ;;  %23970 = vmatmul.mubr.msk.bf16.vlgmr.msra.gmra.mrb[4].mxu1 %vm154_vm1, %v27444_v51  ;;  %7386 = vrot.lane.b32.xlu0 %v27646_v23, %s32143_s27 }
 0x224   :  { %4943 = vmatpush1.bf16.msra.mxu1 %v4796_v4  ;;  %v27823_v0 = vpop.f32.mrb[18].mxu1  ;;  %7374 = vrot.lane.b32.xlu1 %v27172_v63, %s32143_s27 }
 0x225   :  { %5145 = vmatprep.subr.bf16.mxu1 %v5082_v42  ;;  %v27829_v18 = vpop.f32.mrb[19].mxu1  ;;  %4974 = vmatprep.mubr.bf16.mxu1 %v32152_v1  ;;  %v6215_v33 = vpop.permute.xlu0 %6214 }
 0x226   :  { %v5352_v40 = vpop.permute.xlu1 %5351 }
 0x227   :  { %24001 = vmatmul.mubr.msk.bf16.vlgmr.msra.gmra.mrb[8].mxu0 %vm154_vm1, %v27819_v37  ;;  %7384 = vrot.lane.b32.xlu0 %v27663_v27, %s32143_s27  ;;  %v5371_v32 = vsel %vm5367_vm12, %v5352_v40, %v27591_v56  ;;  %v5370_v36 = vsel %vm5367_vm12, %v27539_v45, %v5352_v40 }
 0x228   :  { %6056 = vmatpush1.bf16.msra.mxu0 %v5950_v5  ;;  %7661 = vrot.lane.b32.xlu1 %v27544_v30, %s26248_s7  ;;  %v5086_v30 = vsel %vm32145_vm11, %v27793_v41, %v27523_v11  ;;  %vm32148_vm11 = vcmask 228352  }
 0x229   :  { %6087 = vmatprep.mubr.bf16.mxu0 %v32152_v1  ;;  %6141 = vmatprep.subr.bf16.mxu0 %v5955_v14  ;;  %v6213_v63 = vpop.permute.xlu0 %6212  ;;  %v7938_v14 = vld [vmem:[%s32128_s2] sm:$0xff] }
 0x22a   :  { %v27842_v46 = vpop.permute.xlu1 %6224 }
 0x22b   :  { %23972 = vmatmul.mubr.msk.bf16.vlgmr.msra.gmra.mrb[12].mxu1 %vm154_vm1, %v27444_v51  ;;  %7659 = vrot.lane.b32.xlu0 %v27561_v9, %s26248_s7  ;;  %v5954_v51 = vsel %vm32147_vm14, %v27804_v13, %v5942_v58  ;;  %v6236_v9 = vsel %vm6234_vm7, %v6215_v33, %v27806_v2 }
 0x22c   :  { %5146 = vmatpush1.bf16.msra.mxu1 %v5081_v31  ;;  %7382 = vrot.lane.b32.xlu1 %v27205_v50, %s32143_s27  ;;  %s32424_s27 = smov 19  }
 0x22d   :  { %5231 = vmatprep.subr.bf16.mxu1 %v5086_v30  ;;  %v27855_v49 = vpop.f32.mrb[0].mxu1  ;;  %5177 = vmatprep.mubr.bf16.mxu1 %v32152_v1  ;;  %v6223_v10 = vpop.permute.xlu0 %6222 }
 0x22e   :  { %v5360_v53 = vpop.permute.xlu1 %5359  ;;  %v27860_v28 = vpop.f32.mrb[1].mxu1  ;;  %v6240_v43 = vsel %vm6234_vm7, %v6223_v10, %v27842_v46 }
 0x22f   :  { %v27864_v16 = vpop.f32.mrb[2].mxu1  ;;  %24003 = vmatmul.mubr.msk.bf16.vlgmr.msra.gmra.mrb[0].mxu0 %vm154_vm1, %v27819_v37  ;;  %7657 = vrot.lane.b32.xlu0 %v27577_v3, %s26248_s7  ;;  %v26220_v3 = vld [vmem:[%s32126_s0 + $0x10] ss:$48 sps:$4 sm:$0xff]  }
 0x230   :  { %v27870_v50 = vpop.f32.mrb[3].mxu1  ;;  %6142 = vmatpush1.bf16.msra.mxu0 %v5954_v51  ;;  %6173 = vmatprep.mubr.bf16.mxu0 %v32152_v1 }
 0x231   :  { %6258 = vmatprep.subr.bf16.mxu0 %v6236_v9  ;;  %v27873_v11 = vpop.permute.xlu0 %6220  ;;  %7665 = vrot.lane.b32.xlu1 %v27617_v24, %s26248_s7  ;;  %v6235_v24 = vsel %vm6234_vm7, %v6213_v63, %v6215_v33  ;;  %v7939_v63 = vld [vmem:[%s32128_s2 + $0x8] sm:$0xff] }
 0x232   :  { %v6233_v48 = vpop.permute.xlu1 %6232 }
 0x233   :  { %23978 = vmatmul.mubr.msk.bf16.vlgmr.msra.gmra.mrb[4].mxu1 %vm154_vm1, %v27521_v34  ;;  %7663 = vrot.lane.b32.xlu0 %v26220_v3, %s26248_s7 }
 0x234   :  { %5232 = vmatpush1.bf16.msra.mxu1 %v5085_v54  ;;  %5263 = vmatprep.mubr.bf16.mxu1 %v32152_v1 }
 0x235   :  { %5434 = vmatprep.subr.bf16.mxu1 %v5371_v32  ;;  %v6231_v47 = vpop.permute.xlu0 %6230  ;;  %7669 = vrot.lane.b32.xlu1 %v27584_v62, %s26248_s7 }
 0x236   :  { %v5641_v8 = vpop.permute.xlu1 %5640  ;;  %v6244_v58 = vsel %vm6234_vm7, %v6231_v47, %v6233_v48 }
 0x237   :  { %24005 = vmatmul.mubr.msk.bf16.vlgmr.msra.gmra.mrb[4].mxu0 %vm154_vm1, %v27819_v37  ;;  %7667 = vrot.lane.b32.xlu0 %v27602_v35, %s26248_s7  ;;  %v27912_v35 = vld [vmem:[%s32127_s1 + $0xa8] sm:$0xff]   ;;  %v5660_v59 = vsel %vm32146_vm13, %v5641_v8, %v27694_v60  ;;  %v5659_v33 = vsel %vm32146_vm13, %v27634_v22, %v5641_v8 }
 0x238   :  { %6259 = vmatpush1.bf16.msra.mxu0 %v6235_v24  ;;  %6290 = vmatprep.mubr.bf16.mxu0 %v32152_v1 }
 0x239   :  { %6344 = vmatprep.subr.bf16.mxu0 %v6240_v43  ;;  %v27899_v56 = vpop.permute.xlu0 %6228  ;;  %7673 = vrot.lane.b32.xlu1 %v27663_v27, %s26248_s7  ;;  %v5375_v27 = vsel %vm5367_vm12, %v5360_v53, %v27632_v61 }
 0x23a   :  { %v27903_v62 = vpop.permute.xlu1 %6505 }
 0x23b   :  { %23980 = vmatmul.mubr.msk.bf16.vlgmr.msra.gmra.mrb[12].mxu1 %vm154_vm1, %v27521_v34  ;;  %7671 = vrot.lane.b32.xlu0 %v26221_v19, %s26248_s7  ;;  %v6239_v34 = vsel %vm6234_vm7, %v27873_v11, %v6223_v10 }
 0x23c   :  { %5435 = vmatpush1.bf16.msra.mxu1 %v5370_v36  ;;  %5466 = vmatprep.mubr.bf16.mxu1 %v32152_v1 }
 0x23d   :  { %5520 = vmatprep.subr.bf16.mxu1 %v5375_v27  ;;  %v6504_v45 = vpop.permute.xlu0 %6503  ;;  %7677 = vrot.lane.b32.xlu1 %v27624_v12, %s26248_s7  ;;  %v5374_v12 = vsel %vm5367_vm12, %v27552_v55, %v5360_v53  ;;  %v27979_v53 = vld [vmem:[%s32127_s1 + $0xb0] sm:$0xff]  }
 0x23e   :  { %v5649_v44 = vpop.permute.xlu1 %5648  ;;  %v6525_v5 = vsel %vm32148_vm11, %v6504_v45, %v27903_v62 }
 0x23f   :  { %24009 = vmatmul.mubr.msk.bf16.vlgmr.msra.gmra.mrb[8].mxu0 %vm154_vm1, %v27912_v35  ;;  %7675 = vrot.lane.b32.xlu0 %v27646_v23, %s26248_s7  ;;  %v6243_v23 = vsel %vm6234_vm7, %v27899_v56, %v6231_v47  ;;  %v5664_v40 = vsel %vm32146_vm13, %v5649_v44, %v27717_v38  ;;  %v5663_v10 = vsel %vm32146_vm13, %v27670_v20, %v5649_v44  ;;  %vm32149_vm13 = vcmask 220160  }
 0x240   :  { %6345 = vmatpush1.bf16.msra.mxu0 %v6239_v34  ;;  %6376 = vmatprep.mubr.bf16.mxu0 %v32152_v1 }
 0x241   :  { %6430 = vmatprep.subr.bf16.mxu0 %v6244_v58  ;;  %v6502_v61 = vpop.permute.xlu0 %6501  ;;  %7947 = vperm.xlu1 %26078, %v7939_v63  }
 0x242   :  { %v27931_v41 = vpop.permute.xlu1 %6513 }
 0x243   :  { %23986 = vmatmul.mubr.msk.bf16.vlgmr.msra.gmra.mrb[4].mxu1 %vm154_vm1, %v27641_v17  ;;  %7942 = vperm.xlu0 %26077, %v7938_v14  }
 0x244   :  { %5521 = vmatpush1.bf16.msra.mxu1 %v5374_v12  ;;  %5552 = vmatprep.mubr.bf16.mxu1 %v32152_v1  ;;  %v28032_v12 = vld [vmem:[%s32127_s1 + $0xb8] sm:$0xff]  }
 0x245   :  { %5723 = vmatprep.subr.bf16.mxu1 %v5660_v59  ;;  %v6512_v4 = vpop.permute.xlu0 %6511 }
 0x246   :  { %v5930_v42 = vpop.permute.xlu1 %5929  ;;  %v6529_v30 = vsel %vm32148_vm11, %v6512_v4, %v27931_v41 }
 0x247   :  { %24011 = vmatmul.mubr.msk.bf16.vlgmr.msra.gmra.mrb[0].mxu0 %vm154_vm1, %v27912_v35  ;;  %v5949_v9 = vsel %vm32147_vm14, %v5930_v42, %v27779_v7  ;;  %v5948_v7 = vsel %vm32147_vm14, %v27719_v52, %v5930_v42 }
 0x248   :  { %6431 = vmatpush1.bf16.msra.mxu0 %v6243_v23  ;;  %6462 = vmatprep.mubr.bf16.mxu0 %v32152_v1 }
 0x249   :  { %6547 = vmatprep.subr.bf16.mxu0 %v6525_v5  ;;  %v27947_v55 = vpop.permute.xlu0 %6509 }
 0x24a   :  { %v6522_v60 = vpop.permute.xlu1 %6521  ;;  %v6528_v48 = vsel %vm32148_vm11, %v27947_v55, %v6512_v4 }
 0x24b   :  { %23988 = vmatmul.mubr.msk.bf16.vlgmr.msra.gmra.mrb[12].mxu1 %vm154_vm1, %v27641_v17  ;;  %v6524_v17 = vsel %vm32148_vm11, %v6502_v61, %v6504_v45 }
 0x24c   :  { %5724 = vmatpush1.bf16.msra.mxu1 %v5659_v33  ;;  %5755 = vmatprep.mubr.bf16.mxu1 %v32152_v1 }
 0x24d   :  { %5809 = vmatprep.subr.bf16.mxu1 %v5664_v40  ;;  %v6520_v31 = vpop.permute.xlu0 %6519 }
 0x24e   :  { %v5938_v22 = vpop.permute.xlu1 %5937  ;;  %v6533_v32 = vsel %vm32148_vm11, %v6520_v31, %v6522_v60 }
 0x24f   :  { %24013 = vmatmul.mubr.msk.bf16.vlgmr.msra.gmra.mrb[4].mxu0 %vm154_vm1, %v27912_v35  ;;  %v5953_v47 = vsel %vm32147_vm14, %v5938_v22, %v27804_v13  ;;  %v5952_v13 = vsel %vm32147_vm14, %v27755_v25, %v5938_v22  ;;  %vm7101_vm14 = vcmask 154624  }
 0x250   :  { %6548 = vmatpush1.bf16.msra.mxu0 %v6524_v17  ;;  %6579 = vmatprep.mubr.bf16.mxu0 %v32152_v1 }
 0x251   :  { %6633 = vmatprep.subr.bf16.mxu0 %v6529_v30  ;;  %v27968_v38 = vpop.permute.xlu0 %6517 }
 0x252   :  { %v27970_v51 = vpop.permute.xlu1 %6794  ;;  %v6532_v8 = vsel %vm32148_vm11, %v27968_v38, %v6520_v31 }
 0x253   :  { %23994 = vmatmul.mubr.msk.bf16.vlgmr.msra.gmra.mrb[4].mxu1 %vm154_vm1, %v27728_v39 }
 0x254   :  { %5810 = vmatpush1.bf16.msra.mxu1 %v5663_v10  ;;  %5841 = vmatprep.mubr.bf16.mxu1 %v32152_v1 }
 0x255   :  { %6012 = vmatprep.subr.bf16.mxu1 %v5949_v9  ;;  %v6793_v54 = vpop.permute.xlu0 %6792 }
 0x256   :  { %v6219_v3 = vpop.permute.xlu1 %6218  ;;  %v6814_v19 = vsel %vm32149_vm13, %v6793_v54, %v27970_v51 }
 0x257   :  { %24017 = vmatmul.mubr.msk.bf16.vlgmr.msra.gmra.mrb[8].mxu0 %vm154_vm1, %v27979_v53  ;;  %v6238_v27 = vsel %vm6234_vm7, %v6219_v3, %v27873_v11  ;;  %v6237_v61 = vsel %vm6234_vm7, %v27806_v2, %v6219_v3 }
 0x258   :  { %6634 = vmatpush1.bf16.msra.mxu0 %v6528_v48  ;;  %6665 = vmatprep.mubr.bf16.mxu0 %v32152_v1  ;;  %v28081_v48 = vld [vmem:[%s32127_s1 + $0xc0] sm:$0xff]  }
 0x259   :  { %6719 = vmatprep.subr.bf16.mxu0 %v6533_v32  ;;  %v6791_v20 = vpop.permute.xlu0 %6790 }
 0x25a   :  { %v27990_v24 = vpop.permute.xlu1 %6802  ;;  %v6813_v34 = vsel %vm32149_vm13, %v6791_v20, %v6793_v54 }
 0x25b   :  { %23996 = vmatmul.mubr.msk.bf16.vlgmr.msra.gmra.mrb[12].mxu1 %vm154_vm1, %v27728_v39 }
 0x25c   :  { %6013 = vmatpush1.bf16.msra.mxu1 %v5948_v7  ;;  %6044 = vmatprep.mubr.bf16.mxu1 %v32152_v1 }
 0x25d   :  { %6098 = vmatprep.subr.bf16.mxu1 %v5953_v47  ;;  %v6801_v43 = vpop.permute.xlu0 %6800 }
 0x25e   :  { %v6227_v36 = vpop.permute.xlu1 %6226  ;;  %v6818_v58 = vsel %vm32149_vm13, %v6801_v43, %v27990_v24 }
 0x25f   :  { %24019 = vmatmul.mubr.msk.bf16.vlgmr.msra.gmra.mrb[0].mxu0 %vm154_vm1, %v27979_v53  ;;  %v6242_v59 = vsel %vm6234_vm7, %v6227_v36, %v27899_v56  ;;  %v6241_v56 = vsel %vm6234_vm7, %v27842_v46, %v6227_v36 }
 0x260   :  { %6720 = vmatpush1.bf16.msra.mxu0 %v6532_v8  ;;  %6751 = vmatprep.mubr.bf16.mxu0 %v32152_v1 }
 0x261   :  { %6836 = vmatprep.subr.bf16.mxu0 %v6814_v19  ;;  %v28006_v52 = vpop.permute.xlu0 %6798 }
 0x262   :  { %v6811_v39 = vpop.permute.xlu1 %6810  ;;  %v6817_v23 = vsel %vm32149_vm13, %v28006_v52, %v6801_v43 }
 0x263   :  { %24002 = vmatmul.mubr.msk.bf16.vlgmr.msra.gmra.mrb[4].mxu1 %vm154_vm1, %v27819_v37 }
 0x264   :  { %6099 = vmatpush1.bf16.msra.mxu1 %v5952_v13  ;;  %6130 = vmatprep.mubr.bf16.mxu1 %v32152_v1 }
 0x265   :  { %6301 = vmatprep.subr.bf16.mxu1 %v6238_v27  ;;  %v6809_v45 = vpop.permute.xlu0 %6808 }
 0x266   :  { %v6508_v44 = vpop.permute.xlu1 %6507  ;;  %v6822_v42 = vsel %vm32149_vm13, %v6809_v45, %v6811_v39 }
 0x267   :  { %24021 = vmatmul.mubr.msk.bf16.vlgmr.msra.gmra.mrb[4].mxu0 %vm154_vm1, %v27979_v53  ;;  %v6527_v60 = vsel %vm32148_vm11, %v6508_v44, %v27947_v55  ;;  %v6526_v17 = vsel %vm32148_vm11, %v27903_v62, %v6508_v44 }
 0x268   :  { %6837 = vmatpush1.bf16.msra.mxu0 %v6813_v34  ;;  %6868 = vmatprep.mubr.bf16.mxu0 %v32152_v1 }
 0x269   :  { %6922 = vmatprep.subr.bf16.mxu0 %v6818_v58  ;;  %v28021_v25 = vpop.permute.xlu0 %6806 }
 0x26a   :  { %v28023_v11 = vpop.permute.xlu1 %7083  ;;  %v6821_v33 = vsel %vm32149_vm13, %v28021_v25, %v6809_v45 }
 0x26b   :  { %24004 = vmatmul.mubr.msk.bf16.vlgmr.msra.gmra.mrb[12].mxu1 %vm154_vm1, %v27819_v37 }
 0x26c   :  { %6302 = vmatpush1.bf16.msra.mxu1 %v6237_v61  ;;  %6333 = vmatprep.mubr.bf16.mxu1 %v32152_v1 }
 0x26d   :  { %6387 = vmatprep.subr.bf16.mxu1 %v6242_v59  ;;  %v7082_v4 = vpop.permute.xlu0 %7081  ;;  %v26142_v59 = vld [vmem:[%s32127_s1 + $0xc8] sm:$0xff]  }
 0x26e   :  { %v6516_v37 = vpop.permute.xlu1 %6515  ;;  %v7103_v63 = vsel %vm7101_vm14, %v7082_v4, %v28023_v11 }
 0x26f   :  { %24025 = vmatmul.mubr.msk.bf16.vlgmr.msra.gmra.mrb[8].mxu0 %vm154_vm1, %v28032_v12  ;;  %v6531_v31 = vsel %vm32148_vm11, %v6516_v37, %v27968_v38  ;;  %v6530_v38 = vsel %vm32148_vm11, %v27931_v41, %v6516_v37  ;;  %vm7390_vm11 = vcmask 146432  }
 0x270   :  { %6923 = vmatpush1.bf16.msra.mxu0 %v6817_v23  ;;  %6954 = vmatprep.mubr.bf16.mxu0 %v32152_v1 }
 0x271   :  { %7008 = vmatprep.subr.bf16.mxu0 %v6822_v42  ;;  %v7080_v2 = vpop.permute.xlu0 %7079 }
 0x272   :  { %v28043_v5 = vpop.permute.xlu1 %7091  ;;  %v7102_v22 = vsel %vm7101_vm14, %v7080_v2, %v7082_v4 }
 0x273   :  { %24010 = vmatmul.mubr.msk.bf16.vlgmr.msra.gmra.mrb[4].mxu1 %vm154_vm1, %v27912_v35 }
 0x274   :  { %6388 = vmatpush1.bf16.msra.mxu1 %v6241_v56  ;;  %6419 = vmatprep.mubr.bf16.mxu1 %v32152_v1 }
 0x275   :  { %6590 = vmatprep.subr.bf16.mxu1 %v6527_v60  ;;  %v7090_v40 = vpop.permute.xlu0 %7089 }
 0x276   :  { %v6797_v14 = vpop.permute.xlu1 %6796  ;;  %v7107_v9 = vsel %vm7101_vm14, %v7090_v40, %v28043_v5 }
 0x277   :  { %24027 = vmatmul.mubr.msk.bf16.vlgmr.msra.gmra.mrb[0].mxu0 %vm154_vm1, %v28032_v12  ;;  %v6816_v54 = vsel %vm32149_vm13, %v6797_v14, %v28006_v52  ;;  %v6815_v8 = vsel %vm32149_vm13, %v27970_v51, %v6797_v14 }
 0x278   :  { %7009 = vmatpush1.bf16.msra.mxu0 %v6821_v33  ;;  %7040 = vmatprep.mubr.bf16.mxu0 %v32152_v1 }
 0x279   :  { %7125 = vmatprep.subr.bf16.mxu0 %v7103_v63  ;;  %v7088_v46 = vpop.permute.xlu0 %7087 }
 0x27a   :  { %v7100_v55 = vpop.permute.xlu1 %7099  ;;  %v7106_v3 = vsel %vm7101_vm14, %v7088_v46, %v7090_v40 }
 0x27b   :  { %24012 = vmatmul.mubr.msk.bf16.vlgmr.msra.gmra.mrb[12].mxu1 %vm154_vm1, %v27912_v35 }
 0x27c   :  { %6591 = vmatpush1.bf16.msra.mxu1 %v6526_v17  ;;  %6622 = vmatprep.mubr.bf16.mxu1 %v32152_v1 }
 0x27d   :  { %6676 = vmatprep.subr.bf16.mxu1 %v6531_v31  ;;  %v7098_v30 = vpop.permute.xlu0 %7097 }
 0x27e   :  { %v6805_v10 = vpop.permute.xlu1 %6804  ;;  %v7111_v7 = vsel %vm7101_vm14, %v7098_v30, %v7100_v55 }
 0x27f   :  { %24029 = vmatmul.mubr.msk.bf16.vlgmr.msra.gmra.mrb[4].mxu0 %vm154_vm1, %v28032_v12  ;;  %v6820_v43 = vsel %vm32149_vm13, %v6805_v10, %v28021_v25  ;;  %v6819_v13 = vsel %vm32149_vm13, %v27990_v24, %v6805_v10  ;;  %vm7679_vm13 = vcmask 138240  }
 0x280   :  { %7126 = vmatpush1.bf16.msra.mxu0 %v7102_v22  ;;  %7157 = vmatprep.mubr.bf16.mxu0 %v32152_v1 }
 0x281   :  { %7211 = vmatprep.subr.bf16.mxu0 %v7107_v9  ;;  %v7096_v62 = vpop.permute.xlu0 %7095 }
 0x282   :  { %v28072_v35 = vpop.permute.xlu1 %7372  ;;  %v7110_v36 = vsel %vm7101_vm14, %v7096_v62, %v7098_v30 }
 0x283   :  { %24018 = vmatmul.mubr.msk.bf16.vlgmr.msra.gmra.mrb[4].mxu1 %vm154_vm1, %v27979_v53 }
 0x284   :  { %6677 = vmatpush1.bf16.msra.mxu1 %v6530_v38  ;;  %6708 = vmatprep.mubr.bf16.mxu1 %v32152_v1 }
 0x285   :  { %6879 = vmatprep.subr.bf16.mxu1 %v6816_v54  ;;  %v7371_v32 = vpop.permute.xlu0 %7370 }
 0x286   :  { %v7086_v20 = vpop.permute.xlu1 %7085  ;;  %v7392_v39 = vsel %vm7390_vm11, %v7371_v32, %v28072_v35 }
 0x287   :  { %24033 = vmatmul.mubr.msk.bf16.vlgmr.msra.gmra.mrb[8].mxu0 %vm154_vm1, %v28081_v48  ;;  %v7105_v27 = vsel %vm7101_vm14, %v7086_v20, %v7088_v46  ;;  %v7104_v61 = vsel %vm7101_vm14, %v28023_v11, %v7086_v20 }
 0x288   :  { %7212 = vmatpush1.bf16.msra.mxu0 %v7106_v3  ;;  %7243 = vmatprep.mubr.bf16.mxu0 %v32152_v1 }
 0x289   :  { %7297 = vmatprep.subr.bf16.mxu0 %v7111_v7  ;;  %v7369_v41 = vpop.permute.xlu0 %7368 }
 0x28a   :  { %v28091_v47 = vpop.permute.xlu1 %7380  ;;  %v7391_v34 = vsel %vm7390_vm11, %v7369_v41, %v7371_v32  ;;  %v8012_v41 = vlaneseq }
 0x28b   :  { %24020 = vmatmul.mubr.msk.bf16.vlgmr.msra.gmra.mrb[12].mxu1 %vm154_vm1, %v27979_v53 }
 0x28c   :  { %6880 = vmatpush1.bf16.msra.mxu1 %v6815_v8  ;;  %6911 = vmatprep.mubr.bf16.mxu1 %v32152_v1 }
 0x28d   :  { %6965 = vmatprep.subr.bf16.mxu1 %v6820_v43  ;;  %v7379_v19 = vpop.permute.xlu0 %7378 }
 0x28e   :  { %v7094_v52 = vpop.permute.xlu1 %7093  ;;  %v7396_v58 = vsel %vm7390_vm11, %v7379_v19, %v28091_v47 }
 0x28f   :  { %24035 = vmatmul.mubr.msk.bf16.vlgmr.msra.gmra.mrb[0].mxu0 %vm154_vm1, %v28081_v48  ;;  %v7109_v23 = vsel %vm7101_vm14, %v7094_v52, %v7096_v62  ;;  %v7108_v56 = vsel %vm7101_vm14, %v28043_v5, %v7094_v52  ;;  %v26143_v62 = vld [vmem:[%s32127_s1 + $0xd0] sm:$0xff]  }
 0x290   :  { %7298 = vmatpush1.bf16.msra.mxu0 %v7110_v36  ;;  %7329 = vmatprep.mubr.bf16.mxu0 %v32152_v1 }
 0x291   :  { %7414 = vmatprep.subr.bf16.mxu0 %v7392_v39  ;;  %v7377_v51 = vpop.permute.xlu0 %7376 }
 0x292   :  { %v7389_v53 = vpop.permute.xlu1 %7388  ;;  %v7395_v4 = vsel %vm7390_vm11, %v7377_v51, %v7379_v19 }
 0x293   :  { %24026 = vmatmul.mubr.msk.bf16.vlgmr.msra.gmra.mrb[4].mxu1 %vm154_vm1, %v28032_v12 }
 0x294   :  { %6966 = vmatpush1.bf16.msra.mxu1 %v6819_v13  ;;  %6997 = vmatprep.mubr.bf16.mxu1 %v32152_v1 }
 0x295   :  { %7168 = vmatprep.subr.bf16.mxu1 %v7105_v27  ;;  %v7387_v45 = vpop.permute.xlu0 %7386 }
 0x296   :  { %v7375_v44 = vpop.permute.xlu1 %7374  ;;  %v7400_v42 = vsel %vm7390_vm11, %v7387_v45, %v7389_v53 }
 0x297   :  { %24037 = vmatmul.mubr.msk.bf16.vlgmr.msra.gmra.mrb[4].mxu0 %vm154_vm1, %v28081_v48  ;;  %v7394_v2 = vsel %vm7390_vm11, %v7375_v44, %v7377_v51  ;;  %v7393_v55 = vsel %vm7390_vm11, %v28072_v35, %v7375_v44  ;;  %v28196_v44 = vld [vmem:[%s32129_s3] sm:$0xff] }
 0x298   :  { %7415 = vmatpush1.bf16.msra.mxu0 %v7391_v34  ;;  %7446 = vmatprep.mubr.bf16.mxu0 %v32152_v1 }
 0x299   :  { %7500 = vmatprep.subr.bf16.mxu0 %v7396_v58  ;;  %v7385_v24 = vpop.permute.xlu0 %7384 }
 0x29a   :  { %v28118_v25 = vpop.permute.xlu1 %7661  ;;  %v7399_v33 = vsel %vm7390_vm11, %v7385_v24, %v7387_v45 }
 0x29b   :  { %24028 = vmatmul.mubr.msk.bf16.vlgmr.msra.gmra.mrb[12].mxu1 %vm154_vm1, %v28032_v12 }
 0x29c   :  { %7169 = vmatpush1.bf16.msra.mxu1 %v7104_v61  ;;  %7200 = vmatprep.mubr.bf16.mxu1 %v32152_v1 }
 0x29d   :  { %7254 = vmatprep.subr.bf16.mxu1 %v7109_v23  ;;  %v7660_v37 = vpop.permute.xlu0 %7659 }
 0x29e   :  { %v7383_v12 = vpop.permute.xlu1 %7382  ;;  %v7681_v14 = vsel %vm7679_vm13, %v7660_v37, %v28118_v25 }
 0x29f   :  { %24041 = vmatmul.mubr.msk.bf16.vlgmr.msra.gmra.mrb[8].mxu0 %vm154_vm1, %v26142_v59  ;;  %v7398_v46 = vsel %vm7390_vm11, %v7383_v12, %v7385_v24  ;;  %v7397_v9 = vsel %vm7390_vm11, %v28091_v47, %v7383_v12  ;;  %v28181_v47 = vshrl.u32 %v8012_v41, 7 }
 0x2a0   :  { %7501 = vmatpush1.bf16.msra.mxu0 %v7395_v4  ;;  %7532 = vmatprep.mubr.bf16.mxu0 %v32152_v1 }
 0x2a1   :  { %7586 = vmatprep.subr.bf16.mxu0 %v7400_v42  ;;  %v7658_v11 = vpop.permute.xlu0 %7657  ;;  %v8014_v53 = vsub.s32 0, %v28181_v47  ;;  %v8018_v13 = vsub.s32 1, %v28181_v47 }
 0x2a2   :  { %v7680_v17 = vsel %vm7679_vm13, %v7658_v11, %v7660_v37 }
 0x2a3   :  { %24034 = vmatmul.mubr.msk.bf16.vlgmr.msra.gmra.mrb[4].mxu1 %vm154_vm1, %v28081_v48  ;;  %v7666_v60 = vpop.permute.xlu1 %7665  ;;  %v28207_v37 = vrot.slane %v28196_v44, %v8014_v53  ;;  %v28210_v42 = vrot.slane %v28196_v44, %v8018_v13 }
 0x2a4   :  { %7255 = vmatpush1.bf16.msra.mxu1 %v7108_v56  ;;  %7286 = vmatprep.mubr.bf16.mxu1 %v32152_v1 }
 0x2a5   :  { %7457 = vmatprep.subr.bf16.mxu1 %v7394_v2  ;;  %v7664_v40 = vpop.permute.xlu0 %7663  ;;  %32217 = vst [vmem:[#allocation4_spill] sm:$0xff] %v28207_v37  ;;  %32218 = vst [vmem:[#allocation5_spill] sm:$0xff] %v28210_v42 }
 0x2a6   :  { %v7683_v10 = vsel %vm7679_vm13, %v7664_v40, %v7666_v60  ;;  %v7682_v32 = vsel %vm7679_vm13, %v28118_v25, %v7664_v40  ;;  %v8022_v25 = vsub.s32 2, %v28181_v47 }
 0x2a7   :  { %24043 = vmatmul.mubr.msk.bf16.vlgmr.msra.gmra.mrb[0].mxu0 %vm154_vm1, %v26142_v59  ;;  %v7670_v63 = vpop.permute.xlu1 %7669 }
 0x2a8   :  { %7587 = vmatpush1.bf16.msra.mxu0 %v7399_v33  ;;  %7618 = vmatprep.mubr.bf16.mxu0 %v32152_v1 }
 0x2a9   :  { %7703 = vmatprep.subr.bf16.mxu0 %v7681_v14  ;;  %v7668_v5 = vpop.permute.xlu0 %7667  ;;  %v28222_v14 = vrot.slane %v28196_v44, %v8022_v25 }
 0x2aa   :  { %v7685_v30 = vsel %vm7679_vm13, %v7668_v5, %v7670_v63 }
 0x2ab   :  { %24036 = vmatmul.mubr.msk.bf16.vlgmr.msra.gmra.mrb[12].mxu1 %vm154_vm1, %v28081_v48  ;;  %v7674_v31 = vpop.permute.xlu1 %7673  ;;  %v7684_v48 = vsel %vm7679_vm13, %v7666_v60, %v7668_v5  ;;  %32221 = vst [vmem:[#allocation8_spill] sm:$0xff] %v28222_v14 }
 0x2ac   :  { %7458 = vmatpush1.bf16.msra.mxu1 %v7393_v55  ;;  %7489 = vmatprep.mubr.bf16.mxu1 %v32152_v1 }
 0x2ad   :  { %7543 = vmatprep.subr.bf16.mxu1 %v7398_v46  ;;  %v7672_v22 = vpop.permute.xlu0 %7671 }
 0x2ae   :  { %v7687_v3 = vsel %vm7679_vm13, %v7672_v22, %v7674_v31  ;;  %v7686_v7 = vsel %vm7679_vm13, %v7670_v63, %v7672_v22 }
 0x2af   :  { %24045 = vmatmul.mubr.msk.bf16.vlgmr.msra.gmra.mrb[4].mxu0 %vm154_vm1, %v26142_v59  ;;  %v7678_v35 = vpop.permute.xlu1 %7677 }
 0x2b0   :  { %7704 = vmatpush1.bf16.msra.mxu0 %v7680_v17  ;;  %7735 = vmatprep.mubr.bf16.mxu0 %v32152_v1 }
 0x2b1   :  { %7789 = vmatprep.subr.bf16.mxu0 %v7685_v30  ;;  %v7676_v38 = vpop.permute.xlu0 %7675 }
 0x2b2   :  { %v7689_v54 = vsel %vm7679_vm13, %v7676_v38, %v7678_v35  ;;  %v7688_v20 = vsel %vm7679_vm13, %v7674_v31, %v7676_v38  ;;  %v8038_v31 = vsub.s32 6, %v28181_v47 }
 0x2b3   :  { %24042 = vmatmul.mubr.msk.bf16.vlgmr.msra.gmra.mrb[4].mxu1 %vm154_vm1, %v26142_v59 }
 0x2b4   :  { %7544 = vmatpush1.bf16.msra.mxu1 %v7397_v9  ;;  %7575 = vmatprep.mubr.bf16.mxu1 %v32152_v1 }
 0x2b5   :  { %7746 = vmatprep.subr.bf16.mxu1 %v7683_v10 }
 0x2b7   :  { %24049 = vmatmul.mubr.msk.bf16.vlgmr.msra.gmra.mrb[8].mxu0 %vm154_vm1, %v26143_v62 }
 0x2b8   :  { %7790 = vmatpush1.bf16.msra.mxu0 %v7684_v48  ;;  %7821 = vmatprep.mubr.bf16.mxu0 %v32152_v1 }
 0x2b9   :  { %7875 = vmatprep.subr.bf16.mxu0 %v7689_v54 }
 0x2bb   :  { %24044 = vmatmul.mubr.msk.bf16.vlgmr.msra.gmra.mrb[12].mxu1 %vm154_vm1, %v26142_v59 }
 0x2bc   :  { %7747 = vmatpush1.bf16.msra.mxu1 %v7682_v32  ;;  %7778 = vmatprep.mubr.bf16.mxu1 %v32152_v1 }
 0x2bd   :  { %7832 = vmatprep.subr.bf16.mxu1 %v7687_v3 }
 0x2bf   :  { %24051 = vmatmul.mubr.msk.bf16.vlgmr.msra.gmra.mrb[0].mxu0 %vm154_vm1, %v26143_v62 }
 0x2c0   :  { %7876 = vmatpush1.bf16.msra.mxu0 %v7688_v20  ;;  %7907 = vmatprep.mubr.bf16.mxu0 %v32152_v1  ;;  %v28187_v51 = vpop.permute.xlu1 %7947 }
 0x2c2   :  { %v28183_v43 = vpop.permute.xlu0 %7942 }
 0x2c3   :  { %24050 = vmatmul.mubr.msk.bf16.vlgmr.msra.gmra.mrb[4].mxu1 %vm154_vm1, %v26143_v62 }
 0x2c4   :  { %7833 = vmatpush1.bf16.msra.mxu1 %v7686_v7  ;;  %7864 = vmatprep.mubr.bf16.mxu1 %v32152_v1 }
 0x2c7   :  { %24053 = vmatmul.mubr.msk.bf16.vlgmr.msra.gmra.mrb[4].mxu0 %vm154_vm1, %v26143_v62 }
 0x2c8   :  { %16063 = vmatprep.mubr.bf16.mxu0 %v32152_v1 }
 0x2cb   :  { %24052 = vmatmul.mubr.msk.bf16.vlgmr.msra.gmra.mrb[12].mxu1 %vm154_vm1, %v26143_v62  ;;  %v8042_v62 = vsub.s32 7, %v28181_v47 }
 0x2cc   :  { %8212 = vmatprep.mubr.bf16.mxu1 %v32152_v1 }
 0x38a   :  { %v7737_v8 = vpop.f32.mrb[8].mxu0 }
 0x38b   :  { %v24490_v36 = vadd.f32 %v7737_v8, %v27855_v49  ;;  %v7739_v19 = vpop.f32.mrb[9].mxu0  ;;  %v8030_v49 = vsub.s32 4, %v28181_v47 }
 0x38c   :  { %v24491_v52 = vadd.f32 %v7739_v19, %v27860_v28  ;;  %v7741_v39 = vpop.f32.mrb[10].mxu0  ;;  %v8034_v28 = vsub.s32 5, %v28181_v47 }
 0x38d   :  { %v24492_v27 = vadd.f32 %v7741_v39, %v27864_v16  ;;  %v7950_v34 = vadd.f32 %v24490_v36, %v28183_v43  ;;  %v7743_v45 = vpop.f32.mrb[11].mxu0  ;;  %v8026_v16 = vsub.s32 3, %v28181_v47  ;;  %v28216_v2 = vrot.slane %v28196_v44, %v8030_v49 }
 0x38e   :  { %v7951_v58 = vadd.f32 %v24491_v52, %v28183_v43  ;;  %v24493_v24 = vadd.f32 %v7743_v45, %v27870_v50  ;;  %v43_v50 = vld [vmem:[%s32129_s3 + $0x8] sm:$0x3]  ;;  %v28219_v56 = vrot.slane %v28196_v44, %v8034_v28  ;;  %s32235_s3 = smov 37  }
 0x38f   :  { %v7970_v61 = vmul.f32 0.01, %v7950_v34  ;;  %v7960_v59 = vadd.f32 %v24492_v27, %v28187_v51  ;;  %32219 = vst [vmem:[#allocation6_spill] sm:$0xff] %v28216_v2  ;;  %v28225_v63 = vrot.slane %v28196_v44, %v8026_v16  ;;  %v28228_v17 = vrot.slane %v43_v50, %v8014_v53 }
 0x390   :  { %v7971_v23 = vmul.f32 0.01, %v7951_v58  ;;  %v7961_v4 = vadd.f32 %v24493_v24, %v28187_v51  ;;  %32220 = vst [vmem:[#allocation7_spill] sm:$0xff] %v28219_v56  ;;  %v28232_v9 = vrot.slane %v43_v50, %v8018_v13 }
 0x391   :  { %v7990_v12 = vmax.f32 %v7950_v34, %v7970_v61  ;;  %v7980_v11 = vmul.f32 0.01, %v7960_v59  ;;  %32222 = vst [vmem:[#allocation9_spill] sm:$0xff] %v28225_v63  ;;  %32223 = vst [vmem:[#allocation10_spill] sm:$0xff] %v28228_v17 }
 0x392   :  { %v7991_v60 = vmax.f32 %v7951_v58, %v7971_v23  ;;  %v7981_v33 = vmul.f32 0.01, %v7961_v4  ;;  %v7823_v40 = vpop.f32.mrb[0].mxu0  ;;  %32224 = vst [vmem:[#allocation11_spill] sm:$0xff] %v28232_v9 }
 0x393   :  { %v8000_v5 = vmax.f32 %v7960_v59, %v7980_v11  ;;  %v24494_v46 = vadd.f32 %v7823_v40, %v27739_v57  ;;  %v7825_v55 = vpop.f32.mrb[1].mxu0  ;;  %v8062_v38 = vmul.f32 %v28207_v37, %v7990_v12 }
 0x394   :  { %v8001_v22 = vmax.f32 %v7961_v4, %v7981_v33  ;;  %v24495_v30 = vadd.f32 %v7825_v55, %v27742_v29  ;;  %v7827_v10 = vpop.f32.mrb[2].mxu0  ;;  %v8063_v3 = vmul.f32 %v28210_v42, %v7991_v60 }
 0x395   :  { %v7954_v35 = vadd.f32 %v24494_v46, %v28183_v43  ;;  %v8072_v48 = vmul.f32 %v28207_v37, %v8000_v5  ;;  %v24496_v57 = vadd.f32 %v7827_v10, %v27750_v15  ;;  %v7829_v54 = vpop.f32.mrb[3].mxu0 }
 0x396   :  { %v8073_v32 = vmul.f32 %v28210_v42, %v8001_v22  ;;  %v7955_v29 = vadd.f32 %v24495_v30, %v28183_v43  ;;  %v24497_v20 = vadd.f32 %v7829_v54, %v27752_v21  ;;  %v7780_v7 = vpop.f32.mrb[4].mxu1 }
 0x397   :  { %v7974_v41 = vmul.f32 0.01, %v7954_v35  ;;  %v28243_v8 = vpack.c.bf16 %v8072_v48, %v8062_v38  ;;  %v7964_v36 = vadd.f32 %v24496_v57, %v28187_v51  ;;  %v7952_v19 = vadd.f32 %v28183_v43, %v7780_v7  ;;  %v7782_v52 = vpop.f32.mrb[5].mxu1 }
 0x398   :  { %v28247_v39 = vpack.c.bf16 %v8073_v32, %v8063_v3  ;;  %v7975_v15 = vmul.f32 0.01, %v7955_v29  ;;  %v7965_v53 = vadd.f32 %v24497_v20, %v28187_v51  ;;  %v7953_v13 = vadd.f32 %v28183_v43, %v7782_v52  ;;  %v7784_v27 = vpop.f32.mrb[6].mxu1 }
 0x399   :  { %v7994_v34 = vmax.f32 %v7954_v35, %v7974_v41  ;;  %v7984_v45 = vmul.f32 0.01, %v7964_v36  ;;  %v7972_v21 = vmul.f32 0.01, %v7952_v19  ;;  %v7962_v49 = vadd.f32 %v28187_v51, %v7784_v27  ;;  %v7786_v28 = vpop.f32.mrb[7].mxu1  ;;  %8137 = vrot.lane.b32.xlu1 %v28243_v8, %s26224_s6 }
 0x39a   :  { %v7995_v58 = vmax.f32 %v7955_v29, %v7975_v15  ;;  %v7985_v24 = vmul.f32 0.01, %v7965_v53  ;;  %v7973_v25 = vmul.f32 0.01, %v7953_v13  ;;  %v7963_v16 = vadd.f32 %v28187_v51, %v7786_v28  ;;  %v7909_v61 = vpop.f32.mrb[4].mxu0  ;;  %8139 = vrot.lane.b32.xlu0 %v28247_v39, %s26224_s6 }
 0x39b   :  { %v8066_v59 = vmul.f32 %v28216_v2, %v7994_v34  ;;  %v8004_v23 = vmax.f32 %v7964_v36, %v7984_v45  ;;  %v7992_v4 = vmax.f32 %v7952_v19, %v7972_v21  ;;  %v7982_v50 = vmul.f32 0.01, %v7962_v49  ;;  %v7911_v12 = vpop.f32.mrb[5].mxu0 }
 0x39c   :  { %v8067_v11 = vmul.f32 %v28219_v56, %v7995_v58  ;;  %v8005_v60 = vmax.f32 %v7965_v53, %v7985_v24  ;;  %v7993_v33 = vmax.f32 %v7953_v13, %v7973_v25  ;;  %v7983_v40 = vmul.f32 0.01, %v7963_v16  ;;  %v7913_v5 = vpop.f32.mrb[6].mxu0 }
 0x39d   :  { %v8076_v46 = vmul.f32 %v28216_v2, %v8004_v23  ;;  %v8064_v55 = vmul.f32 %v28222_v14, %v7992_v4  ;;  %v8002_v22 = vmax.f32 %v7962_v49, %v7982_v50  ;;  %v24498_v30 = vadd.f32 %v7909_v61, %v27808_v6  ;;  %v7915_v10 = vpop.f32.mrb[7].mxu0  ;;  %8135 = vrot.lane.b32.xlu1 %v32152_v1, %s26224_s6 }
 0x39e   :  { %v8077_v35 = vmul.f32 %v28219_v56, %v8005_v60  ;;  %v8065_v38 = vmul.f32 %v28225_v63, %v7993_v33  ;;  %v8003_v48 = vmax.f32 %v7963_v16, %v7983_v40  ;;  %v24499_v57 = vadd.f32 %v7911_v12, %v27810_v26  ;;  %v7866_v54 = vpop.f32.mrb[12].mxu1 }
 0x39f   :  { %v28267_v3 = vpack.c.bf16 %v8076_v46, %v8066_v59  ;;  %v8074_v32 = vmul.f32 %v28222_v14, %v8002_v22  ;;  %v7958_v29 = vadd.f32 %v24498_v30, %v28183_v43  ;;  %v24500_v6 = vadd.f32 %v7913_v5, %v27823_v0  ;;  %v7868_v20 = vpop.f32.mrb[13].mxu1 }
 0x3a0   :  { %v28272_v7 = vpack.c.bf16 %v8077_v35, %v8067_v11  ;;  %v8075_v41 = vmul.f32 %v28225_v63, %v8003_v48  ;;  %v7959_v36 = vadd.f32 %v24499_v57, %v28183_v43  ;;  %v24501_v19 = vadd.f32 %v7915_v10, %v27829_v18  ;;  %v7870_v52 = vpop.f32.mrb[14].mxu1 }
 0x3a1   :  { %v28277_v26 = vpack.c.bf16 %v8074_v32, %v8064_v55  ;;  %v7978_v15 = vmul.f32 0.01, %v7958_v29  ;;  %v7968_v53 = vadd.f32 %v24500_v6, %v28187_v51  ;;  %v7956_v13 = vadd.f32 %v28183_v43, %v7866_v54  ;;  %v7872_v27 = vpop.f32.mrb[15].mxu1 }
 0x3a2   :  { %v28281_v34 = vpack.c.bf16 %v8075_v41, %v8065_v38  ;;  %v7979_v0 = vmul.f32 0.01, %v7959_v36  ;;  %v7969_v45 = vadd.f32 %v24501_v19, %v28187_v51  ;;  %v7957_v21 = vadd.f32 %v28183_v43, %v7868_v20 }
 0x3a3   :  { %v7998_v49 = vmax.f32 %v7958_v29, %v7978_v15  ;;  %v7988_v28 = vmul.f32 0.01, %v7968_v53  ;;  %v7976_v58 = vmul.f32 0.01, %v7956_v13  ;;  %v7966_v18 = vadd.f32 %v28187_v51, %v7870_v52  ;;  %8141 = vrot.lane.b32.xlu0 %v28277_v26, %s26224_s6  ;;  %v28426_v29 = vld [vmem:[%s32127_s1 + $0xe0] sm:$0xff]  }
 0x3a4   :  { %v7999_v24 = vmax.f32 %v7959_v36, %v7979_v0  ;;  %v7989_v25 = vmul.f32 0.01, %v7969_v45  ;;  %v7977_v16 = vmul.f32 0.01, %v7957_v21  ;;  %v7967_v61 = vadd.f32 %v28187_v51, %v7872_v27  ;;  %8143 = vrot.lane.b32.xlu1 %v28281_v34, %s26224_s6 }
 0x3a5   :  { %v8008_v59 = vmax.f32 %v7968_v53, %v7988_v28  ;;  %v7996_v23 = vmax.f32 %v7956_v13, %v7976_v58  ;;  %v28294_v43 = vrot.slane %v28196_v44, %v8038_v31  ;;  %v7986_v4 = vmul.f32 0.01, %v7966_v18 }
 0x3a6   :  { %v8009_v50 = vmax.f32 %v7969_v45, %v7989_v25  ;;  %v7997_v12 = vmax.f32 %v7957_v21, %v7977_v16  ;;  %v28299_v11 = vrot.slane %v28196_v44, %v8042_v62  ;;  %v7987_v60 = vmul.f32 0.01, %v7967_v61 }
 0x3a7   :  { %32225 = vst [vmem:[#allocation12_spill] sm:$0xff] %v28294_v43  ;;  %v8070_v51 = vmul.f32 %v28228_v17, %v7998_v49  ;;  %v8080_v33 = vmul.f32 %v28228_v17, %v8008_v59  ;;  %v8006_v40 = vmax.f32 %v7966_v18, %v7986_v4  ;;  %8145 = vrot.lane.b32.xlu0 %v28267_v3, %s26224_s6  ;;  %v32227_v17 = vmov 0  }
 0x3a8   :  { %32226 = vst [vmem:[#allocation13_spill] sm:$0xff] %v28299_v11  ;;  %v8071_v31 = vmul.f32 %v28232_v9, %v7999_v24  ;;  %v8081_v5 = vmul.f32 %v28232_v9, %v8009_v50  ;;  %v8007_v46 = vmax.f32 %v7967_v61, %v7987_v60  ;;  %8147 = vrot.lane.b32.xlu1 %v28272_v7, %s26224_s6 }
 0x3a9   :  { %v28309_v47 = vpack.c.bf16 %v8080_v33, %v8070_v51  ;;  %v8068_v44 = vmul.f32 %v28294_v43, %v7996_v23  ;;  %v8078_v62 = vmul.f32 %v28294_v43, %v8006_v40  ;;  %v8069_v22 = vmul.f32 %v28299_v11, %v7997_v12  ;;  %v26145_v40 = vld [vmem:[%s32127_s1 + $0xd8] sm:$0xff]  }
 0x3aa   :  { %v28313_v55 = vpack.c.bf16 %v8081_v5, %v8071_v31  ;;  %v8079_v30 = vmul.f32 %v28299_v11, %v8007_v46 }
 0x3ab   :  { %v28317_v10 = vpack.c.bf16 %v8078_v62, %v8068_v44 }
 0x3ac   :  { %v28319_v35 = vpack.c.bf16 %v8079_v30, %v8069_v22 }
 0x3ad   :  { %8149 = vrot.lane.b32.xlu0 %v28317_v10, %s26224_s6 }
 0x3ae   :  { %8151 = vrot.lane.b32.xlu1 %v28319_v35, %s26224_s6 }
 0x3b1   :  { %8153 = vrot.lane.b32.xlu0 %v28309_v47, %s26224_s6 }
 0x3b2   :  { %8155 = vrot.lane.b32.xlu1 %v28313_v55, %s26224_s6 }
 0x3b5   :  { %8402 = vrot.lane.b32.xlu0 %v28243_v8, %s26227_s15 }
 0x3b6   :  { %8404 = vrot.lane.b32.xlu1 %v28247_v39, %s26227_s15 }
 0x3b9   :  { %8400 = vrot.lane.b32.xlu0 %v32152_v1, %s26227_s15 }
 0x3ba   :  { %8406 = vrot.lane.b32.xlu1 %v28277_v26, %s26227_s15 }
 0x3bd   :  { %8408 = vrot.lane.b32.xlu0 %v28281_v34, %s26227_s15 }
 0x3be   :  { %8410 = vrot.lane.b32.xlu1 %v28267_v3, %s26227_s15 }
 0x3c1   :  { %8412 = vrot.lane.b32.xlu0 %v28272_v7, %s26227_s15 }
 0x3c2   :  { %8414 = vrot.lane.b32.xlu1 %v28317_v10, %s26227_s15 }
 0x3c5   :  { %8416 = vrot.lane.b32.xlu0 %v28319_v35, %s26227_s15 }
 0x3c6   :  { %8418 = vrot.lane.b32.xlu1 %v28309_v47, %s26227_s15 }
 0x3c9   :  { %8420 = vrot.lane.b32.xlu0 %v28313_v55, %s26227_s15 }
 0x3ca   :  { %8670 = vrot.lane.b32.xlu1 %v28243_v8, %s26230_s18 }
 0x3cd   :  { %8672 = vrot.lane.b32.xlu0 %v28247_v39, %s26230_s18 }
 0x3ce   :  { %8668 = vrot.lane.b32.xlu1 %v32152_v1, %s26230_s18 }
 0x3d1   :  { %8674 = vrot.lane.b32.xlu0 %v28277_v26, %s26230_s18 }
 0x3d2   :  { %8676 = vrot.lane.b32.xlu1 %v28281_v34, %s26230_s18 }
 0x3d5   :  { %8678 = vrot.lane.b32.xlu0 %v28267_v3, %s26230_s18 }
 0x3d6   :  { %8680 = vrot.lane.b32.xlu1 %v28272_v7, %s26230_s18 }
 0x3d9   :  { %8682 = vrot.lane.b32.xlu0 %v28317_v10, %s26230_s18 }
 0x3da   :  { %8684 = vrot.lane.b32.xlu1 %v28319_v35, %s26230_s18 }
 0x3dd   :  { %8686 = vrot.lane.b32.xlu0 %v28309_v47, %s26230_s18 }
 0x3de   :  { %8688 = vrot.lane.b32.xlu1 %v28313_v55, %s26230_s18 }
 0x3e1   :  { %8958 = vrot.lane.b32.xlu0 %v28243_v8, %s26232_s29 }
 0x3e2   :  { %8960 = vrot.lane.b32.xlu1 %v28247_v39, %s26232_s29 }
 0x3e5   :  { %8956 = vrot.lane.b32.xlu0 %v32152_v1, %s26232_s29 }
 0x3e6   :  { %8962 = vrot.lane.b32.xlu1 %v28277_v26, %s26232_s29 }
 0x3e9   :  { %8964 = vrot.lane.b32.xlu0 %v28281_v34, %s26232_s29 }
 0x3ea   :  { %8966 = vrot.lane.b32.xlu1 %v28267_v3, %s26232_s29 }
 0x3ed   :  { %8968 = vrot.lane.b32.xlu0 %v28272_v7, %s26232_s29 }
 0x3ee   :  { %8970 = vrot.lane.b32.xlu1 %v28317_v10, %s26232_s29 }
 0x3f1   :  { %8972 = vrot.lane.b32.xlu0 %v28319_v35, %s26232_s29 }
 0x3f2   :  { %8974 = vrot.lane.b32.xlu1 %v28309_v47, %s26232_s29 }
 0x3f5   :  { %8976 = vrot.lane.b32.xlu0 %v28313_v55, %s26232_s29 }
 0x3f6   :  { %9246 = vrot.lane.b32.xlu1 %v28243_v8, %s26223_s19 }
 0x3f9   :  { %9248 = vrot.lane.b32.xlu0 %v28247_v39, %s26223_s19 }
 0x3fa   :  { %9244 = vrot.lane.b32.xlu1 %v32152_v1, %s26223_s19 }
 0x3fd   :  { %9250 = vrot.lane.b32.xlu0 %v28277_v26, %s26223_s19 }
 0x3fe   :  { %9252 = vrot.lane.b32.xlu1 %v28281_v34, %s26223_s19 }
 0x401   :  { %9254 = vrot.lane.b32.xlu0 %v28267_v3, %s26223_s19 }
 0x402   :  { %9256 = vrot.lane.b32.xlu1 %v28272_v7, %s26223_s19 }
 0x405   :  { %9258 = vrot.lane.b32.xlu0 %v28317_v10, %s26223_s19 }
 0x406   :  { %9260 = vrot.lane.b32.xlu1 %v28319_v35, %s26223_s19 }
 0x409   :  { %9262 = vrot.lane.b32.xlu0 %v28309_v47, %s26223_s19 }
 0x40a   :  { %9264 = vrot.lane.b32.xlu1 %v28313_v55, %s26223_s19 }
 0x40b   :  { %v8138_v38 = vpop.permute.xlu1 %8137 }
 0x40c   :  { %v8140_v48 = vpop.permute.xlu0 %8139 }
 0x40d   :  { %9534 = vrot.lane.b32.xlu0 %v28243_v8, %s26225_s9  ;;  %v8158_v57 = vsel %vm133_vm2, %v8138_v38, %v8140_v48 }
 0x40e   :  { %9536 = vrot.lane.b32.xlu1 %v28247_v39, %s26225_s9  ;;  %8180 = vmatprep.subr.bf16.mxu1 %v8158_v57 }
 0x40f   :  { %v8136_v54 = vpop.permute.xlu1 %8135 }
 0x410   :  { %v8157_v32 = vsel %vm133_vm2, %v8136_v54, %v8138_v38 }
 0x411   :  { %9532 = vrot.lane.b32.xlu0 %v32152_v1, %s26225_s9  ;;  %8181 = vmatpush1.bf16.msra.mxu1 %v8157_v32 }
 0x412   :  { %9538 = vrot.lane.b32.xlu1 %v28277_v26, %s26225_s9 }
 0x414   :  { %24059 = vmatmul.mubr.msk.bf16.vlgmr.msra.gmra.mrb[20].mxu1 %vm154_vm1, %v28426_v29 }
 0x415   :  { %9540 = vrot.lane.b32.xlu0 %v28281_v34, %s26225_s9  ;;  %v8142_v6 = vpop.permute.xlu0 %8141  ;;  %8255 = vmatprep.mubr.bf16.mxu1 %v32152_v1 }
 0x416   :  { %9542 = vrot.lane.b32.xlu1 %v28267_v3, %s26225_s9  ;;  %v8144_v20 = vpop.permute.xlu1 %8143  ;;  %v8159_v36 = vsel %vm133_vm2, %v8140_v48, %v8142_v6 }
 0x417   :  { %v8160_v41 = vsel %vm133_vm2, %v8142_v6, %v8144_v20 }
 0x418   :  { %8223 = vmatprep.subr.bf16.mxu1 %v8160_v41 }
 0x419   :  { %9544 = vrot.lane.b32.xlu0 %v28272_v7, %s26225_s9  ;;  %8224 = vmatpush1.bf16.msra.mxu1 %v8159_v36  ;;  %v8146_v19 = vpop.permute.xlu0 %8145 }
 0x41a   :  { %9546 = vrot.lane.b32.xlu1 %v28317_v10, %s26225_s9  ;;  %v8148_v52 = vpop.permute.xlu1 %8147  ;;  %v8161_v53 = vsel %vm133_vm2, %v8144_v20, %v8146_v19 }
 0x41b   :  { %v8162_v15 = vsel %vm133_vm2, %v8146_v19, %v8148_v52 }
 0x41c   :  { %24060 = vmatmul.mubr.msk.bf16.vlgmr.msra.gmra.mrb[24].mxu1 %vm154_vm1, %v28426_v29  ;;  %8266 = vmatprep.subr.bf16.mxu1 %v8162_v15 }
 0x41d   :  { %9548 = vrot.lane.b32.xlu0 %v28319_v35, %s26225_s9  ;;  %8267 = vmatpush1.bf16.msra.mxu1 %v8161_v53 }
 0x41e   :  { %9550 = vrot.lane.b32.xlu1 %v28309_v47, %s26225_s9  ;;  %8298 = vmatprep.mubr.bf16.mxu1 %v32152_v1 }
 0x41f   :  { %v8150_v13 = vpop.permute.xlu0 %8149 }
 0x420   :  { %v8152_v27 = vpop.permute.xlu1 %8151  ;;  %v8163_v49 = vsel %vm133_vm2, %v8148_v52, %v8150_v13 }
 0x421   :  { %9552 = vrot.lane.b32.xlu0 %v28313_v55, %s26225_s9  ;;  %v8164_v0 = vsel %vm133_vm2, %v8150_v13, %v8152_v27 }
 0x422   :  { %9822 = vrot.lane.b32.xlu1 %v28243_v8, %s26226_s14  ;;  %8309 = vmatprep.subr.bf16.mxu1 %v8164_v0 }
 0x423   :  { %v8154_v45 = vpop.permute.xlu0 %8153 }
 0x424   :  { %v8156_v21 = vpop.permute.xlu1 %8155  ;;  %24061 = vmatmul.mubr.msk.bf16.vlgmr.msra.gmra.mrb[28].mxu1 %vm154_vm1, %v28426_v29  ;;  %v8165_v16 = vsel %vm133_vm2, %v8152_v27, %v8154_v45 }
 0x425   :  { %9824 = vrot.lane.b32.xlu0 %v28247_v39, %s26226_s14  ;;  %8310 = vmatpush1.bf16.msra.mxu1 %v8163_v49  ;;  %v8166_v28 = vsel %vm133_vm2, %v8154_v45, %v8156_v21 }
 0x426   :  { %9820 = vrot.lane.b32.xlu1 %v32152_v1, %s26226_s14  ;;  %8352 = vmatprep.subr.bf16.mxu1 %v8166_v28 }
 0x427   :  { %v8403_v58 = vpop.permute.xlu0 %8402  ;;  %8341 = vmatprep.mubr.bf16.mxu1 %v32152_v1 }
 0x428   :  { %v8405_v18 = vpop.permute.xlu1 %8404 }
 0x429   :  { %9826 = vrot.lane.b32.xlu0 %v28277_v26, %s26226_s14  ;;  %v8423_v61 = vsel %vm400_vm5, %v8403_v58, %v8405_v18 }
 0x42a   :  { %9828 = vrot.lane.b32.xlu1 %v28281_v34, %s26226_s14 }
 0x42b   :  { %v8401_v24 = vpop.permute.xlu0 %8400 }
 0x42c   :  { %v8407_v25 = vpop.permute.xlu1 %8406  ;;  %24062 = vmatmul.mubr.msk.bf16.vlgmr.msra.gmra.mrb[32].mxu1 %vm154_vm1, %v28426_v29  ;;  %v8422_v50 = vsel %vm400_vm5, %v8401_v24, %v8403_v58  ;;  %v26146_v24 = vld [vmem:[%s32127_s1 + $0xe8] sm:$0xff]  }
 0x42d   :  { %9830 = vrot.lane.b32.xlu0 %v28267_v3, %s26226_s14  ;;  %8353 = vmatpush1.bf16.msra.mxu1 %v8165_v16  ;;  %v8424_v46 = vsel %vm400_vm5, %v8405_v18, %v8407_v25 }
 0x42e   :  { %9832 = vrot.lane.b32.xlu1 %v28272_v7, %s26226_s14  ;;  %8445 = vmatprep.subr.bf16.mxu1 %v8423_v61 }
 0x42f   :  { %v8409_v59 = vpop.permute.xlu0 %8408  ;;  %8384 = vmatprep.mubr.bf16.mxu1 %v32152_v1 }
 0x430   :  { %v8411_v23 = vpop.permute.xlu1 %8410  ;;  %v8425_v60 = vsel %vm400_vm5, %v8407_v25, %v8409_v59 }
 0x431   :  { %9834 = vrot.lane.b32.xlu0 %v28317_v10, %s26226_s14  ;;  %v8426_v48 = vsel %vm400_vm5, %v8409_v59, %v8411_v23 }
 0x432   :  { %9836 = vrot.lane.b32.xlu1 %v28319_v35, %s26226_s14 }
 0x433   :  { %v8413_v4 = vpop.permute.xlu0 %8412 }
 0x434   :  { %v8415_v12 = vpop.permute.xlu1 %8414  ;;  %24063 = vmatmul.mubr.msk.bf16.vlgmr.msra.gmra.mrb[36].mxu1 %vm154_vm1, %v28426_v29  ;;  %v8427_v44 = vsel %vm400_vm5, %v8411_v23, %v8413_v4 }
 0x435   :  { %9838 = vrot.lane.b32.xlu0 %v28309_v47, %s26226_s14  ;;  %8446 = vmatpush1.bf16.msra.mxu1 %v8422_v50  ;;  %v8428_v20 = vsel %vm400_vm5, %v8413_v4, %v8415_v12 }
 0x436   :  { %9840 = vrot.lane.b32.xlu1 %v28313_v55, %s26226_s14  ;;  %8488 = vmatprep.subr.bf16.mxu1 %v8425_v60 }
 0x437   :  { %v8417_v51 = vpop.permute.xlu0 %8416  ;;  %8477 = vmatprep.mubr.bf16.mxu1 %v32152_v1 }
 0x438   :  { %v8419_v33 = vpop.permute.xlu1 %8418  ;;  %v8429_v57 = vsel %vm400_vm5, %v8415_v12, %v8417_v51 }
 0x439   :  { %10110 = vrot.lane.b32.xlu0 %v28243_v8, %s26228_s16  ;;  %v8430_v53 = vsel %vm400_vm5, %v8417_v51, %v8419_v33 }
 0x43a   :  { %10112 = vrot.lane.b32.xlu1 %v28247_v39, %s26228_s16 }
 0x43b   :  { %v8421_v31 = vpop.permute.xlu0 %8420 }
 0x43c   :  { %v8671_v5 = vpop.permute.xlu1 %8670  ;;  %24065 = vmatmul.mubr.msk.bf16.vlgmr.msra.gmra.mrb[20].mxu1 %vm154_vm1, %v26145_v40  ;;  %v8431_v41 = vsel %vm400_vm5, %v8419_v33, %v8421_v31 }
 0x43d   :  { %10108 = vrot.lane.b32.xlu0 %v32152_v1, %s26228_s16  ;;  %8489 = vmatpush1.bf16.msra.mxu1 %v8424_v46 }
 0x43e   :  { %10114 = vrot.lane.b32.xlu1 %v28277_v26, %s26228_s16  ;;  %8531 = vmatprep.subr.bf16.mxu1 %v8427_v44 }
 0x43f   :  { %v28508_v62 = vpop.permute.xlu0 %8672  ;;  %8520 = vmatprep.mubr.bf16.mxu1 %v32152_v1 }
 0x440   :  { %v8669_v22 = vpop.permute.xlu1 %8668  ;;  %v8691_v13 = vsel %vm669_vm8, %v8671_v5, %v28508_v62 }
 0x441   :  { %10116 = vrot.lane.b32.xlu0 %v28281_v34, %s26228_s16  ;;  %v8690_v21 = vsel %vm669_vm8, %v8669_v22, %v8671_v5 }
 0x442   :  { %10118 = vrot.lane.b32.xlu1 %v28267_v3, %s26228_s16 }
 0x443   :  { %v8675_v30 = vpop.permute.xlu0 %8674 }
 0x444   :  { %v28515_v38 = vpop.permute.xlu1 %8676  ;;  %24066 = vmatmul.mubr.msk.bf16.vlgmr.msra.gmra.mrb[24].mxu1 %vm154_vm1, %v26145_v40  ;;  %v8692_v61 = vsel %vm669_vm8, %v28508_v62, %v8675_v30 }
 0x445   :  { %10120 = vrot.lane.b32.xlu0 %v28272_v7, %s26228_s16  ;;  %8532 = vmatpush1.bf16.msra.mxu1 %v8426_v48  ;;  %v8693_v28 = vsel %vm669_vm8, %v8675_v30, %v28515_v38 }
 0x446   :  { %10122 = vrot.lane.b32.xlu1 %v28317_v10, %s26228_s16  ;;  %8574 = vmatprep.subr.bf16.mxu1 %v8429_v57 }
 0x447   :  { %v28524_v54 = vpop.permute.xlu0 %8678  ;;  %8563 = vmatprep.mubr.bf16.mxu1 %v32152_v1 }
 0x448   :  { %v28527_v32 = vpop.permute.xlu1 %8680  ;;  %v8694_v60 = vsel %vm669_vm8, %v28515_v38, %v28524_v54 }
 0x449   :  { %10124 = vrot.lane.b32.xlu0 %v28319_v35, %s26228_s16  ;;  %v8695_v59 = vsel %vm669_vm8, %v28524_v54, %v28527_v32 }
 0x44a   :  { %10126 = vrot.lane.b32.xlu1 %v28309_v47, %s26228_s16 }
 0x44b   :  { %v28533_v29 = vpop.permute.xlu0 %8682 }
 0x44c   :  { %v28535_v6 = vpop.permute.xlu1 %8684  ;;  %24067 = vmatmul.mubr.msk.bf16.vlgmr.msra.gmra.mrb[28].mxu1 %vm154_vm1, %v26145_v40  ;;  %v8696_v46 = vsel %vm669_vm8, %v28527_v32, %v28533_v29 }
 0x44d   :  { %10128 = vrot.lane.b32.xlu0 %v28313_v55, %s26228_s16  ;;  %8575 = vmatpush1.bf16.msra.mxu1 %v8428_v20  ;;  %v8697_v51 = vsel %vm669_vm8, %v28533_v29, %v28535_v6 }
 0x44e   :  { %10398 = vrot.lane.b32.xlu1 %v28243_v8, %s26229_s17  ;;  %8617 = vmatprep.subr.bf16.mxu1 %v8431_v41 }
 0x44f   :  { %v28544_v36 = vpop.permute.xlu0 %8686  ;;  %8606 = vmatprep.mubr.bf16.mxu1 %v32152_v1 }
 0x450   :  { %v28547_v19 = vpop.permute.xlu1 %8688  ;;  %v8698_v48 = vsel %vm669_vm8, %v28535_v6, %v28544_v36 }
 0x451   :  { %10400 = vrot.lane.b32.xlu0 %v28247_v39, %s26229_s17  ;;  %v8699_v44 = vsel %vm669_vm8, %v28544_v36, %v28547_v19 }
 0x452   :  { %10396 = vrot.lane.b32.xlu1 %v32152_v1, %s26229_s17 }
 0x453   :  { %v28553_v52 = vpop.permute.xlu0 %8958 }
 0x454   :  { %v28555_v15 = vpop.permute.xlu1 %8960  ;;  %24068 = vmatmul.mubr.msk.bf16.vlgmr.msra.gmra.mrb[32].mxu1 %vm154_vm1, %v26145_v40 }
 0x455   :  { %10402 = vrot.lane.b32.xlu0 %v28277_v26, %s26229_s17  ;;  %8618 = vmatpush1.bf16.msra.mxu1 %v8430_v53  ;;  %v8979_v57 = vsel %vm958_vm10, %v28553_v52, %v28555_v15 }
 0x456   :  { %10404 = vrot.lane.b32.xlu1 %v28281_v34, %s26229_s17  ;;  %8713 = vmatprep.subr.bf16.mxu1 %v8691_v13 }
 0x457   :  { %v28565_v27 = vpop.permute.xlu0 %8956  ;;  %8649 = vmatprep.mubr.bf16.mxu1 %v32152_v1 }
 0x458   :  { %v28568_v0 = vpop.permute.xlu1 %8962  ;;  %v8978_v6 = vsel %vm958_vm10, %v28565_v27, %v28553_v52  ;;  %v26147_v52 = vld [vmem:[%s32127_s1 + $0xf0] sm:$0xff]  }
 0x459   :  { %10406 = vrot.lane.b32.xlu0 %v28267_v3, %s26229_s17  ;;  %v8980_v27 = vsel %vm958_vm10, %v28555_v15, %v28568_v0 }
 0x45a   :  { %10408 = vrot.lane.b32.xlu1 %v28272_v7, %s26229_s17 }
 0x45b   :  { %v28574_v45 = vpop.permute.xlu0 %8964 }
 0x45c   :  { %v28577_v49 = vpop.permute.xlu1 %8966  ;;  %24069 = vmatmul.mubr.msk.bf16.vlgmr.msra.gmra.mrb[36].mxu1 %vm154_vm1, %v26145_v40  ;;  %v8981_v41 = vsel %vm958_vm10, %v28568_v0, %v28574_v45 }
 0x45d   :  { %10410 = vrot.lane.b32.xlu0 %v28317_v10, %s26229_s17  ;;  %8714 = vmatpush1.bf16.msra.mxu1 %v8690_v21 }
 0x45e   :  { %10412 = vrot.lane.b32.xlu1 %v28319_v35, %s26229_s17  ;;  %8756 = vmatprep.subr.bf16.mxu1 %v8693_v28 }
 0x45f   :  { %v28586_v58 = vpop.permute.xlu0 %8968  ;;  %8745 = vmatprep.mubr.bf16.mxu1 %v32152_v1 }
 0x460   :  { %v28589_v18 = vpop.permute.xlu1 %8970  ;;  %v8983_v21 = vsel %vm958_vm10, %v28577_v49, %v28586_v58 }
 0x461   :  { %10414 = vrot.lane.b32.xlu0 %v28309_v47, %s26229_s17 }
 0x462   :  { %10416 = vrot.lane.b32.xlu1 %v28313_v55, %s26229_s17 }
 0x463   :  { %v28598_v25 = vpop.permute.xlu0 %8972 }
 0x464   :  { %v28600_v16 = vpop.permute.xlu1 %8974  ;;  %24073 = vmatmul.mubr.msk.bf16.vlgmr.msra.gmra.mrb[20].mxu1 %vm154_vm1, %v26146_v24 }
 0x465   :  { %10686 = vrot.lane.b32.xlu0 %v28243_v8, %s26231_s26  ;;  %8757 = vmatpush1.bf16.msra.mxu1 %v8692_v61  ;;  %v8982_v61 = vsel %vm958_vm10, %v28574_v45, %v28577_v49 }
 0x466   :  { %10688 = vrot.lane.b32.xlu1 %v28247_v39, %s26231_s26  ;;  %8799 = vmatprep.subr.bf16.mxu1 %v8695_v59  ;;  %v8985_v59 = vsel %vm958_vm10, %v28589_v18, %v28598_v25 }
 0x467   :  { %v28612_v23 = vpop.permute.xlu0 %8976  ;;  %8788 = vmatprep.mubr.bf16.mxu1 %v32152_v1 }
 0x468   :  { %v28615_v4 = vpop.permute.xlu1 %9246 }
 0x469   :  { %10684 = vrot.lane.b32.xlu0 %v32152_v1, %s26231_s26 }
 0x46a   :  { %10690 = vrot.lane.b32.xlu1 %v28277_v26, %s26231_s26 }
 0x46b   :  { %v28621_v50 = vpop.permute.xlu0 %9248 }
 0x46c   :  { %v28623_v12 = vpop.permute.xlu1 %9244  ;;  %24074 = vmatmul.mubr.msk.bf16.vlgmr.msra.gmra.mrb[24].mxu1 %vm154_vm1, %v26146_v24 }
 0x46d   :  { %10692 = vrot.lane.b32.xlu0 %v28281_v34, %s26231_s26  ;;  %8800 = vmatpush1.bf16.msra.mxu1 %v8694_v60 }
 0x46e   :  { %10694 = vrot.lane.b32.xlu1 %v28267_v3, %s26231_s26  ;;  %8842 = vmatprep.subr.bf16.mxu1 %v8697_v51 }
 0x46f   :  { %v28636_v33 = vpop.permute.xlu0 %9250  ;;  %8831 = vmatprep.mubr.bf16.mxu1 %v32152_v1 }
 0x470   :  { %v28639_v40 = vpop.permute.xlu1 %9252 }
 0x471   :  { %10696 = vrot.lane.b32.xlu0 %v28272_v7, %s26231_s26 }
 0x472   :  { %10698 = vrot.lane.b32.xlu1 %v28317_v10, %s26231_s26 }
 0x473   :  { %v28645_v31 = vpop.permute.xlu0 %9254 }
 0x474   :  { %v28647_v5 = vpop.permute.xlu1 %9256  ;;  %24075 = vmatmul.mubr.msk.bf16.vlgmr.msra.gmra.mrb[28].mxu1 %vm154_vm1, %v26146_v24 }
 0x475   :  { %10700 = vrot.lane.b32.xlu0 %v28319_v35, %s26231_s26  ;;  %8843 = vmatpush1.bf16.msra.mxu1 %v8696_v46  ;;  %v8984_v46 = vsel %vm958_vm10, %v28586_v58, %v28589_v18 }
 0x476   :  { %10702 = vrot.lane.b32.xlu1 %v28309_v47, %s26231_s26  ;;  %8885 = vmatprep.subr.bf16.mxu1 %v8699_v44  ;;  %v8987_v44 = vsel %vm958_vm10, %v28600_v16, %v28612_v23  ;;  %v8986_v23 = vsel %vm958_vm10, %v28598_v25, %v28600_v16  ;;  %v9266_v16 = vsel %vm1247_vm0, %v28623_v12, %v28615_v4  ;;  %v26148_v12 = vld [vmem:[%s32127_s1 + $0xf8] sm:$0xff]  }
 0x477   :  { %v28660_v62 = vpop.permute.xlu0 %9258  ;;  %8874 = vmatprep.mubr.bf16.mxu1 %v32152_v1 }
 0x478   :  { %v28663_v22 = vpop.permute.xlu1 %9260 }
 0x479   :  { %10704 = vrot.lane.b32.xlu0 %v28313_v55, %s26231_s26 }
 0x47a   :  { %10974 = vrot.lane.b32.xlu1 %v28243_v8, %s26233_s30 }
 0x47b   :  { %v28669_v30 = vpop.permute.xlu0 %9262 }
 0x47c   :  { %v28671_v38 = vpop.permute.xlu1 %9264  ;;  %24076 = vmatmul.mubr.msk.bf16.vlgmr.msra.gmra.mrb[32].mxu1 %vm154_vm1, %v26146_v24 }
 0x47d   :  { %10976 = vrot.lane.b32.xlu0 %v28247_v39, %s26233_s30  ;;  %8886 = vmatpush1.bf16.msra.mxu1 %v8698_v48 }
 0x47e   :  { %10972 = vrot.lane.b32.xlu1 %v32152_v1, %s26233_s30  ;;  %9001 = vmatprep.subr.bf16.mxu1 %v8979_v57 }
 0x47f   :  { %v28684_v54 = vpop.permute.xlu0 %9534  ;;  %8917 = vmatprep.mubr.bf16.mxu1 %v32152_v1 }
 0x480   :  { %v28687_v32 = vpop.permute.xlu1 %9536 }
 0x481   :  { %10978 = vrot.lane.b32.xlu0 %v28277_v26, %s26233_s30 }
 0x482   :  { %10980 = vrot.lane.b32.xlu1 %v28281_v34, %s26233_s30 }
 0x483   :  { %v28693_v29 = vpop.permute.xlu0 %9532 }
 0x484   :  { %v28698_v20 = vpop.permute.xlu1 %9538  ;;  %24077 = vmatmul.mubr.msk.bf16.vlgmr.msra.gmra.mrb[36].mxu1 %vm154_vm1, %v26146_v24 }
 0x485   :  { %10982 = vrot.lane.b32.xlu0 %v28267_v3, %s26233_s30  ;;  %9002 = vmatpush1.bf16.msra.mxu1 %v8978_v6  ;;  %v9267_v6 = vsel %vm1247_vm0, %v28615_v4, %v28621_v50 }
 0x486   :  { %10984 = vrot.lane.b32.xlu1 %v28272_v7, %s26233_s30  ;;  %9044 = vmatprep.subr.bf16.mxu1 %v8981_v41 }
 0x487   :  { %v28708_v36 = vpop.permute.xlu0 %9540  ;;  %9033 = vmatprep.mubr.bf16.mxu1 %v32152_v1 }
 0x488   :  { %v28711_v19 = vpop.permute.xlu1 %9542 }
 0x489   :  { %10986 = vrot.lane.b32.xlu0 %v28317_v10, %s26233_s30 }
 0x48a   :  { %10988 = vrot.lane.b32.xlu1 %v28319_v35, %s26233_s30 }
 0x48b   :  { %v28720_v53 = vpop.permute.xlu0 %9544 }
 0x48c   :  { %v28722_v13 = vpop.permute.xlu1 %9546  ;;  %24081 = vmatmul.mubr.msk.bf16.vlgmr.msra.gmra.mrb[20].mxu1 %vm154_vm1, %v26147_v52  ;;  %v9559_v2 = vsel %vm32194_vm3, %v28711_v19, %v28720_v53 }
 0x48d   :  { %10990 = vrot.lane.b32.xlu0 %v28309_v47, %s26233_s30  ;;  %9045 = vmatpush1.bf16.msra.mxu1 %v8980_v27 }
 0x48e   :  { %10992 = vrot.lane.b32.xlu1 %v28313_v55, %s26233_s30  ;;  %9087 = vmatprep.subr.bf16.mxu1 %v8983_v21 }
 0x48f   :  { %v28735_v28 = vpop.permute.xlu0 %9548  ;;  %9076 = vmatprep.mubr.bf16.mxu1 %v32152_v1 }
 0x490   :  { %v28738_v24 = vpop.permute.xlu1 %9550 }
 0x491   :  { %11262 = vrot.lane.b32.xlu0 %v28243_v8, %s26234_s11 }
 0x492   :  { %11264 = vrot.lane.b32.xlu1 %v28247_v39, %s26234_s11 }
 0x493   :  { %v28744_v15 = vpop.permute.xlu0 %9552 }
 0x494   :  { %v28746_v0 = vpop.permute.xlu1 %9822  ;;  %24082 = vmatmul.mubr.msk.bf16.vlgmr.msra.gmra.mrb[24].mxu1 %vm154_vm1, %v26147_v52 }
 0x495   :  { %11260 = vrot.lane.b32.xlu0 %v32152_v1, %s26234_s11  ;;  %9088 = vmatpush1.bf16.msra.mxu1 %v8982_v61  ;;  %v9269_v61 = vsel %vm1247_vm0, %v28636_v33, %v28639_v40 }
 0x496   :  { %11266 = vrot.lane.b32.xlu1 %v28277_v26, %s26234_s11  ;;  %9130 = vmatprep.subr.bf16.mxu1 %v8985_v59 }
 0x497   :  { %v28759_v60 = vpop.permute.xlu0 %9824  ;;  %9119 = vmatprep.mubr.bf16.mxu1 %v32152_v1 }
 0x498   :  { %v28762_v51 = vpop.permute.xlu1 %9820 }
 0x499   :  { %11268 = vrot.lane.b32.xlu0 %v28281_v34, %s26234_s11 }
 0x49a   :  { %11270 = vrot.lane.b32.xlu1 %v28267_v3, %s26234_s11 }
 0x49b   :  { %v28768_v45 = vpop.permute.xlu0 %9826 }
 0x49c   :  { %v28770_v49 = vpop.permute.xlu1 %9828  ;;  %24083 = vmatmul.mubr.msk.bf16.vlgmr.msra.gmra.mrb[28].mxu1 %vm154_vm1, %v26147_v52 }
 0x49d   :  { %11272 = vrot.lane.b32.xlu0 %v28272_v7, %s26234_s11  ;;  %9131 = vmatpush1.bf16.msra.mxu1 %v8984_v46 }
 0x49e   :  { %11274 = vrot.lane.b32.xlu1 %v28317_v10, %s26234_s11  ;;  %9173 = vmatprep.subr.bf16.mxu1 %v8987_v44  ;;  %v9268_v44 = vsel %vm1247_vm0, %v28621_v50, %v28636_v33 }
 0x49f   :  { %v28783_v48 = vpop.permute.xlu0 %9830  ;;  %9162 = vmatprep.mubr.bf16.mxu1 %v32152_v1 }
 0x4a0   :  { %v28786_v57 = vpop.permute.xlu1 %9832 }
 0x4a1   :  { %11276 = vrot.lane.b32.xlu0 %v28319_v35, %s26234_s11 }
 0x4a2   :  { %11278 = vrot.lane.b32.xlu1 %v28309_v47, %s26234_s11 }
 0x4a3   :  { %v28792_v58 = vpop.permute.xlu0 %9834 }
 0x4a4   :  { %v28794_v18 = vpop.permute.xlu1 %9836  ;;  %24084 = vmatmul.mubr.msk.bf16.vlgmr.msra.gmra.mrb[32].mxu1 %vm154_vm1, %v26147_v52 }
 0x4a5   :  { %11280 = vrot.lane.b32.xlu0 %v28313_v55, %s26234_s11  ;;  %9174 = vmatpush1.bf16.msra.mxu1 %v8986_v23  ;;  %v9271_v23 = vsel %vm1247_vm0, %v28645_v31, %v28647_v5 }
 0x4a6   :  { %11550 = vrot.lane.b32.xlu1 %v28243_v8, %s26235_s22  ;;  %9289 = vmatprep.subr.bf16.mxu1 %v9267_v6 }
 0x4a7   :  { %v28807_v41 = vpop.permute.xlu0 %9838  ;;  %9205 = vmatprep.mubr.bf16.mxu1 %v32152_v1 }
 0x4a8   :  { %v28810_v27 = vpop.permute.xlu1 %9840 }
 0x4a9   :  { %11552 = vrot.lane.b32.xlu0 %v28247_v39, %s26235_s22 }
 0x4aa   :  { %11548 = vrot.lane.b32.xlu1 %v32152_v1, %s26235_s22 }
 0x4ab   :  { %v28816_v25 = vpop.permute.xlu0 %10110 }
 0x4ac   :  { %v28821_v21 = vpop.permute.xlu1 %10112  ;;  %24085 = vmatmul.mubr.msk.bf16.vlgmr.msra.gmra.mrb[36].mxu1 %vm154_vm1, %v26147_v52 }
 0x4ad   :  { %11554 = vrot.lane.b32.xlu0 %v28277_v26, %s26235_s22  ;;  %9290 = vmatpush1.bf16.msra.mxu1 %v9266_v16 }
 0x4ae   :  { %11556 = vrot.lane.b32.xlu1 %v28281_v34, %s26235_s22  ;;  %9332 = vmatprep.subr.bf16.mxu1 %v9269_v61  ;;  %v9270_v61 = vsel %vm1247_vm0, %v28639_v40, %v28645_v31 }
 0x4af   :  { %v28831_v59 = vpop.permute.xlu0 %10108  ;;  %9321 = vmatprep.mubr.bf16.mxu1 %v32152_v1 }
 0x4b0   :  { %v28834_v4 = vpop.permute.xlu1 %10114 }
 0x4b1   :  { %11558 = vrot.lane.b32.xlu0 %v28267_v3, %s26235_s22 }
 0x4b2   :  { %11560 = vrot.lane.b32.xlu1 %v28272_v7, %s26235_s22 }
 0x4b3   :  { %v28843_v52 = vpop.permute.xlu0 %10116 }
 0x4b4   :  { %v28845_v46 = vpop.permute.xlu1 %10118  ;;  %24089 = vmatmul.mubr.msk.bf16.vlgmr.msra.gmra.mrb[20].mxu1 %vm154_vm1, %v26148_v12 }
 0x4b5   :  { %11562 = vrot.lane.b32.xlu0 %v28317_v10, %s26235_s22  ;;  %9333 = vmatpush1.bf16.msra.mxu1 %v9268_v44  ;;  %v9273_v44 = vsel %vm1247_vm0, %v28660_v62, %v28663_v22 }
 0x4b6   :  { %11564 = vrot.lane.b32.xlu1 %v28319_v35, %s26235_s22  ;;  %9375 = vmatprep.subr.bf16.mxu1 %v9271_v23 }
 0x4b7   :  { %v28858_v6 = vpop.permute.xlu0 %10120  ;;  %9364 = vmatprep.mubr.bf16.mxu1 %v32152_v1 }
 0x4b8   :  { %v28861_v16 = vpop.permute.xlu1 %10122 }
 0x4b9   :  { %11566 = vrot.lane.b32.xlu0 %v28309_v47, %s26235_s22 }
 0x4ba   :  { %11568 = vrot.lane.b32.xlu1 %v28313_v55, %s26235_s22 }
 0x4bb   :  { %v28867_v50 = vpop.permute.xlu0 %10124 }
 0x4bc   :  { %v28869_v33 = vpop.permute.xlu1 %10126  ;;  %24090 = vmatmul.mubr.msk.bf16.vlgmr.msra.gmra.mrb[24].mxu1 %vm154_vm1, %v26148_v12 }
 0x4bd   :  { %12106 = vrot.lane.b32.xlu0 %v28247_v39, %s26236_s20  ;;  %9376 = vmatpush1.bf16.msra.mxu1 %v9270_v61  ;;  %v9272_v61 = vsel %vm1247_vm0, %v28647_v5, %v28660_v62 }
 0x4be   :  { %12108 = vrot.lane.b32.xlu1 %v28277_v26, %s26236_s20  ;;  %9418 = vmatprep.subr.bf16.mxu1 %v9273_v44  ;;  %v9275_v44 = vsel %vm1247_vm0, %v28669_v30, %v28671_v38  ;;  %v9274_v38 = vsel %vm1247_vm0, %v28663_v22, %v28669_v30  ;;  %v9554_v30 = vsel %vm32194_vm3, %v28693_v29, %v28684_v54  ;;  %v26149_v29 = vld [vmem:[%s32127_s1 + $0x100] sm:$0xff]  }
 0x4bf   :  { %v28882_v23 = vpop.permute.xlu0 %10128  ;;  %9407 = vmatprep.mubr.bf16.mxu1 %v32152_v1 }
 0x4c0   :  { %v28885_v9 = vpop.permute.xlu1 %10398 }
 0x4c1   :  { %12104 = vrot.lane.b32.xlu0 %v28243_v8, %s26236_s20 }
 0x4c2   :  { %12110 = vrot.lane.b32.xlu1 %v28281_v34, %s26236_s20 }
 0x4c3   :  { %v28891_v40 = vpop.permute.xlu0 %10400 }
 0x4c4   :  { %v28893_v31 = vpop.permute.xlu1 %10396  ;;  %24091 = vmatmul.mubr.msk.bf16.vlgmr.msra.gmra.mrb[28].mxu1 %vm154_vm1, %v26148_v12 }
 0x4c5   :  { %12112 = vrot.lane.b32.xlu0 %v28267_v3, %s26236_s20  ;;  %9419 = vmatpush1.bf16.msra.mxu1 %v9272_v61  ;;  %v9555_v61 = vsel %vm32194_vm3, %v28684_v54, %v28687_v32 }
 0x4c6   :  { %12114 = vrot.lane.b32.xlu1 %v28272_v7, %s26236_s20  ;;  %9461 = vmatprep.subr.bf16.mxu1 %v9275_v44 }
 0x4c7   :  { %v28906_v1 = vpop.permute.xlu0 %10402  ;;  %9450 = vmatprep.mubr.bf16.mxu1 %v32227_v17 }
 0x4c8   :  { %v28909_v11 = vpop.permute.xlu1 %10404 }
 0x4c9   :  { %12116 = vrot.lane.b32.xlu0 %v28317_v10, %s26236_s20 }
 0x4ca   :  { %12118 = vrot.lane.b32.xlu1 %v28319_v35, %s26236_s20 }
 0x4cb   :  { %v28915_v5 = vpop.permute.xlu0 %10406 }
 0x4cc   :  { %v28917_v62 = vpop.permute.xlu1 %10408  ;;  %24092 = vmatmul.mubr.msk.bf16.vlgmr.msra.gmra.mrb[32].mxu1 %vm154_vm1, %v26148_v12 }
 0x4cd   :  { %12120 = vrot.lane.b32.xlu0 %v28309_v47, %s26236_s20  ;;  %9462 = vmatpush1.bf16.msra.mxu1 %v9274_v38 }
 0x4ce   :  { %12122 = vrot.lane.b32.xlu1 %v28313_v55, %s26236_s20  ;;  %9577 = vmatprep.subr.bf16.mxu1 %v9555_v61  ;;  %v9557_v61 = vsel %vm32194_vm3, %v28698_v20, %v28708_v36 }
 0x4cf   :  { %v28930_v44 = vpop.permute.xlu0 %10410  ;;  %9493 = vmatprep.mubr.bf16.mxu1 %v32227_v17 }
 0x4d0   :  { %v28933_v43 = vpop.permute.xlu1 %10412 }
 0x4d1   :  { %12124 = vrot.lane.b32.xlu0 %v32227_v17, %s26236_s20 }
 0x4d2   :  { %12394 = vrot.lane.b32.xlu1 %v28247_v39, %s26237_s5 }
 0x4d3   :  { %v28939_v22 = vpop.permute.xlu0 %10414 }
 0x4d4   :  { %v28944_v38 = vpop.permute.xlu1 %10416  ;;  %24093 = vmatmul.mubr.msk.bf16.vlgmr.msra.gmra.mrb[36].mxu1 %vm154_vm1, %v26148_v12 }
 0x4d5   :  { %12396 = vrot.lane.b32.xlu0 %v28277_v26, %s26237_s5  ;;  %9578 = vmatpush1.bf16.msra.mxu1 %v9554_v30 }
 0x4d6   :  { %12392 = vrot.lane.b32.xlu1 %v28243_v8, %s26237_s5  ;;  %9620 = vmatprep.subr.bf16.mxu1 %v9557_v61  ;;  %v9556_v61 = vsel %vm32194_vm3, %v28687_v32, %v28698_v20 }
 0x4d7   :  { %v28954_v56 = vpop.permute.xlu0 %10686  ;;  %9609 = vmatprep.mubr.bf16.mxu1 %v32227_v17 }
 0x4d8   :  { %v28957_v54 = vpop.permute.xlu1 %10688 }
 0x4d9   :  { %12398 = vrot.lane.b32.xlu0 %v28281_v34, %s26237_s5 }
 0x4da   :  { %12400 = vrot.lane.b32.xlu1 %v28267_v3, %s26237_s5 }
 0x4db   :  { %v28966_v12 = vpop.permute.xlu0 %10684 }
 0x4dc   :  { %v28968_v30 = vpop.permute.xlu1 %10690  ;;  %24097 = vmatmul.mubr.msk.bf16.vlgmr.msra.gmra.mrb[20].mxu1 %vm154_vm1, %v26149_v29 }
 0x4dd   :  { %12402 = vrot.lane.b32.xlu0 %v28272_v7, %s26237_s5  ;;  %9621 = vmatpush1.bf16.msra.mxu1 %v9556_v61  ;;  %v9561_v61 = vsel %vm32194_vm3, %v28722_v13, %v28735_v28 }
 0x4de   :  { %12404 = vrot.lane.b32.xlu1 %v28317_v10, %s26237_s5  ;;  %9663 = vmatprep.subr.bf16.mxu1 %v9559_v2  ;;  %v9558_v2 = vsel %vm32194_vm3, %v28708_v36, %v28711_v19  ;;  %v9560_v19 = vsel %vm32194_vm3, %v28720_v53, %v28722_v13  ;;  %v9562_v13 = vsel %vm32194_vm3, %v28735_v28, %v28738_v24 }
 0x4df   :  { %v28981_v63 = vpop.permute.xlu0 %10692  ;;  %9652 = vmatprep.mubr.bf16.mxu1 %v32227_v17  ;;  %v9842_v28 = vsel %vm32177_vm4, %v28762_v51, %v28746_v0 }
 0x4e0   :  { %v28984_v14 = vpop.permute.xlu1 %10694 }
 0x4e1   :  { %12406 = vrot.lane.b32.xlu0 %v28319_v35, %s26237_s5 }
 0x4e2   :  { %12408 = vrot.lane.b32.xlu1 %v28309_v47, %s26237_s5 }
 0x4e3   :  { %v28990_v32 = vpop.permute.xlu0 %10696 }
 0x4e4   :  { %v28992_v20 = vpop.permute.xlu1 %10698  ;;  %24098 = vmatmul.mubr.msk.bf16.vlgmr.msra.gmra.mrb[24].mxu1 %vm154_vm1, %v26149_v29 }
 0x4e5   :  { %12410 = vrot.lane.b32.xlu0 %v28313_v55, %s26237_s5  ;;  %9664 = vmatpush1.bf16.msra.mxu1 %v9558_v2 }
 0x4e6   :  { %12412 = vrot.lane.b32.xlu1 %v32227_v17, %s26237_s5  ;;  %9706 = vmatprep.subr.bf16.mxu1 %v9561_v61  ;;  %v9563_v61 = vsel %vm32194_vm3, %v28738_v24, %v28744_v15  ;;  %v9843_v15 = vsel %vm32177_vm4, %v28746_v0, %v28759_v60  ;;  %v26150_v0 = vld [vmem:[%s32127_s1 + $0x108] sm:$0xff]  }
 0x4e7   :  { %v29005_v42 = vpop.permute.xlu0 %10700  ;;  %9695 = vmatprep.mubr.bf16.mxu1 %v32227_v17 }
 0x4e8   :  { %v29010_v36 = vpop.permute.xlu1 %10702 }
 0x4e9   :  { %12682 = vrot.lane.b32.xlu0 %v28247_v39, %s26238_s10 }
 0x4ea   :  { %12684 = vrot.lane.b32.xlu1 %v28277_v26, %s26238_s10 }
 0x4eb   :  { %v29018_v2 = vpop.permute.xlu0 %10704 }
 0x4ec   :  { %24099 = vmatmul.mubr.msk.bf16.vlgmr.msra.gmra.mrb[28].mxu1 %vm154_vm1, %v26149_v29  ;;  %v29028_v37 = vpop.permute.xlu1 %10974 }
 0x4ed   :  { %12680 = vrot.lane.b32.xlu0 %v28243_v8, %s26238_s10  ;;  %9707 = vmatpush1.bf16.msra.mxu1 %v9560_v19 }
 0x4ee   :  { %12686 = vrot.lane.b32.xlu1 %v28281_v34, %s26238_s10  ;;  %9749 = vmatprep.subr.bf16.mxu1 %v9563_v61 }
 0x4ef   :  { %9738 = vmatprep.mubr.bf16.mxu1 %v32227_v17  ;;  %v29034_v53 = vpop.permute.xlu0 %10976 }
 0x4f0   :  { %v29045_v19 = vpop.permute.xlu1 %10972 }
 0x4f1   :  { %12688 = vrot.lane.b32.xlu0 %v28267_v3, %s26238_s10 }
 0x4f2   :  { %12690 = vrot.lane.b32.xlu1 %v28272_v7, %s26238_s10 }
 0x4f3   :  { %v29050_v61 = vpop.permute.xlu0 %10978 }
 0x4f4   :  { %24100 = vmatmul.mubr.msk.bf16.vlgmr.msra.gmra.mrb[32].mxu1 %vm154_vm1, %v26149_v29  ;;  %v29059_v24 = vpop.permute.xlu1 %10980 }
 0x4f5   :  { %12692 = vrot.lane.b32.xlu0 %v28317_v10, %s26238_s10  ;;  %9750 = vmatpush1.bf16.msra.mxu1 %v9562_v13  ;;  %v9845_v13 = vsel %vm32177_vm4, %v28768_v45, %v28770_v49 }
 0x4f6   :  { %12694 = vrot.lane.b32.xlu1 %v28319_v35, %s26238_s10  ;;  %9865 = vmatprep.subr.bf16.mxu1 %v9843_v15 }
 0x4f7   :  { %9781 = vmatprep.mubr.bf16.mxu1 %v32227_v17  ;;  %v29069_v15 = vpop.permute.xlu0 %10982 }
 0x4f8   :  { %32228 = vst [vmem:[#allocation14_spill] sm:$0xff] %v29069_v15  ;;  %v29077_v51 = vpop.permute.xlu1 %10984 }
 0x4f9   :  { %12696 = vrot.lane.b32.xlu0 %v28309_v47, %s26238_s10 }
 0x4fa   :  { %12698 = vrot.lane.b32.xlu1 %v28313_v55, %s26238_s10 }
 0x4fc   :  { %24101 = vmatmul.mubr.msk.bf16.vlgmr.msra.gmra.mrb[36].mxu1 %vm154_vm1, %v26149_v29  ;;  %v9844_v29 = vsel %vm32177_vm4, %v28759_v60, %v28768_v45  ;;  %v29095_v15 = vpop.permute.xlu1 %10988  ;;  %v9846_v45 = vsel %vm32177_vm4, %v28770_v49, %v28783_v48 }
 0x4fd   :  { %12700 = vrot.lane.b32.xlu0 %v32227_v17, %s26238_s10  ;;  %9866 = vmatpush1.bf16.msra.mxu1 %v9842_v28  ;;  %v29085_v28 = vpop.permute.xlu0 %10986 }
 0x4fe   :  { %12970 = vrot.lane.b32.xlu1 %v28247_v39, %s26239_s21  ;;  %9908 = vmatprep.subr.bf16.mxu1 %v9845_v13  ;;  %v9847_v13 = vsel %vm32177_vm4, %v28783_v48, %v28786_v57  ;;  %v9848_v48 = vsel %vm32177_vm4, %v28786_v57, %v28792_v58 }
 0x4ff   :  { %9897 = vmatprep.mubr.bf16.mxu1 %v32227_v17 }
 0x501   :  { %12972 = vrot.lane.b32.xlu0 %v28277_v26, %s26239_s21  ;;  %v29101_v60 = vpop.permute.xlu0 %10990 }
 0x502   :  { %12968 = vrot.lane.b32.xlu1 %v28243_v8, %s26239_s21  ;;  %32229 = vst [vmem:[#allocation15_spill] sm:$0xff] %v29101_v60 }
 0x504   :  { %24105 = vmatmul.mubr.msk.bf16.vlgmr.msra.gmra.mrb[20].mxu1 %vm154_vm1, %v26150_v0 }
 0x505   :  { %12974 = vrot.lane.b32.xlu0 %v28281_v34, %s26239_s21  ;;  %9909 = vmatpush1.bf16.msra.mxu1 %v9844_v29  ;;  %v9849_v29 = vsel %vm32177_vm4, %v28792_v58, %v28794_v18  ;;  %v29117_v60 = vpop.permute.xlu0 %11262  ;;  %v9850_v58 = vsel %vm32177_vm4, %v28794_v18, %v28807_v41 }
 0x506   :  { %12976 = vrot.lane.b32.xlu1 %v28267_v3, %s26239_s21  ;;  %9951 = vmatprep.subr.bf16.mxu1 %v9847_v13  ;;  %v29112_v13 = vpop.permute.xlu1 %10992 }
 0x507   :  { %9940 = vmatprep.mubr.bf16.mxu1 %v32227_v17 }
 0x509   :  { %12978 = vrot.lane.b32.xlu0 %v28272_v7, %s26239_s21 }
 0x50a   :  { %12980 = vrot.lane.b32.xlu1 %v28317_v10, %s26239_s21  ;;  %v29123_v49 = vpop.permute.xlu1 %11264 }
 0x50c   :  { %24106 = vmatmul.mubr.msk.bf16.vlgmr.msra.gmra.mrb[24].mxu1 %vm154_vm1, %v26150_v0 }
 0x50d   :  { %12982 = vrot.lane.b32.xlu0 %v28319_v35, %s26239_s21  ;;  %9952 = vmatpush1.bf16.msra.mxu1 %v9846_v45  ;;  %v9851_v45 = vsel %vm32177_vm4, %v28807_v41, %v28810_v27  ;;  %v10130_v41 = vsel %vm32178_vm6, %v28831_v59, %v28816_v25  ;;  %vm32236_vm4 = vcmask 728064  }
 0x50e   :  { %12984 = vrot.lane.b32.xlu1 %v28309_v47, %s26239_s21  ;;  %9994 = vmatprep.subr.bf16.mxu1 %v9849_v29  ;;  %v29136_v29 = vpop.permute.xlu0 %11260  ;;  %v29141_v57 = vpop.permute.xlu1 %11266 }
 0x50f   :  { %9983 = vmatprep.mubr.bf16.mxu1 %v32227_v17 }
 0x511   :  { %12986 = vrot.lane.b32.xlu0 %v28313_v55, %s26239_s21 }
 0x512   :  { %12988 = vrot.lane.b32.xlu1 %v32227_v17, %s26239_s21  ;;  %v29149_v27 = vpop.permute.xlu0 %11268 }
 0x514   :  { %24107 = vmatmul.mubr.msk.bf16.vlgmr.msra.gmra.mrb[28].mxu1 %vm154_vm1, %v26150_v0 }
 0x515   :  { %13258 = vrot.lane.b32.xlu0 %v28247_v39, %s32230_s12  ;;  %9995 = vmatpush1.bf16.msra.mxu1 %v9848_v48  ;;  %v10131_v48 = vsel %vm32178_vm6, %v28816_v25, %v28821_v21  ;;  %v26151_v25 = vld [vmem:[%s32127_s1 + $0x110] sm:$0xff]  }
 0x516   :  { %13260 = vrot.lane.b32.xlu1 %v28277_v26, %s32230_s12  ;;  %10037 = vmatprep.subr.bf16.mxu1 %v9851_v45  ;;  %v29159_v45 = vpop.permute.xlu1 %11270  ;;  %v29165_v18 = vpop.permute.xlu0 %11272 }
 0x517   :  { %10026 = vmatprep.mubr.bf16.mxu1 %v32227_v17 }
 0x519   :  { %13256 = vrot.lane.b32.xlu0 %v28243_v8, %s32230_s12 }
 0x51a   :  { %13262 = vrot.lane.b32.xlu1 %v28281_v34, %s32230_s12  ;;  %v29184_v59 = vpop.permute.xlu0 %11276 }
 0x51c   :  { %24108 = vmatmul.mubr.msk.bf16.vlgmr.msra.gmra.mrb[32].mxu1 %vm154_vm1, %v26150_v0 }
 0x51d   :  { %13264 = vrot.lane.b32.xlu0 %v28267_v3, %s32230_s12  ;;  %10038 = vmatpush1.bf16.msra.mxu1 %v9850_v58  ;;  %v10133_v58 = vsel %vm32178_vm6, %v28834_v4, %v28843_v52 }
 0x51e   :  { %13266 = vrot.lane.b32.xlu1 %v28272_v7, %s32230_s12  ;;  %10153 = vmatprep.subr.bf16.mxu1 %v10131_v48  ;;  %v29176_v48 = vpop.permute.xlu1 %11274 }
 0x51f   :  { %10069 = vmatprep.mubr.bf16.mxu1 %v32227_v17  ;;  %32231 = vst [vmem:[#allocation16_spill] sm:$0xff] %v29176_v48  ;;  %v29203_v48 = vpop.permute.xlu0 %11280 }
 0x521   :  { %13268 = vrot.lane.b32.xlu0 %v28317_v10, %s32230_s12 }
 0x522   :  { %13270 = vrot.lane.b32.xlu1 %v28319_v35, %s32230_s12 }
 0x524   :  { %24109 = vmatmul.mubr.msk.bf16.vlgmr.msra.gmra.mrb[36].mxu1 %vm154_vm1, %v26150_v0  ;;  %v29190_v0 = vpop.permute.xlu1 %11278 }
 0x525   :  { %13272 = vrot.lane.b32.xlu0 %v28309_v47, %s32230_s12  ;;  %10154 = vmatpush1.bf16.msra.mxu1 %v10130_v41  ;;  %v10132_v41 = vsel %vm32178_vm6, %v28821_v21, %v28834_v4  ;;  %v10134_v4 = vsel %vm32178_vm6, %v28843_v52, %v28845_v46 }
 0x526   :  { %13274 = vrot.lane.b32.xlu1 %v28313_v55, %s32230_s12  ;;  %10196 = vmatprep.subr.bf16.mxu1 %v10133_v58  ;;  %v10135_v58 = vsel %vm32178_vm6, %v28845_v46, %v28858_v6  ;;  %v10136_v46 = vsel %vm32178_vm6, %v28858_v6, %v28861_v16 }
 0x527   :  { %10185 = vmatprep.mubr.bf16.mxu1 %v32227_v17 }
 0x528   :  { %v29208_v21 = vpop.permute.xlu1 %11550 }
 0x529   :  { %13276 = vrot.lane.b32.xlu0 %v32227_v17, %s32230_s12  ;;  %32233 = vst [vmem:[#allocation17_spill] sm:$0xff] %v29208_v21 }
 0x52a   :  { %13546 = vrot.lane.b32.xlu1 %v28247_v39, %s32232_s13 }
 0x52c   :  { %24113 = vmatmul.mubr.msk.bf16.vlgmr.msra.gmra.mrb[20].mxu1 %vm154_vm1, %v26151_v25  ;;  %v29226_v21 = vpop.permute.xlu1 %11548 }
 0x52d   :  { %13548 = vrot.lane.b32.xlu0 %v28277_v26, %s32232_s13  ;;  %10197 = vmatpush1.bf16.msra.mxu1 %v10132_v41  ;;  %v29216_v41 = vpop.permute.xlu0 %11552 }
 0x52e   :  { %13544 = vrot.lane.b32.xlu1 %v28243_v8, %s32232_s13  ;;  %10239 = vmatprep.subr.bf16.mxu1 %v10135_v58  ;;  %v10137_v58 = vsel %vm32178_vm6, %v28861_v16, %v28867_v50  ;;  %v10138_v16 = vsel %vm32178_vm6, %v28867_v50, %v28869_v33 }
 0x52f   :  { %10228 = vmatprep.mubr.bf16.mxu1 %v32227_v17 }
 0x531   :  { %13550 = vrot.lane.b32.xlu0 %v28281_v34, %s32232_s13  ;;  %v29232_v52 = vpop.permute.xlu0 %11554 }
 0x532   :  { %13552 = vrot.lane.b32.xlu1 %v28267_v3, %s32232_s13  ;;  %32234 = vst [vmem:[#allocation18_spill] sm:$0xff] %v29232_v52 }
 0x534   :  { %24114 = vmatmul.mubr.msk.bf16.vlgmr.msra.gmra.mrb[24].mxu1 %vm154_vm1, %v26151_v25 }
 0x535   :  { %13554 = vrot.lane.b32.xlu0 %v28272_v7, %s32232_s13  ;;  %10240 = vmatpush1.bf16.msra.mxu1 %v10134_v4  ;;  %v10139_v4 = vsel %vm32178_vm6, %v28869_v33, %v28882_v23  ;;  %v29248_v52 = vpop.permute.xlu0 %11558  ;;  %v10419_v23 = vsel %vm32236_vm4, %v28885_v9, %v28891_v40  ;;  %vm32237_vm6 = vmmov %vm32236_vm4 }
 0x536   :  { %13556 = vrot.lane.b32.xlu1 %v28317_v10, %s32232_s13  ;;  %10282 = vmatprep.subr.bf16.mxu1 %v10137_v58  ;;  %v29243_v58 = vpop.permute.xlu1 %11556  ;;  %v10418_v33 = vsel %vm32237_vm6, %v28893_v31, %v28885_v9  ;;  %v26152_v9 = vld [vmem:[%s32127_s1 + $0x118] sm:$0xff]   ;;  %vm32239_vm6 = vmmov %vm32236_vm4 }
 0x537   :  { %10271 = vmatprep.mubr.bf16.mxu1 %v32227_v17 }
 0x539   :  { %13558 = vrot.lane.b32.xlu0 %v28319_v35, %s32232_s13 }
 0x53a   :  { %13560 = vrot.lane.b32.xlu1 %v28309_v47, %s32232_s13  ;;  %v29254_v6 = vpop.permute.xlu1 %11560 }
 0x53c   :  { %24115 = vmatmul.mubr.msk.bf16.vlgmr.msra.gmra.mrb[28].mxu1 %vm154_vm1, %v26151_v25 }
 0x53d   :  { %13562 = vrot.lane.b32.xlu0 %v28313_v55, %s32232_s13  ;;  %10283 = vmatpush1.bf16.msra.mxu1 %v10136_v46  ;;  %v29267_v46 = vpop.permute.xlu0 %11562 }
 0x53e   :  { %13564 = vrot.lane.b32.xlu1 %v32227_v17, %s32232_s13  ;;  %10325 = vmatprep.subr.bf16.mxu1 %v10139_v4  ;;  %v29272_v50 = vpop.permute.xlu1 %11564 }
 0x53f   :  { %10314 = vmatprep.mubr.bf16.mxu1 %v32227_v17 }
 0x541   :  { %13834 = vrot.lane.b32.xlu0 %v28247_v39, %s32235_s3  ;;  %v29280_v4 = vpop.permute.xlu0 %11566 }
 0x542   :  { %13836 = vrot.lane.b32.xlu1 %v28277_v26, %s32235_s3 }
 0x544   :  { %24116 = vmatmul.mubr.msk.bf16.vlgmr.msra.gmra.mrb[32].mxu1 %vm154_vm1, %v26151_v25 }
 0x545   :  { %13832 = vrot.lane.b32.xlu0 %v28243_v8, %s32235_s3  ;;  %10326 = vmatpush1.bf16.msra.mxu1 %v10138_v16  ;;  %v10421_v16 = vsel %vm32236_vm4, %v28906_v1, %v28909_v11  ;;  %v29299_v31 = vpop.permute.xlu0 %12106 }
 0x546   :  { %13838 = vrot.lane.b32.xlu1 %v28281_v34, %s32235_s3  ;;  %10441 = vmatprep.subr.bf16.mxu1 %v10419_v23  ;;  %v29290_v23 = vpop.permute.xlu1 %11568  ;;  %32238 = vst [vmem:[#allocation19_spill] sm:$0xff] %v29299_v31 }
 0x547   :  { %10357 = vmatprep.mubr.bf16.mxu1 %v32227_v17 }
 0x549   :  { %13840 = vrot.lane.b32.xlu0 %v28267_v3, %s32235_s3  ;;  %v29315_v31 = vpop.permute.xlu0 %12104 }
 0x54a   :  { %13842 = vrot.lane.b32.xlu1 %v28272_v7, %s32235_s3 }
 0x54c   :  { %24117 = vmatmul.mubr.msk.bf16.vlgmr.msra.gmra.mrb[36].mxu1 %vm154_vm1, %v26151_v25  ;;  %v10420_v25 = vsel %vm32239_vm6, %v28891_v40, %v28906_v1  ;;  %vm32240_vm6 = vmmov %vm32236_vm4 }
 0x54d   :  { %13844 = vrot.lane.b32.xlu0 %v28317_v10, %s32235_s3  ;;  %10442 = vmatpush1.bf16.msra.mxu1 %v10418_v33  ;;  %v10423_v33 = vsel %vm32236_vm4, %v28915_v5, %v28917_v62  ;;  %v10422_v40 = vsel %vm32240_vm6, %v28909_v11, %v28915_v5  ;;  %vm32242_vm6 = vmmov %vm32236_vm4 }
 0x54e   :  { %13846 = vrot.lane.b32.xlu1 %v28319_v35, %s32235_s3  ;;  %10484 = vmatprep.subr.bf16.mxu1 %v10421_v16  ;;  %v29310_v16 = vpop.permute.xlu1 %12108  ;;  %v10424_v5 = vsel %vm32242_vm6, %v28917_v62, %v28930_v44  ;;  %vm32243_vm6 = vmmov %vm32236_vm4 }
 0x54f   :  { %10473 = vmatprep.mubr.bf16.mxu1 %v32227_v17 }
 0x551   :  { %13848 = vrot.lane.b32.xlu0 %v28309_v47, %s32235_s3 }
 0x552   :  { %13850 = vrot.lane.b32.xlu1 %v28313_v55, %s32235_s3  ;;  %v29321_v1 = vpop.permute.xlu1 %12110 }
 0x554   :  { %24121 = vmatmul.mubr.msk.bf16.vlgmr.msra.gmra.mrb[20].mxu1 %vm154_vm1, %v26152_v9 }
 0x555   :  { %13852 = vrot.lane.b32.xlu0 %v32227_v17, %s32235_s3  ;;  %10485 = vmatpush1.bf16.msra.mxu1 %v10420_v25  ;;  %v10425_v25 = vsel %vm32236_vm4, %v28930_v44, %v28933_v43  ;;  %v10426_v44 = vsel %vm32243_vm6, %v28933_v43, %v28939_v22  ;;  %v10706_v43 = vsel %vm32193_vm9, %v28966_v12, %v28954_v56 }
 0x556   :  { %14122 = vrot.lane.b32.xlu1 %v28247_v39, %s26243_s8  ;;  %10527 = vmatprep.subr.bf16.mxu1 %v10423_v33  ;;  %v29334_v33 = vpop.permute.xlu0 %12112  ;;  %v29339_v11 = vpop.permute.xlu1 %12114 }
 0x557   :  { %10516 = vmatprep.mubr.bf16.mxu1 %v32227_v17  ;;  %32241 = vst [vmem:[#allocation20_spill] sm:$0xff] %v29339_v11 }
 0x559   :  { %14124 = vrot.lane.b32.xlu0 %v28277_v26, %s26243_s8 }
 0x55a   :  { %14120 = vrot.lane.b32.xlu1 %v28243_v8, %s26243_s8  ;;  %v29357_v11 = vpop.permute.xlu1 %12118 }
 0x55c   :  { %24122 = vmatmul.mubr.msk.bf16.vlgmr.msra.gmra.mrb[24].mxu1 %vm154_vm1, %v26152_v9 }
 0x55d   :  { %14126 = vrot.lane.b32.xlu0 %v28281_v34, %s26243_s8  ;;  %10528 = vmatpush1.bf16.msra.mxu1 %v10422_v40  ;;  %v29347_v40 = vpop.permute.xlu0 %12116 }
 0x55e   :  { %14128 = vrot.lane.b32.xlu1 %v28267_v3, %s26243_s8  ;;  %10570 = vmatprep.subr.bf16.mxu1 %v10425_v25  ;;  %v10427_v25 = vsel %vm32236_vm4, %v28939_v22, %v28944_v38  ;;  %v10707_v38 = vsel %vm32193_vm9, %v28954_v56, %v28957_v54  ;;  %v26153_v56 = vld [vmem:[%s32127_s1 + $0x120] sm:$0xff]   ;;  %vm32246_vm4 = vcmask 80896  }
 0x55f   :  { %10559 = vmatprep.mubr.bf16.mxu1 %v32227_v17  ;;  %vm32247_vm6 = vmmov %vm32246_vm4 }
 0x561   :  { %14130 = vrot.lane.b32.xlu0 %v28272_v7, %s26243_s8  ;;  %v29363_v62 = vpop.permute.xlu0 %12120 }
 0x562   :  { %14132 = vrot.lane.b32.xlu1 %v28317_v10, %s26243_s8 }
 0x564   :  { %24123 = vmatmul.mubr.msk.bf16.vlgmr.msra.gmra.mrb[28].mxu1 %vm154_vm1, %v26152_v9 }
 0x565   :  { %14134 = vrot.lane.b32.xlu0 %v28319_v35, %s26243_s8  ;;  %10571 = vmatpush1.bf16.msra.mxu1 %v10424_v5  ;;  %v29374_v5 = vpop.permute.xlu1 %12122 }
 0x566   :  { %14136 = vrot.lane.b32.xlu1 %v28309_v47, %s26243_s8  ;;  %10613 = vmatprep.subr.bf16.mxu1 %v10427_v25  ;;  %v29379_v25 = vpop.permute.xlu0 %12124 }
 0x567   :  { %10602 = vmatprep.mubr.bf16.mxu1 %v32227_v17 }
 0x569   :  { %14138 = vrot.lane.b32.xlu0 %v28313_v55, %s26243_s8  ;;  %v29388_v22 = vpop.permute.xlu1 %12394 }
 0x56a   :  { %14140 = vrot.lane.b32.xlu1 %v32227_v17, %s26243_s8 }
 0x56c   :  { %24124 = vmatmul.mubr.msk.bf16.vlgmr.msra.gmra.mrb[32].mxu1 %vm154_vm1, %v26152_v9 }
 0x56d   :  { %14410 = vrot.lane.b32.xlu0 %v28247_v39, %s26244_s23  ;;  %10614 = vmatpush1.bf16.msra.mxu1 %v10426_v44  ;;  %v10709_v44 = vsel %vm32193_vm9, %v28968_v30, %v28981_v63  ;;  %v29406_v12 = vpop.permute.xlu1 %12392 }
 0x56e   :  { %14412 = vrot.lane.b32.xlu1 %v28277_v26, %s26244_s23  ;;  %10729 = vmatprep.subr.bf16.mxu1 %v10707_v38  ;;  %v29398_v38 = vpop.permute.xlu0 %12396  ;;  %32244 = vst [vmem:[#allocation21_spill] sm:$0xff] %v29406_v12 }
 0x56f   :  { %10645 = vmatprep.mubr.bf16.mxu1 %v32227_v17 }
 0x571   :  { %14408 = vrot.lane.b32.xlu0 %v28243_v8, %s26244_s23  ;;  %v29424_v12 = vpop.permute.xlu1 %12400 }
 0x572   :  { %14414 = vrot.lane.b32.xlu1 %v28281_v34, %s26244_s23 }
 0x574   :  { %24125 = vmatmul.mubr.msk.bf16.vlgmr.msra.gmra.mrb[36].mxu1 %vm154_vm1, %v26152_v9  ;;  %v10708_v9 = vsel %vm32193_vm9, %v28957_v54, %v28968_v30  ;;  %v10710_v30 = vsel %vm32193_vm9, %v28981_v63, %v28984_v14  ;;  %v10712_v63 = vsel %vm32193_vm9, %v28990_v32, %v28992_v20 }
 0x575   :  { %14416 = vrot.lane.b32.xlu0 %v28267_v3, %s26244_s23  ;;  %10730 = vmatpush1.bf16.msra.mxu1 %v10706_v43  ;;  %v29414_v43 = vpop.permute.xlu0 %12398 }
 0x576   :  { %14418 = vrot.lane.b32.xlu1 %v28272_v7, %s26244_s23  ;;  %10772 = vmatprep.subr.bf16.mxu1 %v10709_v44  ;;  %v10711_v44 = vsel %vm32193_vm9, %v28984_v14, %v28990_v32 }
 0x577   :  { %10761 = vmatprep.mubr.bf16.mxu1 %v32227_v17 }
 0x579   :  { %14420 = vrot.lane.b32.xlu0 %v28317_v10, %s26244_s23  ;;  %v29430_v54 = vpop.permute.xlu0 %12402 }
 0x57a   :  { %14422 = vrot.lane.b32.xlu1 %v28319_v35, %s26244_s23  ;;  %32245 = vst [vmem:[#allocation22_spill] sm:$0xff] %v29430_v54 }
 0x57c   :  { %24129 = vmatmul.mubr.msk.bf16.vlgmr.msra.gmra.mrb[20].mxu1 %vm154_vm1, %v26153_v56 }
 0x57d   :  { %14424 = vrot.lane.b32.xlu0 %v28309_v47, %s26244_s23  ;;  %10773 = vmatpush1.bf16.msra.mxu1 %v10708_v9  ;;  %v10713_v9 = vsel %vm32193_vm9, %v28992_v20, %v29005_v42  ;;  %v29446_v54 = vpop.permute.xlu0 %12406  ;;  %v10714_v20 = vsel %vm32193_vm9, %v29005_v42, %v29010_v36 }
 0x57e   :  { %14426 = vrot.lane.b32.xlu1 %v28313_v55, %s26244_s23  ;;  %10815 = vmatprep.subr.bf16.mxu1 %v10711_v44  ;;  %v29441_v44 = vpop.permute.xlu1 %12404 }
 0x57f   :  { %10804 = vmatprep.mubr.bf16.mxu1 %v32227_v17 }
 0x581   :  { %14428 = vrot.lane.b32.xlu0 %v32227_v17, %s26244_s23 }
 0x582   :  { %14698 = vrot.lane.b32.xlu1 %v28247_v39, %s32190_s25  ;;  %v29452_v14 = vpop.permute.xlu1 %12408 }
 0x584   :  { %24130 = vmatmul.mubr.msk.bf16.vlgmr.msra.gmra.mrb[24].mxu1 %vm154_vm1, %v26153_v56 }
 0x585   :  { %14700 = vrot.lane.b32.xlu0 %v28277_v26, %s32190_s25  ;;  %10816 = vmatpush1.bf16.msra.mxu1 %v10710_v30  ;;  %v10715_v30 = vsel %vm32193_vm9, %v29010_v36, %v29018_v2  ;;  %v10994_v36 = vsel %vm32247_vm6, %v29045_v19, %v29028_v37  ;;  %vm32250_vm6 = vmmov %vm32246_vm4 }
 0x586   :  { %14696 = vrot.lane.b32.xlu1 %v28243_v8, %s32190_s25  ;;  %10858 = vmatprep.subr.bf16.mxu1 %v10713_v9  ;;  %v29465_v9 = vpop.permute.xlu0 %12410  ;;  %v29470_v32 = vpop.permute.xlu1 %12412 }
 0x587   :  { %10847 = vmatprep.mubr.bf16.mxu1 %v32227_v17 }
 0x589   :  { %14702 = vrot.lane.b32.xlu0 %v28281_v34, %s32190_s25 }
 0x58a   :  { %14704 = vrot.lane.b32.xlu1 %v28267_v3, %s32190_s25  ;;  %v29478_v2 = vpop.permute.xlu0 %12682 }
 0x58c   :  { %24131 = vmatmul.mubr.msk.bf16.vlgmr.msra.gmra.mrb[28].mxu1 %vm154_vm1, %v26153_v56 }
 0x58d   :  { %14706 = vrot.lane.b32.xlu0 %v28272_v7, %s32190_s25  ;;  %10859 = vmatpush1.bf16.msra.mxu1 %v10712_v63  ;;  %v10995_v63 = vsel %vm32246_vm4, %v29028_v37, %v29034_v53  ;;  %v26154_v37 = vld [vmem:[%s32127_s1 + $0x128] sm:$0xff]  }
 0x58e   :  { %14708 = vrot.lane.b32.xlu1 %v28317_v10, %s32190_s25  ;;  %10901 = vmatprep.subr.bf16.mxu1 %v10715_v30  ;;  %v29488_v30 = vpop.permute.xlu1 %12684  ;;  %v29494_v42 = vpop.permute.xlu0 %12680 }
 0x58f   :  { %10890 = vmatprep.mubr.bf16.mxu1 %v32227_v17 }
 0x591   :  { %14710 = vrot.lane.b32.xlu0 %v28319_v35, %s32190_s25 }
 0x592   :  { %14712 = vrot.lane.b32.xlu1 %v28309_v47, %s32190_s25  ;;  %v29513_v19 = vpop.permute.xlu0 %12688 }
 0x593   :  { %32249 = vst [vmem:[#allocation24_spill] sm:$0xff] %v29513_v19 }
 0x594   :  { %24132 = vmatmul.mubr.msk.bf16.vlgmr.msra.gmra.mrb[32].mxu1 %vm154_vm1, %v26153_v56 }
 0x595   :  { %14714 = vrot.lane.b32.xlu0 %v28313_v55, %s32190_s25  ;;  %10902 = vmatpush1.bf16.msra.mxu1 %v10714_v20  ;;  %v10997_v20 = vsel %vm32246_vm4, %v29050_v61, %v29059_v24 }
 0x596   :  { %14716 = vrot.lane.b32.xlu1 %v32227_v17, %s32190_s25  ;;  %11017 = vmatprep.subr.bf16.mxu1 %v10995_v63  ;;  %v29505_v63 = vpop.permute.xlu1 %12686  ;;  %v29532_v19 = vpop.permute.xlu0 %12692 }
 0x597   :  { %10933 = vmatprep.mubr.bf16.mxu1 %v32227_v17  ;;  %32248 = vst [vmem:[#allocation23_spill] sm:$0xff] %v29505_v63 }
 0x599   :  { %14986 = vrot.lane.b32.xlu0 %v28247_v39, %s32188_s28 }
 0x59a   :  { %14988 = vrot.lane.b32.xlu1 %v28277_v26, %s32188_s28 }
 0x59c   :  { %24133 = vmatmul.mubr.msk.bf16.vlgmr.msra.gmra.mrb[36].mxu1 %vm154_vm1, %v26153_v56  ;;  %v29519_v56 = vpop.permute.xlu1 %12690 }
 0x59d   :  { %14984 = vrot.lane.b32.xlu0 %v28243_v8, %s32188_s28  ;;  %11018 = vmatpush1.bf16.msra.mxu1 %v10994_v36  ;;  %v10996_v36 = vsel %vm32250_vm6, %v29034_v53, %v29050_v61  ;;  %vm32253_vm6 = vmmov %vm32246_vm4 }
 0x59e   :  { %14990 = vrot.lane.b32.xlu1 %v28281_v34, %s32188_s28  ;;  %11060 = vmatprep.subr.bf16.mxu1 %v10997_v20  ;;  %v32251_v20 = vld [vmem:[#allocation14_spill] sm:$0xff] }
 0x59f   :  { %11049 = vmatprep.mubr.bf16.mxu1 %v32227_v17  ;;  %v10999_v63 = vsel %vm32246_vm4, %v32251_v20, %v29077_v51  ;;  %v10998_v61 = vsel %vm32253_vm6, %v29059_v24, %v32251_v20  ;;  %vm32257_vm6 = vmmov %vm32246_vm4 }
 0x5a0   :  { %v29537_v53 = vpop.permute.xlu1 %12694  ;;  %v11000_v20 = vsel %vm32257_vm6, %v29077_v51, %v29085_v28  ;;  %vm32259_vm6 = vmmov %vm32246_vm4 }
 0x5a1   :  { %14992 = vrot.lane.b32.xlu0 %v28267_v3, %s32188_s28  ;;  %32252 = vst [vmem:[#allocation14_spill] sm:$0xff] %v29537_v53 }
 0x5a2   :  { %14994 = vrot.lane.b32.xlu1 %v28272_v7, %s32188_s28 }
 0x5a4   :  { %24137 = vmatmul.mubr.msk.bf16.vlgmr.msra.gmra.mrb[20].mxu1 %vm154_vm1, %v26154_v37  ;;  %v29555_v53 = vpop.permute.xlu1 %12698 }
 0x5a5   :  { %14996 = vrot.lane.b32.xlu0 %v28317_v10, %s32188_s28  ;;  %11061 = vmatpush1.bf16.msra.mxu1 %v10996_v36  ;;  %v29545_v36 = vpop.permute.xlu0 %12696  ;;  %32255 = vst [vmem:[#allocation25_spill] sm:$0xff] %v29555_v53 }
 0x5a6   :  { %14998 = vrot.lane.b32.xlu1 %v28319_v35, %s32188_s28  ;;  %11103 = vmatprep.subr.bf16.mxu1 %v10999_v63  ;;  %v11001_v63 = vsel %vm32246_vm4, %v29085_v28, %v29095_v15 }
 0x5a7   :  { %11092 = vmatprep.mubr.bf16.mxu1 %v32227_v17 }
 0x5a8   :  { %v29572_v53 = vpop.permute.xlu1 %12970 }
 0x5a9   :  { %15000 = vrot.lane.b32.xlu0 %v28309_v47, %s32188_s28  ;;  %v29561_v24 = vpop.permute.xlu0 %12700 }
 0x5aa   :  { %15002 = vrot.lane.b32.xlu1 %v28313_v55, %s32188_s28  ;;  %32256 = vst [vmem:[#allocation26_spill] sm:$0xff] %v29561_v24 }
 0x5ac   :  { %24138 = vmatmul.mubr.msk.bf16.vlgmr.msra.gmra.mrb[24].mxu1 %vm154_vm1, %v26154_v37  ;;  %v29583_v51 = vpop.permute.xlu1 %12968 }
 0x5ad   :  { %15004 = vrot.lane.b32.xlu0 %v32227_v17, %s32188_s28  ;;  %11104 = vmatpush1.bf16.msra.mxu1 %v10998_v61  ;;  %v32258_v61 = vld [vmem:[#allocation15_spill] sm:$0xff]  ;;  %v29577_v24 = vpop.permute.xlu0 %12972 }
 0x5ae   :  { %15274 = vrot.lane.b32.xlu1 %v28247_v39, %s32254_s24  ;;  %11146 = vmatprep.subr.bf16.mxu1 %v11001_v63  ;;  %v11003_v63 = vsel %vm32246_vm4, %v32258_v61, %v29112_v13  ;;  %v11002_v28 = vsel %vm32259_vm6, %v29095_v15, %v32258_v61  ;;  %vm32260_vm4 = vcmask 72704  }
 0x5af   :  { %11135 = vmatprep.mubr.bf16.mxu1 %v32227_v17  ;;  %v11283_v13 = vsel %vm32260_vm4, %v29117_v60, %v29123_v49  ;;  %vm32261_vm6 = vmmov %vm32260_vm4 }
 0x5b0   :  { %v29601_v15 = vpop.permute.xlu1 %12976  ;;  %v11282_v61 = vsel %vm32261_vm6, %v29136_v29, %v29117_v60  ;;  %v26155_v60 = vld [vmem:[%s32127_s1 + $0x130] sm:$0xff]   ;;  %vm32263_vm6 = vmmov %vm32260_vm4 }
 0x5b1   :  { %15276 = vrot.lane.b32.xlu0 %v28277_v26, %s32254_s24  ;;  %vm32270_vm9 = vmmov %vm32260_vm4 }
 0x5b2   :  { %15272 = vrot.lane.b32.xlu1 %v28243_v8, %s32254_s24 }
 0x5b4   :  { %24139 = vmatmul.mubr.msk.bf16.vlgmr.msra.gmra.mrb[28].mxu1 %vm154_vm1, %v26154_v37 }
 0x5b5   :  { %15278 = vrot.lane.b32.xlu0 %v28281_v34, %s32254_s24  ;;  %11147 = vmatpush1.bf16.msra.mxu1 %v11000_v20  ;;  %v29596_v20 = vpop.permute.xlu0 %12974 }
 0x5b6   :  { %15280 = vrot.lane.b32.xlu1 %v28267_v3, %s32254_s24  ;;  %11189 = vmatprep.subr.bf16.mxu1 %v11003_v63 }
 0x5b7   :  { %11178 = vmatprep.mubr.bf16.mxu1 %v32227_v17 }
 0x5b9   :  { %15282 = vrot.lane.b32.xlu0 %v28272_v7, %s32254_s24  ;;  %v29609_v63 = vpop.permute.xlu0 %12978 }
 0x5ba   :  { %15284 = vrot.lane.b32.xlu1 %v28317_v10, %s32254_s24 }
 0x5bc   :  { %24140 = vmatmul.mubr.msk.bf16.vlgmr.msra.gmra.mrb[32].mxu1 %vm154_vm1, %v26154_v37 }
 0x5bd   :  { %15286 = vrot.lane.b32.xlu0 %v28319_v35, %s32254_s24  ;;  %11190 = vmatpush1.bf16.msra.mxu1 %v11002_v28  ;;  %v11285_v28 = vsel %vm32260_vm4, %v29141_v57, %v29149_v27  ;;  %v29628_v29 = vpop.permute.xlu0 %12982 }
 0x5be   :  { %15288 = vrot.lane.b32.xlu1 %v28309_v47, %s32254_s24  ;;  %11305 = vmatprep.subr.bf16.mxu1 %v11283_v13  ;;  %v29619_v13 = vpop.permute.xlu1 %12980  ;;  %32262 = vst [vmem:[#allocation15_spill] sm:$0xff] %v29628_v29 }
 0x5bf   :  { %11221 = vmatprep.mubr.bf16.mxu1 %v32227_v17 }
 0x5c1   :  { %15290 = vrot.lane.b32.xlu0 %v28313_v55, %s32254_s24  ;;  %v29644_v29 = vpop.permute.xlu0 %12986 }
 0x5c2   :  { %15292 = vrot.lane.b32.xlu1 %v32227_v17, %s32254_s24  ;;  %32264 = vst [vmem:[#allocation27_spill] sm:$0xff] %v29644_v29 }
 0x5c4   :  { %24141 = vmatmul.mubr.msk.bf16.vlgmr.msra.gmra.mrb[36].mxu1 %vm154_vm1, %v26154_v37  ;;  %v11284_v37 = vsel %vm32263_vm6, %v29123_v49, %v29141_v57  ;;  %vm32266_vm6 = vmmov %vm32260_vm4 }
 0x5c5   :  { %15562 = vrot.lane.b32.xlu0 %v28247_v39, %s26248_s7  ;;  %11306 = vmatpush1.bf16.msra.mxu1 %v11282_v61  ;;  %v11287_v61 = vsel %vm32260_vm4, %v29159_v45, %v29165_v18  ;;  %v11286_v57 = vsel %vm32266_vm6, %v29149_v27, %v29159_v45  ;;  %v29663_v29 = vpop.permute.xlu0 %13258  ;;  %v24271_v45 = vld [vmem:[%s32128_s2 + $0x18] sm:$0xff]  ;;  %vm32269_vm6 = vmmov %vm32260_vm4 }
 0x5c6   :  { %15564 = vrot.lane.b32.xlu1 %v28277_v26, %s26248_s7  ;;  %11348 = vmatprep.subr.bf16.mxu1 %v11285_v28  ;;  %v29639_v28 = vpop.permute.xlu1 %12984 }
 0x5c7   :  { %11337 = vmatprep.mubr.bf16.mxu1 %v32227_v17 }
 0x5c9   :  { %15560 = vrot.lane.b32.xlu0 %v28243_v8, %s26248_s7 }
 0x5ca   :  { %15566 = vrot.lane.b32.xlu1 %v28281_v34, %s26248_s7  ;;  %v29650_v49 = vpop.permute.xlu1 %12988 }
 0x5cb   :  { %32265 = vst [vmem:[#allocation28_spill] sm:$0xff] %v29650_v49  ;;  %v24270_v49 = vld [vmem:[%s32128_s2 + $0x10] sm:$0xff] }
 0x5cc   :  { %24145 = vmatmul.mubr.msk.bf16.vlgmr.msra.gmra.mrb[20].mxu1 %vm154_vm1, %v26155_v60 }
 0x5cd   :  { %15568 = vrot.lane.b32.xlu0 %v28267_v3, %s26248_s7  ;;  %11349 = vmatpush1.bf16.msra.mxu1 %v11284_v37  ;;  %v32267_v37 = vld [vmem:[#allocation16_spill] sm:$0xff] }
 0x5ce   :  { %15570 = vrot.lane.b32.xlu1 %v28272_v7, %s26248_s7  ;;  %11391 = vmatprep.subr.bf16.mxu1 %v11287_v61  ;;  %v11289_v61 = vsel %vm32260_vm4, %v32267_v37, %v29184_v59  ;;  %32268 = vst [vmem:[#allocation16_spill] sm:$0xff] %v29663_v29  ;;  %v29671_v27 = vpop.permute.xlu1 %13260  ;;  %v11291_v29 = vsel %vm32260_vm4, %v29190_v0, %v29203_v48 }
 0x5cf   :  { %11380 = vmatprep.mubr.bf16.mxu1 %v32227_v17 }
 0x5d1   :  { %15572 = vrot.lane.b32.xlu0 %v28317_v10, %s26248_s7 }
 0x5d2   :  { %15574 = vrot.lane.b32.xlu1 %v28319_v35, %s26248_s7 }
 0x5d4   :  { %24146 = vmatmul.mubr.msk.bf16.vlgmr.msra.gmra.mrb[24].mxu1 %vm154_vm1, %v26155_v60 }
 0x5d5   :  { %15576 = vrot.lane.b32.xlu0 %v28309_v47, %s26248_s7  ;;  %11392 = vmatpush1.bf16.msra.mxu1 %v11286_v57  ;;  %v11288_v57 = vsel %vm32269_vm6, %v29165_v18, %v32267_v37  ;;  %v32271_v18 = vld [vmem:[#allocation17_spill] sm:$0xff]  ;;  %vm32272_vm6 = vcmask 7168  }
 0x5d6   :  { %15578 = vrot.lane.b32.xlu1 %v28313_v55, %s26248_s7  ;;  %11434 = vmatprep.subr.bf16.mxu1 %v11289_v61  ;;  %v29680_v61 = vpop.permute.xlu0 %13256  ;;  %v11571_v37 = vsel %vm32272_vm6, %v32271_v18, %v29216_v41  ;;  %vm32273_vm4 = vmmov %vm32272_vm6 }
 0x5d7   :  { %11423 = vmatprep.mubr.bf16.mxu1 %v32227_v17  ;;  %v11570_v48 = vsel %vm32273_vm4, %v29226_v21, %v32271_v18  ;;  %vm32275_vm3 = vmmov %vm32273_vm4  ;;  %v32301_v18 = vld [vmem:[#allocation14_spill] sm:$0xff] }
 0x5d8   :  { %vm32277_vm6 = vmmov %vm32275_vm3 }
 0x5d9   :  { %15580 = vrot.lane.b32.xlu0 %v32227_v17, %s26248_s7  ;;  %v11575_v21 = vsel %vm32277_vm6, %v29248_v52, %v29254_v6  ;;  %vm32278_vm4 = vmmov %vm32275_vm3 }
 0x5da   :  { %15845 = vperm.xlu1 %26078, %v24270_v49   ;;  %v11290_v49 = vsel %vm32270_vm9, %v29184_v59, %v29190_v0  ;;  %v26156_v59 = vld [vmem:[%s32127_s1 + $0x138] sm:$0xff]   ;;  %vm32276_vm9 = vmmov %vm32275_vm3 }
 0x5db   :  { %vm32280_vm6 = vmmov %vm32275_vm3 }
 0x5dc   :  { %24147 = vmatmul.mubr.msk.bf16.vlgmr.msra.gmra.mrb[28].mxu1 %vm154_vm1, %v26155_v60 }
 0x5dd   :  { %15850 = vperm.xlu0 %26077, %v24271_v45   ;;  %11435 = vmatpush1.bf16.msra.mxu1 %v11288_v57  ;;  %v11577_v57 = vsel %vm32278_vm4, %v29267_v46, %v29272_v50  ;;  %vm32282_vm4 = vcmask 1039360  }
 0x5de   :  { %11477 = vmatprep.subr.bf16.mxu1 %v11291_v29  ;;  %11466 = vmatprep.mubr.bf16.mxu1 %v32227_v17  ;;  %v32274_v29 = vld [vmem:[#allocation18_spill] sm:$0xff] }
 0x5df   :  { %v11573_v45 = vsel %vm32275_vm3, %v32274_v29, %v29243_v58  ;;  %v11572_v0 = vsel %vm32276_vm9, %v29216_v41, %v32274_v29  ;;  %vm32279_vm9 = vmmov %vm32275_vm3  ;;  %v32305_v29 = vld [vmem:[#allocation25_spill] sm:$0xff] }
 0x5e0   :  { %v11576_v41 = vsel %vm32279_vm9, %v29254_v6, %v29267_v46  ;;  %vm32283_vm9 = vmmov %vm32282_vm4 }
 0x5e4   :  { %24148 = vmatmul.mubr.msk.bf16.vlgmr.msra.gmra.mrb[32].mxu1 %vm154_vm1, %v26155_v60 }
 0x5e5   :  { %11478 = vmatpush1.bf16.msra.mxu1 %v11290_v49  ;;  %11509 = vmatprep.mubr.bf16.mxu1 %v32227_v17  ;;  %v11579_v49 = vsel %vm32280_vm6, %v29280_v4, %v29290_v23  ;;  %vm32284_vm6 = vmmov %vm32282_vm4  ;;  %v32292_v23 = vld [vmem:[#allocation21_spill] sm:$0xff] }
 0x5e6   :  { %11593 = vmatprep.subr.bf16.mxu1 %v11571_v37 }
 0x5ec   :  { %24149 = vmatmul.mubr.msk.bf16.vlgmr.msra.gmra.mrb[36].mxu1 %vm154_vm1, %v26155_v60  ;;  %v11574_v60 = vsel %vm32275_vm3, %v29243_v58, %v29248_v52  ;;  %v11578_v52 = vsel %vm32275_vm3, %v29272_v50, %v29280_v4  ;;  %v26157_v58 = vld [vmem:[%s32127_s1 + $0x140] sm:$0xff]   ;;  %vm32285_vm3 = vmmov %vm32282_vm4  ;;  %v12415_v4 = vsel %vm4500_vm15, %v29388_v22, %v29398_v38 }
 0x5ed   :  { %11594 = vmatpush1.bf16.msra.mxu1 %v11570_v48  ;;  %11625 = vmatprep.mubr.bf16.mxu1 %v32227_v17  ;;  %v12132_v6 = vsel %vm32285_vm3, %v29347_v40, %v29357_v11  ;;  %v32304_v48 = vld [vmem:[#allocation26_spill] sm:$0xff] }
 0x5ee   :  { %11636 = vmatprep.subr.bf16.mxu1 %v11573_v45 }
 0x5f4   :  { %24153 = vmatmul.mubr.msk.bf16.vlgmr.msra.gmra.mrb[20].mxu1 %vm154_vm1, %v26156_v59 }
 0x5f5   :  { %11637 = vmatpush1.bf16.msra.mxu1 %v11572_v0  ;;  %11668 = vmatprep.mubr.bf16.mxu1 %v32227_v17 }
 0x5f6   :  { %11679 = vmatprep.subr.bf16.mxu1 %v11575_v21 }
 0x5fc   :  { %24154 = vmatmul.mubr.msk.bf16.vlgmr.msra.gmra.mrb[24].mxu1 %vm154_vm1, %v26156_v59 }
 0x5fd   :  { %11680 = vmatpush1.bf16.msra.mxu1 %v11574_v60  ;;  %11711 = vmatprep.mubr.bf16.mxu1 %v32227_v17  ;;  %v32313_v60 = vld [vmem:[#allocation15_spill] sm:$0xff] }
 0x5fe   :  { %11722 = vmatprep.subr.bf16.mxu1 %v11577_v57 }
 0x604   :  { %24155 = vmatmul.mubr.msk.bf16.vlgmr.msra.gmra.mrb[28].mxu1 %vm154_vm1, %v26156_v59 }
 0x605   :  { %11723 = vmatpush1.bf16.msra.mxu1 %v11576_v41  ;;  %11754 = vmatprep.mubr.bf16.mxu1 %v32227_v17  ;;  %v32316_v41 = vld [vmem:[#allocation27_spill] sm:$0xff] }
 0x606   :  { %11765 = vmatprep.subr.bf16.mxu1 %v11579_v49 }
 0x60c   :  { %24156 = vmatmul.mubr.msk.bf16.vlgmr.msra.gmra.mrb[32].mxu1 %vm154_vm1, %v26156_v59 }
 0x60d   :  { %11766 = vmatpush1.bf16.msra.mxu1 %v11578_v52  ;;  %11797 = vmatprep.mubr.bf16.mxu1 %v32227_v17 }
 0x60e   :  { %11839 = vmatprep.subr.bf16.mxu1 %v28247_v39 }
 0x614   :  { %24157 = vmatmul.mubr.msk.bf16.vlgmr.msra.gmra.mrb[36].mxu1 %vm154_vm1, %v26156_v59 }
 0x615   :  { %11840 = vmatpush1.bf16.msra.mxu1 %v28243_v8  ;;  %11871 = vmatprep.mubr.bf16.mxu1 %v32227_v17  ;;  %v32281_v8 = vld [vmem:[#allocation19_spill] sm:$0xff] }
 0x616   :  { %11882 = vmatprep.subr.bf16.mxu1 %v28281_v34  ;;  %v12127_v39 = vsel %vm32282_vm4, %v32281_v8, %v29310_v16  ;;  %v12128_v34 = vsel %vm32285_vm3, %v29310_v16, %v29321_v1  ;;  %vm32287_vm4 = vmmov %vm32285_vm3  ;;  %v12417_v16 = vsel %vm4500_vm15, %v29414_v43, %v29424_v12 }
 0x61c   :  { %24161 = vmatmul.mubr.msk.bf16.vlgmr.msra.gmra.mrb[20].mxu1 %vm154_vm1, %v26157_v58 }
 0x61d   :  { %11883 = vmatpush1.bf16.msra.mxu1 %v28277_v26  ;;  %11914 = vmatprep.mubr.bf16.mxu1 %v32227_v17  ;;  %v26158_v26 = vld [vmem:[%s32127_s1 + $0x148] sm:$0xff]  }
 0x61e   :  { %11925 = vmatprep.subr.bf16.mxu1 %v28272_v7  ;;  %v12129_v7 = vsel %vm32284_vm6, %v29321_v1, %v29334_v33  ;;  %vm32289_vm6 = vmmov %vm32285_vm3  ;;  %v26159_v1 = vld [vmem:[%s32127_s1 + $0x150] sm:$0xff]  }
 0x624   :  { %24162 = vmatmul.mubr.msk.bf16.vlgmr.msra.gmra.mrb[24].mxu1 %vm154_vm1, %v26157_v58 }
 0x625   :  { %11926 = vmatpush1.bf16.msra.mxu1 %v28267_v3  ;;  %11957 = vmatprep.mubr.bf16.mxu1 %v32227_v17  ;;  %v12126_v3 = vsel %vm32283_vm9, %v29315_v31, %v32281_v8  ;;  %vm32288_vm9 = vmmov %vm32285_vm3  ;;  %v12414_v31 = vsel %vm4500_vm15, %v32292_v23, %v29388_v22  ;;  %v12423_v22 = vsel %vm4500_vm15, %v29465_v9, %v29470_v32  ;;  %v13263_v8 = vpop.permute.xlu1 %13262 }
 0x626   :  { %11968 = vmatprep.subr.bf16.mxu1 %v28319_v35  ;;  %v12133_v35 = vsel %vm32289_vm6, %v29357_v11, %v29363_v62  ;;  %v32293_v11 = vld [vmem:[#allocation22_spill] sm:$0xff]  ;;  %vm32294_vm6 = vcmask 965632  }
 0x62c   :  { %24163 = vmatmul.mubr.msk.bf16.vlgmr.msra.gmra.mrb[28].mxu1 %vm154_vm1, %v26157_v58 }
 0x62d   :  { %11969 = vmatpush1.bf16.msra.mxu1 %v28317_v10  ;;  %12000 = vmatprep.mubr.bf16.mxu1 %v32227_v17 }
 0x62e   :  { %12011 = vmatprep.subr.bf16.mxu1 %v28313_v55 }
 0x634   :  { %24164 = vmatmul.mubr.msk.bf16.vlgmr.msra.gmra.mrb[32].mxu1 %vm154_vm1, %v26157_v58 }
 0x635   :  { %12012 = vmatpush1.bf16.msra.mxu1 %v28309_v47  ;;  %12043 = vmatprep.mubr.bf16.mxu1 %v32227_v17  ;;  %v32286_v47 = vld [vmem:[#allocation20_spill] sm:$0xff] }
 0x636   :  { %12149 = vmatprep.subr.bf16.mxu1 %v12127_v39  ;;  %v12131_v55 = vsel %vm32287_vm4, %v32286_v47, %v29347_v40  ;;  %v12130_v10 = vsel %vm32288_vm9, %v29334_v33, %v32286_v47  ;;  %vm32290_vm4 = vmmov %vm32285_vm3  ;;  %v12416_v33 = vsel %vm4500_vm15, %v29398_v38, %v29414_v43  ;;  %v12419_v40 = vsel %vm4500_vm15, %v32293_v11, %v29441_v44 }
 0x637   :  { %v12135_v46 = vsel %vm32290_vm4, %v29374_v5, %v29379_v25  ;;  %vm32291_vm9 = vmmov %vm32285_vm3  ;;  %v12420_v25 = vsel %vm4500_vm15, %v29441_v44, %v29446_v54  ;;  %v12422_v38 = vsel %vm4500_vm15, %v29452_v14, %v29465_v9  ;;  %v32297_v44 = vld [vmem:[#allocation23_spill] sm:$0xff] }
 0x638   :  { %v12134_v50 = vsel %vm32291_vm9, %v29363_v62, %v29374_v5  ;;  %v12418_v62 = vsel %vm4500_vm15, %v29424_v12, %v32293_v11  ;;  %v12421_v5 = vsel %vm4500_vm15, %v29446_v54, %v29452_v14  ;;  %v12703_v12 = vsel %vm32294_vm6, %v29478_v2, %v29488_v30  ;;  %vm32295_vm3 = vmmov %vm32294_vm6  ;;  %v32296_v54 = vld [vmem:[#allocation24_spill] sm:$0xff]  ;;  %v26160_v14 = vld [vmem:[%s32127_s1 + $0x158] sm:$0xff]  }
 0x639   :  { %v12702_v43 = vsel %vm32295_vm3, %v29494_v42, %v29478_v2  ;;  %vm32298_vm4 = vmmov %vm32295_vm3  ;;  %v12706_v42 = vsel %vm32295_vm3, %v32296_v54, %v29519_v56 }
 0x63a   :  { %v12705_v32 = vsel %vm32298_vm4, %v32297_v44, %v32296_v54  ;;  %vm32299_vm9 = vmmov %vm32295_vm3 }
 0x63b   :  { %v12704_v9 = vsel %vm32299_vm9, %v29488_v30, %v32297_v44  ;;  %vm32300_vm6 = vmmov %vm32295_vm3 }
 0x63c   :  { %24165 = vmatmul.mubr.msk.bf16.vlgmr.msra.gmra.mrb[36].mxu1 %vm154_vm1, %v26157_v58  ;;  %v12707_v2 = vsel %vm32300_vm6, %v29519_v56, %v29532_v19  ;;  %vm32302_vm4 = vmmov %vm32295_vm3  ;;  %v12710_v56 = vsel %vm32295_vm3, %v29545_v36, %v32305_v29 }
 0x63d   :  { %12150 = vmatpush1.bf16.msra.mxu1 %v12126_v3  ;;  %12181 = vmatprep.mubr.bf16.mxu1 %v32227_v17  ;;  %v12709_v37 = vsel %vm32302_vm4, %v32301_v18, %v29545_v36  ;;  %vm32303_vm9 = vmmov %vm32295_vm3  ;;  %vm32307_vm4 = vcmask 957440   ;;  %v26161_v36 = vld [vmem:[%s32127_s1 + $0x160] sm:$0xff]  }
 0x63e   :  { %12192 = vmatprep.subr.bf16.mxu1 %v12129_v7  ;;  %v12708_v30 = vsel %vm32303_vm9, %v29532_v19, %v32301_v18  ;;  %vm32306_vm6 = vmmov %vm32295_vm3  ;;  %v12991_v59 = vsel %vm32307_vm4, %v29572_v53, %v29577_v24  ;;  %v13267_v7 = vpop.permute.xlu1 %13266 }
 0x63f   :  { %v12711_v45 = vsel %vm32306_vm6, %v32305_v29, %v32304_v48  ;;  %vm32308_vm9 = vmmov %vm32307_vm4 }
 0x640   :  { %v12990_v19 = vsel %vm32308_vm9, %v29583_v51, %v29572_v53  ;;  %vm32309_vm6 = vmmov %vm32307_vm4 }
 0x641   :  { %v12993_v0 = vsel %vm32309_vm6, %v29596_v20, %v29601_v15  ;;  %vm32310_vm3 = vmmov %vm32307_vm4 }
 0x642   :  { %v12992_v53 = vsel %vm32310_vm3, %v29577_v24, %v29596_v20  ;;  %vm32311_vm4 = vmmov %vm32310_vm3  ;;  %v12996_v24 = vsel %vm32310_vm3, %v29619_v13, %v32313_v60  ;;  %v32315_v20 = vld [vmem:[#allocation28_spill] sm:$0xff] }
 0x643   :  { %v12995_v51 = vsel %vm32311_vm4, %v29609_v63, %v29619_v13  ;;  %vm32312_vm9 = vmmov %vm32310_vm3  ;;  %v13265_v13 = vpop.permute.xlu0 %13264 }
 0x644   :  { %24169 = vmatmul.mubr.msk.bf16.vlgmr.msra.gmra.mrb[20].mxu1 %vm154_vm1, %v26158_v26  ;;  %v12994_v21 = vsel %vm32312_vm9, %v29601_v15, %v29609_v63  ;;  %vm32314_vm6 = vmmov %vm32310_vm3  ;;  %v32319_v63 = vld [vmem:[#allocation16_spill] sm:$0xff]  ;;  %v13281_v39 = vsel %vm5367_vm12, %v13263_v8, %v13265_v13 }
 0x645   :  { %12193 = vmatpush1.bf16.msra.mxu1 %v12128_v34  ;;  %12224 = vmatprep.mubr.bf16.mxu1 %v32227_v17  ;;  %v12997_v57 = vsel %vm32314_vm6, %v32313_v60, %v29639_v28  ;;  %vm32317_vm4 = vmmov %vm32310_vm3  ;;  %v13279_v52 = vsel %vm5367_vm12, %v32319_v63, %v29671_v27  ;;  %v13278_v58 = vsel %vm5367_vm12, %v29680_v61, %v32319_v63  ;;  %v13271_v34 = vpop.permute.xlu1 %13270  ;;  %vm32320_vm6 = vcmask 310272  }
 0x646   :  { %12235 = vmatprep.subr.bf16.mxu1 %v12131_v55  ;;  %v12999_v49 = vsel %vm32317_vm4, %v32316_v41, %v32315_v20  ;;  %vm32318_vm9 = vmmov %vm32310_vm3  ;;  %v13280_v61 = vsel %vm5367_vm12, %v29671_v27, %v13263_v8  ;;  %v13282_v55 = vsel %vm5367_vm12, %v13265_v13, %v13267_v7 }
 0x647   :  { %v12998_v15 = vsel %vm32318_vm9, %v29639_v28, %v32316_v41  ;;  %v26162_v28 = vld [vmem:[%s32127_s1 + $0x168] sm:$0xff]   ;;  %v13269_v3 = vpop.permute.xlu0 %13268  ;;  %vm32321_vm3 = vmmov %vm32320_vm6 }
 0x648   :  { %vm32322_vm4 = vmmov %vm32321_vm3 }
 0x649   :  { %vm32323_vm9 = vmmov %vm32321_vm3 }
 0x64b   :  { %v13273_v47 = vpop.permute.xlu0 %13272 }
 0x64c   :  { %24170 = vmatmul.mubr.msk.bf16.vlgmr.msra.gmra.mrb[24].mxu1 %vm154_vm1, %v26158_v26 }
 0x64d   :  { %12236 = vmatpush1.bf16.msra.mxu1 %v12130_v10  ;;  %12267 = vmatprep.mubr.bf16.mxu1 %v32227_v17  ;;  %v13285_v10 = vsel %vm5367_vm12, %v13271_v34, %v13273_v47 }
 0x64e   :  { %12278 = vmatprep.subr.bf16.mxu1 %v12133_v35  ;;  %v13275_v35 = vpop.permute.xlu1 %13274 }
 0x64f   :  { %v13277_v27 = vpop.permute.xlu0 %13276 }
 0x654   :  { %24171 = vmatmul.mubr.msk.bf16.vlgmr.msra.gmra.mrb[28].mxu1 %vm154_vm1, %v26158_v26 }
 0x655   :  { %12279 = vmatpush1.bf16.msra.mxu1 %v12132_v6  ;;  %12310 = vmatprep.mubr.bf16.mxu1 %v32227_v17  ;;  %v13284_v6 = vsel %vm5367_vm12, %v13269_v3, %v13271_v34 }
 0x656   :  { %12321 = vmatprep.subr.bf16.mxu1 %v12135_v46  ;;  %v13287_v46 = vsel %vm5367_vm12, %v13275_v35, %v13277_v27 }
 0x65c   :  { %24172 = vmatmul.mubr.msk.bf16.vlgmr.msra.gmra.mrb[32].mxu1 %vm154_vm1, %v26158_v26 }
 0x65d   :  { %12322 = vmatpush1.bf16.msra.mxu1 %v12134_v50  ;;  %12353 = vmatprep.mubr.bf16.mxu1 %v32227_v17  ;;  %v13547_v50 = vpop.permute.xlu1 %13546 }
 0x65e   :  { %12437 = vmatprep.subr.bf16.mxu1 %v12415_v4  ;;  %v13549_v4 = vpop.permute.xlu0 %13548 }
 0x661   :  { %v13545_v23 = vpop.permute.xlu1 %13544 }
 0x662   :  { %v13566_v11 = vsel %vm32321_vm3, %v13545_v23, %v13547_v50 }
 0x664   :  { %24173 = vmatmul.mubr.msk.bf16.vlgmr.msra.gmra.mrb[36].mxu1 %vm154_vm1, %v26158_v26  ;;  %v13283_v26 = vsel %vm5367_vm12, %v13267_v7, %v13269_v3 }
 0x665   :  { %12438 = vmatpush1.bf16.msra.mxu1 %v12414_v31  ;;  %12469 = vmatprep.mubr.bf16.mxu1 %v32227_v17  ;;  %v13286_v31 = vsel %vm5367_vm12, %v13273_v47, %v13275_v35 }
 0x666   :  { %12480 = vmatprep.subr.bf16.mxu1 %v12417_v16  ;;  %v13567_v16 = vsel %vm32320_vm6, %v13547_v50, %v13549_v4  ;;  %vm32324_vm6 = vmmov %vm32321_vm3 }
 0x66c   :  { %24177 = vmatmul.mubr.msk.bf16.vlgmr.msra.gmra.mrb[20].mxu1 %vm154_vm1, %v26159_v1 }
 0x66d   :  { %12481 = vmatpush1.bf16.msra.mxu1 %v12416_v33  ;;  %12512 = vmatprep.mubr.bf16.mxu1 %v32227_v17  ;;  %v13553_v33 = vpop.permute.xlu1 %13552 }
 0x66e   :  { %12523 = vmatprep.subr.bf16.mxu1 %v12419_v40 }
 0x674   :  { %24178 = vmatmul.mubr.msk.bf16.vlgmr.msra.gmra.mrb[24].mxu1 %vm154_vm1, %v26159_v1 }
 0x675   :  { %12524 = vmatpush1.bf16.msra.mxu1 %v12418_v62  ;;  %12555 = vmatprep.mubr.bf16.mxu1 %v32227_v17  ;;  %v26163_v62 = vld [vmem:[%s32127_s1 + $0x170] sm:$0xff]  }
 0x676   :  { %12566 = vmatprep.subr.bf16.mxu1 %v12421_v5 }
 0x67c   :  { %24179 = vmatmul.mubr.msk.bf16.vlgmr.msra.gmra.mrb[28].mxu1 %vm154_vm1, %v26159_v1 }
 0x67d   :  { %12567 = vmatpush1.bf16.msra.mxu1 %v12420_v25  ;;  %12598 = vmatprep.mubr.bf16.mxu1 %v32227_v17  ;;  %v13557_v25 = vpop.permute.xlu1 %13556 }
 0x67e   :  { %12609 = vmatprep.subr.bf16.mxu1 %v12423_v22 }
 0x684   :  { %24180 = vmatmul.mubr.msk.bf16.vlgmr.msra.gmra.mrb[32].mxu1 %vm154_vm1, %v26159_v1 }
 0x685   :  { %12610 = vmatpush1.bf16.msra.mxu1 %v12422_v38  ;;  %12641 = vmatprep.mubr.bf16.mxu1 %v32227_v17 }
 0x686   :  { %12725 = vmatprep.subr.bf16.mxu1 %v12703_v12 }
 0x68c   :  { %24181 = vmatmul.mubr.msk.bf16.vlgmr.msra.gmra.mrb[36].mxu1 %vm154_vm1, %v26159_v1  ;;  %v13551_v1 = vpop.permute.xlu0 %13550 }
 0x68d   :  { %12726 = vmatpush1.bf16.msra.mxu1 %v12702_v43  ;;  %12757 = vmatprep.mubr.bf16.mxu1 %v32227_v17  ;;  %v13569_v40 = vsel %vm32322_vm4, %v13551_v1, %v13553_v33  ;;  %v13568_v22 = vsel %vm32323_vm9, %v13549_v4, %v13551_v1  ;;  %v13561_v43 = vpop.permute.xlu1 %13560  ;;  %vm32325_vm4 = vmmov %vm32321_vm3 }
 0x68e   :  { %12768 = vmatprep.subr.bf16.mxu1 %v12705_v32  ;;  %vm32326_vm9 = vmmov %vm32321_vm3 }
 0x690   :  { %v13555_v5 = vpop.permute.xlu0 %13554 }
 0x691   :  { %v13571_v38 = vsel %vm32324_vm6, %v13555_v5, %v13557_v25  ;;  %v13570_v54 = vsel %vm32321_vm3, %v13553_v33, %v13555_v5  ;;  %vm32327_vm6 = vmmov %vm32321_vm3 }
 0x694   :  { %24185 = vmatmul.mubr.msk.bf16.vlgmr.msra.gmra.mrb[20].mxu1 %vm154_vm1, %v26160_v14  ;;  %v13559_v12 = vpop.permute.xlu0 %13558 }
 0x695   :  { %12769 = vmatpush1.bf16.msra.mxu1 %v12704_v9  ;;  %12800 = vmatprep.mubr.bf16.mxu1 %v32227_v17  ;;  %v13573_v44 = vsel %vm32325_vm4, %v13559_v12, %v13561_v43  ;;  %v13572_v9 = vsel %vm32326_vm9, %v13557_v25, %v13559_v12  ;;  %vm32328_vm4 = vcmask 302080  }
 0x696   :  { %12811 = vmatprep.subr.bf16.mxu1 %v12707_v2  ;;  %vm32329_vm9 = vmmov %vm32328_vm4 }
 0x698   :  { %v13563_v32 = vpop.permute.xlu0 %13562 }
 0x69c   :  { %24186 = vmatmul.mubr.msk.bf16.vlgmr.msra.gmra.mrb[24].mxu1 %vm154_vm1, %v26160_v14 }
 0x69d   :  { %12812 = vmatpush1.bf16.msra.mxu1 %v12706_v42  ;;  %12843 = vmatprep.mubr.bf16.mxu1 %v32227_v17  ;;  %v13835_v42 = vpop.permute.xlu0 %13834 }
 0x69e   :  { %12854 = vmatprep.subr.bf16.mxu1 %v12709_v37 }
 0x6a1   :  { %v13833_v37 = vpop.permute.xlu0 %13832 }
 0x6a4   :  { %24187 = vmatmul.mubr.msk.bf16.vlgmr.msra.gmra.mrb[28].mxu1 %vm154_vm1, %v26160_v14 }
 0x6a5   :  { %12855 = vmatpush1.bf16.msra.mxu1 %v12708_v30  ;;  %12886 = vmatprep.mubr.bf16.mxu1 %v32227_v17  ;;  %v13574_v30 = vsel %vm32321_vm3, %v13561_v43, %v13563_v32  ;;  %v13841_v29 = vpop.permute.xlu0 %13840  ;;  %vm32331_vm3 = vmmov %vm32328_vm4 }
 0x6a6   :  { %12897 = vmatprep.subr.bf16.mxu1 %v12711_v45  ;;  %v13854_v45 = vsel %vm32329_vm9, %v13833_v37, %v13835_v42  ;;  %vm32333_vm9 = vmmov %vm32331_vm3 }
 0x6ac   :  { %24188 = vmatmul.mubr.msk.bf16.vlgmr.msra.gmra.mrb[32].mxu1 %vm154_vm1, %v26160_v14 }
 0x6ad   :  { %12898 = vmatpush1.bf16.msra.mxu1 %v12710_v56  ;;  %12929 = vmatprep.mubr.bf16.mxu1 %v32227_v17 }
 0x6ae   :  { %13013 = vmatprep.subr.bf16.mxu1 %v12991_v59 }
 0x6b4   :  { %24189 = vmatmul.mubr.msk.bf16.vlgmr.msra.gmra.mrb[36].mxu1 %vm154_vm1, %v26160_v14  ;;  %v13565_v14 = vpop.permute.xlu1 %13564 }
 0x6b5   :  { %13014 = vmatpush1.bf16.msra.mxu1 %v12990_v19  ;;  %13045 = vmatprep.mubr.bf16.mxu1 %v32227_v17  ;;  %v13575_v2 = vsel %vm32327_vm6, %v13563_v32, %v13565_v14  ;;  %vm32330_vm6 = vmmov %vm32328_vm4  ;;  %v26164_v19 = vld [vmem:[%s32127_s1 + $0x178] sm:$0xff]  }
 0x6b6   :  { %13056 = vmatprep.subr.bf16.mxu1 %v12993_v0  ;;  %v13845_v0 = vpop.permute.xlu0 %13844 }
 0x6b8   :  { %v13837_v18 = vpop.permute.xlu1 %13836 }
 0x6b9   :  { %v13855_v48 = vsel %vm32328_vm4, %v13835_v42, %v13837_v18  ;;  %vm32332_vm4 = vmmov %vm32331_vm3 }
 0x6ba   :  { %v13849_v60 = vpop.permute.xlu0 %13848 }
 0x6bc   :  { %24193 = vmatmul.mubr.msk.bf16.vlgmr.msra.gmra.mrb[20].mxu1 %vm154_vm1, %v26161_v36  ;;  %v13839_v56 = vpop.permute.xlu1 %13838 }
 0x6bd   :  { %13057 = vmatpush1.bf16.msra.mxu1 %v12992_v53  ;;  %13088 = vmatprep.mubr.bf16.mxu1 %v32227_v17  ;;  %v13857_v59 = vsel %vm32330_vm6, %v13839_v56, %v13841_v29  ;;  %v13856_v53 = vsel %vm32331_vm3, %v13837_v18, %v13839_v56  ;;  %vm32334_vm6 = vmmov %vm32331_vm3 }
 0x6be   :  { %13099 = vmatprep.subr.bf16.mxu1 %v12995_v51  ;;  %v13853_v41 = vpop.permute.xlu0 %13852 }
 0x6c4   :  { %24194 = vmatmul.mubr.msk.bf16.vlgmr.msra.gmra.mrb[24].mxu1 %vm154_vm1, %v26161_v36 }
 0x6c5   :  { %13100 = vmatpush1.bf16.msra.mxu1 %v12994_v21  ;;  %13131 = vmatprep.mubr.bf16.mxu1 %v32227_v17 }
 0x6c6   :  { %13142 = vmatprep.subr.bf16.mxu1 %v12997_v57 }
 0x6cc   :  { %24195 = vmatmul.mubr.msk.bf16.vlgmr.msra.gmra.mrb[28].mxu1 %vm154_vm1, %v26161_v36 }
 0x6cd   :  { %13143 = vmatpush1.bf16.msra.mxu1 %v12996_v24  ;;  %13174 = vmatprep.mubr.bf16.mxu1 %v32227_v17 }
 0x6ce   :  { %13185 = vmatprep.subr.bf16.mxu1 %v12999_v49 }
 0x6d4   :  { %24196 = vmatmul.mubr.msk.bf16.vlgmr.msra.gmra.mrb[32].mxu1 %vm154_vm1, %v26161_v36 }
 0x6d5   :  { %13186 = vmatpush1.bf16.msra.mxu1 %v12998_v15  ;;  %13217 = vmatprep.mubr.bf16.mxu1 %v32227_v17 }
 0x6d6   :  { %13301 = vmatprep.subr.bf16.mxu1 %v13279_v52  ;;  %v14125_v52 = vpop.permute.xlu0 %14124 }
 0x6dc   :  { %24197 = vmatmul.mubr.msk.bf16.vlgmr.msra.gmra.mrb[36].mxu1 %vm154_vm1, %v26161_v36  ;;  %v13843_v36 = vpop.permute.xlu1 %13842 }
 0x6dd   :  { %13302 = vmatpush1.bf16.msra.mxu1 %v13278_v58  ;;  %13333 = vmatprep.mubr.bf16.mxu1 %v32227_v17  ;;  %v13859_v51 = vsel %vm32332_vm4, %v13843_v36, %v13845_v0  ;;  %v13858_v57 = vsel %vm32333_vm9, %v13841_v29, %v13843_v36  ;;  %vm32335_vm4 = vmmov %vm32331_vm3 }
 0x6de   :  { %13344 = vmatprep.subr.bf16.mxu1 %v13281_v39  ;;  %vm32336_vm9 = vmmov %vm32331_vm3  ;;  %v14127_v39 = vpop.permute.xlu0 %14126 }
 0x6df   :  { %v14144_v47 = vsel %vm6234_vm7, %v14125_v52, %v14127_v39 }
 0x6e0   :  { %v13847_v21 = vpop.permute.xlu1 %13846 }
 0x6e1   :  { %v13861_v24 = vsel %vm32334_vm6, %v13847_v21, %v13849_v60  ;;  %v13860_v49 = vsel %vm32331_vm3, %v13845_v0, %v13847_v21  ;;  %vm32337_vm6 = vcmask 228352  }
 0x6e2   :  { %vm32338_vm3 = vmmov %vm32337_vm6 }
 0x6e4   :  { %24201 = vmatmul.mubr.msk.bf16.vlgmr.msra.gmra.mrb[20].mxu1 %vm154_vm1, %v26162_v28  ;;  %v13851_v20 = vpop.permute.xlu1 %13850 }
 0x6e5   :  { %13345 = vmatpush1.bf16.msra.mxu1 %v13280_v61  ;;  %13376 = vmatprep.mubr.bf16.mxu1 %v32227_v17  ;;  %v13863_v15 = vsel %vm32335_vm4, %v13851_v20, %v13853_v41  ;;  %v13862_v58 = vsel %vm32336_vm9, %v13849_v60, %v13851_v20  ;;  %v26165_v61 = vld [vmem:[%s32127_s1 + $0x180] sm:$0xff]   ;;  %vm32339_vm4 = vmmov %vm32338_vm3 }
 0x6e6   :  { %13387 = vmatprep.subr.bf16.mxu1 %v13283_v26  ;;  %v14131_v26 = vpop.permute.xlu0 %14130  ;;  %vm32340_vm9 = vmmov %vm32338_vm3 }
 0x6e8   :  { %v14123_v63 = vpop.permute.xlu1 %14122 }
 0x6e9   :  { %v14143_v8 = vsel %vm6234_vm7, %v14123_v63, %v14125_v52 }
 0x6ec   :  { %24202 = vmatmul.mubr.msk.bf16.vlgmr.msra.gmra.mrb[24].mxu1 %vm154_vm1, %v26162_v28  ;;  %v14121_v13 = vpop.permute.xlu1 %14120 }
 0x6ed   :  { %13388 = vmatpush1.bf16.msra.mxu1 %v13282_v55  ;;  %13419 = vmatprep.mubr.bf16.mxu1 %v32227_v17  ;;  %v14142_v3 = vsel %vm6234_vm7, %v14121_v13, %v14123_v63 }
 0x6ee   :  { %13430 = vmatprep.subr.bf16.mxu1 %v13285_v10  ;;  %v14135_v10 = vpop.permute.xlu0 %14134 }
 0x6f4   :  { %24203 = vmatmul.mubr.msk.bf16.vlgmr.msra.gmra.mrb[28].mxu1 %vm154_vm1, %v26162_v28 }
 0x6f5   :  { %13431 = vmatpush1.bf16.msra.mxu1 %v13284_v6  ;;  %13462 = vmatprep.mubr.bf16.mxu1 %v32227_v17 }
 0x6f6   :  { %13473 = vmatprep.subr.bf16.mxu1 %v13287_v46  ;;  %v14139_v46 = vpop.permute.xlu0 %14138 }
 0x6fc   :  { %24204 = vmatmul.mubr.msk.bf16.vlgmr.msra.gmra.mrb[32].mxu1 %vm154_vm1, %v26162_v28 }
 0x6fd   :  { %13474 = vmatpush1.bf16.msra.mxu1 %v13286_v31  ;;  %13505 = vmatprep.mubr.bf16.mxu1 %v32227_v17  ;;  %v14411_v31 = vpop.permute.xlu0 %14410 }
 0x6fe   :  { %13589 = vmatprep.subr.bf16.mxu1 %v13567_v16 }
 0x701   :  { %v14409_v1 = vpop.permute.xlu0 %14408 }
 0x704   :  { %24205 = vmatmul.mubr.msk.bf16.vlgmr.msra.gmra.mrb[36].mxu1 %vm154_vm1, %v26162_v28  ;;  %v14129_v28 = vpop.permute.xlu1 %14128 }
 0x705   :  { %13590 = vmatpush1.bf16.msra.mxu1 %v13566_v11  ;;  %13621 = vmatprep.mubr.bf16.mxu1 %v32227_v17  ;;  %v14145_v7 = vsel %vm6234_vm7, %v14127_v39, %v14129_v28  ;;  %v14146_v27 = vsel %vm6234_vm7, %v14129_v28, %v14131_v26 }
 0x706   :  { %13632 = vmatprep.subr.bf16.mxu1 %v13569_v40  ;;  %v14417_v40 = vpop.permute.xlu0 %14416 }
 0x708   :  { %v14133_v34 = vpop.permute.xlu1 %14132 }
 0x709   :  { %v14147_v55 = vsel %vm6234_vm7, %v14131_v26, %v14133_v34  ;;  %v14148_v4 = vsel %vm6234_vm7, %v14133_v34, %v14135_v10 }
 0x70c   :  { %24209 = vmatmul.mubr.msk.bf16.vlgmr.msra.gmra.mrb[20].mxu1 %vm154_vm1, %v26163_v62  ;;  %v14137_v35 = vpop.permute.xlu1 %14136 }
 0x70d   :  { %13633 = vmatpush1.bf16.msra.mxu1 %v13568_v22  ;;  %13664 = vmatprep.mubr.bf16.mxu1 %v32227_v17  ;;  %v14149_v6 = vsel %vm6234_vm7, %v14135_v10, %v14137_v35  ;;  %v14150_v33 = vsel %vm6234_vm7, %v14137_v35, %v14139_v46  ;;  %v26166_v22 = vld [vmem:[%s32127_s1 + $0x188] sm:$0xff]  }
 0x70e   :  { %13675 = vmatprep.subr.bf16.mxu1 %v13571_v38  ;;  %v14421_v38 = vpop.permute.xlu0 %14420 }
 0x710   :  { %v14141_v50 = vpop.permute.xlu1 %14140 }
 0x711   :  { %v14151_v23 = vsel %vm6234_vm7, %v14139_v46, %v14141_v50 }
 0x712   :  { %v14425_v32 = vpop.permute.xlu0 %14424 }
 0x714   :  { %24210 = vmatmul.mubr.msk.bf16.vlgmr.msra.gmra.mrb[24].mxu1 %vm154_vm1, %v26163_v62  ;;  %v14413_v16 = vpop.permute.xlu1 %14412 }
 0x715   :  { %13676 = vmatpush1.bf16.msra.mxu1 %v13570_v54  ;;  %13707 = vmatprep.mubr.bf16.mxu1 %v32227_v17  ;;  %v14431_v11 = vsel %vm32337_vm6, %v14411_v31, %v14413_v16  ;;  %vm32341_vm6 = vmmov %vm32338_vm3 }
 0x716   :  { %13718 = vmatprep.subr.bf16.mxu1 %v13573_v44  ;;  %v14429_v42 = vpop.permute.xlu0 %14428 }
 0x718   :  { %v14415_v5 = vpop.permute.xlu1 %14414 }
 0x719   :  { %v14433_v25 = vsel %vm32339_vm4, %v14415_v5, %v14417_v40  ;;  %v14432_v43 = vsel %vm32340_vm9, %v14413_v16, %v14415_v5  ;;  %vm32342_vm4 = vmmov %vm32338_vm3 }
 0x71a   :  { %vm32343_vm9 = vmmov %vm32338_vm3 }
 0x71c   :  { %24211 = vmatmul.mubr.msk.bf16.vlgmr.msra.gmra.mrb[28].mxu1 %vm154_vm1, %v26163_v62  ;;  %v14419_v12 = vpop.permute.xlu1 %14418 }
 0x71d   :  { %13719 = vmatpush1.bf16.msra.mxu1 %v13572_v9  ;;  %13750 = vmatprep.mubr.bf16.mxu1 %v32227_v17  ;;  %v14435_v54 = vsel %vm32341_vm6, %v14419_v12, %v14421_v38  ;;  %v14434_v14 = vsel %vm32338_vm3, %v14417_v40, %v14419_v12  ;;  %vm32344_vm6 = vmmov %vm32338_vm3 }
 0x71e   :  { %13761 = vmatprep.subr.bf16.mxu1 %v13575_v2 }
 0x720   :  { %v14423_v44 = vpop.permute.xlu1 %14422 }
 0x721   :  { %v14437_v9 = vsel %vm32342_vm4, %v14423_v44, %v14425_v32  ;;  %v14436_v18 = vsel %vm32343_vm9, %v14421_v38, %v14423_v44  ;;  %vm32345_vm4 = vcmask 220160  }
 0x722   :  { %vm32346_vm9 = vmmov %vm32345_vm4 }
 0x724   :  { %24212 = vmatmul.mubr.msk.bf16.vlgmr.msra.gmra.mrb[32].mxu1 %vm154_vm1, %v26163_v62  ;;  %v14427_v2 = vpop.permute.xlu1 %14426 }
 0x725   :  { %13762 = vmatpush1.bf16.msra.mxu1 %v13574_v30  ;;  %13793 = vmatprep.mubr.bf16.mxu1 %v32227_v17  ;;  %v14439_v37 = vsel %vm32344_vm6, %v14427_v2, %v14429_v42  ;;  %vm32347_vm6 = vmmov %vm32345_vm4 }
 0x726   :  { %13877 = vmatprep.subr.bf16.mxu1 %v13855_v48  ;;  %v14701_v48 = vpop.permute.xlu0 %14700 }
 0x728   :  { %v14699_v30 = vpop.permute.xlu1 %14698 }
 0x729   :  { %v14719_v56 = vsel %vm32345_vm4, %v14699_v30, %v14701_v48 }
 0x72c   :  { %24213 = vmatmul.mubr.msk.bf16.vlgmr.msra.gmra.mrb[36].mxu1 %vm154_vm1, %v26163_v62  ;;  %v14430_v62 = vsel %vm32338_vm3, %v14409_v1, %v14411_v31  ;;  %v14697_v29 = vpop.permute.xlu1 %14696 }
 0x72d   :  { %13878 = vmatpush1.bf16.msra.mxu1 %v13854_v45  ;;  %13909 = vmatprep.mubr.bf16.mxu1 %v32227_v17  ;;  %v14438_v45 = vsel %vm32338_vm3, %v14425_v32, %v14427_v2  ;;  %v14718_v0 = vsel %vm32346_vm9, %v14697_v29, %v14699_v30  ;;  %vm32348_vm3 = vmmov %vm32345_vm4 }
 0x72e   :  { %13920 = vmatprep.subr.bf16.mxu1 %v13857_v59  ;;  %v14703_v59 = vpop.permute.xlu0 %14702  ;;  %vm32349_vm4 = vmmov %vm32348_vm3 }
 0x72f   :  { %v14720_v60 = vsel %vm32348_vm3, %v14701_v48, %v14703_v59  ;;  %vm32350_vm9 = vmmov %vm32348_vm3 }
 0x734   :  { %24217 = vmatmul.mubr.msk.bf16.vlgmr.msra.gmra.mrb[20].mxu1 %vm154_vm1, %v26164_v19 }
 0x735   :  { %13921 = vmatpush1.bf16.msra.mxu1 %v13856_v53  ;;  %13952 = vmatprep.mubr.bf16.mxu1 %v32227_v17  ;;  %v26167_v53 = vld [vmem:[%s32127_s1 + $0x190] sm:$0xff]  }
 0x736   :  { %13963 = vmatprep.subr.bf16.mxu1 %v13859_v51  ;;  %v14707_v51 = vpop.permute.xlu0 %14706 }
 0x73c   :  { %24218 = vmatmul.mubr.msk.bf16.vlgmr.msra.gmra.mrb[24].mxu1 %vm154_vm1, %v26164_v19 }
 0x73d   :  { %13964 = vmatpush1.bf16.msra.mxu1 %v13858_v57  ;;  %13995 = vmatprep.mubr.bf16.mxu1 %v32227_v17 }
 0x73e   :  { %14006 = vmatprep.subr.bf16.mxu1 %v13861_v24  ;;  %v14711_v24 = vpop.permute.xlu0 %14710 }
 0x744   :  { %24219 = vmatmul.mubr.msk.bf16.vlgmr.msra.gmra.mrb[28].mxu1 %vm154_vm1, %v26164_v19 }
 0x745   :  { %14007 = vmatpush1.bf16.msra.mxu1 %v13860_v49  ;;  %14038 = vmatprep.mubr.bf16.mxu1 %v32227_v17 }
 0x746   :  { %14049 = vmatprep.subr.bf16.mxu1 %v13863_v15  ;;  %v14715_v15 = vpop.permute.xlu0 %14714 }
 0x74c   :  { %24220 = vmatmul.mubr.msk.bf16.vlgmr.msra.gmra.mrb[32].mxu1 %vm154_vm1, %v26164_v19 }
 0x74d   :  { %14050 = vmatpush1.bf16.msra.mxu1 %v13862_v58  ;;  %14081 = vmatprep.mubr.bf16.mxu1 %v32227_v17  ;;  %v14987_v58 = vpop.permute.xlu0 %14986 }
 0x74e   :  { %14165 = vmatprep.subr.bf16.mxu1 %v14143_v8 }
 0x751   :  { %v14985_v39 = vpop.permute.xlu0 %14984 }
 0x754   :  { %24221 = vmatmul.mubr.msk.bf16.vlgmr.msra.gmra.mrb[36].mxu1 %vm154_vm1, %v26164_v19  ;;  %v14705_v19 = vpop.permute.xlu1 %14704 }
 0x755   :  { %14166 = vmatpush1.bf16.msra.mxu1 %v14142_v3  ;;  %14197 = vmatprep.mubr.bf16.mxu1 %v32227_v17  ;;  %v14721_v36 = vsel %vm32347_vm6, %v14703_v59, %v14705_v19  ;;  %v14722_v41 = vsel %vm32350_vm9, %v14705_v19, %v14707_v51  ;;  %vm32351_vm6 = vmmov %vm32348_vm3 }
 0x756   :  { %14208 = vmatprep.subr.bf16.mxu1 %v14145_v7  ;;  %vm32353_vm9 = vmmov %vm32348_vm3  ;;  %v14993_v7 = vpop.permute.xlu0 %14992 }
 0x758   :  { %v14709_v21 = vpop.permute.xlu1 %14708 }
 0x759   :  { %v14723_v57 = vsel %vm32349_vm4, %v14707_v51, %v14709_v21  ;;  %v14724_v52 = vsel %vm32348_vm3, %v14709_v21, %v14711_v24  ;;  %vm32352_vm4 = vmmov %vm32348_vm3 }
 0x75c   :  { %24225 = vmatmul.mubr.msk.bf16.vlgmr.msra.gmra.mrb[20].mxu1 %vm154_vm1, %v26165_v61  ;;  %v14713_v20 = vpop.permute.xlu1 %14712 }
 0x75d   :  { %14209 = vmatpush1.bf16.msra.mxu1 %v14144_v47  ;;  %14240 = vmatprep.mubr.bf16.mxu1 %v32227_v17  ;;  %v14725_v49 = vsel %vm32351_vm6, %v14711_v24, %v14713_v20  ;;  %v14726_v28 = vsel %vm32353_vm9, %v14713_v20, %v14715_v15  ;;  %v26168_v47 = vld [vmem:[%s32127_s1 + $0x198] sm:$0xff]  }
 0x75e   :  { %14251 = vmatprep.subr.bf16.mxu1 %v14147_v55  ;;  %v14997_v55 = vpop.permute.xlu0 %14996 }
 0x760   :  { %v14717_v63 = vpop.permute.xlu1 %14716 }
 0x761   :  { %v14727_v13 = vsel %vm32352_vm4, %v14715_v15, %v14717_v63 }
 0x762   :  { %v15001_v46 = vpop.permute.xlu0 %15000 }
 0x764   :  { %24226 = vmatmul.mubr.msk.bf16.vlgmr.msra.gmra.mrb[24].mxu1 %vm154_vm1, %v26165_v61  ;;  %v14989_v8 = vpop.permute.xlu1 %14988 }
 0x765   :  { %14252 = vmatpush1.bf16.msra.mxu1 %v14146_v27  ;;  %14283 = vmatprep.mubr.bf16.mxu1 %v32227_v17  ;;  %v15007_v3 = vsel %vm7101_vm14, %v14987_v58, %v14989_v8 }
 0x766   :  { %14294 = vmatprep.subr.bf16.mxu1 %v14149_v6  ;;  %v15005_v31 = vpop.permute.xlu0 %15004 }
 0x768   :  { %v14991_v26 = vpop.permute.xlu1 %14990 }
 0x769   :  { %v15009_v34 = vsel %vm7101_vm14, %v14991_v26, %v14993_v7  ;;  %v15008_v35 = vsel %vm7101_vm14, %v14989_v8, %v14991_v26 }
 0x76c   :  { %24227 = vmatmul.mubr.msk.bf16.vlgmr.msra.gmra.mrb[28].mxu1 %vm154_vm1, %v26165_v61  ;;  %v14995_v10 = vpop.permute.xlu1 %14994 }
 0x76d   :  { %14295 = vmatpush1.bf16.msra.mxu1 %v14148_v4  ;;  %14326 = vmatprep.mubr.bf16.mxu1 %v32227_v17  ;;  %v15011_v27 = vsel %vm7101_vm14, %v14995_v10, %v14997_v55  ;;  %v15010_v50 = vsel %vm7101_vm14, %v14993_v7, %v14995_v10 }
 0x76e   :  { %14337 = vmatprep.subr.bf16.mxu1 %v14151_v23 }
 0x770   :  { %v14999_v6 = vpop.permute.xlu1 %14998 }
 0x771   :  { %v15013_v4 = vsel %vm7101_vm14, %v14999_v6, %v15001_v46  ;;  %v15012_v16 = vsel %vm7101_vm14, %v14997_v55, %v14999_v6 }
 0x774   :  { %24228 = vmatmul.mubr.msk.bf16.vlgmr.msra.gmra.mrb[32].mxu1 %vm154_vm1, %v26165_v61  ;;  %v15003_v23 = vpop.permute.xlu1 %15002 }
 0x775   :  { %14338 = vmatpush1.bf16.msra.mxu1 %v14150_v33  ;;  %14369 = vmatprep.mubr.bf16.mxu1 %v32227_v17  ;;  %v15015_v1 = vsel %vm7101_vm14, %v15003_v23, %v15005_v31 }
 0x776   :  { %14453 = vmatprep.subr.bf16.mxu1 %v14431_v11  ;;  %v15277_v11 = vpop.permute.xlu0 %15276 }
 0x778   :  { %v15275_v33 = vpop.permute.xlu1 %15274 }
 0x779   :  { %v15295_v5 = vsel %vm7390_vm11, %v15275_v33, %v15277_v11 }
 0x77c   :  { %24229 = vmatmul.mubr.msk.bf16.vlgmr.msra.gmra.mrb[36].mxu1 %vm154_vm1, %v26165_v61  ;;  %v15006_v61 = vsel %vm7101_vm14, %v14985_v39, %v14987_v58  ;;  %v15273_v40 = vpop.permute.xlu1 %15272 }
 0x77d   :  { %14454 = vmatpush1.bf16.msra.mxu1 %v14430_v62  ;;  %14485 = vmatprep.mubr.bf16.mxu1 %v32227_v17  ;;  %v15014_v62 = vsel %vm7101_vm14, %v15001_v46, %v15003_v23  ;;  %v15294_v38 = vsel %vm7390_vm11, %v15273_v40, %v15275_v33 }
 0x77e   :  { %14496 = vmatprep.subr.bf16.mxu1 %v14433_v25  ;;  %v15279_v25 = vpop.permute.xlu0 %15278 }
 0x77f   :  { %v15296_v32 = vsel %vm7390_vm11, %v15277_v11, %v15279_v25  ;;  %v32354_v11 = vld [vmem:[#allocation4_spill] sm:$0xff] }
 0x784   :  { %24233 = vmatmul.mubr.msk.bf16.vlgmr.msra.gmra.mrb[20].mxu1 %vm154_vm1, %v26166_v22 }
 0x785   :  { %14497 = vmatpush1.bf16.msra.mxu1 %v14432_v43  ;;  %14528 = vmatprep.mubr.bf16.mxu1 %v32227_v17  ;;  %v26169_v43 = vld [vmem:[%s32127_s1 + $0x1a0] sm:$0xff]  }
 0x786   :  { %14539 = vmatprep.subr.bf16.mxu1 %v14435_v54  ;;  %v15283_v54 = vpop.permute.xlu0 %15282 }
 0x78c   :  { %24234 = vmatmul.mubr.msk.bf16.vlgmr.msra.gmra.mrb[24].mxu1 %vm154_vm1, %v26166_v22 }
 0x78d   :  { %14540 = vmatpush1.bf16.msra.mxu1 %v14434_v14  ;;  %14571 = vmatprep.mubr.bf16.mxu1 %v32227_v17 }
 0x78e   :  { %14582 = vmatprep.subr.bf16.mxu1 %v14437_v9  ;;  %v15287_v9 = vpop.permute.xlu0 %15286 }
 0x794   :  { %24235 = vmatmul.mubr.msk.bf16.vlgmr.msra.gmra.mrb[28].mxu1 %vm154_vm1, %v26166_v22 }
 0x795   :  { %14583 = vmatpush1.bf16.msra.mxu1 %v14436_v18  ;;  %14614 = vmatprep.mubr.bf16.mxu1 %v32227_v17 }
 0x796   :  { %14625 = vmatprep.subr.bf16.mxu1 %v14439_v37  ;;  %v15291_v37 = vpop.permute.xlu0 %15290 }
 0x79c   :  { %24236 = vmatmul.mubr.msk.bf16.vlgmr.msra.gmra.mrb[32].mxu1 %vm154_vm1, %v26166_v22 }
 0x79d   :  { %14626 = vmatpush1.bf16.msra.mxu1 %v14438_v45  ;;  %14657 = vmatprep.mubr.bf16.mxu1 %v32227_v17  ;;  %v15563_v45 = vpop.permute.xlu0 %15562 }
 0x79e   :  { %14741 = vmatprep.subr.bf16.mxu1 %v14719_v56 }
 0x7a1   :  { %v15561_v59 = vpop.permute.xlu0 %15560 }
 0x7a4   :  { %24237 = vmatmul.mubr.msk.bf16.vlgmr.msra.gmra.mrb[36].mxu1 %vm154_vm1, %v26166_v22  ;;  %v15281_v22 = vpop.permute.xlu1 %15280 }
 0x7a5   :  { %14742 = vmatpush1.bf16.msra.mxu1 %v14718_v0  ;;  %14773 = vmatprep.mubr.bf16.mxu1 %v32227_v17  ;;  %v15297_v12 = vsel %vm7390_vm11, %v15279_v25, %v15281_v22  ;;  %v15298_v42 = vsel %vm7390_vm11, %v15281_v22, %v15283_v54  ;;  %v32355_v22 = vld [vmem:[#allocation5_spill] sm:$0xff] }
 0x7a6   :  { %14784 = vmatprep.subr.bf16.mxu1 %v14721_v36  ;;  %v15569_v36 = vpop.permute.xlu0 %15568 }
 0x7a8   :  { %v15285_v44 = vpop.permute.xlu1 %15284 }
 0x7a9   :  { %v15299_v14 = vsel %vm7390_vm11, %v15283_v54, %v15285_v44  ;;  %v15300_v48 = vsel %vm7390_vm11, %v15285_v44, %v15287_v9 }
 0x7ac   :  { %24241 = vmatmul.mubr.msk.bf16.vlgmr.msra.gmra.mrb[20].mxu1 %vm154_vm1, %v26167_v53  ;;  %v15289_v2 = vpop.permute.xlu1 %15288 }
 0x7ad   :  { %14785 = vmatpush1.bf16.msra.mxu1 %v14720_v60  ;;  %14816 = vmatprep.mubr.bf16.mxu1 %v32227_v17  ;;  %v15301_v18 = vsel %vm7390_vm11, %v15287_v9, %v15289_v2  ;;  %v15302_v19 = vsel %vm7390_vm11, %v15289_v2, %v15291_v37  ;;  %v26170_v60 = vld [vmem:[%s32127_s1 + $0x1a8] sm:$0xff]  }
 0x7ae   :  { %14827 = vmatprep.subr.bf16.mxu1 %v14723_v57  ;;  %v15573_v57 = vpop.permute.xlu0 %15572 }
 0x7b0   :  { %v15293_v30 = vpop.permute.xlu1 %15292 }
 0x7b1   :  { %v15303_v29 = vsel %vm7390_vm11, %v15291_v37, %v15293_v30 }
 0x7b4   :  { %24242 = vmatmul.mubr.msk.bf16.vlgmr.msra.gmra.mrb[24].mxu1 %vm154_vm1, %v26167_v53  ;;  %v15565_v56 = vpop.permute.xlu1 %15564 }
 0x7b5   :  { %14828 = vmatpush1.bf16.msra.mxu1 %v14722_v41  ;;  %14859 = vmatprep.mubr.bf16.mxu1 %v32227_v17  ;;  %v15583_v0 = vsel %vm7679_vm13, %v15563_v45, %v15565_v56 }
 0x7b6   :  { %14870 = vmatprep.subr.bf16.mxu1 %v14725_v49  ;;  %v15577_v49 = vpop.permute.xlu0 %15576 }
 0x7b8   :  { %v15567_v51 = vpop.permute.xlu1 %15566 }
 0x7b9   :  { %v15585_v21 = vsel %vm7679_vm13, %v15567_v51, %v15569_v36  ;;  %v15584_v20 = vsel %vm7679_vm13, %v15565_v56, %v15567_v51 }
 0x7bc   :  { %24243 = vmatmul.mubr.msk.bf16.vlgmr.msra.gmra.mrb[28].mxu1 %vm154_vm1, %v26167_v53  ;;  %v15571_v24 = vpop.permute.xlu1 %15570 }
 0x7bd   :  { %14871 = vmatpush1.bf16.msra.mxu1 %v14724_v52  ;;  %14902 = vmatprep.mubr.bf16.mxu1 %v32227_v17  ;;  %v15587_v41 = vsel %vm7679_vm13, %v15571_v24, %v15573_v57  ;;  %v15586_v63 = vsel %vm7679_vm13, %v15569_v36, %v15571_v24 }
 0x7be   :  { %14913 = vmatprep.subr.bf16.mxu1 %v14727_v13  ;;  %v15581_v13 = vpop.permute.xlu0 %15580 }
 0x7c0   :  { %v15575_v15 = vpop.permute.xlu1 %15574 }
 0x7c1   :  { %v15589_v52 = vsel %vm7679_vm13, %v15575_v15, %v15577_v49  ;;  %v15588_v8 = vsel %vm7679_vm13, %v15573_v57, %v15575_v15 }
 0x7c4   :  { %24244 = vmatmul.mubr.msk.bf16.vlgmr.msra.gmra.mrb[32].mxu1 %vm154_vm1, %v26167_v53  ;;  %v15579_v58 = vpop.permute.xlu1 %15578 }
 0x7c5   :  { %14914 = vmatpush1.bf16.msra.mxu1 %v14726_v28  ;;  %14945 = vmatprep.mubr.bf16.mxu1 %v32227_v17  ;;  %v15591_v39 = vsel %vm7679_vm13, %v15579_v58, %v15581_v13  ;;  %v15590_v28 = vsel %vm7679_vm13, %v15577_v49, %v15579_v58 }
 0x7c6   :  { %15029 = vmatprep.subr.bf16.mxu1 %v15007_v3 }
 0x7c8   :  { %v30142_v3 = vpop.permute.xlu1 %15845 }
 0x7cc   :  { %24245 = vmatmul.mubr.msk.bf16.vlgmr.msra.gmra.mrb[36].mxu1 %vm154_vm1, %v26167_v53  ;;  %v15582_v53 = vsel %vm7679_vm13, %v15561_v59, %v15563_v45 }
 0x7cd   :  { %15030 = vmatpush1.bf16.msra.mxu1 %v15006_v61  ;;  %15061 = vmatprep.mubr.bf16.mxu1 %v32227_v17 }
 0x7ce   :  { %15072 = vmatprep.subr.bf16.mxu1 %v15009_v34  ;;  %v30145_v34 = vpop.permute.xlu0 %15850 }
 0x7d4   :  { %24249 = vmatmul.mubr.msk.bf16.vlgmr.msra.gmra.mrb[20].mxu1 %vm154_vm1, %v26168_v47 }
 0x7d5   :  { %15073 = vmatpush1.bf16.msra.mxu1 %v15008_v35  ;;  %15104 = vmatprep.mubr.bf16.mxu1 %v32227_v17 }
 0x7d6   :  { %15115 = vmatprep.subr.bf16.mxu1 %v15011_v27 }
 0x7dc   :  { %24250 = vmatmul.mubr.msk.bf16.vlgmr.msra.gmra.mrb[24].mxu1 %vm154_vm1, %v26168_v47 }
 0x7dd   :  { %15116 = vmatpush1.bf16.msra.mxu1 %v15010_v50  ;;  %15147 = vmatprep.mubr.bf16.mxu1 %v32227_v17 }
 0x7de   :  { %15158 = vmatprep.subr.bf16.mxu1 %v15013_v4 }
 0x7e4   :  { %24251 = vmatmul.mubr.msk.bf16.vlgmr.msra.gmra.mrb[28].mxu1 %vm154_vm1, %v26168_v47 }
 0x7e5   :  { %15159 = vmatpush1.bf16.msra.mxu1 %v15012_v16  ;;  %15190 = vmatprep.mubr.bf16.mxu1 %v32227_v17 }
 0x7e6   :  { %15201 = vmatprep.subr.bf16.mxu1 %v15015_v1 }
 0x7ec   :  { %24252 = vmatmul.mubr.msk.bf16.vlgmr.msra.gmra.mrb[32].mxu1 %vm154_vm1, %v26168_v47 }
 0x7ed   :  { %15202 = vmatpush1.bf16.msra.mxu1 %v15014_v62  ;;  %15233 = vmatprep.mubr.bf16.mxu1 %v32227_v17 }
 0x7ee   :  { %15317 = vmatprep.subr.bf16.mxu1 %v15295_v5 }
 0x7f4   :  { %24253 = vmatmul.mubr.msk.bf16.vlgmr.msra.gmra.mrb[36].mxu1 %vm154_vm1, %v26168_v47 }
 0x7f5   :  { %15318 = vmatpush1.bf16.msra.mxu1 %v15294_v38  ;;  %15349 = vmatprep.mubr.bf16.mxu1 %v32227_v17 }
 0x7f6   :  { %15360 = vmatprep.subr.bf16.mxu1 %v15297_v12 }
 0x7fc   :  { %24257 = vmatmul.mubr.msk.bf16.vlgmr.msra.gmra.mrb[20].mxu1 %vm154_vm1, %v26169_v43 }
 0x7fd   :  { %15361 = vmatpush1.bf16.msra.mxu1 %v15296_v32  ;;  %15392 = vmatprep.mubr.bf16.mxu1 %v32227_v17 }
 0x7fe   :  { %15403 = vmatprep.subr.bf16.mxu1 %v15299_v14 }
 0x804   :  { %24258 = vmatmul.mubr.msk.bf16.vlgmr.msra.gmra.mrb[24].mxu1 %vm154_vm1, %v26169_v43 }
 0x805   :  { %15404 = vmatpush1.bf16.msra.mxu1 %v15298_v42  ;;  %15435 = vmatprep.mubr.bf16.mxu1 %v32227_v17 }
 0x806   :  { %15446 = vmatprep.subr.bf16.mxu1 %v15301_v18 }
 0x80c   :  { %24259 = vmatmul.mubr.msk.bf16.vlgmr.msra.gmra.mrb[28].mxu1 %vm154_vm1, %v26169_v43 }
 0x80d   :  { %15447 = vmatpush1.bf16.msra.mxu1 %v15300_v48  ;;  %15478 = vmatprep.mubr.bf16.mxu1 %v32227_v17 }
 0x80e   :  { %15489 = vmatprep.subr.bf16.mxu1 %v15303_v29 }
 0x814   :  { %24260 = vmatmul.mubr.msk.bf16.vlgmr.msra.gmra.mrb[32].mxu1 %vm154_vm1, %v26169_v43 }
 0x815   :  { %15490 = vmatpush1.bf16.msra.mxu1 %v15302_v19  ;;  %15521 = vmatprep.mubr.bf16.mxu1 %v32227_v17  ;;  %v32356_v19 = vld [vmem:[#allocation8_spill] sm:$0xff] }
 0x816   :  { %15605 = vmatprep.subr.bf16.mxu1 %v15583_v0 }
 0x81c   :  { %24261 = vmatmul.mubr.msk.bf16.vlgmr.msra.gmra.mrb[36].mxu1 %vm154_vm1, %v26169_v43 }
 0x81d   :  { %15606 = vmatpush1.bf16.msra.mxu1 %v15582_v53  ;;  %15637 = vmatprep.mubr.bf16.mxu1 %v32227_v17 }
 0x81e   :  { %15648 = vmatprep.subr.bf16.mxu1 %v15585_v21  ;;  %v32357_v21 = vld [vmem:[#allocation9_spill] sm:$0xff] }
 0x824   :  { %24265 = vmatmul.mubr.msk.bf16.vlgmr.msra.gmra.mrb[20].mxu1 %vm154_vm1, %v26170_v60 }
 0x825   :  { %15649 = vmatpush1.bf16.msra.mxu1 %v15584_v20  ;;  %15680 = vmatprep.mubr.bf16.mxu1 %v32227_v17 }
 0x826   :  { %15691 = vmatprep.subr.bf16.mxu1 %v15587_v41 }
 0x82c   :  { %24266 = vmatmul.mubr.msk.bf16.vlgmr.msra.gmra.mrb[24].mxu1 %vm154_vm1, %v26170_v60 }
 0x82d   :  { %15692 = vmatpush1.bf16.msra.mxu1 %v15586_v63  ;;  %15723 = vmatprep.mubr.bf16.mxu1 %v32227_v17 }
 0x82e   :  { %15734 = vmatprep.subr.bf16.mxu1 %v15589_v52 }
 0x834   :  { %24267 = vmatmul.mubr.msk.bf16.vlgmr.msra.gmra.mrb[28].mxu1 %vm154_vm1, %v26170_v60 }
 0x835   :  { %15735 = vmatpush1.bf16.msra.mxu1 %v15588_v8  ;;  %15766 = vmatprep.mubr.bf16.mxu1 %v32227_v17 }
 0x836   :  { %15777 = vmatprep.subr.bf16.mxu1 %v15591_v39 }
 0x83c   :  { %24268 = vmatmul.mubr.msk.bf16.vlgmr.msra.gmra.mrb[32].mxu1 %vm154_vm1, %v26170_v60 }
 0x83d   :  { %15778 = vmatpush1.bf16.msra.mxu1 %v15590_v28  ;;  %15809 = vmatprep.mubr.bf16.mxu1 %v32227_v17 }
 0x844   :  { %24269 = vmatmul.mubr.msk.bf16.vlgmr.msra.gmra.mrb[36].mxu1 %vm154_vm1, %v26170_v60 }
 0x8f7   :  { %v15639_v7 = vpop.f32.mrb[20].mxu1 }
 0x8f8   :  { %v15853_v61 = vadd.f32 %v30142_v3, %v15639_v7  ;;  %v15641_v26 = vpop.f32.mrb[21].mxu1 }
 0x8f9   :  { %v15854_v47 = vadd.f32 %v30142_v3, %v15641_v26  ;;  %v15643_v55 = vpop.f32.mrb[22].mxu1 }
 0x8fa   :  { %v15873_v10 = vmul.f32 0.01, %v15853_v61  ;;  %v15863_v35 = vadd.f32 %v30145_v34, %v15643_v55  ;;  %v15645_v27 = vpop.f32.mrb[23].mxu1  ;;  %v32358_v55 = vld [vmem:[#allocation6_spill] sm:$0xff] }
 0x8fb   :  { %v15874_v6 = vmul.f32 0.01, %v15854_v47  ;;  %v15864_v46 = vadd.f32 %v30145_v34, %v15645_v27 }
 0x8fc   :  { %v15893_v50 = vmax.f32 %v15853_v61, %v15873_v10  ;;  %v15883_v4 = vmul.f32 0.01, %v15863_v35 }
 0x8fd   :  { %v15894_v23 = vmax.f32 %v15854_v47, %v15874_v6  ;;  %v15884_v31 = vmul.f32 0.01, %v15864_v46 }
 0x8fe   :  { %v15903_v16 = vmax.f32 %v15863_v35, %v15883_v4  ;;  %v15913_v40 = vmul.f32 %v15893_v50, %v32354_v11 }
 0x8ff   :  { %v15904_v1 = vmax.f32 %v15864_v46, %v15884_v31  ;;  %v15682_v33 = vpop.f32.mrb[24].mxu1  ;;  %v15914_v38 = vmul.f32 %v15894_v23, %v32355_v22  ;;  %v32359_v46 = vld [vmem:[#allocation7_spill] sm:$0xff] }
 0x900   :  { %v15923_v62 = vmul.f32 %v15903_v16, %v32354_v11  ;;  %v15855_v5 = vadd.f32 %v30142_v3, %v15682_v33  ;;  %v15684_v25 = vpop.f32.mrb[25].mxu1 }
 0x901   :  { %v15924_v12 = vmul.f32 %v15904_v1, %v32355_v22  ;;  %v15856_v43 = vadd.f32 %v30142_v3, %v15684_v25  ;;  %v15686_v54 = vpop.f32.mrb[26].mxu1 }
 0x902   :  { %v30156_v44 = vpack.c.bf16 %v15923_v62, %v15913_v40  ;;  %v15875_v32 = vmul.f32 0.01, %v15855_v5  ;;  %v15865_v14 = vadd.f32 %v30145_v34, %v15686_v54  ;;  %v15688_v9 = vpop.f32.mrb[27].mxu1 }
 0x903   :  { %v30159_v2 = vpack.c.bf16 %v15924_v12, %v15914_v38  ;;  %v15876_v42 = vmul.f32 0.01, %v15856_v43  ;;  %v15866_v18 = vadd.f32 %v30145_v34, %v15688_v9 }
 0x904   :  { %v15895_v37 = vmax.f32 %v15855_v5, %v15875_v32  ;;  %v15885_v30 = vmul.f32 0.01, %v15865_v14  ;;  %15988 = vrot.lane.b32.xlu1 %v30156_v44, %s26224_s6 }
 0x905   :  { %v15896_v48 = vmax.f32 %v15856_v43, %v15876_v42  ;;  %v15886_v29 = vmul.f32 0.01, %v15866_v18  ;;  %15990 = vrot.lane.b32.xlu0 %v30159_v2, %s26224_s6  ;;  %v32360_v42 = vld [vmem:[#allocation12_spill] sm:$0xff] }
 0x906   :  { %v15905_v45 = vmax.f32 %v15865_v14, %v15885_v30  ;;  %v15915_v0 = vmul.f32 %v15895_v37, %v32356_v19 }
 0x907   :  { %v15906_v56 = vmax.f32 %v15866_v18, %v15886_v29  ;;  %v15725_v59 = vpop.f32.mrb[28].mxu1  ;;  %v15916_v60 = vmul.f32 %v15896_v48, %v32357_v21  ;;  %v32361_v29 = vld [vmem:[#allocation13_spill] sm:$0xff] }
 0x908   :  { %v15925_v36 = vmul.f32 %v15905_v45, %v32356_v19  ;;  %v15857_v53 = vadd.f32 %v30142_v3, %v15725_v59  ;;  %v15727_v51 = vpop.f32.mrb[29].mxu1  ;;  %15986 = vrot.lane.b32.xlu1 %v32227_v17, %s26224_s6 }
 0x909   :  { %v15926_v57 = vmul.f32 %v15906_v56, %v32357_v21  ;;  %v15858_v24 = vadd.f32 %v30142_v3, %v15727_v51  ;;  %v15729_v20 = vpop.f32.mrb[30].mxu1 }
 0x90a   :  { %v30174_v41 = vpack.c.bf16 %v15925_v36, %v15915_v0  ;;  %v15877_v49 = vmul.f32 0.01, %v15857_v53  ;;  %v15867_v15 = vadd.f32 %v30145_v34, %v15729_v20  ;;  %v15731_v63 = vpop.f32.mrb[31].mxu1 }
 0x90b   :  { %v30177_v52 = vpack.c.bf16 %v15926_v57, %v15916_v60  ;;  %v15878_v13 = vmul.f32 0.01, %v15858_v24  ;;  %v15868_v58 = vadd.f32 %v30145_v34, %v15731_v63 }
 0x90c   :  { %v15897_v8 = vmax.f32 %v15857_v53, %v15877_v49  ;;  %v15887_v39 = vmul.f32 0.01, %v15867_v15  ;;  %15992 = vrot.lane.b32.xlu0 %v30174_v41, %s26224_s6 }
 0x90d   :  { %v15898_v28 = vmax.f32 %v15858_v24, %v15878_v13  ;;  %v15888_v7 = vmul.f32 0.01, %v15868_v58  ;;  %15994 = vrot.lane.b32.xlu1 %v30177_v52, %s26224_s6 }
 0x90e   :  { %v15907_v61 = vmax.f32 %v15867_v15, %v15887_v39  ;;  %v15917_v10 = vmul.f32 %v15897_v8, %v32358_v55  ;;  %v32362_v8 = vld [vmem:[#allocation10_spill] sm:$0xff] }
 0x90f   :  { %v15908_v26 = vmax.f32 %v15868_v58, %v15888_v7  ;;  %v15768_v47 = vpop.f32.mrb[32].mxu1  ;;  %v15918_v50 = vmul.f32 %v15898_v28, %v32359_v46  ;;  %v32363_v7 = vld [vmem:[#allocation11_spill] sm:$0xff] }
 0x910   :  { %v15927_v35 = vmul.f32 %v15907_v61, %v32358_v55  ;;  %v15859_v27 = vadd.f32 %v30142_v3, %v15768_v47  ;;  %v15770_v6 = vpop.f32.mrb[33].mxu1 }
 0x911   :  { %v15928_v4 = vmul.f32 %v15908_v26, %v32359_v46  ;;  %v15860_v23 = vadd.f32 %v30142_v3, %v15770_v6  ;;  %v15772_v31 = vpop.f32.mrb[34].mxu1 }
 0x912   :  { %v30190_v16 = vpack.c.bf16 %v15927_v35, %v15917_v10  ;;  %v15879_v1 = vmul.f32 0.01, %v15859_v27  ;;  %v15869_v33 = vadd.f32 %v30145_v34, %v15772_v31  ;;  %v15774_v40 = vpop.f32.mrb[35].mxu1 }
 0x913   :  { %v30193_v62 = vpack.c.bf16 %v15928_v4, %v15918_v50  ;;  %v15880_v5 = vmul.f32 0.01, %v15860_v23  ;;  %v15870_v25 = vadd.f32 %v30145_v34, %v15774_v40  ;;  %v26171_v4 = vld [vmem:[%s32127_s1 + $0x1b8] sm:$0xff]  }
 0x914   :  { %v15899_v38 = vmax.f32 %v15859_v27, %v15879_v1  ;;  %v15889_v12 = vmul.f32 0.01, %v15869_v33  ;;  %15996 = vrot.lane.b32.xlu0 %v30190_v16, %s26224_s6 }
 0x915   :  { %v15900_v43 = vmax.f32 %v15860_v23, %v15880_v5  ;;  %v15890_v54 = vmul.f32 0.01, %v15870_v25  ;;  %15998 = vrot.lane.b32.xlu1 %v30193_v62, %s26224_s6 }
 0x916   :  { %v15909_v32 = vmax.f32 %v15869_v33, %v15889_v12  ;;  %v15919_v18 = vmul.f32 %v15899_v38, %v32360_v42 }
 0x917   :  { %v15910_v14 = vmax.f32 %v15870_v25, %v15890_v54  ;;  %v15811_v9 = vpop.f32.mrb[36].mxu1  ;;  %v15920_v45 = vmul.f32 %v15900_v43, %v32361_v29 }
 0x918   :  { %v15929_v37 = vmul.f32 %v15909_v32, %v32360_v42  ;;  %v15861_v30 = vadd.f32 %v30142_v3, %v15811_v9  ;;  %v15813_v48 = vpop.f32.mrb[37].mxu1 }
 0x919   :  { %v15930_v56 = vmul.f32 %v15910_v14, %v32361_v29  ;;  %v15862_v59 = vadd.f32 %v30142_v3, %v15813_v48  ;;  %v15815_v0 = vpop.f32.mrb[38].mxu1 }
 0x91a   :  { %v30206_v36 = vpack.c.bf16 %v15929_v37, %v15919_v18  ;;  %v15881_v53 = vmul.f32 0.01, %v15861_v30  ;;  %v15871_v51 = vadd.f32 %v30145_v34, %v15815_v0  ;;  %v15817_v60 = vpop.f32.mrb[39].mxu1 }
 0x91b   :  { %v30209_v57 = vpack.c.bf16 %v15930_v56, %v15920_v45  ;;  %v15882_v24 = vmul.f32 0.01, %v15862_v59  ;;  %v15872_v20 = vadd.f32 %v30145_v34, %v15817_v60 }
 0x91c   :  { %v15901_v49 = vmax.f32 %v15861_v30, %v15881_v53  ;;  %v15891_v15 = vmul.f32 0.01, %v15871_v51  ;;  %16000 = vrot.lane.b32.xlu0 %v30206_v36, %s26224_s6 }
 0x91d   :  { %v15902_v63 = vmax.f32 %v15862_v59, %v15882_v24  ;;  %v15892_v13 = vmul.f32 0.01, %v15872_v20  ;;  %16002 = vrot.lane.b32.xlu1 %v30209_v57, %s26224_s6  ;;  %v30381_v24 = vld [vmem:[%s32127_s1 + $0x1b0] sm:$0xff]  }
 0x91e   :  { %v15911_v3 = vmax.f32 %v15871_v51, %v15891_v15  ;;  %v15921_v39 = vmul.f32 %v15901_v49, %v32362_v8 }
 0x91f   :  { %v15912_v58 = vmax.f32 %v15872_v20, %v15892_v13  ;;  %v15922_v61 = vmul.f32 %v15902_v63, %v32363_v7 }
 0x920   :  { %v15931_v28 = vmul.f32 %v15911_v3, %v32362_v8 }
 0x921   :  { %v15932_v34 = vmul.f32 %v15912_v58, %v32363_v7 }
 0x922   :  { %v30220_v26 = vpack.c.bf16 %v15931_v28, %v15921_v39 }
 0x923   :  { %v30222_v47 = vpack.c.bf16 %v15932_v34, %v15922_v61 }
 0x924   :  { %16004 = vrot.lane.b32.xlu0 %v30220_v26, %s26224_s6 }
 0x925   :  { %16006 = vrot.lane.b32.xlu1 %v30222_v47, %s26224_s6 }
 0x928   :  { %16253 = vrot.lane.b32.xlu0 %v30156_v44, %s26227_s15 }
 0x929   :  { %16255 = vrot.lane.b32.xlu1 %v30159_v2, %s26227_s15 }
 0x92c   :  { %16251 = vrot.lane.b32.xlu0 %v32227_v17, %s26227_s15 }
 0x92d   :  { %16257 = vrot.lane.b32.xlu1 %v30174_v41, %s26227_s15 }
 0x930   :  { %16259 = vrot.lane.b32.xlu0 %v30177_v52, %s26227_s15 }
 0x931   :  { %16261 = vrot.lane.b32.xlu1 %v30190_v16, %s26227_s15 }
 0x934   :  { %16263 = vrot.lane.b32.xlu0 %v30193_v62, %s26227_s15 }
 0x935   :  { %16265 = vrot.lane.b32.xlu1 %v30206_v36, %s26227_s15 }
 0x938   :  { %16267 = vrot.lane.b32.xlu0 %v30209_v57, %s26227_s15 }
 0x939   :  { %16269 = vrot.lane.b32.xlu1 %v30220_v26, %s26227_s15 }
 0x93c   :  { %16271 = vrot.lane.b32.xlu0 %v30222_v47, %s26227_s15 }
 0x93d   :  { %16521 = vrot.lane.b32.xlu1 %v30156_v44, %s26230_s18 }
 0x940   :  { %16523 = vrot.lane.b32.xlu0 %v30159_v2, %s26230_s18 }
 0x941   :  { %16519 = vrot.lane.b32.xlu1 %v32227_v17, %s26230_s18 }
 0x944   :  { %16525 = vrot.lane.b32.xlu0 %v30174_v41, %s26230_s18 }
 0x945   :  { %16527 = vrot.lane.b32.xlu1 %v30177_v52, %s26230_s18 }
 0x948   :  { %16529 = vrot.lane.b32.xlu0 %v30190_v16, %s26230_s18 }
 0x949   :  { %16531 = vrot.lane.b32.xlu1 %v30193_v62, %s26230_s18 }
 0x94c   :  { %16533 = vrot.lane.b32.xlu0 %v30206_v36, %s26230_s18 }
 0x94d   :  { %16535 = vrot.lane.b32.xlu1 %v30209_v57, %s26230_s18 }
 0x950   :  { %16537 = vrot.lane.b32.xlu0 %v30220_v26, %s26230_s18 }
 0x951   :  { %16539 = vrot.lane.b32.xlu1 %v30222_v47, %s26230_s18 }
 0x954   :  { %16809 = vrot.lane.b32.xlu0 %v30156_v44, %s26232_s29 }
 0x955   :  { %16811 = vrot.lane.b32.xlu1 %v30159_v2, %s26232_s29 }
 0x958   :  { %16807 = vrot.lane.b32.xlu0 %v32227_v17, %s26232_s29 }
 0x959   :  { %16813 = vrot.lane.b32.xlu1 %v30174_v41, %s26232_s29 }
 0x95c   :  { %16815 = vrot.lane.b32.xlu0 %v30177_v52, %s26232_s29 }
 0x95d   :  { %16817 = vrot.lane.b32.xlu1 %v30190_v16, %s26232_s29 }
 0x960   :  { %16819 = vrot.lane.b32.xlu0 %v30193_v62, %s26232_s29 }
 0x961   :  { %16821 = vrot.lane.b32.xlu1 %v30206_v36, %s26232_s29 }
 0x964   :  { %16823 = vrot.lane.b32.xlu0 %v30209_v57, %s26232_s29 }
 0x965   :  { %16825 = vrot.lane.b32.xlu1 %v30220_v26, %s26232_s29 }
 0x968   :  { %16827 = vrot.lane.b32.xlu0 %v30222_v47, %s26232_s29 }
 0x969   :  { %17097 = vrot.lane.b32.xlu1 %v30156_v44, %s26223_s19 }
 0x96c   :  { %17099 = vrot.lane.b32.xlu0 %v30159_v2, %s26223_s19 }
 0x96d   :  { %17095 = vrot.lane.b32.xlu1 %v32227_v17, %s26223_s19 }
 0x970   :  { %17101 = vrot.lane.b32.xlu0 %v30174_v41, %s26223_s19 }
 0x971   :  { %17103 = vrot.lane.b32.xlu1 %v30177_v52, %s26223_s19 }
 0x974   :  { %17105 = vrot.lane.b32.xlu0 %v30190_v16, %s26223_s19 }
 0x975   :  { %17107 = vrot.lane.b32.xlu1 %v30193_v62, %s26223_s19 }
 0x976   :  { %v15989_v10 = vpop.permute.xlu1 %15988 }
 0x977   :  { %v15991_v35 = vpop.permute.xlu0 %15990 }
 0x978   :  { %17109 = vrot.lane.b32.xlu0 %v30206_v36, %s26223_s19  ;;  %v16009_v27 = vsel %vm133_vm2, %v15989_v10, %v15991_v35 }
 0x979   :  { %17111 = vrot.lane.b32.xlu1 %v30209_v57, %s26223_s19  ;;  %16031 = vmatprep.subr.bf16.mxu0 %v16009_v27 }
 0x97a   :  { %v15987_v6 = vpop.permute.xlu1 %15986 }
 0x97b   :  { %v16008_v50 = vsel %vm133_vm2, %v15987_v6, %v15989_v10 }
 0x97c   :  { %17113 = vrot.lane.b32.xlu0 %v30220_v26, %s26223_s19  ;;  %16032 = vmatpush1.bf16.msra.mxu0 %v16008_v50 }
 0x97d   :  { %17115 = vrot.lane.b32.xlu1 %v30222_v47, %s26223_s19 }
 0x97e   :  { %v15993_v23 = vpop.permute.xlu0 %15992 }
 0x97f   :  { %24277 = vmatmul.mubr.msk.bf16.vlgmr.msra.gmra.mrb[12].mxu0 %vm154_vm1, %v26171_v4  ;;  %v15995_v31 = vpop.permute.xlu1 %15994  ;;  %v16010_v33 = vsel %vm133_vm2, %v15991_v35, %v15993_v23 }
 0x980   :  { %17385 = vrot.lane.b32.xlu0 %v30156_v44, %s26225_s9  ;;  %v16011_v1 = vsel %vm133_vm2, %v15993_v23, %v15995_v31  ;;  %16106 = vmatprep.mubr.bf16.mxu0 %v32227_v17 }
 0x981   :  { %17387 = vrot.lane.b32.xlu1 %v30159_v2, %s26225_s9  ;;  %16074 = vmatprep.subr.bf16.mxu0 %v16011_v1 }
 0x982   :  { %16075 = vmatpush1.bf16.msra.mxu0 %v16010_v33 }
 0x984   :  { %17383 = vrot.lane.b32.xlu0 %v32227_v17, %s26225_s9 }
 0x985   :  { %17389 = vrot.lane.b32.xlu1 %v30174_v41, %s26225_s9 }
 0x986   :  { %v15997_v40 = vpop.permute.xlu0 %15996 }
 0x987   :  { %24278 = vmatmul.mubr.msk.bf16.vlgmr.msra.gmra.mrb[16].mxu0 %vm154_vm1, %v26171_v4  ;;  %v15999_v5 = vpop.permute.xlu1 %15998  ;;  %v16012_v38 = vsel %vm133_vm2, %v15995_v31, %v15997_v40 }
 0x988   :  { %17391 = vrot.lane.b32.xlu0 %v30177_v52, %s26225_s9  ;;  %v16013_v25 = vsel %vm133_vm2, %v15997_v40, %v15999_v5  ;;  %16149 = vmatprep.mubr.bf16.mxu0 %v32227_v17 }
 0x989   :  { %17393 = vrot.lane.b32.xlu1 %v30190_v16, %s26225_s9  ;;  %16117 = vmatprep.subr.bf16.mxu0 %v16013_v25 }
 0x98a   :  { %16118 = vmatpush1.bf16.msra.mxu0 %v16012_v38 }
 0x98c   :  { %17395 = vrot.lane.b32.xlu0 %v30193_v62, %s26225_s9 }
 0x98d   :  { %17397 = vrot.lane.b32.xlu1 %v30206_v36, %s26225_s9 }
 0x98e   :  { %v16001_v12 = vpop.permute.xlu0 %16000 }
 0x98f   :  { %24279 = vmatmul.mubr.msk.bf16.vlgmr.msra.gmra.mrb[20].mxu0 %vm154_vm1, %v26171_v4  ;;  %v16003_v43 = vpop.permute.xlu1 %16002  ;;  %v16014_v32 = vsel %vm133_vm2, %v15999_v5, %v16001_v12 }
 0x990   :  { %17399 = vrot.lane.b32.xlu0 %v30209_v57, %s26225_s9  ;;  %v16015_v54 = vsel %vm133_vm2, %v16001_v12, %v16003_v43  ;;  %16192 = vmatprep.mubr.bf16.mxu0 %v32227_v17 }
 0x991   :  { %17401 = vrot.lane.b32.xlu1 %v30220_v26, %s26225_s9  ;;  %16160 = vmatprep.subr.bf16.mxu0 %v16015_v54 }
 0x992   :  { %16161 = vmatpush1.bf16.msra.mxu0 %v16014_v32 }
 0x994   :  { %17403 = vrot.lane.b32.xlu0 %v30222_v47, %s26225_s9 }
 0x995   :  { %17673 = vrot.lane.b32.xlu1 %v30156_v44, %s26226_s14 }
 0x996   :  { %v16005_v14 = vpop.permute.xlu0 %16004 }
 0x997   :  { %24280 = vmatmul.mubr.msk.bf16.vlgmr.msra.gmra.mrb[24].mxu0 %vm154_vm1, %v26171_v4  ;;  %v16007_v9 = vpop.permute.xlu1 %16006  ;;  %v16016_v37 = vsel %vm133_vm2, %v16003_v43, %v16005_v14 }
 0x998   :  { %17675 = vrot.lane.b32.xlu0 %v30159_v2, %s26226_s14  ;;  %v16017_v18 = vsel %vm133_vm2, %v16005_v14, %v16007_v9  ;;  %16235 = vmatprep.mubr.bf16.mxu0 %v32227_v17  ;;  %v26173_v9 = vld [vmem:[%s32127_s1 + $0x1c0] sm:$0xff]   ;;  %vm32364_vm2 = vcmask 809984  }
 0x999   :  { %17671 = vrot.lane.b32.xlu1 %v32227_v17, %s26226_s14  ;;  %16203 = vmatprep.subr.bf16.mxu0 %v16017_v18 }
 0x99a   :  { %v16254_v30 = vpop.permute.xlu0 %16253  ;;  %16204 = vmatpush1.bf16.msra.mxu0 %v16016_v37 }
 0x99b   :  { %v16256_v48 = vpop.permute.xlu1 %16255 }
 0x99c   :  { %17677 = vrot.lane.b32.xlu0 %v30174_v41, %s26226_s14  ;;  %v16274_v45 = vsel %vm400_vm5, %v16254_v30, %v16256_v48 }
 0x99d   :  { %17679 = vrot.lane.b32.xlu1 %v30177_v52, %s26226_s14  ;;  %16296 = vmatprep.subr.bf16.mxu0 %v16274_v45 }
 0x99e   :  { %v16252_v56 = vpop.permute.xlu0 %16251 }
 0x99f   :  { %v16273_v59 = vsel %vm400_vm5, %v16252_v56, %v16254_v30  ;;  %24281 = vmatmul.mubr.msk.bf16.vlgmr.msra.gmra.mrb[28].mxu0 %vm154_vm1, %v26171_v4  ;;  %v16258_v0 = vpop.permute.xlu1 %16257 }
 0x9a0   :  { %17681 = vrot.lane.b32.xlu0 %v30190_v16, %s26226_s14  ;;  %16297 = vmatpush1.bf16.msra.mxu0 %v16273_v59  ;;  %v16275_v49 = vsel %vm400_vm5, %v16256_v48, %v16258_v0 }
 0x9a1   :  { %17683 = vrot.lane.b32.xlu1 %v30193_v62, %s26226_s14  ;;  %16328 = vmatprep.mubr.bf16.mxu0 %v32227_v17 }
 0x9a2   :  { %v16260_v53 = vpop.permute.xlu0 %16259 }
 0x9a3   :  { %v16262_v51 = vpop.permute.xlu1 %16261  ;;  %v16276_v60 = vsel %vm400_vm5, %v16258_v0, %v16260_v53 }
 0x9a4   :  { %17685 = vrot.lane.b32.xlu0 %v30206_v36, %s26226_s14  ;;  %16339 = vmatprep.subr.bf16.mxu0 %v16276_v60  ;;  %v16277_v39 = vsel %vm400_vm5, %v16260_v53, %v16262_v51 }
 0x9a5   :  { %17687 = vrot.lane.b32.xlu1 %v30209_v57, %s26226_s14 }
 0x9a6   :  { %v16264_v20 = vpop.permute.xlu0 %16263 }
 0x9a7   :  { %24283 = vmatmul.mubr.msk.bf16.vlgmr.msra.gmra.mrb[12].mxu0 %vm154_vm1, %v30381_v24  ;;  %v16266_v15 = vpop.permute.xlu1 %16265  ;;  %v16278_v63 = vsel %vm400_vm5, %v16262_v51, %v16264_v20 }
 0x9a8   :  { %16340 = vmatpush1.bf16.msra.mxu0 %v16275_v49  ;;  %17689 = vrot.lane.b32.xlu0 %v30220_v26, %s26226_s14  ;;  %v16279_v27 = vsel %vm400_vm5, %v16264_v20, %v16266_v15 }
 0x9a9   :  { %16382 = vmatprep.subr.bf16.mxu0 %v16278_v63  ;;  %17691 = vrot.lane.b32.xlu1 %v30222_v47, %s26226_s14 }
 0x9aa   :  { %v16268_v13 = vpop.permute.xlu0 %16267  ;;  %16371 = vmatprep.mubr.bf16.mxu0 %v32227_v17 }
 0x9ab   :  { %v16270_v3 = vpop.permute.xlu1 %16269  ;;  %v16280_v61 = vsel %vm400_vm5, %v16266_v15, %v16268_v13 }
 0x9ac   :  { %17961 = vrot.lane.b32.xlu0 %v30156_v44, %s26228_s16  ;;  %v16281_v1 = vsel %vm400_vm5, %v16268_v13, %v16270_v3 }
 0x9ad   :  { %17963 = vrot.lane.b32.xlu1 %v30159_v2, %s26228_s16 }
 0x9ae   :  { %v16272_v58 = vpop.permute.xlu0 %16271 }
 0x9af   :  { %24284 = vmatmul.mubr.msk.bf16.vlgmr.msra.gmra.mrb[16].mxu0 %vm154_vm1, %v30381_v24  ;;  %v16522_v28 = vpop.permute.xlu1 %16521  ;;  %v16282_v50 = vsel %vm400_vm5, %v16270_v3, %v16272_v58 }
 0x9b0   :  { %16383 = vmatpush1.bf16.msra.mxu0 %v16277_v39  ;;  %17959 = vrot.lane.b32.xlu0 %v32227_v17, %s26228_s16 }
 0x9b1   :  { %16425 = vmatprep.subr.bf16.mxu0 %v16280_v61  ;;  %17965 = vrot.lane.b32.xlu1 %v30174_v41, %s26228_s16 }
 0x9b2   :  { %v16524_v34 = vpop.permute.xlu0 %16523  ;;  %16414 = vmatprep.mubr.bf16.mxu0 %v32227_v17 }
 0x9b3   :  { %v16520_v10 = vpop.permute.xlu1 %16519  ;;  %v16542_v40 = vsel %vm669_vm8, %v16522_v28, %v16524_v34 }
 0x9b4   :  { %17967 = vrot.lane.b32.xlu0 %v30177_v52, %s26228_s16  ;;  %v16541_v12 = vsel %vm669_vm8, %v16520_v10, %v16522_v28 }
 0x9b5   :  { %17969 = vrot.lane.b32.xlu1 %v30190_v16, %s26228_s16 }
 0x9b6   :  { %v16526_v35 = vpop.permute.xlu0 %16525 }
 0x9b7   :  { %24285 = vmatmul.mubr.msk.bf16.vlgmr.msra.gmra.mrb[20].mxu0 %vm154_vm1, %v30381_v24  ;;  %v16528_v6 = vpop.permute.xlu1 %16527  ;;  %v16543_v37 = vsel %vm669_vm8, %v16524_v34, %v16526_v35 }
 0x9b8   :  { %16426 = vmatpush1.bf16.msra.mxu0 %v16279_v27  ;;  %17971 = vrot.lane.b32.xlu0 %v30193_v62, %s26228_s16  ;;  %v16544_v54 = vsel %vm669_vm8, %v16526_v35, %v16528_v6 }
 0x9b9   :  { %16468 = vmatprep.subr.bf16.mxu0 %v16282_v50  ;;  %17973 = vrot.lane.b32.xlu1 %v30206_v36, %s26228_s16 }
 0x9ba   :  { %v16530_v4 = vpop.permute.xlu0 %16529  ;;  %16457 = vmatprep.mubr.bf16.mxu0 %v32227_v17 }
 0x9bb   :  { %v30422_v23 = vpop.permute.xlu1 %16531  ;;  %v16545_v0 = vsel %vm669_vm8, %v16528_v6, %v16530_v4 }
 0x9bc   :  { %17975 = vrot.lane.b32.xlu0 %v30209_v57, %s26228_s16  ;;  %v16546_v48 = vsel %vm669_vm8, %v16530_v4, %v30422_v23 }
 0x9bd   :  { %17977 = vrot.lane.b32.xlu1 %v30220_v26, %s26228_s16 }
 0x9be   :  { %v16534_v31 = vpop.permute.xlu0 %16533 }
 0x9bf   :  { %24286 = vmatmul.mubr.msk.bf16.vlgmr.msra.gmra.mrb[24].mxu0 %vm154_vm1, %v30381_v24  ;;  %v30431_v33 = vpop.permute.xlu1 %16535  ;;  %v16547_v49 = vsel %vm669_vm8, %v30422_v23, %v16534_v31 }
 0x9c0   :  { %16469 = vmatpush1.bf16.msra.mxu0 %v16281_v1  ;;  %17979 = vrot.lane.b32.xlu0 %v30222_v47, %s26228_s16  ;;  %v16548_v51 = vsel %vm669_vm8, %v16534_v31, %v30431_v33  ;;  %v26174_v31 = vld [vmem:[%s32127_s1 + $0x1c8] sm:$0xff]  }
 0x9c1   :  { %16564 = vmatprep.subr.bf16.mxu0 %v16542_v40  ;;  %18249 = vrot.lane.b32.xlu1 %v30156_v44, %s26229_s17 }
 0x9c2   :  { %v30438_v5 = vpop.permute.xlu0 %16537  ;;  %16500 = vmatprep.mubr.bf16.mxu0 %v32227_v17 }
 0x9c3   :  { %v16540_v25 = vpop.permute.xlu1 %16539  ;;  %v16549_v39 = vsel %vm669_vm8, %v30431_v33, %v30438_v5 }
 0x9c4   :  { %18251 = vrot.lane.b32.xlu0 %v30159_v2, %s26229_s17  ;;  %v16550_v63 = vsel %vm669_vm8, %v30438_v5, %v16540_v25 }
 0x9c5   :  { %18247 = vrot.lane.b32.xlu1 %v32227_v17, %s26229_s17 }
 0x9c6   :  { %v30445_v38 = vpop.permute.xlu0 %16809 }
 0x9c7   :  { %24287 = vmatmul.mubr.msk.bf16.vlgmr.msra.gmra.mrb[28].mxu0 %vm154_vm1, %v30381_v24  ;;  %v30450_v43 = vpop.permute.xlu1 %16811 }
 0x9c8   :  { %16565 = vmatpush1.bf16.msra.mxu0 %v16541_v12  ;;  %18253 = vrot.lane.b32.xlu0 %v30174_v41, %s26229_s17  ;;  %v16830_v61 = vsel %vm958_vm10, %v30445_v38, %v30450_v43 }
 0x9c9   :  { %16607 = vmatprep.subr.bf16.mxu0 %v16544_v54  ;;  %18255 = vrot.lane.b32.xlu1 %v30177_v52, %s26229_s17 }
 0x9ca   :  { %v30457_v32 = vpop.permute.xlu0 %16807  ;;  %16596 = vmatprep.mubr.bf16.mxu0 %v32227_v17 }
 0x9cb   :  { %v30460_v14 = vpop.permute.xlu1 %16813  ;;  %v16829_v27 = vsel %vm958_vm10, %v30457_v32, %v30445_v38 }
 0x9cc   :  { %18257 = vrot.lane.b32.xlu0 %v30190_v16, %s26229_s17  ;;  %v16831_v33 = vsel %vm958_vm10, %v30450_v43, %v30460_v14 }
 0x9cd   :  { %18259 = vrot.lane.b32.xlu1 %v30193_v62, %s26229_s17 }
 0x9ce   :  { %v30469_v18 = vpop.permute.xlu0 %16815 }
 0x9cf   :  { %24291 = vmatmul.mubr.msk.bf16.vlgmr.msra.gmra.mrb[12].mxu0 %vm154_vm1, %v26173_v9  ;;  %v30473_v30 = vpop.permute.xlu1 %16817  ;;  %v16832_v50 = vsel %vm958_vm10, %v30460_v14, %v30469_v18 }
 0x9d0   :  { %16608 = vmatpush1.bf16.msra.mxu0 %v16543_v37  ;;  %18261 = vrot.lane.b32.xlu0 %v30206_v36, %s26229_s17  ;;  %v16833_v43 = vsel %vm958_vm10, %v30469_v18, %v30473_v30 }
 0x9d1   :  { %16650 = vmatprep.subr.bf16.mxu0 %v16546_v48  ;;  %18263 = vrot.lane.b32.xlu1 %v30209_v57, %s26229_s17 }
 0x9d2   :  { %v30481_v45 = vpop.permute.xlu0 %16819  ;;  %16639 = vmatprep.mubr.bf16.mxu0 %v32227_v17 }
 0x9d3   :  { %v30484_v56 = vpop.permute.xlu1 %16821  ;;  %v16834_v5 = vsel %vm958_vm10, %v30473_v30, %v30481_v45 }
 0x9d4   :  { %18265 = vrot.lane.b32.xlu0 %v30220_v26, %s26229_s17  ;;  %v16835_v37 = vsel %vm958_vm10, %v30481_v45, %v30484_v56 }
 0x9d5   :  { %18267 = vrot.lane.b32.xlu1 %v30222_v47, %s26229_s17 }
 0x9d6   :  { %v30490_v59 = vpop.permute.xlu0 %16823 }
 0x9d7   :  { %24292 = vmatmul.mubr.msk.bf16.vlgmr.msra.gmra.mrb[16].mxu0 %vm154_vm1, %v26173_v9  ;;  %v30494_v53 = vpop.permute.xlu1 %16825  ;;  %v16836_v32 = vsel %vm958_vm10, %v30484_v56, %v30490_v59 }
 0x9d8   :  { %16651 = vmatpush1.bf16.msra.mxu0 %v16545_v0  ;;  %18537 = vrot.lane.b32.xlu0 %v30156_v44, %s26231_s26  ;;  %v16837_v56 = vsel %vm958_vm10, %v30490_v59, %v30494_v53 }
 0x9d9   :  { %16693 = vmatprep.subr.bf16.mxu0 %v16548_v51  ;;  %18539 = vrot.lane.b32.xlu1 %v30159_v2, %s26231_s26 }
 0x9da   :  { %v30502_v60 = vpop.permute.xlu0 %16827  ;;  %16682 = vmatprep.mubr.bf16.mxu0 %v32227_v17 }
 0x9db   :  { %v30505_v24 = vpop.permute.xlu1 %17097  ;;  %v16838_v48 = vsel %vm958_vm10, %v30494_v53, %v30502_v60 }
 0x9dc   :  { %18535 = vrot.lane.b32.xlu0 %v32227_v17, %s26231_s26 }
 0x9dd   :  { %18541 = vrot.lane.b32.xlu1 %v30174_v41, %s26231_s26 }
 0x9de   :  { %v30511_v20 = vpop.permute.xlu0 %17099 }
 0x9df   :  { %24293 = vmatmul.mubr.msk.bf16.vlgmr.msra.gmra.mrb[20].mxu0 %vm154_vm1, %v26173_v9  ;;  %v30516_v15 = vpop.permute.xlu1 %17095 }
 0x9e0   :  { %16694 = vmatpush1.bf16.msra.mxu0 %v16547_v49  ;;  %18543 = vrot.lane.b32.xlu0 %v30177_v52, %s26231_s26  ;;  %v17118_v49 = vsel %vm1247_vm0, %v30505_v24, %v30511_v20  ;;  %v17117_v53 = vsel %vm1247_vm0, %v30516_v15, %v30505_v24  ;;  %v26175_v15 = vld [vmem:[%s32127_s1 + $0x1d0] sm:$0xff]  }
 0x9e1   :  { %16736 = vmatprep.subr.bf16.mxu0 %v16550_v63  ;;  %18545 = vrot.lane.b32.xlu1 %v30190_v16, %s26231_s26 }
 0x9e2   :  { %v30524_v13 = vpop.permute.xlu0 %17101  ;;  %16725 = vmatprep.mubr.bf16.mxu0 %v32227_v17 }
 0x9e3   :  { %v30527_v3 = vpop.permute.xlu1 %17103 }
 0x9e4   :  { %18547 = vrot.lane.b32.xlu0 %v30193_v62, %s26231_s26 }
 0x9e5   :  { %18549 = vrot.lane.b32.xlu1 %v30206_v36, %s26231_s26 }
 0x9e6   :  { %v30533_v58 = vpop.permute.xlu0 %17105 }
 0x9e7   :  { %24294 = vmatmul.mubr.msk.bf16.vlgmr.msra.gmra.mrb[24].mxu0 %vm154_vm1, %v26173_v9  ;;  %v30539_v28 = vpop.permute.xlu1 %17107 }
 0x9e8   :  { %16737 = vmatpush1.bf16.msra.mxu0 %v16549_v39  ;;  %18551 = vrot.lane.b32.xlu0 %v30209_v57, %s26231_s26 }
 0x9e9   :  { %16852 = vmatprep.subr.bf16.mxu0 %v16830_v61  ;;  %18553 = vrot.lane.b32.xlu1 %v30220_v26, %s26231_s26 }
 0x9ea   :  { %v30548_v34 = vpop.permute.xlu0 %17109  ;;  %16768 = vmatprep.mubr.bf16.mxu0 %v32227_v17 }
 0x9eb   :  { %v30551_v10 = vpop.permute.xlu1 %17111 }
 0x9ec   :  { %18555 = vrot.lane.b32.xlu0 %v30222_v47, %s26231_s26 }
 0x9ed   :  { %18825 = vrot.lane.b32.xlu1 %v30156_v44, %s26233_s30 }
 0x9ee   :  { %v30557_v35 = vpop.permute.xlu0 %17113 }
 0x9ef   :  { %24295 = vmatmul.mubr.msk.bf16.vlgmr.msra.gmra.mrb[28].mxu0 %vm154_vm1, %v26173_v9  ;;  %v30563_v6 = vpop.permute.xlu1 %17115 }
 0x9f0   :  { %16853 = vmatpush1.bf16.msra.mxu0 %v16829_v27  ;;  %18827 = vrot.lane.b32.xlu0 %v30159_v2, %s26233_s30  ;;  %v17120_v27 = vsel %vm1247_vm0, %v30524_v13, %v30527_v3 }
 0x9f1   :  { %16895 = vmatprep.subr.bf16.mxu0 %v16832_v50  ;;  %18823 = vrot.lane.b32.xlu1 %v32227_v17, %s26233_s30 }
 0x9f2   :  { %v30572_v4 = vpop.permute.xlu0 %17385  ;;  %16884 = vmatprep.mubr.bf16.mxu0 %v32227_v17 }
 0x9f3   :  { %v30575_v23 = vpop.permute.xlu1 %17387 }
 0x9f4   :  { %18829 = vrot.lane.b32.xlu0 %v30174_v41, %s26233_s30 }
 0x9f5   :  { %18831 = vrot.lane.b32.xlu1 %v30177_v52, %s26233_s30 }
 0x9f6   :  { %v30584_v1 = vpop.permute.xlu0 %17383 }
 0x9f7   :  { %24299 = vmatmul.mubr.msk.bf16.vlgmr.msra.gmra.mrb[12].mxu0 %vm154_vm1, %v26174_v31  ;;  %v30590_v40 = vpop.permute.xlu1 %17389 }
 0x9f8   :  { %16896 = vmatpush1.bf16.msra.mxu0 %v16831_v33  ;;  %18833 = vrot.lane.b32.xlu0 %v30190_v16, %s26233_s30  ;;  %v17119_v33 = vsel %vm1247_vm0, %v30511_v20, %v30524_v13  ;;  %v17121_v13 = vsel %vm1247_vm0, %v30527_v3, %v30533_v58 }
 0x9f9   :  { %16938 = vmatprep.subr.bf16.mxu0 %v16834_v5  ;;  %18835 = vrot.lane.b32.xlu1 %v30193_v62, %s26233_s30 }
 0x9fa   :  { %v30599_v25 = vpop.permute.xlu0 %17391  ;;  %16927 = vmatprep.mubr.bf16.mxu0 %v32227_v17 }
 0x9fb   :  { %v30602_v38 = vpop.permute.xlu1 %17393 }
 0x9fc   :  { %18837 = vrot.lane.b32.xlu0 %v30206_v36, %s26233_s30 }
 0x9fd   :  { %18839 = vrot.lane.b32.xlu1 %v30209_v57, %s26233_s30 }
 0x9fe   :  { %v30608_v12 = vpop.permute.xlu0 %17395 }
 0x9ff   :  { %24300 = vmatmul.mubr.msk.bf16.vlgmr.msra.gmra.mrb[16].mxu0 %vm154_vm1, %v26174_v31  ;;  %v30614_v54 = vpop.permute.xlu1 %17397 }
 0xa00   :  { %16939 = vmatpush1.bf16.msra.mxu0 %v16833_v43  ;;  %18841 = vrot.lane.b32.xlu0 %v30220_v26, %s26233_s30  ;;  %v17122_v43 = vsel %vm1247_vm0, %v30533_v58, %v30539_v28  ;;  %v17123_v58 = vsel %vm1247_vm0, %v30539_v28, %v30548_v34 }
 0xa01   :  { %16981 = vmatprep.subr.bf16.mxu0 %v16836_v32  ;;  %18843 = vrot.lane.b32.xlu1 %v30222_v47, %s26233_s30 }
 0xa02   :  { %v30623_v14 = vpop.permute.xlu0 %17399  ;;  %16970 = vmatprep.mubr.bf16.mxu0 %v32227_v17 }
 0xa03   :  { %v30626_v9 = vpop.permute.xlu1 %17401 }
 0xa04   :  { %19113 = vrot.lane.b32.xlu0 %v30156_v44, %s26234_s11 }
 0xa05   :  { %19115 = vrot.lane.b32.xlu1 %v30159_v2, %s26234_s11 }
 0xa06   :  { %v30632_v18 = vpop.permute.xlu0 %17403 }
 0xa07   :  { %24301 = vmatmul.mubr.msk.bf16.vlgmr.msra.gmra.mrb[20].mxu0 %vm154_vm1, %v26174_v31  ;;  %v30638_v30 = vpop.permute.xlu1 %17673 }
 0xa08   :  { %16982 = vmatpush1.bf16.msra.mxu0 %v16835_v37  ;;  %19111 = vrot.lane.b32.xlu0 %v32227_v17, %s26234_s11 }
 0xa09   :  { %17024 = vmatprep.subr.bf16.mxu0 %v16838_v48  ;;  %19117 = vrot.lane.b32.xlu1 %v30174_v41, %s26234_s11 }
 0xa0a   :  { %v30647_v0 = vpop.permute.xlu0 %17675  ;;  %17013 = vmatprep.mubr.bf16.mxu0 %v32227_v17 }
 0xa0b   :  { %v30650_v51 = vpop.permute.xlu1 %17671 }
 0xa0c   :  { %19119 = vrot.lane.b32.xlu0 %v30177_v52, %s26234_s11 }
 0xa0d   :  { %19121 = vrot.lane.b32.xlu1 %v30190_v16, %s26234_s11 }
 0xa0e   :  { %v30656_v45 = vpop.permute.xlu0 %17677 }
 0xa0f   :  { %24302 = vmatmul.mubr.msk.bf16.vlgmr.msra.gmra.mrb[24].mxu0 %vm154_vm1, %v26174_v31  ;;  %v30662_v60 = vpop.permute.xlu1 %17679 }
 0xa10   :  { %17025 = vmatpush1.bf16.msra.mxu0 %v16837_v56  ;;  %19123 = vrot.lane.b32.xlu0 %v30193_v62, %s26234_s11  ;;  %v17124_v56 = vsel %vm1247_vm0, %v30548_v34, %v30551_v10  ;;  %v17125_v34 = vsel %vm1247_vm0, %v30551_v10, %v30557_v35 }
 0xa11   :  { %17140 = vmatprep.subr.bf16.mxu0 %v17118_v49  ;;  %19125 = vrot.lane.b32.xlu1 %v30206_v36, %s26234_s11 }
 0xa12   :  { %v30671_v63 = vpop.permute.xlu0 %17681  ;;  %17056 = vmatprep.mubr.bf16.mxu0 %v32227_v17 }
 0xa13   :  { %v30674_v39 = vpop.permute.xlu1 %17683 }
 0xa14   :  { %19127 = vrot.lane.b32.xlu0 %v30209_v57, %s26234_s11 }
 0xa15   :  { %19129 = vrot.lane.b32.xlu1 %v30220_v26, %s26234_s11 }
 0xa16   :  { %v30680_v59 = vpop.permute.xlu0 %17685 }
 0xa17   :  { %24303 = vmatmul.mubr.msk.bf16.vlgmr.msra.gmra.mrb[28].mxu0 %vm154_vm1, %v26174_v31  ;;  %v30686_v61 = vpop.permute.xlu1 %17687 }
 0xa18   :  { %17141 = vmatpush1.bf16.msra.mxu0 %v17117_v53  ;;  %19131 = vrot.lane.b32.xlu0 %v30222_v47, %s26234_s11 }
 0xa19   :  { %17183 = vmatprep.subr.bf16.mxu0 %v17120_v27  ;;  %19401 = vrot.lane.b32.xlu1 %v30156_v44, %s26235_s22 }
 0xa1a   :  { %v30695_v50 = vpop.permute.xlu0 %17689  ;;  %17172 = vmatprep.mubr.bf16.mxu0 %v32227_v17 }
 0xa1b   :  { %v30698_v24 = vpop.permute.xlu1 %17691 }
 0xa1c   :  { %19403 = vrot.lane.b32.xlu0 %v30159_v2, %s26235_s22 }
 0xa1d   :  { %19399 = vrot.lane.b32.xlu1 %v32227_v17, %s26235_s22 }
 0xa1e   :  { %v30707_v31 = vpop.permute.xlu0 %17961 }
 0xa1f   :  { %24307 = vmatmul.mubr.msk.bf16.vlgmr.msra.gmra.mrb[12].mxu0 %vm154_vm1, %v26175_v15  ;;  %v30713_v5 = vpop.permute.xlu1 %17963 }
 0xa20   :  { %17184 = vmatpush1.bf16.msra.mxu0 %v17119_v33  ;;  %19405 = vrot.lane.b32.xlu0 %v30174_v41, %s26235_s22  ;;  %v17126_v33 = vsel %vm1247_vm0, %v30557_v35, %v30563_v6  ;;  %vm32365_vm0 = vmmov %vm32364_vm2 }
 0xa21   :  { %17226 = vmatprep.subr.bf16.mxu0 %v17122_v43  ;;  %19407 = vrot.lane.b32.xlu1 %v30177_v52, %s26235_s22  ;;  %v17405_v35 = vsel %vm32365_vm0, %v30584_v1, %v30572_v4  ;;  %vm32366_vm5 = vmmov %vm32365_vm0  ;;  %v26176_v1 = vld [vmem:[%s32127_s1 + $0x1d8] sm:$0xff]  }
 0xa22   :  { %v30722_v32 = vpop.permute.xlu0 %17959  ;;  %17215 = vmatprep.mubr.bf16.mxu0 %v32227_v17  ;;  %vm32367_vm8 = vmmov %vm32365_vm0 }
 0xa23   :  { %v30725_v37 = vpop.permute.xlu1 %17965  ;;  %vm32368_vm10 = vmmov %vm32365_vm0 }
 0xa24   :  { %19409 = vrot.lane.b32.xlu0 %v30190_v16, %s26235_s22  ;;  %v17410_v8 = vsel %vm32368_vm10, %v30602_v38, %v30608_v12  ;;  %vm32369_vm6 = vmmov %vm32365_vm0 }
 0xa25   :  { %19411 = vrot.lane.b32.xlu1 %v30193_v62, %s26235_s22  ;;  %vm32370_vm3 = vmmov %vm32365_vm0 }
 0xa26   :  { %v30731_v20 = vpop.permute.xlu0 %17967  ;;  %vm32371_vm4 = vmmov %vm32365_vm0 }
 0xa27   :  { %24308 = vmatmul.mubr.msk.bf16.vlgmr.msra.gmra.mrb[16].mxu0 %vm154_vm1, %v26175_v15  ;;  %v30737_v48 = vpop.permute.xlu1 %17969  ;;  %vm32372_vm9 = vmmov %vm32365_vm0 }
 0xa28   :  { %17227 = vmatpush1.bf16.msra.mxu0 %v17121_v13  ;;  %19413 = vrot.lane.b32.xlu0 %v30206_v36, %s26235_s22 }
 0xa29   :  { %17269 = vmatprep.subr.bf16.mxu0 %v17124_v56  ;;  %19415 = vrot.lane.b32.xlu1 %v30209_v57, %s26235_s22  ;;  %v17406_v56 = vsel %vm32364_vm2, %v30572_v4, %v30575_v23  ;;  %vm32373_vm2 = vmmov %vm32365_vm0  ;;  %vm32374_vm0 = vcmask 744448  }
 0xa2a   :  { %v30746_v49 = vpop.permute.xlu0 %17971  ;;  %17258 = vmatprep.mubr.bf16.mxu0 %v32227_v17  ;;  %vm32377_vm10 = vmmov %vm32374_vm0 }
 0xa2b   :  { %v30749_v53 = vpop.permute.xlu1 %17973 }
 0xa2c   :  { %19417 = vrot.lane.b32.xlu0 %v30220_v26, %s26235_s22 }
 0xa2d   :  { %19419 = vrot.lane.b32.xlu1 %v30222_v47, %s26235_s22 }
 0xa2e   :  { %v30755_v3 = vpop.permute.xlu0 %17975 }
 0xa2f   :  { %24309 = vmatmul.mubr.msk.bf16.vlgmr.msra.gmra.mrb[20].mxu0 %vm154_vm1, %v26175_v15  ;;  %v30761_v27 = vpop.permute.xlu1 %17977 }
 0xa30   :  { %17270 = vmatpush1.bf16.msra.mxu0 %v17123_v58  ;;  %19957 = vrot.lane.b32.xlu0 %v30159_v2, %s26236_s20 }
 0xa31   :  { %17312 = vmatprep.subr.bf16.mxu0 %v17126_v33  ;;  %19959 = vrot.lane.b32.xlu1 %v30174_v41, %s26236_s20 }
 0xa32   :  { %v30770_v43 = vpop.permute.xlu0 %17979  ;;  %17301 = vmatprep.mubr.bf16.mxu0 %v32227_v17 }
 0xa33   :  { %v30773_v13 = vpop.permute.xlu1 %18249 }
 0xa34   :  { %19955 = vrot.lane.b32.xlu0 %v30156_v44, %s26236_s20 }
 0xa35   :  { %19961 = vrot.lane.b32.xlu1 %v30177_v52, %s26236_s20 }
 0xa36   :  { %v30779_v28 = vpop.permute.xlu0 %18251 }
 0xa37   :  { %24310 = vmatmul.mubr.msk.bf16.vlgmr.msra.gmra.mrb[24].mxu0 %vm154_vm1, %v26175_v15  ;;  %v30785_v6 = vpop.permute.xlu1 %18247 }
 0xa38   :  { %17313 = vmatpush1.bf16.msra.mxu0 %v17125_v34  ;;  %19963 = vrot.lane.b32.xlu0 %v30190_v16, %s26236_s20 }
 0xa39   :  { %17428 = vmatprep.subr.bf16.mxu0 %v17406_v56  ;;  %19965 = vrot.lane.b32.xlu1 %v30193_v62, %s26236_s20  ;;  %v17408_v56 = vsel %vm32366_vm5, %v30590_v40, %v30599_v25  ;;  %vm32375_vm5 = vmmov %vm32374_vm0 }
 0xa3a   :  { %v30794_v58 = vpop.permute.xlu0 %18253  ;;  %17344 = vmatprep.mubr.bf16.mxu0 %v32227_v17 }
 0xa3b   :  { %v30797_v33 = vpop.permute.xlu1 %18255 }
 0xa3c   :  { %19967 = vrot.lane.b32.xlu0 %v30206_v36, %s26236_s20 }
 0xa3d   :  { %19969 = vrot.lane.b32.xlu1 %v30209_v57, %s26236_s20 }
 0xa3e   :  { %v30803_v10 = vpop.permute.xlu0 %18257 }
 0xa3f   :  { %24311 = vmatmul.mubr.msk.bf16.vlgmr.msra.gmra.mrb[28].mxu0 %vm154_vm1, %v26175_v15  ;;  %v30809_v34 = vpop.permute.xlu1 %18259 }
 0xa40   :  { %17429 = vmatpush1.bf16.msra.mxu0 %v17405_v35  ;;  %19971 = vrot.lane.b32.xlu0 %v30220_v26, %s26236_s20  ;;  %v17407_v35 = vsel %vm32367_vm8, %v30575_v23, %v30590_v40  ;;  %vm32376_vm8 = vmmov %vm32374_vm0 }
 0xa41   :  { %17471 = vmatprep.subr.bf16.mxu0 %v17408_v56  ;;  %19973 = vrot.lane.b32.xlu1 %v30222_v47, %s26236_s20 }
 0xa42   :  { %v30818_v7 = vpop.permute.xlu0 %18261  ;;  %17460 = vmatprep.mubr.bf16.mxu0 %v32227_v17 }
 0xa43   :  { %v30821_v4 = vpop.permute.xlu1 %18263 }
 0xa44   :  { %19975 = vrot.lane.b32.xlu0 %v32227_v17, %s26236_s20 }
 0xa45   :  { %20245 = vrot.lane.b32.xlu1 %v30159_v2, %s26237_s5 }
 0xa46   :  { %v30830_v15 = vpop.permute.xlu0 %18265 }
 0xa47   :  { %24315 = vmatmul.mubr.msk.bf16.vlgmr.msra.gmra.mrb[12].mxu0 %vm154_vm1, %v26176_v1  ;;  %v30836_v56 = vpop.permute.xlu1 %18267 }
 0xa48   :  { %17472 = vmatpush1.bf16.msra.mxu0 %v17407_v35  ;;  %20247 = vrot.lane.b32.xlu0 %v30174_v41, %s26237_s5  ;;  %v17412_v35 = vsel %vm32370_vm3, %v30614_v54, %v30623_v14  ;;  %vm32379_vm3 = vmmov %vm32374_vm0 }
 0xa49   :  { %17514 = vmatprep.subr.bf16.mxu0 %v17410_v8  ;;  %20243 = vrot.lane.b32.xlu1 %v30156_v44, %s26237_s5  ;;  %v17409_v8 = vsel %vm32369_vm6, %v30599_v25, %v30602_v38  ;;  %v17411_v38 = vsel %vm32371_vm4, %v30608_v12, %v30614_v54  ;;  %v17413_v54 = vsel %vm32373_vm2, %v30623_v14, %v30626_v9  ;;  %vm32378_vm6 = vmmov %vm32374_vm0 }
 0xa4a   :  { %v30845_v29 = vpop.permute.xlu0 %18537  ;;  %17503 = vmatprep.mubr.bf16.mxu0 %v32227_v17  ;;  %vm32380_vm4 = vmmov %vm32374_vm0 }
 0xa4b   :  { %v30848_v42 = vpop.permute.xlu1 %18539  ;;  %vm32382_vm2 = vmmov %vm32374_vm0 }
 0xa4c   :  { %20249 = vrot.lane.b32.xlu0 %v30177_v52, %s26237_s5 }
 0xa4d   :  { %20251 = vrot.lane.b32.xlu1 %v30190_v16, %s26237_s5 }
 0xa4e   :  { %v30854_v23 = vpop.permute.xlu0 %18535 }
 0xa4f   :  { %24316 = vmatmul.mubr.msk.bf16.vlgmr.msra.gmra.mrb[16].mxu0 %vm154_vm1, %v26176_v1  ;;  %v30860_v40 = vpop.permute.xlu1 %18541 }
 0xa50   :  { %17515 = vmatpush1.bf16.msra.mxu0 %v17409_v8  ;;  %20253 = vrot.lane.b32.xlu0 %v30193_v62, %s26237_s5 }
 0xa51   :  { %17557 = vmatprep.subr.bf16.mxu0 %v17412_v35  ;;  %20255 = vrot.lane.b32.xlu1 %v30206_v36, %s26237_s5  ;;  %v17414_v35 = vsel %vm32372_vm9, %v30626_v9, %v30632_v18  ;;  %v17693_v9 = vsel %vm32375_vm5, %v30650_v51, %v30638_v30  ;;  %vm32381_vm9 = vmmov %vm32374_vm0  ;;  %vm32383_vm5 = vcmask 736256  }
 0xa52   :  { %v30869_v46 = vpop.permute.xlu0 %18543  ;;  %17546 = vmatprep.mubr.bf16.mxu0 %v32227_v17 }
 0xa53   :  { %v30872_v55 = vpop.permute.xlu1 %18545 }
 0xa54   :  { %20257 = vrot.lane.b32.xlu0 %v30209_v57, %s26237_s5 }
 0xa55   :  { %20259 = vrot.lane.b32.xlu1 %v30220_v26, %s26237_s5 }
 0xa56   :  { %v30878_v25 = vpop.permute.xlu0 %18547 }
 0xa57   :  { %24317 = vmatmul.mubr.msk.bf16.vlgmr.msra.gmra.mrb[20].mxu0 %vm154_vm1, %v26176_v1  ;;  %v30884_v8 = vpop.permute.xlu1 %18549 }
 0xa58   :  { %17558 = vmatpush1.bf16.msra.mxu0 %v17411_v38  ;;  %20261 = vrot.lane.b32.xlu0 %v30222_v47, %s26237_s5  ;;  %v17694_v38 = vsel %vm32374_vm0, %v30638_v30, %v30647_v0  ;;  %v26177_v30 = vld [vmem:[%s32127_s1 + $0x1e0] sm:$0xff]  }
 0xa59   :  { %17600 = vmatprep.subr.bf16.mxu0 %v17414_v35  ;;  %20263 = vrot.lane.b32.xlu1 %v32227_v17, %s26237_s5 }
 0xa5a   :  { %v30893_v21 = vpop.permute.xlu0 %18551  ;;  %17589 = vmatprep.mubr.bf16.mxu0 %v32227_v17 }
 0xa5b   :  { %v30898_v12 = vpop.permute.xlu1 %18553 }
 0xa5c   :  { %20533 = vrot.lane.b32.xlu0 %v30159_v2, %s26238_s10 }
 0xa5d   :  { %20535 = vrot.lane.b32.xlu1 %v30174_v41, %s26238_s10 }
 0xa5e   :  { %v30906_v18 = vpop.permute.xlu0 %18555 }
 0xa5f   :  { %24318 = vmatmul.mubr.msk.bf16.vlgmr.msra.gmra.mrb[24].mxu0 %vm154_vm1, %v26176_v1  ;;  %v30916_v35 = vpop.permute.xlu1 %18825 }
 0xa60   :  { %17601 = vmatpush1.bf16.msra.mxu0 %v17413_v54  ;;  %20531 = vrot.lane.b32.xlu0 %v30156_v44, %s26238_s10  ;;  %v17696_v54 = vsel %vm32376_vm8, %v30656_v45, %v30662_v60  ;;  %vm32384_vm8 = vmmov %vm32383_vm5 }
 0xa61   :  { %17716 = vmatprep.subr.bf16.mxu0 %v17694_v38  ;;  %20537 = vrot.lane.b32.xlu1 %v30177_v52, %s26238_s10 }
 0xa62   :  { %17632 = vmatprep.mubr.bf16.mxu0 %v32227_v17  ;;  %v30922_v14 = vpop.permute.xlu0 %18827 }
 0xa63   :  { %v30933_v38 = vpop.permute.xlu1 %18823 }
 0xa64   :  { %20539 = vrot.lane.b32.xlu0 %v30190_v16, %s26238_s10 }
 0xa65   :  { %20541 = vrot.lane.b32.xlu1 %v30193_v62, %s26238_s10 }
 0xa66   :  { %v30941_v51 = vpop.permute.xlu0 %18829 }
 0xa67   :  { %24319 = vmatmul.mubr.msk.bf16.vlgmr.msra.gmra.mrb[28].mxu0 %vm154_vm1, %v26176_v1  ;;  %v30947_v1 = vpop.permute.xlu1 %18831 }
 0xa68   :  { %17717 = vmatpush1.bf16.msra.mxu0 %v17693_v9  ;;  %20543 = vrot.lane.b32.xlu0 %v30206_v36, %s26238_s10  ;;  %v17695_v9 = vsel %vm32377_vm10, %v30647_v0, %v30656_v45  ;;  %v17697_v45 = vsel %vm32379_vm3, %v30662_v60, %v30671_v63  ;;  %vm32385_vm10 = vmmov %vm32383_vm5 }
 0xa69   :  { %17759 = vmatprep.subr.bf16.mxu0 %v17696_v54  ;;  %20545 = vrot.lane.b32.xlu1 %v30209_v57, %s26238_s10  ;;  %v17698_v54 = vsel %vm32378_vm6, %v30671_v63, %v30674_v39  ;;  %v17699_v63 = vsel %vm32381_vm9, %v30674_v39, %v30680_v59  ;;  %vm32387_vm6 = vmmov %vm32383_vm5 }
 0xa6a   :  { %17748 = vmatprep.mubr.bf16.mxu0 %v32227_v17  ;;  %v30960_v19 = vpop.permute.xlu0 %18833  ;;  %vm32388_vm3 = vmmov %vm32383_vm5 }
 0xa6b   :  { %v30965_v0 = vpop.permute.xlu1 %18835  ;;  %vm32390_vm9 = vmmov %vm32388_vm3 }
 0xa6c   :  { %20547 = vrot.lane.b32.xlu0 %v30220_v26, %s26238_s10 }
 0xa6d   :  { %20549 = vrot.lane.b32.xlu1 %v30222_v47, %s26238_s10 }
 0xa6f   :  { %24323 = vmatmul.mubr.msk.bf16.vlgmr.msra.gmra.mrb[12].mxu0 %vm154_vm1, %v26177_v30  ;;  %v30983_v22 = vpop.permute.xlu1 %18839 }
 0xa70   :  { %17760 = vmatpush1.bf16.msra.mxu0 %v17695_v9  ;;  %20551 = vrot.lane.b32.xlu0 %v32227_v17, %s26238_s10  ;;  %v30973_v9 = vpop.permute.xlu0 %18837 }
 0xa71   :  { %17802 = vmatprep.subr.bf16.mxu0 %v17698_v54  ;;  %20821 = vrot.lane.b32.xlu1 %v30159_v2, %s26239_s21  ;;  %v17700_v54 = vsel %vm32380_vm4, %v30680_v59, %v30686_v61  ;;  %v17701_v59 = vsel %vm32374_vm0, %v30686_v61, %v30695_v50  ;;  %vm32389_vm4 = vmmov %vm32388_vm3 }
 0xa72   :  { %17791 = vmatprep.mubr.bf16.mxu0 %v32227_v17 }
 0xa74   :  { %20823 = vrot.lane.b32.xlu0 %v30174_v41, %s26239_s21  ;;  %v30989_v60 = vpop.permute.xlu0 %18841 }
 0xa75   :  { %20819 = vrot.lane.b32.xlu1 %v30156_v44, %s26239_s21 }
 0xa77   :  { %24324 = vmatmul.mubr.msk.bf16.vlgmr.msra.gmra.mrb[16].mxu0 %vm154_vm1, %v26177_v30 }
 0xa78   :  { %17803 = vmatpush1.bf16.msra.mxu0 %v17697_v45  ;;  %20825 = vrot.lane.b32.xlu0 %v30177_v52, %s26239_s21  ;;  %v17702_v45 = vsel %vm32382_vm2, %v30695_v50, %v30698_v24  ;;  %v31005_v11 = vpop.permute.xlu0 %19113  ;;  %v17982_v24 = vsel %vm32383_vm5, %v30707_v31, %v30713_v5  ;;  %v17981_v50 = vsel %vm32384_vm8, %v30722_v32, %v30707_v31  ;;  %v26178_v31 = vld [vmem:[%s32127_s1 + $0x1e8] sm:$0xff]   ;;  %vm32392_vm2 = vmmov %vm32388_vm3  ;;  %vm32395_vm8 = vcmask 728064  }
 0xa79   :  { %17845 = vmatprep.subr.bf16.mxu0 %v17700_v54  ;;  %20827 = vrot.lane.b32.xlu1 %v30190_v16, %s26239_s21  ;;  %v31000_v54 = vpop.permute.xlu1 %18843  ;;  %vm32393_vm0 = vmmov %vm32392_vm2 }
 0xa7a   :  { %17834 = vmatprep.mubr.bf16.mxu0 %v32227_v17  ;;  %vm32394_vm5 = vmmov %vm32393_vm0 }
 0xa7c   :  { %20829 = vrot.lane.b32.xlu0 %v30193_v62, %s26239_s21 }
 0xa7d   :  { %20831 = vrot.lane.b32.xlu1 %v30206_v36, %s26239_s21  ;;  %v31011_v39 = vpop.permute.xlu1 %19115 }
 0xa7f   :  { %24325 = vmatmul.mubr.msk.bf16.vlgmr.msra.gmra.mrb[20].mxu0 %vm154_vm1, %v26177_v30 }
 0xa80   :  { %17846 = vmatpush1.bf16.msra.mxu0 %v17699_v63  ;;  %20833 = vrot.lane.b32.xlu0 %v30209_v57, %s26239_s21  ;;  %v31024_v63 = vpop.permute.xlu0 %19111 }
 0xa81   :  { %17888 = vmatprep.subr.bf16.mxu0 %v17702_v45  ;;  %20835 = vrot.lane.b32.xlu1 %v30220_v26, %s26239_s21  ;;  %v31029_v61 = vpop.permute.xlu1 %19117 }
 0xa82   :  { %17877 = vmatprep.mubr.bf16.mxu0 %v32227_v17 }
 0xa84   :  { %20837 = vrot.lane.b32.xlu0 %v30222_v47, %s26239_s21  ;;  %v31037_v45 = vpop.permute.xlu0 %19119 }
 0xa85   :  { %20839 = vrot.lane.b32.xlu1 %v32227_v17, %s26239_s21 }
 0xa87   :  { %24326 = vmatmul.mubr.msk.bf16.vlgmr.msra.gmra.mrb[24].mxu0 %vm154_vm1, %v26177_v30 }
 0xa88   :  { %17889 = vmatpush1.bf16.msra.mxu0 %v17701_v59  ;;  %21109 = vrot.lane.b32.xlu0 %v30159_v2, %s32230_s12  ;;  %v17984_v59 = vsel %vm32385_vm10, %v30725_v37, %v30731_v20  ;;  %v31056_v32 = vpop.permute.xlu0 %19123  ;;  %vm32396_vm10 = vmmov %vm32395_vm8 }
 0xa89   :  { %18004 = vmatprep.subr.bf16.mxu0 %v17982_v24  ;;  %21111 = vrot.lane.b32.xlu1 %v30174_v41, %s32230_s12  ;;  %v31047_v24 = vpop.permute.xlu1 %19121 }
 0xa8a   :  { %17920 = vmatprep.mubr.bf16.mxu0 %v32227_v17  ;;  %32386 = vst [vmem:[#allocation17_spill] sm:$0xff] %v31047_v24 }
 0xa8c   :  { %21107 = vrot.lane.b32.xlu0 %v30156_v44, %s32230_s12  ;;  %v31072_v24 = vpop.permute.xlu0 %19127 }
 0xa8d   :  { %21113 = vrot.lane.b32.xlu1 %v30177_v52, %s32230_s12 }
 0xa8f   :  { %24327 = vmatmul.mubr.msk.bf16.vlgmr.msra.gmra.mrb[28].mxu0 %vm154_vm1, %v26177_v30  ;;  %v17983_v30 = vsel %vm32387_vm6, %v30713_v5, %v30725_v37  ;;  %v17985_v37 = vsel %vm32389_vm4, %v30731_v20, %v30737_v48  ;;  %vm32397_vm6 = vmmov %vm32395_vm8 }
 0xa90   :  { %18005 = vmatpush1.bf16.msra.mxu0 %v17981_v50  ;;  %21115 = vrot.lane.b32.xlu0 %v30190_v16, %s32230_s12  ;;  %v17986_v50 = vsel %vm32388_vm3, %v30737_v48, %v30746_v49  ;;  %v17987_v48 = vsel %vm32392_vm2, %v30746_v49, %v30749_v53  ;;  %vm32399_vm3 = vmmov %vm32397_vm6 }
 0xa91   :  { %18047 = vmatprep.subr.bf16.mxu0 %v17984_v59  ;;  %21117 = vrot.lane.b32.xlu1 %v30193_v62, %s32230_s12  ;;  %v31067_v59 = vpop.permute.xlu1 %19125  ;;  %vm32400_vm4 = vmmov %vm32399_vm3 }
 0xa92   :  { %18036 = vmatprep.mubr.bf16.mxu0 %v32227_v17  ;;  %vm32403_vm2 = vmmov %vm32399_vm3 }
 0xa94   :  { %21119 = vrot.lane.b32.xlu0 %v30206_v36, %s32230_s12 }
 0xa95   :  { %21121 = vrot.lane.b32.xlu1 %v30209_v57, %s32230_s12  ;;  %v31078_v5 = vpop.permute.xlu1 %19129 }
 0xa97   :  { %24331 = vmatmul.mubr.msk.bf16.vlgmr.msra.gmra.mrb[12].mxu0 %vm154_vm1, %v26178_v31 }
 0xa98   :  { %18048 = vmatpush1.bf16.msra.mxu0 %v17983_v30  ;;  %21123 = vrot.lane.b32.xlu0 %v30220_v26, %s32230_s12  ;;  %v17988_v30 = vsel %vm32390_vm9, %v30749_v53, %v30755_v3  ;;  %v17989_v53 = vsel %vm32394_vm5, %v30755_v3, %v30761_v27  ;;  %v18269_v3 = vsel %vm32396_vm10, %v30785_v6, %v30773_v13  ;;  %vm32402_vm9 = vmmov %vm32399_vm3  ;;  %vm32407_vm10 = vcmask 89088  }
 0xa99   :  { %18090 = vmatprep.subr.bf16.mxu0 %v17986_v50  ;;  %21125 = vrot.lane.b32.xlu1 %v30222_v47, %s32230_s12  ;;  %v31091_v50 = vpop.permute.xlu0 %19131  ;;  %v31096_v20 = vpop.permute.xlu1 %19401 }
 0xa9a   :  { %18079 = vmatprep.mubr.bf16.mxu0 %v32227_v17  ;;  %32391 = vst [vmem:[#allocation18_spill] sm:$0xff] %v31096_v20 }
 0xa9c   :  { %21127 = vrot.lane.b32.xlu0 %v32227_v17, %s32230_s12 }
 0xa9d   :  { %21397 = vrot.lane.b32.xlu1 %v30159_v2, %s32232_s13  ;;  %v31114_v20 = vpop.permute.xlu1 %19399 }
 0xa9f   :  { %24332 = vmatmul.mubr.msk.bf16.vlgmr.msra.gmra.mrb[16].mxu0 %vm154_vm1, %v26178_v31 }
 0xaa0   :  { %18091 = vmatpush1.bf16.msra.mxu0 %v17985_v37  ;;  %21399 = vrot.lane.b32.xlu0 %v30174_v41, %s32232_s13  ;;  %v31104_v37 = vpop.permute.xlu0 %19403 }
 0xaa1   :  { %18133 = vmatprep.subr.bf16.mxu0 %v17988_v30  ;;  %21395 = vrot.lane.b32.xlu1 %v30156_v44, %s32232_s13  ;;  %v17990_v30 = vsel %vm32393_vm0, %v30761_v27, %v30770_v43  ;;  %v18270_v43 = vsel %vm32395_vm8, %v30773_v13, %v30779_v28  ;;  %v26179_v13 = vld [vmem:[%s32127_s1 + $0x1f0] sm:$0xff]   ;;  %vm32404_vm0 = vmmov %vm32403_vm2 }
 0xaa2   :  { %18122 = vmatprep.mubr.bf16.mxu0 %v32227_v17  ;;  %vm32405_vm5 = vmmov %vm32404_vm0 }
 0xaa3   :  { %vm32406_vm8 = vmmov %vm32404_vm0 }
 0xaa4   :  { %21401 = vrot.lane.b32.xlu0 %v30177_v52, %s32232_s13  ;;  %v31120_v49 = vpop.permute.xlu0 %19405 }
 0xaa5   :  { %21403 = vrot.lane.b32.xlu1 %v30190_v16, %s32232_s13 }
 0xaa7   :  { %24333 = vmatmul.mubr.msk.bf16.vlgmr.msra.gmra.mrb[20].mxu0 %vm154_vm1, %v26178_v31 }
 0xaa8   :  { %18134 = vmatpush1.bf16.msra.mxu0 %v17987_v48  ;;  %21405 = vrot.lane.b32.xlu0 %v30193_v62, %s32232_s13  ;;  %v31131_v48 = vpop.permute.xlu1 %19407 }
 0xaa9   :  { %18176 = vmatprep.subr.bf16.mxu0 %v17990_v30  ;;  %21407 = vrot.lane.b32.xlu1 %v30206_v36, %s32232_s13  ;;  %v31136_v30 = vpop.permute.xlu0 %19409 }
 0xaaa   :  { %18165 = vmatprep.mubr.bf16.mxu0 %v32227_v17 }
 0xaac   :  { %21409 = vrot.lane.b32.xlu0 %v30209_v57, %s32232_s13  ;;  %v31145_v27 = vpop.permute.xlu1 %19411 }
 0xaad   :  { %21411 = vrot.lane.b32.xlu1 %v30220_v26, %s32232_s13 }
 0xaaf   :  { %24334 = vmatmul.mubr.msk.bf16.vlgmr.msra.gmra.mrb[24].mxu0 %vm154_vm1, %v26178_v31 }
 0xab0   :  { %18177 = vmatpush1.bf16.msra.mxu0 %v17989_v53  ;;  %21413 = vrot.lane.b32.xlu0 %v30222_v47, %s32232_s13  ;;  %v18272_v53 = vsel %vm32397_vm6, %v30794_v58, %v30797_v33  ;;  %v31163_v6 = vpop.permute.xlu1 %19415  ;;  %vm32408_vm6 = vmmov %vm32407_vm10 }
 0xab1   :  { %18292 = vmatprep.subr.bf16.mxu0 %v18270_v43  ;;  %21415 = vrot.lane.b32.xlu1 %v32227_v17, %s32232_s13  ;;  %v31155_v43 = vpop.permute.xlu0 %19413 }
 0xab2   :  { %18208 = vmatprep.mubr.bf16.mxu0 %v32227_v17  ;;  %32398 = vst [vmem:[#allocation19_spill] sm:$0xff] %v31155_v43 }
 0xab4   :  { %21685 = vrot.lane.b32.xlu0 %v30159_v2, %s32235_s3  ;;  %v31181_v43 = vpop.permute.xlu1 %19419 }
 0xab5   :  { %21687 = vrot.lane.b32.xlu1 %v30174_v41, %s32235_s3 }
 0xab7   :  { %24335 = vmatmul.mubr.msk.bf16.vlgmr.msra.gmra.mrb[28].mxu0 %vm154_vm1, %v26178_v31  ;;  %v18271_v31 = vsel %vm32399_vm3, %v30779_v28, %v30794_v58  ;;  %v18273_v58 = vsel %vm32402_vm9, %v30797_v33, %v30803_v10  ;;  %vm32409_vm3 = vmmov %vm32408_vm6 }
 0xab8   :  { %18293 = vmatpush1.bf16.msra.mxu0 %v18269_v3  ;;  %21683 = vrot.lane.b32.xlu0 %v30156_v44, %s32235_s3  ;;  %v31171_v3 = vpop.permute.xlu0 %19417  ;;  %vm32412_vm9 = vmmov %vm32409_vm3 }
 0xab9   :  { %18335 = vmatprep.subr.bf16.mxu0 %v18272_v53  ;;  %21689 = vrot.lane.b32.xlu1 %v30177_v52, %s32235_s3  ;;  %v18274_v53 = vsel %vm32400_vm4, %v30803_v10, %v30809_v34  ;;  %v18275_v10 = vsel %vm32404_vm0, %v30809_v34, %v30818_v7  ;;  %v18277_v34 = vsel %vm32406_vm8, %v30821_v4, %v30830_v15  ;;  %vm32411_vm4 = vmmov %vm32409_vm3 }
 0xaba   :  { %18324 = vmatprep.mubr.bf16.mxu0 %v32227_v17 }
 0xabc   :  { %21691 = vrot.lane.b32.xlu0 %v30190_v16, %s32235_s3  ;;  %v31187_v28 = vpop.permute.xlu0 %19957 }
 0xabd   :  { %21693 = vrot.lane.b32.xlu1 %v30193_v62, %s32235_s3  ;;  %32401 = vst [vmem:[#allocation20_spill] sm:$0xff] %v31187_v28 }
 0xabf   :  { %24339 = vmatmul.mubr.msk.bf16.vlgmr.msra.gmra.mrb[12].mxu0 %vm154_vm1, %v26179_v13 }
 0xac0   :  { %18336 = vmatpush1.bf16.msra.mxu0 %v18271_v31  ;;  %21695 = vrot.lane.b32.xlu0 %v30206_v36, %s32235_s3  ;;  %v18276_v31 = vsel %vm32403_vm2, %v30818_v7, %v30821_v4  ;;  %v31203_v28 = vpop.permute.xlu0 %19955  ;;  %vm32414_vm2 = vmmov %vm32409_vm3 }
 0xac1   :  { %18378 = vmatprep.subr.bf16.mxu0 %v18274_v53  ;;  %21697 = vrot.lane.b32.xlu1 %v30209_v57, %s32235_s3  ;;  %v31198_v53 = vpop.permute.xlu1 %19959  ;;  %vm32415_vm0 = vmmov %vm32414_vm2 }
 0xac2   :  { %18367 = vmatprep.mubr.bf16.mxu0 %v32227_v17  ;;  %vm32419_vm8 = vmmov %vm32415_vm0 }
 0xac4   :  { %21699 = vrot.lane.b32.xlu0 %v30220_v26, %s32235_s3 }
 0xac5   :  { %21701 = vrot.lane.b32.xlu1 %v30222_v47, %s32235_s3  ;;  %v31209_v33 = vpop.permute.xlu1 %19961 }
 0xac7   :  { %24340 = vmatmul.mubr.msk.bf16.vlgmr.msra.gmra.mrb[16].mxu0 %vm154_vm1, %v26179_v13 }
 0xac8   :  { %18379 = vmatpush1.bf16.msra.mxu0 %v18273_v58  ;;  %21703 = vrot.lane.b32.xlu0 %v32227_v17, %s32235_s3  ;;  %v18278_v58 = vsel %vm32405_vm5, %v30830_v15, %v30836_v56  ;;  %v18557_v15 = vsel %vm32408_vm6, %v30854_v23, %v30845_v29  ;;  %s32416_s3 = smov 27   ;;  %vm32418_vm5 = vmmov %vm32415_vm0  ;;  %vm32421_vm6 = vcmask 80896  }
 0xac9   :  { %18421 = vmatprep.subr.bf16.mxu0 %v18276_v31  ;;  %21973 = vrot.lane.b32.xlu1 %v30159_v2, %s26243_s8  ;;  %v31222_v31 = vpop.permute.xlu0 %19963  ;;  %v31227_v7 = vpop.permute.xlu1 %19965 }
 0xaca   :  { %18410 = vmatprep.mubr.bf16.mxu0 %v32227_v17 }
 0xacc   :  { %21975 = vrot.lane.b32.xlu0 %v30174_v41, %s26243_s8 }
 0xacd   :  { %21971 = vrot.lane.b32.xlu1 %v30156_v44, %s26243_s8  ;;  %v31235_v56 = vpop.permute.xlu0 %19967 }
 0xacf   :  { %24341 = vmatmul.mubr.msk.bf16.vlgmr.msra.gmra.mrb[20].mxu0 %vm154_vm1, %v26179_v13 }
 0xad0   :  { %18422 = vmatpush1.bf16.msra.mxu0 %v18275_v10  ;;  %21977 = vrot.lane.b32.xlu0 %v30177_v52, %s26243_s8  ;;  %v18558_v10 = vsel %vm32407_vm10, %v30845_v29, %v30848_v42  ;;  %v26180_v29 = vld [vmem:[%s32127_s1 + $0x1f8] sm:$0xff]   ;;  %vm32420_vm10 = vmmov %vm32415_vm0 }
 0xad1   :  { %18464 = vmatprep.subr.bf16.mxu0 %v18278_v58  ;;  %21979 = vrot.lane.b32.xlu1 %v30190_v16, %s26243_s8  ;;  %v31245_v58 = vpop.permute.xlu1 %19969  ;;  %v31251_v4 = vpop.permute.xlu0 %19971 }
 0xad2   :  { %18453 = vmatprep.mubr.bf16.mxu0 %v32227_v17 }
 0xad4   :  { %21981 = vrot.lane.b32.xlu0 %v30193_v62, %s26243_s8 }
 0xad5   :  { %21983 = vrot.lane.b32.xlu1 %v30206_v36, %s26243_s8  ;;  %v31270_v23 = vpop.permute.xlu0 %19975 }
 0xad7   :  { %24342 = vmatmul.mubr.msk.bf16.vlgmr.msra.gmra.mrb[24].mxu0 %vm154_vm1, %v26179_v13 }
 0xad8   :  { %18465 = vmatpush1.bf16.msra.mxu0 %v18277_v34  ;;  %21985 = vrot.lane.b32.xlu0 %v30209_v57, %s26243_s8  ;;  %v18560_v34 = vsel %vm32409_vm3, %v30860_v40, %v30869_v46  ;;  %vm32422_vm3 = vmmov %vm32421_vm6 }
 0xad9   :  { %18580 = vmatprep.subr.bf16.mxu0 %v18558_v10  ;;  %21987 = vrot.lane.b32.xlu1 %v30220_v26, %s26243_s8  ;;  %v31262_v10 = vpop.permute.xlu1 %19973 }
 0xada   :  { %18496 = vmatprep.mubr.bf16.mxu0 %v32227_v17  ;;  %32410 = vst [vmem:[#allocation21_spill] sm:$0xff] %v31262_v10  ;;  %v31289_v10 = vpop.permute.xlu0 %20247 }
 0xadc   :  { %21989 = vrot.lane.b32.xlu0 %v30222_v47, %s26243_s8 }
 0xadd   :  { %21991 = vrot.lane.b32.xlu1 %v32227_v17, %s26243_s8 }
 0xadf   :  { %24343 = vmatmul.mubr.msk.bf16.vlgmr.msra.gmra.mrb[28].mxu0 %vm154_vm1, %v26179_v13  ;;  %v31276_v13 = vpop.permute.xlu1 %20245 }
 0xae0   :  { %18581 = vmatpush1.bf16.msra.mxu0 %v18557_v15  ;;  %22261 = vrot.lane.b32.xlu0 %v30159_v2, %s26244_s23  ;;  %v18559_v15 = vsel %vm32411_vm4, %v30848_v42, %v30860_v40  ;;  %v18561_v40 = vsel %vm32414_vm2, %v30869_v46, %v30872_v55  ;;  %v18563_v46 = vsel %vm32418_vm5, %v30878_v25, %v30884_v8  ;;  %vm32423_vm4 = vmmov %vm32422_vm3 }
 0xae1   :  { %18623 = vmatprep.subr.bf16.mxu0 %v18560_v34  ;;  %22263 = vrot.lane.b32.xlu1 %v30174_v41, %s26244_s23  ;;  %v18562_v34 = vsel %vm32412_vm9, %v30872_v55, %v30878_v25  ;;  %vm32426_vm9 = vmmov %vm32422_vm3 }
 0xae2   :  { %18612 = vmatprep.mubr.bf16.mxu0 %v32227_v17  ;;  %vm32427_vm2 = vmmov %vm32422_vm3 }
 0xae3   :  { %v31294_v42 = vpop.permute.xlu1 %20243 }
 0xae4   :  { %22259 = vrot.lane.b32.xlu0 %v30156_v44, %s26244_s23  ;;  %32413 = vst [vmem:[#allocation22_spill] sm:$0xff] %v31294_v42 }
 0xae5   :  { %22265 = vrot.lane.b32.xlu1 %v30177_v52, %s26244_s23 }
 0xae7   :  { %24347 = vmatmul.mubr.msk.bf16.vlgmr.msra.gmra.mrb[12].mxu0 %vm154_vm1, %v26180_v29  ;;  %v31312_v42 = vpop.permute.xlu1 %20251 }
 0xae8   :  { %18624 = vmatpush1.bf16.msra.mxu0 %v18559_v15  ;;  %22267 = vrot.lane.b32.xlu0 %v30190_v16, %s26244_s23  ;;  %v31302_v15 = vpop.permute.xlu0 %20249 }
 0xae9   :  { %18666 = vmatprep.subr.bf16.mxu0 %v18562_v34  ;;  %22269 = vrot.lane.b32.xlu1 %v30193_v62, %s26244_s23  ;;  %v18564_v34 = vsel %vm32415_vm0, %v30884_v8, %v30893_v21  ;;  %v18565_v8 = vsel %vm32420_vm10, %v30893_v21, %v30898_v12  ;;  %vm32428_vm0 = vmmov %vm32427_vm2 }
 0xaea   :  { %18655 = vmatprep.mubr.bf16.mxu0 %v32227_v17  ;;  %vm32429_vm5 = vmmov %vm32428_vm0 }
 0xaeb   :  { %vm32432_vm10 = vmmov %vm32428_vm0 }
 0xaec   :  { %22271 = vrot.lane.b32.xlu0 %v30206_v36, %s26244_s23  ;;  %v31318_v55 = vpop.permute.xlu0 %20253 }
 0xaed   :  { %22273 = vrot.lane.b32.xlu1 %v30209_v57, %s26244_s23  ;;  %32417 = vst [vmem:[#allocation24_spill] sm:$0xff] %v31318_v55 }
 0xaef   :  { %24348 = vmatmul.mubr.msk.bf16.vlgmr.msra.gmra.mrb[16].mxu0 %vm154_vm1, %v26180_v29 }
 0xaf0   :  { %18667 = vmatpush1.bf16.msra.mxu0 %v18561_v40  ;;  %22275 = vrot.lane.b32.xlu0 %v30220_v26, %s26244_s23  ;;  %v18566_v40 = vsel %vm32419_vm8, %v30898_v12, %v30906_v18  ;;  %v31334_v55 = vpop.permute.xlu0 %20257  ;;  %v18846_v18 = vsel %vm32421_vm6, %v30916_v35, %v30922_v14  ;;  %v18845_v12 = vsel %vm32422_vm3, %v30933_v38, %v30916_v35  ;;  %v26181_v35 = vld [vmem:[%s32127_s1 + $0x200] sm:$0xff]   ;;  %vm32431_vm8 = vmmov %vm32428_vm0  ;;  %vm32434_vm3 = vcmask 72704  }
 0xaf1   :  { %18709 = vmatprep.subr.bf16.mxu0 %v18564_v34  ;;  %22277 = vrot.lane.b32.xlu1 %v30222_v47, %s26244_s23  ;;  %v31329_v34 = vpop.permute.xlu1 %20255  ;;  %vm32433_vm6 = vmmov %vm32428_vm0 }
 0xaf2   :  { %18698 = vmatprep.mubr.bf16.mxu0 %v32227_v17 }
 0xaf4   :  { %22279 = vrot.lane.b32.xlu0 %v32227_v17, %s26244_s23 }
 0xaf5   :  { %22549 = vrot.lane.b32.xlu1 %v30159_v2, %s32416_s3  ;;  %v31340_v25 = vpop.permute.xlu1 %20259 }
 0xaf7   :  { %24349 = vmatmul.mubr.msk.bf16.vlgmr.msra.gmra.mrb[20].mxu0 %vm154_vm1, %v26180_v29 }
 0xaf8   :  { %18710 = vmatpush1.bf16.msra.mxu0 %v18563_v46  ;;  %22551 = vrot.lane.b32.xlu0 %v30174_v41, %s32416_s3  ;;  %v31353_v46 = vpop.permute.xlu0 %20261 }
 0xaf9   :  { %18752 = vmatprep.subr.bf16.mxu0 %v18566_v40  ;;  %22547 = vrot.lane.b32.xlu1 %v30156_v44, %s32416_s3  ;;  %v31358_v21 = vpop.permute.xlu1 %20263 }
 0xafa   :  { %18741 = vmatprep.mubr.bf16.mxu0 %v32227_v17 }
 0xafc   :  { %22553 = vrot.lane.b32.xlu0 %v30177_v52, %s32416_s3  ;;  %v31366_v40 = vpop.permute.xlu0 %20533 }
 0xafd   :  { %22555 = vrot.lane.b32.xlu1 %v30190_v16, %s32416_s3 }
 0xaff   :  { %24350 = vmatmul.mubr.msk.bf16.vlgmr.msra.gmra.mrb[24].mxu0 %vm154_vm1, %v26180_v29 }
 0xb00   :  { %18753 = vmatpush1.bf16.msra.mxu0 %v18565_v8  ;;  %22557 = vrot.lane.b32.xlu0 %v30193_v62, %s32416_s3  ;;  %v18848_v8 = vsel %vm32423_vm4, %v30941_v51, %v30947_v1  ;;  %v31385_v38 = vpop.permute.xlu0 %20531  ;;  %vm32435_vm4 = vmmov %vm32434_vm3 }
 0xb01   :  { %18868 = vmatprep.subr.bf16.mxu0 %v18846_v18  ;;  %22559 = vrot.lane.b32.xlu1 %v30206_v36, %s32416_s3  ;;  %v31376_v18 = vpop.permute.xlu1 %20535  ;;  %32425 = vst [vmem:[#allocation23_spill] sm:$0xff] %v31385_v38 }
 0xb02   :  { %18784 = vmatprep.mubr.bf16.mxu0 %v32227_v17 }
 0xb04   :  { %22561 = vrot.lane.b32.xlu0 %v30209_v57, %s32416_s3  ;;  %v31401_v38 = vpop.permute.xlu0 %20539 }
 0xb05   :  { %22563 = vrot.lane.b32.xlu1 %v30220_v26, %s32416_s3 }
 0xb07   :  { %24351 = vmatmul.mubr.msk.bf16.vlgmr.msra.gmra.mrb[28].mxu0 %vm154_vm1, %v26180_v29  ;;  %v18847_v29 = vsel %vm32426_vm9, %v30922_v14, %v30941_v51  ;;  %v18849_v51 = vsel %vm32428_vm0, %v30947_v1, %v30960_v19  ;;  %v18851_v1 = vsel %vm32431_vm8, %v30965_v0, %v30973_v9  ;;  %vm32436_vm9 = vmmov %vm32434_vm3 }
 0xb08   :  { %18869 = vmatpush1.bf16.msra.mxu0 %v18845_v12  ;;  %22565 = vrot.lane.b32.xlu0 %v30222_v47, %s32416_s3  ;;  %v18850_v12 = vsel %vm32427_vm2, %v30960_v19, %v30965_v0  ;;  %vm32439_vm2 = vmmov %vm32434_vm3 }
 0xb09   :  { %18911 = vmatprep.subr.bf16.mxu0 %v18848_v8  ;;  %22567 = vrot.lane.b32.xlu1 %v32227_v17, %s32416_s3  ;;  %v31396_v8 = vpop.permute.xlu1 %20537  ;;  %vm32441_vm0 = vmmov %vm32439_vm2 }
 0xb0a   :  { %18900 = vmatprep.mubr.bf16.mxu0 %v32227_v17  ;;  %vm32444_vm8 = vmmov %vm32441_vm0 }
 0xb0c   :  { %22837 = vrot.lane.b32.xlu0 %v30159_v2, %s32424_s27 }
 0xb0d   :  { %22839 = vrot.lane.b32.xlu1 %v30174_v41, %s32424_s27  ;;  %v31407_v14 = vpop.permute.xlu1 %20541 }
 0xb0f   :  { %24355 = vmatmul.mubr.msk.bf16.vlgmr.msra.gmra.mrb[12].mxu0 %vm154_vm1, %v26181_v35 }
 0xb10   :  { %18912 = vmatpush1.bf16.msra.mxu0 %v18847_v29  ;;  %22835 = vrot.lane.b32.xlu0 %v30156_v44, %s32424_s27  ;;  %v18852_v29 = vsel %vm32429_vm5, %v30973_v9, %v30983_v22  ;;  %v18853_v9 = vsel %vm32433_vm6, %v30983_v22, %v30989_v60  ;;  %v19133_v22 = vsel %vm32435_vm4, %v31024_v63, %v31005_v11  ;;  %vm32443_vm5 = vmmov %vm32441_vm0  ;;  %vm32451_vm4 = vcmask 7168  }
 0xb11   :  { %18954 = vmatprep.subr.bf16.mxu0 %v18850_v12  ;;  %22841 = vrot.lane.b32.xlu1 %v30177_v52, %s32424_s27  ;;  %v31420_v12 = vpop.permute.xlu0 %20543  ;;  %v31425_v19 = vpop.permute.xlu1 %20545  ;;  %vm32447_vm6 = vmmov %vm32441_vm0 }
 0xb12   :  { %18943 = vmatprep.mubr.bf16.mxu0 %v32227_v17  ;;  %32430 = vst [vmem:[#allocation14_spill] sm:$0xff] %v31425_v19 }
 0xb14   :  { %22843 = vrot.lane.b32.xlu0 %v30190_v16, %s32424_s27 }
 0xb15   :  { %22845 = vrot.lane.b32.xlu1 %v30193_v62, %s32424_s27  ;;  %v31443_v19 = vpop.permute.xlu1 %20549 }
 0xb17   :  { %24356 = vmatmul.mubr.msk.bf16.vlgmr.msra.gmra.mrb[16].mxu0 %vm154_vm1, %v26181_v35 }
 0xb18   :  { %18955 = vmatpush1.bf16.msra.mxu0 %v18849_v51  ;;  %22847 = vrot.lane.b32.xlu0 %v30206_v36, %s32424_s27  ;;  %v31433_v51 = vpop.permute.xlu0 %20547 }
 0xb19   :  { %18997 = vmatprep.subr.bf16.mxu0 %v18852_v29  ;;  %22849 = vrot.lane.b32.xlu1 %v30209_v57, %s32424_s27  ;;  %v18854_v29 = vsel %vm32432_vm10, %v30989_v60, %v31000_v54  ;;  %v19134_v54 = vsel %vm32434_vm3, %v31005_v11, %v31011_v39  ;;  %v26182_v11 = vld [vmem:[%s32127_s1 + $0x208] sm:$0xff]   ;;  %vm32446_vm10 = vmmov %vm32441_vm0 }
 0xb1a   :  { %18986 = vmatprep.mubr.bf16.mxu0 %v32227_v17  ;;  %vm32449_vm3 = vmmov %vm32441_vm0 }
 0xb1c   :  { %22851 = vrot.lane.b32.xlu0 %v30220_v26, %s32424_s27  ;;  %v31449_v0 = vpop.permute.xlu0 %20551 }
 0xb1d   :  { %22853 = vrot.lane.b32.xlu1 %v30222_v47, %s32424_s27 }
 0xb1f   :  { %24357 = vmatmul.mubr.msk.bf16.vlgmr.msra.gmra.mrb[20].mxu0 %vm154_vm1, %v26181_v35 }
 0xb20   :  { %18998 = vmatpush1.bf16.msra.mxu0 %v18851_v1  ;;  %22855 = vrot.lane.b32.xlu0 %v32227_v17, %s32424_s27  ;;  %v31460_v1 = vpop.permute.xlu1 %20821 }
 0xb21   :  { %19040 = vmatprep.subr.bf16.mxu0 %v18854_v29  ;;  %23125 = vrot.lane.b32.xlu1 %v30159_v2, %s32254_s24  ;;  %v31465_v29 = vpop.permute.xlu0 %20823 }
 0xb22   :  { %19029 = vmatprep.mubr.bf16.mxu0 %v32227_v17 }
 0xb24   :  { %23127 = vrot.lane.b32.xlu0 %v30174_v41, %s32254_s24  ;;  %v31474_v60 = vpop.permute.xlu1 %20819 }
 0xb25   :  { %23123 = vrot.lane.b32.xlu1 %v30156_v44, %s32254_s24 }
 0xb27   :  { %24358 = vmatmul.mubr.msk.bf16.vlgmr.msra.gmra.mrb[24].mxu0 %vm154_vm1, %v26181_v35 }
 0xb28   :  { %19041 = vmatpush1.bf16.msra.mxu0 %v18853_v9  ;;  %23129 = vrot.lane.b32.xlu0 %v30177_v52, %s32254_s24  ;;  %v19136_v9 = vsel %vm32436_vm9, %v31029_v61, %v31037_v45  ;;  %v31492_v63 = vpop.permute.xlu1 %20827  ;;  %vm32452_vm9 = vmmov %vm32451_vm4 }
 0xb29   :  { %19156 = vmatprep.subr.bf16.mxu0 %v19134_v54  ;;  %23131 = vrot.lane.b32.xlu1 %v30190_v16, %s32254_s24  ;;  %v31484_v54 = vpop.permute.xlu0 %20825  ;;  %32438 = vst [vmem:[#allocation25_spill] sm:$0xff] %v31492_v63 }
 0xb2a   :  { %19072 = vmatprep.mubr.bf16.mxu0 %v32227_v17  ;;  %32437 = vst [vmem:[#allocation26_spill] sm:$0xff] %v31484_v54 }
 0xb2c   :  { %23133 = vrot.lane.b32.xlu0 %v30193_v62, %s32254_s24  ;;  %v31510_v63 = vpop.permute.xlu1 %20831 }
 0xb2d   :  { %23135 = vrot.lane.b32.xlu1 %v30206_v36, %s32254_s24 }
 0xb2f   :  { %24359 = vmatmul.mubr.msk.bf16.vlgmr.msra.gmra.mrb[28].mxu0 %vm154_vm1, %v26181_v35  ;;  %v19135_v35 = vsel %vm32439_vm2, %v31011_v39, %v31029_v61  ;;  %vm32453_vm2 = vmmov %vm32451_vm4 }
 0xb30   :  { %19157 = vmatpush1.bf16.msra.mxu0 %v19133_v22  ;;  %23137 = vrot.lane.b32.xlu0 %v30209_v57, %s32254_s24  ;;  %v31500_v22 = vpop.permute.xlu0 %20829 }
 0xb31   :  { %19199 = vmatprep.subr.bf16.mxu0 %v19136_v9  ;;  %23139 = vrot.lane.b32.xlu1 %v30220_v26, %s32254_s24  ;;  %v32440_v9 = vld [vmem:[#allocation17_spill] sm:$0xff] }
 0xb32   :  { %19188 = vmatprep.mubr.bf16.mxu0 %v32227_v17  ;;  %v19138_v54 = vsel %vm32441_vm0, %v32440_v9, %v31056_v32  ;;  %v19137_v61 = vsel %vm32443_vm5, %v31037_v45, %v32440_v9  ;;  %v19139_v9 = vsel %vm32446_vm10, %v31056_v32, %v31067_v59  ;;  %vm32454_vm0 = vmmov %vm32453_vm2 }
 0xb33   :  { %vm32455_vm5 = vmmov %vm32454_vm0 }
 0xb34   :  { %23141 = vrot.lane.b32.xlu0 %v30222_v47, %s32254_s24  ;;  %v31516_v39 = vpop.permute.xlu0 %20833  ;;  %vm32458_vm10 = vmmov %vm32454_vm0 }
 0xb35   :  { %23143 = vrot.lane.b32.xlu1 %v32227_v17, %s32254_s24  ;;  %32442 = vst [vmem:[#allocation15_spill] sm:$0xff] %v31516_v39 }
 0xb37   :  { %24363 = vmatmul.mubr.msk.bf16.vlgmr.msra.gmra.mrb[12].mxu0 %vm154_vm1, %v26182_v11 }
 0xb38   :  { %19200 = vmatpush1.bf16.msra.mxu0 %v19135_v35  ;;  %23413 = vrot.lane.b32.xlu0 %v30159_v2, %s26248_s7  ;;  %v31527_v35 = vpop.permute.xlu1 %20835  ;;  %v31532_v39 = vpop.permute.xlu0 %20837 }
 0xb39   :  { %19242 = vmatprep.subr.bf16.mxu0 %v19138_v54  ;;  %23415 = vrot.lane.b32.xlu1 %v30174_v41, %s26248_s7  ;;  %v19140_v54 = vsel %vm32444_vm8, %v31067_v59, %v31072_v24  ;;  %32445 = vst [vmem:[#allocation28_spill] sm:$0xff] %v31532_v39  ;;  %v24488_v39 = vld [vmem:[%s32128_s2 + $0x20] sm:$0xff]  ;;  %v24489_v59 = vld [vmem:[%s32128_s2 + $0x28] sm:$0xff]  ;;  %vm32456_vm8 = vmmov %vm32454_vm0 }
 0xb3a   :  { %19231 = vmatprep.mubr.bf16.mxu0 %v32227_v17 }
 0xb3c   :  { %23411 = vrot.lane.b32.xlu0 %v30156_v44, %s26248_s7  ;;  %v31538_v45 = vpop.permute.xlu1 %20839 }
 0xb3d   :  { %23417 = vrot.lane.b32.xlu1 %v30177_v52, %s26248_s7 }
 0xb3f   :  { %24364 = vmatmul.mubr.msk.bf16.vlgmr.msra.gmra.mrb[16].mxu0 %vm154_vm1, %v26182_v11 }
 0xb40   :  { %19243 = vmatpush1.bf16.msra.mxu0 %v19137_v61  ;;  %23419 = vrot.lane.b32.xlu0 %v30190_v16, %s26248_s7  ;;  %v19142_v61 = vsel %vm32447_vm6, %v31078_v5, %v31091_v50  ;;  %v31559_v32 = vpop.permute.xlu1 %21111  ;;  %v19141_v50 = vsel %vm32449_vm3, %v31072_v24, %v31078_v5  ;;  %v19424_v24 = vsel %vm32453_vm2, %v31120_v49, %v31131_v48  ;;  %v26183_v5 = vld [vmem:[%s32127_s1 + $0x210] sm:$0xff]   ;;  %vm32459_vm6 = vmmov %vm32454_vm0 }
 0xb41   :  { %19285 = vmatprep.subr.bf16.mxu0 %v19140_v54  ;;  %23421 = vrot.lane.b32.xlu1 %v30193_v62, %s26248_s7  ;;  %v31551_v54 = vpop.permute.xlu0 %21109  ;;  %vm32460_vm3 = vmmov %vm32454_vm0 }
 0xb42   :  { %19274 = vmatprep.mubr.bf16.mxu0 %v32227_v17  ;;  %32448 = vst [vmem:[#allocation27_spill] sm:$0xff] %v31551_v54 }
 0xb44   :  { %23423 = vrot.lane.b32.xlu0 %v30206_v36, %s26248_s7 }
 0xb45   :  { %23425 = vrot.lane.b32.xlu1 %v30209_v57, %s26248_s7 }
 0xb47   :  { %24365 = vmatmul.mubr.msk.bf16.vlgmr.msra.gmra.mrb[20].mxu0 %vm154_vm1, %v26182_v11 }
 0xb48   :  { %19286 = vmatpush1.bf16.msra.mxu0 %v19139_v9  ;;  %23427 = vrot.lane.b32.xlu0 %v30220_v26, %s26248_s7  ;;  %v31568_v9 = vpop.permute.xlu0 %21107 }
 0xb49   :  { %19328 = vmatprep.subr.bf16.mxu0 %v19142_v61  ;;  %23429 = vrot.lane.b32.xlu1 %v30222_v47, %s26248_s7  ;;  %v32450_v61 = vld [vmem:[#allocation18_spill] sm:$0xff] }
 0xb4a   :  { %19317 = vmatprep.mubr.bf16.mxu0 %v32227_v17  ;;  %v19422_v54 = vsel %vm32451_vm4, %v32450_v61, %v31104_v37  ;;  %vm32461_vm4 = vmmov %vm32454_vm0 }
 0xb4c   :  { %23431 = vrot.lane.b32.xlu0 %v32227_v17, %s26248_s7 }
 0xb4d   :  { %23696 = vperm.xlu1 %26078, %v24488_v39   ;;  %v19421_v39 = vsel %vm32452_vm9, %v31114_v20, %v32450_v61  ;;  %v19423_v20 = vsel %vm32454_vm0, %v31104_v37, %v31120_v49  ;;  %v19430_v49 = vsel %vm32460_vm3, %v31171_v3, %v31181_v43  ;;  %vm32463_vm9 = vcmask 1039360  }
 0xb4e   :  { %vm32464_vm2 = vmmov %vm32463_vm9 }
 0xb4f   :  { %24366 = vmatmul.mubr.msk.bf16.vlgmr.msra.gmra.mrb[24].mxu0 %vm154_vm1, %v26182_v11  ;;  %vm32465_vm0 = vmmov %vm32464_vm2 }
 0xb50   :  { %19329 = vmatpush1.bf16.msra.mxu0 %v19141_v50  ;;  %23701 = vperm.xlu0 %26077, %v24489_v59   ;;  %v32457_v59 = vld [vmem:[#allocation19_spill] sm:$0xff]  ;;  %vm32470_vm3 = vmmov %vm32465_vm0 }
 0xb51   :  { %19444 = vmatprep.subr.bf16.mxu0 %v19422_v54  ;;  %19360 = vmatprep.mubr.bf16.mxu0 %v32227_v17  ;;  %v19425_v54 = vsel %vm32456_vm8, %v31131_v48, %v31136_v30  ;;  %v19428_v50 = vsel %vm32458_vm10, %v32457_v59, %v31163_v6  ;;  %v19427_v37 = vsel %vm32459_vm6, %v31145_v27, %v32457_v59  ;;  %vm32467_vm8 = vmmov %vm32465_vm0  ;;  %v32499_v59 = vld [vmem:[#allocation28_spill] sm:$0xff] }
 0xb52   :  { %v19429_v48 = vsel %vm32461_vm4, %v31163_v6, %v31171_v3  ;;  %vm32468_vm10 = vmmov %vm32465_vm0  ;;  %v20266_v3 = vsel %vm4500_vm15, %v31276_v13, %v31289_v10 }
 0xb53   :  { %vm32469_vm6 = vmmov %vm32465_vm0 }
 0xb54   :  { %vm32472_vm4 = vmmov %vm32465_vm0 }
 0xb57   :  { %24367 = vmatmul.mubr.msk.bf16.vlgmr.msra.gmra.mrb[28].mxu0 %vm154_vm1, %v26182_v11  ;;  %v19426_v11 = vsel %vm32455_vm5, %v31136_v30, %v31145_v27  ;;  %v26184_v30 = vld [vmem:[%s32127_s1 + $0x218] sm:$0xff]   ;;  %vm32466_vm5 = vmmov %vm32465_vm0  ;;  %v32471_v27 = vld [vmem:[#allocation21_spill] sm:$0xff] }
 0xb58   :  { %19445 = vmatpush1.bf16.msra.mxu0 %v19421_v39  ;;  %19476 = vmatprep.mubr.bf16.mxu0 %v32227_v17  ;;  %v19986_v43 = vsel %vm32472_vm4, %v32471_v27, %v31270_v23  ;;  %v20272_v23 = vsel %vm4500_vm15, %v31334_v55, %v31340_v25  ;;  %v32483_v39 = vld [vmem:[#allocation14_spill] sm:$0xff] }
 0xb59   :  { %19487 = vmatprep.subr.bf16.mxu0 %v19424_v24 }
 0xb5f   :  { %24371 = vmatmul.mubr.msk.bf16.vlgmr.msra.gmra.mrb[12].mxu0 %vm154_vm1, %v26183_v5 }
 0xb60   :  { %19488 = vmatpush1.bf16.msra.mxu0 %v19423_v20  ;;  %19519 = vmatprep.mubr.bf16.mxu0 %v32227_v17 }
 0xb61   :  { %19530 = vmatprep.subr.bf16.mxu0 %v19426_v11  ;;  %v32496_v11 = vld [vmem:[#allocation15_spill] sm:$0xff] }
 0xb67   :  { %24372 = vmatmul.mubr.msk.bf16.vlgmr.msra.gmra.mrb[16].mxu0 %vm154_vm1, %v26183_v5 }
 0xb68   :  { %19531 = vmatpush1.bf16.msra.mxu0 %v19425_v54  ;;  %19562 = vmatprep.mubr.bf16.mxu0 %v32227_v17 }
 0xb69   :  { %19573 = vmatprep.subr.bf16.mxu0 %v19428_v50 }
 0xb6f   :  { %24373 = vmatmul.mubr.msk.bf16.vlgmr.msra.gmra.mrb[20].mxu0 %vm154_vm1, %v26183_v5 }
 0xb70   :  { %19574 = vmatpush1.bf16.msra.mxu0 %v19427_v37  ;;  %19605 = vmatprep.mubr.bf16.mxu0 %v32227_v17  ;;  %v32502_v37 = vld [vmem:[#allocation27_spill] sm:$0xff] }
 0xb71   :  { %19616 = vmatprep.subr.bf16.mxu0 %v19430_v49  ;;  %v21130_v49 = vsel %vm5367_vm12, %v32502_v37, %v31559_v32 }
 0xb77   :  { %24374 = vmatmul.mubr.msk.bf16.vlgmr.msra.gmra.mrb[24].mxu0 %vm154_vm1, %v26183_v5 }
 0xb78   :  { %19617 = vmatpush1.bf16.msra.mxu0 %v19429_v48  ;;  %19648 = vmatprep.mubr.bf16.mxu0 %v32227_v17  ;;  %v21114_v48 = vpop.permute.xlu1 %21113 }
 0xb79   :  { %19690 = vmatprep.subr.bf16.mxu0 %v30159_v2 }
 0xb7f   :  { %24375 = vmatmul.mubr.msk.bf16.vlgmr.msra.gmra.mrb[28].mxu0 %vm154_vm1, %v26183_v5  ;;  %v32491_v5 = vld [vmem:[#allocation26_spill] sm:$0xff] }
 0xb80   :  { %19691 = vmatpush1.bf16.msra.mxu0 %v30156_v44  ;;  %19722 = vmatprep.mubr.bf16.mxu0 %v32227_v17  ;;  %v32462_v44 = vld [vmem:[#allocation20_spill] sm:$0xff] }
 0xb81   :  { %19733 = vmatprep.subr.bf16.mxu0 %v30177_v52  ;;  %v19978_v2 = vsel %vm32463_vm9, %v32462_v44, %v31198_v53  ;;  %v19980_v52 = vsel %vm32465_vm0, %v31209_v33, %v31222_v31  ;;  %vm32473_vm9 = vmmov %vm32465_vm0 }
 0xb82   :  { %v19985_v6 = vsel %vm32473_vm9, %v31251_v4, %v32471_v27 }
 0xb87   :  { %24379 = vmatmul.mubr.msk.bf16.vlgmr.msra.gmra.mrb[12].mxu0 %vm154_vm1, %v26184_v30 }
 0xb88   :  { %19734 = vmatpush1.bf16.msra.mxu0 %v30174_v41  ;;  %19765 = vmatprep.mubr.bf16.mxu0 %v32227_v17  ;;  %v19977_v41 = vsel %vm32464_vm2, %v31203_v28, %v32462_v44  ;;  %v32474_v28 = vld [vmem:[#allocation22_spill] sm:$0xff]  ;;  %vm32476_vm2 = vcmask 965632  }
 0xb89   :  { %19776 = vmatprep.subr.bf16.mxu0 %v30193_v62  ;;  %v19979_v62 = vsel %vm32466_vm5, %v31198_v53, %v31209_v33  ;;  %v20265_v53 = vsel %vm4500_vm15, %v32474_v28, %v31276_v13  ;;  %v20268_v33 = vsel %vm4500_vm15, %v31302_v15, %v31312_v42  ;;  %v20274_v13 = vsel %vm4500_vm15, %v31353_v46, %v31358_v21  ;;  %vm32478_vm0 = vmmov %vm32476_vm2 }
 0xb8a   :  { %vm32479_vm5 = vmmov %vm32478_vm0 }
 0xb8b   :  { %v20556_v21 = vsel %vm32479_vm5, %v31396_v8, %v31401_v38  ;;  %vm32486_vm4 = vmmov %vm32478_vm0 }
 0xb8c   :  { %vm32487_vm9 = vmmov %vm32478_vm0 }
 0xb8f   :  { %24380 = vmatmul.mubr.msk.bf16.vlgmr.msra.gmra.mrb[16].mxu0 %vm154_vm1, %v26184_v30 }
 0xb90   :  { %19777 = vmatpush1.bf16.msra.mxu0 %v30190_v16  ;;  %19808 = vmatprep.mubr.bf16.mxu0 %v32227_v17  ;;  %v26185_v16 = vld [vmem:[%s32127_s1 + $0x220] sm:$0xff]  }
 0xb91   :  { %19819 = vmatprep.subr.bf16.mxu0 %v30209_v57  ;;  %v19981_v57 = vsel %vm32468_vm10, %v31222_v31, %v31227_v7  ;;  %v26186_v31 = vld [vmem:[%s32127_s1 + $0x228] sm:$0xff]   ;;  %vm32482_vm10 = vmmov %vm32478_vm0 }
 0xb92   :  { %v20557_v61 = vsel %vm32482_vm10, %v31401_v38, %v31407_v14  ;;  %v20561_v38 = vsel %vm32487_vm9, %v31433_v51, %v31443_v19 }
 0xb97   :  { %24381 = vmatmul.mubr.msk.bf16.vlgmr.msra.gmra.mrb[20].mxu0 %vm154_vm1, %v26184_v30 }
 0xb98   :  { %19820 = vmatpush1.bf16.msra.mxu0 %v30206_v36  ;;  %19851 = vmatprep.mubr.bf16.mxu0 %v32227_v17  ;;  %v19982_v36 = vsel %vm32467_vm8, %v31227_v7, %v31235_v56  ;;  %v20267_v7 = vsel %vm4500_vm15, %v31289_v10, %v31302_v15  ;;  %v20271_v10 = vsel %vm4500_vm15, %v31329_v34, %v31334_v55  ;;  %v32477_v55 = vld [vmem:[#allocation23_spill] sm:$0xff]  ;;  %vm32481_vm8 = vmmov %vm32478_vm0 }
 0xb99   :  { %19862 = vmatprep.subr.bf16.mxu0 %v30222_v47  ;;  %v19983_v47 = vsel %vm32470_vm3, %v31235_v56, %v31245_v58  ;;  %v32475_v56 = vld [vmem:[#allocation24_spill] sm:$0xff]  ;;  %v20554_v15 = vsel %vm32476_vm2, %v31366_v40, %v31376_v18  ;;  %vm32485_vm3 = vmmov %vm32478_vm0  ;;  %vm32488_vm2 = vcmask 957440  }
 0xb9f   :  { %24382 = vmatmul.mubr.msk.bf16.vlgmr.msra.gmra.mrb[24].mxu0 %vm154_vm1, %v26184_v30 }
 0xba0   :  { %19863 = vmatpush1.bf16.msra.mxu0 %v30220_v26  ;;  %19894 = vmatprep.mubr.bf16.mxu0 %v32227_v17  ;;  %v19984_v26 = vsel %vm32469_vm6, %v31245_v58, %v31251_v4  ;;  %v20270_v58 = vsel %vm4500_vm15, %v32475_v56, %v31329_v34  ;;  %v20269_v4 = vsel %vm4500_vm15, %v31312_v42, %v32475_v56  ;;  %vm32484_vm6 = vmmov %vm32478_vm0  ;;  %v26190_v56 = vld [vmem:[%s32127_s1 + $0x248] sm:$0xff]  }
 0xba1   :  { %20000 = vmatprep.subr.bf16.mxu0 %v19978_v2  ;;  %v20273_v42 = vsel %vm4500_vm15, %v31340_v25, %v31353_v46  ;;  %v20553_v34 = vsel %vm32478_vm0, %v32477_v55, %v31366_v40  ;;  %v26187_v25 = vld [vmem:[%s32127_s1 + $0x230] sm:$0xff]   ;;  %vm32480_vm15 = vmmov %vm32478_vm0  ;;  %v20558_v40 = vsel %vm32481_vm8, %v31407_v14, %v31420_v12  ;;  %v20560_v24 = vsel %vm32484_vm6, %v32483_v39, %v31433_v51 }
 0xba2   :  { %v20555_v46 = vsel %vm32480_vm15, %v31376_v18, %v31396_v8  ;;  %v20559_v18 = vsel %vm32485_vm3, %v31420_v12, %v32483_v39  ;;  %v20562_v8 = vsel %vm32486_vm4, %v31443_v19, %v31449_v0  ;;  %v20842_v14 = vsel %vm32488_vm2, %v31460_v1, %v31465_v29  ;;  %vm32489_vm0 = vmmov %vm32488_vm2  ;;  %v32490_v0 = vld [vmem:[#allocation25_spill] sm:$0xff]  ;;  %v26188_v19 = vld [vmem:[%s32127_s1 + $0x238] sm:$0xff]  }
 0xba3   :  { %v20841_v12 = vsel %vm32489_vm0, %v31474_v60, %v31460_v1  ;;  %vm32492_vm5 = vmmov %vm32489_vm0  ;;  %v21131_v2 = vsel %vm5367_vm12, %v31559_v32, %v21114_v48  ;;  %vm32503_vm2 = vcmask 310272  }
 0xba4   :  { %v20844_v20 = vsel %vm32492_vm5, %v32491_v5, %v32490_v0  ;;  %vm32493_vm15 = vmmov %vm32489_vm0 }
 0xba5   :  { %v20843_v51 = vsel %vm32493_vm15, %v31465_v29, %v32491_v5  ;;  %vm32494_vm8 = vmmov %vm32489_vm0 }
 0xba6   :  { %v20846_v1 = vsel %vm32494_vm8, %v31500_v22, %v31510_v63  ;;  %vm32495_vm10 = vmmov %vm32489_vm0 }
 0xba7   :  { %24383 = vmatmul.mubr.msk.bf16.vlgmr.msra.gmra.mrb[28].mxu0 %vm154_vm1, %v26184_v30  ;;  %v20845_v60 = vsel %vm32495_vm10, %v32490_v0, %v31500_v22  ;;  %vm32497_vm6 = vmmov %vm32489_vm0  ;;  %v26191_v0 = vld [vmem:[%s32127_s1 + $0x250] sm:$0xff]  }
 0xba8   :  { %20001 = vmatpush1.bf16.msra.mxu0 %v19977_v41  ;;  %20032 = vmatprep.mubr.bf16.mxu0 %v32227_v17  ;;  %v20848_v54 = vsel %vm32497_vm6, %v32496_v11, %v31527_v35  ;;  %vm32498_vm3 = vmmov %vm32489_vm0  ;;  %v21118_v41 = vpop.permute.xlu1 %21117 }
 0xba9   :  { %20043 = vmatprep.subr.bf16.mxu0 %v19980_v52  ;;  %v20847_v29 = vsel %vm32498_vm3, %v31510_v63, %v32496_v11  ;;  %vm32500_vm4 = vmmov %vm32489_vm0  ;;  %v21116_v63 = vpop.permute.xlu0 %21115 }
 0xbaa   :  { %v20850_v50 = vsel %vm32500_vm4, %v32499_v59, %v31538_v45  ;;  %vm32501_vm9 = vmmov %vm32489_vm0  ;;  %v21129_v45 = vsel %vm5367_vm12, %v31568_v9, %v32502_v37  ;;  %v21132_v30 = vsel %vm5367_vm12, %v21114_v48, %v21116_v63 }
 0xbab   :  { %v20849_v22 = vsel %vm32501_vm9, %v31527_v35, %v32499_v59  ;;  %v26189_v35 = vld [vmem:[%s32127_s1 + $0x240] sm:$0xff]   ;;  %vm32504_vm0 = vmmov %vm32503_vm2  ;;  %vm32513_vm9 = vcmask 302080  }
 0xbac   :  { %v21122_v52 = vpop.permute.xlu1 %21121  ;;  %vm32505_vm5 = vmmov %vm32504_vm0 }
 0xbad   :  { %v21120_v44 = vpop.permute.xlu0 %21119  ;;  %vm32507_vm15 = vmmov %vm32504_vm0 }
 0xbae   :  { %v21134_v9 = vsel %vm5367_vm12, %v21118_v41, %v21120_v44  ;;  %vm32508_vm8 = vmmov %vm32504_vm0 }
 0xbaf   :  { %24387 = vmatmul.mubr.msk.bf16.vlgmr.msra.gmra.mrb[12].mxu0 %vm154_vm1, %v26185_v16  ;;  %vm32509_vm10 = vmmov %vm32504_vm0 }
 0xbb0   :  { %20044 = vmatpush1.bf16.msra.mxu0 %v19979_v62  ;;  %20075 = vmatprep.mubr.bf16.mxu0 %v32227_v17  ;;  %v21133_v62 = vsel %vm5367_vm12, %v21116_v63, %v21118_v41  ;;  %v21126_v32 = vpop.permute.xlu1 %21125  ;;  %vm32510_vm6 = vmmov %vm32504_vm0  ;;  %v26192_v41 = vld [vmem:[%s32127_s1 + $0x258] sm:$0xff]  }
 0xbb1   :  { %20086 = vmatprep.subr.bf16.mxu0 %v19982_v36  ;;  %vm32511_vm3 = vmmov %vm32504_vm0 }
 0xbb2   :  { %vm32512_vm4 = vmmov %vm32504_vm0 }
 0xbb4   :  { %v21398_v27 = vpop.permute.xlu1 %21397 }
 0xbb7   :  { %24388 = vmatmul.mubr.msk.bf16.vlgmr.msra.gmra.mrb[16].mxu0 %vm154_vm1, %v26185_v16 }
 0xbb8   :  { %20087 = vmatpush1.bf16.msra.mxu0 %v19981_v57  ;;  %20118 = vmatprep.mubr.bf16.mxu0 %v32227_v17 }
 0xbb9   :  { %20129 = vmatprep.subr.bf16.mxu0 %v19984_v26  ;;  %v21135_v26 = vsel %vm5367_vm12, %v21120_v44, %v21122_v52 }
 0xbbf   :  { %24389 = vmatmul.mubr.msk.bf16.vlgmr.msra.gmra.mrb[20].mxu0 %vm154_vm1, %v26185_v16 }
 0xbc0   :  { %20130 = vmatpush1.bf16.msra.mxu0 %v19983_v47  ;;  %20161 = vmatprep.mubr.bf16.mxu0 %v32227_v17 }
 0xbc1   :  { %20172 = vmatprep.subr.bf16.mxu0 %v19986_v43 }
 0xbc7   :  { %24390 = vmatmul.mubr.msk.bf16.vlgmr.msra.gmra.mrb[24].mxu0 %vm154_vm1, %v26185_v16 }
 0xbc8   :  { %20173 = vmatpush1.bf16.msra.mxu0 %v19985_v6  ;;  %20204 = vmatprep.mubr.bf16.mxu0 %v32227_v17 }
 0xbc9   :  { %20288 = vmatprep.subr.bf16.mxu0 %v20266_v3  ;;  %v21396_v3 = vpop.permute.xlu1 %21395 }
 0xbcf   :  { %24391 = vmatmul.mubr.msk.bf16.vlgmr.msra.gmra.mrb[28].mxu0 %vm154_vm1, %v26185_v16  ;;  %v21124_v16 = vpop.permute.xlu0 %21123 }
 0xbd0   :  { %20289 = vmatpush1.bf16.msra.mxu0 %v20265_v53  ;;  %20320 = vmatprep.mubr.bf16.mxu0 %v32227_v17  ;;  %v21136_v36 = vsel %vm5367_vm12, %v21122_v52, %v21124_v16  ;;  %v21137_v6 = vsel %vm5367_vm12, %v21124_v16, %v21126_v32 }
 0xbd1   :  { %20331 = vmatprep.subr.bf16.mxu0 %v20268_v33  ;;  %v21404_v33 = vpop.permute.xlu1 %21403 }
 0xbd3   :  { %v21128_v57 = vpop.permute.xlu0 %21127 }
 0xbd4   :  { %v21138_v47 = vsel %vm5367_vm12, %v21126_v32, %v21128_v57  ;;  %vm32506_vm12 = vmmov %vm32504_vm0 }
 0xbd7   :  { %24395 = vmatmul.mubr.msk.bf16.vlgmr.msra.gmra.mrb[12].mxu0 %vm154_vm1, %v26186_v31  ;;  %v21400_v43 = vpop.permute.xlu0 %21399 }
 0xbd8   :  { %20332 = vmatpush1.bf16.msra.mxu0 %v20267_v7  ;;  %20363 = vmatprep.mubr.bf16.mxu0 %v32227_v17  ;;  %v21418_v28 = vsel %vm32503_vm2, %v21398_v27, %v21400_v43  ;;  %vm32514_vm2 = vmmov %vm32513_vm9 }
 0xbd9   :  { %20374 = vmatprep.subr.bf16.mxu0 %v20270_v58 }
 0xbdb   :  { %v21402_v53 = vpop.permute.xlu0 %21401 }
 0xbdc   :  { %v21420_v7 = vsel %vm32505_vm5, %v21402_v53, %v21404_v33 }
 0xbdf   :  { %24396 = vmatmul.mubr.msk.bf16.vlgmr.msra.gmra.mrb[16].mxu0 %vm154_vm1, %v26186_v31  ;;  %v21406_v58 = vpop.permute.xlu0 %21405 }
 0xbe0   :  { %20375 = vmatpush1.bf16.msra.mxu0 %v20269_v4  ;;  %20406 = vmatprep.mubr.bf16.mxu0 %v32227_v17  ;;  %v21408_v4 = vpop.permute.xlu1 %21407 }
 0xbe1   :  { %20417 = vmatprep.subr.bf16.mxu0 %v20272_v23  ;;  %v21419_v23 = vsel %vm32506_vm12, %v21400_v43, %v21402_v53 }
 0xbe7   :  { %24397 = vmatmul.mubr.msk.bf16.vlgmr.msra.gmra.mrb[20].mxu0 %vm154_vm1, %v26186_v31 }
 0xbe8   :  { %20418 = vmatpush1.bf16.msra.mxu0 %v20271_v10  ;;  %20449 = vmatprep.mubr.bf16.mxu0 %v32227_v17  ;;  %v21422_v10 = vsel %vm32507_vm15, %v21406_v58, %v21408_v4 }
 0xbe9   :  { %20460 = vmatprep.subr.bf16.mxu0 %v20274_v13  ;;  %v21410_v13 = vpop.permute.xlu0 %21409 }
 0xbef   :  { %24398 = vmatmul.mubr.msk.bf16.vlgmr.msra.gmra.mrb[24].mxu0 %vm154_vm1, %v26186_v31 }
 0xbf0   :  { %20461 = vmatpush1.bf16.msra.mxu0 %v20273_v42  ;;  %20492 = vmatprep.mubr.bf16.mxu0 %v32227_v17  ;;  %v21412_v42 = vpop.permute.xlu1 %21411 }
 0xbf1   :  { %20576 = vmatprep.subr.bf16.mxu0 %v20554_v15  ;;  %v21421_v15 = vsel %vm32508_vm8, %v21404_v33, %v21406_v58  ;;  %v21424_v55 = vsel %vm32509_vm10, %v21410_v13, %v21412_v42 }
 0xbf7   :  { %24399 = vmatmul.mubr.msk.bf16.vlgmr.msra.gmra.mrb[28].mxu0 %vm154_vm1, %v26186_v31  ;;  %v21417_v31 = vsel %vm32504_vm0, %v21396_v3, %v21398_v27  ;;  %vm32515_vm0 = vmmov %vm32514_vm2 }
 0xbf8   :  { %20577 = vmatpush1.bf16.msra.mxu0 %v20553_v34  ;;  %20608 = vmatprep.mubr.bf16.mxu0 %v32227_v17  ;;  %v21414_v34 = vpop.permute.xlu0 %21413  ;;  %vm32516_vm5 = vmmov %vm32515_vm0 }
 0xbf9   :  { %20619 = vmatprep.subr.bf16.mxu0 %v20556_v21  ;;  %v21416_v21 = vpop.permute.xlu1 %21415  ;;  %v21425_v39 = vsel %vm32512_vm4, %v21412_v42, %v21414_v34  ;;  %vm32517_vm12 = vmmov %vm32515_vm0  ;;  %vm32523_vm4 = vcmask 228352  }
 0xbfa   :  { %vm32518_vm15 = vmmov %vm32515_vm0 }
 0xbfb   :  { %vm32519_vm8 = vmmov %vm32515_vm0 }
 0xbfc   :  { %vm32520_vm10 = vmmov %vm32515_vm0 }
 0xbff   :  { %24403 = vmatmul.mubr.msk.bf16.vlgmr.msra.gmra.mrb[12].mxu0 %vm154_vm1, %v26187_v25 }
 0xc00   :  { %20620 = vmatpush1.bf16.msra.mxu0 %v20555_v46  ;;  %20651 = vmatprep.mubr.bf16.mxu0 %v32227_v17  ;;  %v21426_v46 = vsel %vm32511_vm3, %v21414_v34, %v21416_v21  ;;  %vm32522_vm3 = vmmov %vm32515_vm0 }
 0xc01   :  { %20662 = vmatprep.subr.bf16.mxu0 %v20558_v40  ;;  %v21686_v40 = vpop.permute.xlu0 %21685 }
 0xc07   :  { %24404 = vmatmul.mubr.msk.bf16.vlgmr.msra.gmra.mrb[16].mxu0 %vm154_vm1, %v26187_v25 }
 0xc08   :  { %20663 = vmatpush1.bf16.msra.mxu0 %v20557_v61  ;;  %20694 = vmatprep.mubr.bf16.mxu0 %v32227_v17  ;;  %v21688_v61 = vpop.permute.xlu1 %21687 }
 0xc09   :  { %20705 = vmatprep.subr.bf16.mxu0 %v20560_v24  ;;  %v21684_v24 = vpop.permute.xlu0 %21683 }
 0xc0f   :  { %24405 = vmatmul.mubr.msk.bf16.vlgmr.msra.gmra.mrb[20].mxu0 %vm154_vm1, %v26187_v25 }
 0xc10   :  { %20706 = vmatpush1.bf16.msra.mxu0 %v20559_v18  ;;  %20737 = vmatprep.mubr.bf16.mxu0 %v32227_v17  ;;  %v21706_v18 = vsel %vm32513_vm9, %v21686_v40, %v21688_v61  ;;  %vm32524_vm9 = vmmov %vm32523_vm4 }
 0xc11   :  { %20748 = vmatprep.subr.bf16.mxu0 %v20562_v8  ;;  %v21692_v8 = vpop.permute.xlu0 %21691 }
 0xc15   :  { %v21696_v5 = vpop.permute.xlu0 %21695 }
 0xc17   :  { %24406 = vmatmul.mubr.msk.bf16.vlgmr.msra.gmra.mrb[24].mxu0 %vm154_vm1, %v26187_v25 }
 0xc18   :  { %20749 = vmatpush1.bf16.msra.mxu0 %v20561_v38  ;;  %20780 = vmatprep.mubr.bf16.mxu0 %v32227_v17  ;;  %v21705_v38 = vsel %vm32514_vm2, %v21684_v24, %v21686_v40  ;;  %vm32525_vm2 = vmmov %vm32523_vm4 }
 0xc19   :  { %20864 = vmatprep.subr.bf16.mxu0 %v20842_v14  ;;  %v21690_v14 = vpop.permute.xlu1 %21689 }
 0xc1f   :  { %24407 = vmatmul.mubr.msk.bf16.vlgmr.msra.gmra.mrb[28].mxu0 %vm154_vm1, %v26187_v25  ;;  %v21423_v25 = vsel %vm32510_vm6, %v21408_v4, %v21410_v13  ;;  %vm32521_vm6 = vmmov %vm32515_vm0 }
 0xc20   :  { %20865 = vmatpush1.bf16.msra.mxu0 %v20841_v12  ;;  %20896 = vmatprep.mubr.bf16.mxu0 %v32227_v17  ;;  %v21708_v12 = vsel %vm32515_vm0, %v21690_v14, %v21692_v8  ;;  %vm32527_vm0 = vmmov %vm32525_vm2 }
 0xc21   :  { %20907 = vmatprep.subr.bf16.mxu0 %v20844_v20  ;;  %v21707_v20 = vsel %vm32516_vm5, %v21688_v61, %v21690_v14  ;;  %vm32528_vm5 = vmmov %vm32527_vm0 }
 0xc27   :  { %24411 = vmatmul.mubr.msk.bf16.vlgmr.msra.gmra.mrb[12].mxu0 %vm154_vm1, %v26188_v19 }
 0xc28   :  { %20908 = vmatpush1.bf16.msra.mxu0 %v20843_v51  ;;  %20939 = vmatprep.mubr.bf16.mxu0 %v32227_v17 }
 0xc29   :  { %20950 = vmatprep.subr.bf16.mxu0 %v20846_v1 }
 0xc2f   :  { %24412 = vmatmul.mubr.msk.bf16.vlgmr.msra.gmra.mrb[16].mxu0 %vm154_vm1, %v26188_v19 }
 0xc30   :  { %20951 = vmatpush1.bf16.msra.mxu0 %v20845_v60  ;;  %20982 = vmatprep.mubr.bf16.mxu0 %v32227_v17  ;;  %v21700_v60 = vpop.permute.xlu0 %21699 }
 0xc31   :  { %20993 = vmatprep.subr.bf16.mxu0 %v20848_v54 }
 0xc34   :  { %v21704_v59 = vpop.permute.xlu0 %21703 }
 0xc37   :  { %24413 = vmatmul.mubr.msk.bf16.vlgmr.msra.gmra.mrb[20].mxu0 %vm154_vm1, %v26188_v19 }
 0xc38   :  { %20994 = vmatpush1.bf16.msra.mxu0 %v20847_v29  ;;  %21025 = vmatprep.mubr.bf16.mxu0 %v32227_v17 }
 0xc39   :  { %21036 = vmatprep.subr.bf16.mxu0 %v20850_v50 }
 0xc3f   :  { %24414 = vmatmul.mubr.msk.bf16.vlgmr.msra.gmra.mrb[24].mxu0 %vm154_vm1, %v26188_v19 }
 0xc40   :  { %21037 = vmatpush1.bf16.msra.mxu0 %v20849_v22  ;;  %21068 = vmatprep.mubr.bf16.mxu0 %v32227_v17 }
 0xc41   :  { %21152 = vmatprep.subr.bf16.mxu0 %v21130_v49  ;;  %v21976_v49 = vpop.permute.xlu0 %21975 }
 0xc47   :  { %24415 = vmatmul.mubr.msk.bf16.vlgmr.msra.gmra.mrb[28].mxu0 %vm154_vm1, %v26188_v19  ;;  %v21694_v19 = vpop.permute.xlu1 %21693 }
 0xc48   :  { %21153 = vmatpush1.bf16.msra.mxu0 %v21129_v45  ;;  %21184 = vmatprep.mubr.bf16.mxu0 %v32227_v17  ;;  %v21710_v51 = vsel %vm32517_vm12, %v21694_v19, %v21696_v5  ;;  %v21709_v11 = vsel %vm32518_vm15, %v21692_v8, %v21694_v19  ;;  %vm32529_vm12 = vmmov %vm32527_vm0  ;;  %v26194_v19 = vld [vmem:[%s32127_s1 + $0x268] sm:$0xff]  }
 0xc49   :  { %21195 = vmatprep.subr.bf16.mxu0 %v21132_v30  ;;  %v21978_v30 = vpop.permute.xlu0 %21977  ;;  %vm32530_vm15 = vmmov %vm32527_vm0 }
 0xc4a   :  { %v21995_v16 = vsel %vm6234_vm7, %v21976_v49, %v21978_v30 }
 0xc4b   :  { %v21698_v1 = vpop.permute.xlu1 %21697 }
 0xc4c   :  { %v21712_v54 = vsel %vm32519_vm8, %v21698_v1, %v21700_v60  ;;  %v21711_v50 = vsel %vm32520_vm10, %v21696_v5, %v21698_v1  ;;  %vm32531_vm8 = vmmov %vm32527_vm0 }
 0xc4d   :  { %vm32532_vm10 = vmmov %vm32527_vm0 }
 0xc4f   :  { %24419 = vmatmul.mubr.msk.bf16.vlgmr.msra.gmra.mrb[12].mxu0 %vm154_vm1, %v26189_v35  ;;  %v21702_v29 = vpop.permute.xlu1 %21701 }
 0xc50   :  { %21196 = vmatpush1.bf16.msra.mxu0 %v21131_v2  ;;  %21227 = vmatprep.mubr.bf16.mxu0 %v32227_v17  ;;  %v21714_v22 = vsel %vm32521_vm6, %v21702_v29, %v21704_v59  ;;  %v21713_v63 = vsel %vm32522_vm3, %v21700_v60, %v21702_v29  ;;  %vm32533_vm6 = vcmask 220160  }
 0xc51   :  { %21238 = vmatprep.subr.bf16.mxu0 %v21134_v9  ;;  %v21982_v9 = vpop.permute.xlu0 %21981  ;;  %vm32534_vm3 = vmmov %vm32533_vm6 }
 0xc53   :  { %v21974_v37 = vpop.permute.xlu1 %21973 }
 0xc54   :  { %v21994_v48 = vsel %vm6234_vm7, %v21974_v37, %v21976_v49 }
 0xc57   :  { %24420 = vmatmul.mubr.msk.bf16.vlgmr.msra.gmra.mrb[16].mxu0 %vm154_vm1, %v26189_v35  ;;  %v21972_v45 = vpop.permute.xlu1 %21971 }
 0xc58   :  { %21239 = vmatpush1.bf16.msra.mxu0 %v21133_v62  ;;  %21270 = vmatprep.mubr.bf16.mxu0 %v32227_v17  ;;  %v21993_v44 = vsel %vm6234_vm7, %v21972_v45, %v21974_v37 }
 0xc59   :  { %21281 = vmatprep.subr.bf16.mxu0 %v21136_v36  ;;  %v21986_v36 = vpop.permute.xlu0 %21985 }
 0xc5f   :  { %24421 = vmatmul.mubr.msk.bf16.vlgmr.msra.gmra.mrb[20].mxu0 %vm154_vm1, %v26189_v35 }
 0xc60   :  { %21282 = vmatpush1.bf16.msra.mxu0 %v21135_v26  ;;  %21313 = vmatprep.mubr.bf16.mxu0 %v32227_v17 }
 0xc61   :  { %21324 = vmatprep.subr.bf16.mxu0 %v21138_v47  ;;  %v21990_v47 = vpop.permute.xlu0 %21989 }
 0xc65   :  { %v22262_v3 = vpop.permute.xlu0 %22261 }
 0xc67   :  { %24422 = vmatmul.mubr.msk.bf16.vlgmr.msra.gmra.mrb[24].mxu0 %vm154_vm1, %v26189_v35 }
 0xc68   :  { %21325 = vmatpush1.bf16.msra.mxu0 %v21137_v6  ;;  %21356 = vmatprep.mubr.bf16.mxu0 %v32227_v17 }
 0xc69   :  { %21440 = vmatprep.subr.bf16.mxu0 %v21418_v28  ;;  %v22260_v33 = vpop.permute.xlu0 %22259 }
 0xc6f   :  { %24423 = vmatmul.mubr.msk.bf16.vlgmr.msra.gmra.mrb[28].mxu0 %vm154_vm1, %v26189_v35  ;;  %v21980_v35 = vpop.permute.xlu1 %21979 }
 0xc70   :  { %21441 = vmatpush1.bf16.msra.mxu0 %v21417_v31  ;;  %21472 = vmatprep.mubr.bf16.mxu0 %v32227_v17  ;;  %v21996_v2 = vsel %vm6234_vm7, %v21978_v30, %v21980_v35  ;;  %v21997_v57 = vsel %vm6234_vm7, %v21980_v35, %v21982_v9 }
 0xc71   :  { %21483 = vmatprep.subr.bf16.mxu0 %v21420_v7  ;;  %v22268_v7 = vpop.permute.xlu0 %22267 }
 0xc73   :  { %v21984_v52 = vpop.permute.xlu1 %21983 }
 0xc74   :  { %v21998_v62 = vsel %vm6234_vm7, %v21982_v9, %v21984_v52  ;;  %v21999_v43 = vsel %vm6234_vm7, %v21984_v52, %v21986_v36 }
 0xc77   :  { %24427 = vmatmul.mubr.msk.bf16.vlgmr.msra.gmra.mrb[12].mxu0 %vm154_vm1, %v26190_v56  ;;  %v21988_v32 = vpop.permute.xlu1 %21987 }
 0xc78   :  { %21484 = vmatpush1.bf16.msra.mxu0 %v21419_v23  ;;  %21515 = vmatprep.mubr.bf16.mxu0 %v32227_v17  ;;  %v22000_v26 = vsel %vm6234_vm7, %v21986_v36, %v21988_v32  ;;  %v22001_v53 = vsel %vm6234_vm7, %v21988_v32, %v21990_v47  ;;  %v26193_v23 = vld [vmem:[%s32127_s1 + $0x260] sm:$0xff]  }
 0xc79   :  { %21526 = vmatprep.subr.bf16.mxu0 %v21422_v10  ;;  %v22272_v10 = vpop.permute.xlu0 %22271 }
 0xc7b   :  { %v21992_v27 = vpop.permute.xlu1 %21991 }
 0xc7c   :  { %v22002_v6 = vsel %vm6234_vm7, %v21990_v47, %v21992_v27  ;;  %vm32526_vm7 = vmmov %vm32525_vm2 }
 0xc7d   :  { %v22276_v34 = vpop.permute.xlu0 %22275 }
 0xc7f   :  { %24428 = vmatmul.mubr.msk.bf16.vlgmr.msra.gmra.mrb[16].mxu0 %vm154_vm1, %v26190_v56  ;;  %v22264_v28 = vpop.permute.xlu1 %22263 }
 0xc80   :  { %21527 = vmatpush1.bf16.msra.mxu0 %v21421_v15  ;;  %21558 = vmatprep.mubr.bf16.mxu0 %v32227_v17  ;;  %v22282_v31 = vsel %vm32523_vm4, %v22262_v3, %v22264_v28  ;;  %vm32535_vm4 = vmmov %vm32534_vm3 }
 0xc81   :  { %21569 = vmatprep.subr.bf16.mxu0 %v21424_v55  ;;  %v22280_v40 = vpop.permute.xlu0 %22279 }
 0xc83   :  { %v22266_v58 = vpop.permute.xlu1 %22265 }
 0xc84   :  { %v22284_v4 = vsel %vm32525_vm2, %v22266_v58, %v22268_v7  ;;  %v22283_v13 = vsel %vm32526_vm7, %v22264_v28, %v22266_v58  ;;  %vm32537_vm2 = vmmov %vm32534_vm3 }
 0xc85   :  { %vm32538_vm7 = vmmov %vm32537_vm2 }
 0xc87   :  { %24429 = vmatmul.mubr.msk.bf16.vlgmr.msra.gmra.mrb[20].mxu0 %vm154_vm1, %v26190_v56  ;;  %v22270_v42 = vpop.permute.xlu1 %22269 }
 0xc88   :  { %21570 = vmatpush1.bf16.msra.mxu0 %v21423_v25  ;;  %21601 = vmatprep.mubr.bf16.mxu0 %v32227_v17  ;;  %v22286_v15 = vsel %vm32527_vm0, %v22270_v42, %v22272_v10  ;;  %v22285_v21 = vsel %vm32528_vm5, %v22268_v7, %v22270_v42  ;;  %vm32539_vm0 = vmmov %vm32537_vm2  ;;  %v26196_v42 = vld [vmem:[%s32127_s1 + $0x278] sm:$0xff]  }
 0xc89   :  { %21612 = vmatprep.subr.bf16.mxu0 %v21426_v46  ;;  %vm32540_vm5 = vmmov %vm32539_vm0 }
 0xc8b   :  { %v22274_v55 = vpop.permute.xlu1 %22273 }
 0xc8c   :  { %v22288_v25 = vsel %vm32529_vm12, %v22274_v55, %v22276_v34  ;;  %v22287_v61 = vsel %vm32530_vm15, %v22272_v10, %v22274_v55  ;;  %vm32541_vm12 = vmmov %vm32539_vm0 }
 0xc8d   :  { %vm32542_vm15 = vmmov %vm32539_vm0 }
 0xc8f   :  { %24430 = vmatmul.mubr.msk.bf16.vlgmr.msra.gmra.mrb[24].mxu0 %vm154_vm1, %v26190_v56  ;;  %v22278_v46 = vpop.permute.xlu1 %22277 }
 0xc90   :  { %21613 = vmatpush1.bf16.msra.mxu0 %v21425_v39  ;;  %21644 = vmatprep.mubr.bf16.mxu0 %v32227_v17  ;;  %v22290_v39 = vsel %vm32531_vm8, %v22278_v46, %v22280_v40  ;;  %v22289_v8 = vsel %vm32532_vm10, %v22276_v34, %v22278_v46 }
 0xc91   :  { %21728 = vmatprep.subr.bf16.mxu0 %v21706_v18  ;;  %v22552_v18 = vpop.permute.xlu0 %22551 }
 0xc93   :  { %v22550_v24 = vpop.permute.xlu1 %22549 }
 0xc94   :  { %v22570_v14 = vsel %vm32533_vm6, %v22550_v24, %v22552_v18 }
 0xc97   :  { %24431 = vmatmul.mubr.msk.bf16.vlgmr.msra.gmra.mrb[28].mxu0 %vm154_vm1, %v26190_v56  ;;  %v22281_v56 = vsel %vm32524_vm9, %v22260_v33, %v22262_v3  ;;  %vm32536_vm9 = vmmov %vm32534_vm3 }
 0xc98   :  { %21729 = vmatpush1.bf16.msra.mxu0 %v21705_v38  ;;  %21760 = vmatprep.mubr.bf16.mxu0 %v32227_v17  ;;  %v22548_v38 = vpop.permute.xlu1 %22547 }
 0xc99   :  { %21771 = vmatprep.subr.bf16.mxu0 %v21708_v12  ;;  %v22554_v12 = vpop.permute.xlu0 %22553  ;;  %v22569_v5 = vsel %vm32534_vm3, %v22548_v38, %v22550_v24 }
 0xc9a   :  { %v22571_v60 = vsel %vm32536_vm9, %v22552_v18, %v22554_v12 }
 0xc9f   :  { %24435 = vmatmul.mubr.msk.bf16.vlgmr.msra.gmra.mrb[12].mxu0 %vm154_vm1, %v26191_v0 }
 0xca0   :  { %21772 = vmatpush1.bf16.msra.mxu0 %v21707_v20  ;;  %21803 = vmatprep.mubr.bf16.mxu0 %v32227_v17 }
 0xca1   :  { %21814 = vmatprep.subr.bf16.mxu0 %v21710_v51  ;;  %v22558_v51 = vpop.permute.xlu0 %22557 }
 0xca7   :  { %24436 = vmatmul.mubr.msk.bf16.vlgmr.msra.gmra.mrb[16].mxu0 %vm154_vm1, %v26191_v0 }
 0xca8   :  { %21815 = vmatpush1.bf16.msra.mxu0 %v21709_v11  ;;  %21846 = vmatprep.mubr.bf16.mxu0 %v32227_v17 }
 0xca9   :  { %21857 = vmatprep.subr.bf16.mxu0 %v21712_v54  ;;  %v22562_v54 = vpop.permute.xlu0 %22561 }
 0xcaf   :  { %24437 = vmatmul.mubr.msk.bf16.vlgmr.msra.gmra.mrb[20].mxu0 %vm154_vm1, %v26191_v0 }
 0xcb0   :  { %21858 = vmatpush1.bf16.msra.mxu0 %v21711_v50  ;;  %21889 = vmatprep.mubr.bf16.mxu0 %v32227_v17 }
 0xcb1   :  { %21900 = vmatprep.subr.bf16.mxu0 %v21714_v22  ;;  %v22566_v22 = vpop.permute.xlu0 %22565 }
 0xcb5   :  { %v22838_v45 = vpop.permute.xlu0 %22837 }
 0xcb7   :  { %24438 = vmatmul.mubr.msk.bf16.vlgmr.msra.gmra.mrb[24].mxu0 %vm154_vm1, %v26191_v0 }
 0xcb8   :  { %21901 = vmatpush1.bf16.msra.mxu0 %v21713_v63  ;;  %21932 = vmatprep.mubr.bf16.mxu0 %v32227_v17 }
 0xcb9   :  { %22016 = vmatprep.subr.bf16.mxu0 %v21994_v48  ;;  %v22836_v35 = vpop.permute.xlu0 %22835 }
 0xcbf   :  { %24439 = vmatmul.mubr.msk.bf16.vlgmr.msra.gmra.mrb[28].mxu0 %vm154_vm1, %v26191_v0  ;;  %v22556_v0 = vpop.permute.xlu1 %22555 }
 0xcc0   :  { %22017 = vmatpush1.bf16.msra.mxu0 %v21993_v44  ;;  %22048 = vmatprep.mubr.bf16.mxu0 %v32227_v17  ;;  %v22572_v20 = vsel %vm32535_vm4, %v22554_v12, %v22556_v0  ;;  %v22573_v59 = vsel %vm32538_vm7, %v22556_v0, %v22558_v51 }
 0xcc1   :  { %22059 = vmatprep.subr.bf16.mxu0 %v21996_v2  ;;  %v22844_v2 = vpop.permute.xlu0 %22843 }
 0xcc3   :  { %v22560_v1 = vpop.permute.xlu1 %22559 }
 0xcc4   :  { %v22574_v11 = vsel %vm32537_vm2, %v22558_v51, %v22560_v1  ;;  %v22575_v49 = vsel %vm32540_vm5, %v22560_v1, %v22562_v54 }
 0xcc7   :  { %24443 = vmatmul.mubr.msk.bf16.vlgmr.msra.gmra.mrb[12].mxu0 %vm154_vm1, %v26192_v41  ;;  %v22564_v29 = vpop.permute.xlu1 %22563 }
 0xcc8   :  { %22060 = vmatpush1.bf16.msra.mxu0 %v21995_v16  ;;  %22091 = vmatprep.mubr.bf16.mxu0 %v32227_v17  ;;  %v22576_v50 = vsel %vm32539_vm0, %v22562_v54, %v22564_v29  ;;  %v22577_v30 = vsel %vm32542_vm15, %v22564_v29, %v22566_v22  ;;  %v26195_v16 = vld [vmem:[%s32127_s1 + $0x270] sm:$0xff]  }
 0xcc9   :  { %22102 = vmatprep.subr.bf16.mxu0 %v21998_v62  ;;  %v22848_v62 = vpop.permute.xlu0 %22847 }
 0xccb   :  { %v22568_v37 = vpop.permute.xlu1 %22567 }
 0xccc   :  { %v22578_v63 = vsel %vm32541_vm12, %v22566_v22, %v22568_v37 }
 0xccd   :  { %v22852_v47 = vpop.permute.xlu0 %22851 }
 0xccf   :  { %24444 = vmatmul.mubr.msk.bf16.vlgmr.msra.gmra.mrb[16].mxu0 %vm154_vm1, %v26192_v41  ;;  %v22840_v48 = vpop.permute.xlu1 %22839 }
 0xcd0   :  { %22103 = vmatpush1.bf16.msra.mxu0 %v21997_v57  ;;  %22134 = vmatprep.mubr.bf16.mxu0 %v32227_v17  ;;  %v22858_v44 = vsel %vm7101_vm14, %v22838_v45, %v22840_v48 }
 0xcd1   :  { %22145 = vmatprep.subr.bf16.mxu0 %v22000_v26  ;;  %v22856_v3 = vpop.permute.xlu0 %22855 }
 0xcd3   :  { %v22842_v9 = vpop.permute.xlu1 %22841 }
 0xcd4   :  { %v22860_v52 = vsel %vm7101_vm14, %v22842_v9, %v22844_v2  ;;  %v22859_v36 = vsel %vm7101_vm14, %v22840_v48, %v22842_v9 }
 0xcd7   :  { %24445 = vmatmul.mubr.msk.bf16.vlgmr.msra.gmra.mrb[20].mxu0 %vm154_vm1, %v26192_v41  ;;  %v22846_v32 = vpop.permute.xlu1 %22845 }
 0xcd8   :  { %22146 = vmatpush1.bf16.msra.mxu0 %v21999_v43  ;;  %22177 = vmatprep.mubr.bf16.mxu0 %v32227_v17  ;;  %v22862_v57 = vsel %vm7101_vm14, %v22846_v32, %v22848_v62  ;;  %v22861_v27 = vsel %vm7101_vm14, %v22844_v2, %v22846_v32 }
 0xcd9   :  { %22188 = vmatprep.subr.bf16.mxu0 %v22002_v6 }
 0xcdb   :  { %v22850_v26 = vpop.permute.xlu1 %22849 }
 0xcdc   :  { %v22864_v43 = vsel %vm7101_vm14, %v22850_v26, %v22852_v47  ;;  %v22863_v28 = vsel %vm7101_vm14, %v22848_v62, %v22850_v26 }
 0xcdf   :  { %24446 = vmatmul.mubr.msk.bf16.vlgmr.msra.gmra.mrb[24].mxu0 %vm154_vm1, %v26192_v41  ;;  %v22854_v6 = vpop.permute.xlu1 %22853 }
 0xce0   :  { %22189 = vmatpush1.bf16.msra.mxu0 %v22001_v53  ;;  %22220 = vmatprep.mubr.bf16.mxu0 %v32227_v17  ;;  %v22866_v53 = vsel %vm7101_vm14, %v22854_v6, %v22856_v3  ;;  %v22865_v7 = vsel %vm7101_vm14, %v22852_v47, %v22854_v6  ;;  %v32543_v3 = vld [vmem:[#allocation4_spill] sm:$0xff] }
 0xce1   :  { %22304 = vmatprep.subr.bf16.mxu0 %v22282_v31  ;;  %v23128_v31 = vpop.permute.xlu0 %23127 }
 0xce3   :  { %v23126_v33 = vpop.permute.xlu1 %23125 }
 0xce4   :  { %v23146_v58 = vsel %vm7390_vm11, %v23126_v33, %v23128_v31 }
 0xce7   :  { %24447 = vmatmul.mubr.msk.bf16.vlgmr.msra.gmra.mrb[28].mxu0 %vm154_vm1, %v26192_v41  ;;  %v22857_v41 = vsel %vm7101_vm14, %v22836_v35, %v22838_v45 }
 0xce8   :  { %22305 = vmatpush1.bf16.msra.mxu0 %v22281_v56  ;;  %22336 = vmatprep.mubr.bf16.mxu0 %v32227_v17  ;;  %v23124_v56 = vpop.permute.xlu1 %23123 }
 0xce9   :  { %22347 = vmatprep.subr.bf16.mxu0 %v22284_v4  ;;  %v23130_v4 = vpop.permute.xlu0 %23129  ;;  %v23145_v10 = vsel %vm7390_vm11, %v23124_v56, %v23126_v33  ;;  %v32544_v33 = vld [vmem:[#allocation5_spill] sm:$0xff] }
 0xcea   :  { %v23147_v34 = vsel %vm7390_vm11, %v23128_v31, %v23130_v4 }
 0xcef   :  { %24451 = vmatmul.mubr.msk.bf16.vlgmr.msra.gmra.mrb[12].mxu0 %vm154_vm1, %v26193_v23 }
 0xcf0   :  { %22348 = vmatpush1.bf16.msra.mxu0 %v22283_v13  ;;  %22379 = vmatprep.mubr.bf16.mxu0 %v32227_v17 }
 0xcf1   :  { %22390 = vmatprep.subr.bf16.mxu0 %v22286_v15  ;;  %v23134_v15 = vpop.permute.xlu0 %23133 }
 0xcf7   :  { %24452 = vmatmul.mubr.msk.bf16.vlgmr.msra.gmra.mrb[16].mxu0 %vm154_vm1, %v26193_v23 }
 0xcf8   :  { %22391 = vmatpush1.bf16.msra.mxu0 %v22285_v21  ;;  %22422 = vmatprep.mubr.bf16.mxu0 %v32227_v17 }
 0xcf9   :  { %22433 = vmatprep.subr.bf16.mxu0 %v22288_v25  ;;  %v23138_v25 = vpop.permute.xlu0 %23137 }
 0xcff   :  { %24453 = vmatmul.mubr.msk.bf16.vlgmr.msra.gmra.mrb[20].mxu0 %vm154_vm1, %v26193_v23 }
 0xd00   :  { %22434 = vmatpush1.bf16.msra.mxu0 %v22287_v61  ;;  %22465 = vmatprep.mubr.bf16.mxu0 %v32227_v17 }
 0xd01   :  { %22476 = vmatprep.subr.bf16.mxu0 %v22290_v39  ;;  %v23142_v39 = vpop.permute.xlu0 %23141 }
 0xd05   :  { %v23414_v38 = vpop.permute.xlu0 %23413 }
 0xd07   :  { %24454 = vmatmul.mubr.msk.bf16.vlgmr.msra.gmra.mrb[24].mxu0 %vm154_vm1, %v26193_v23 }
 0xd08   :  { %22477 = vmatpush1.bf16.msra.mxu0 %v22289_v8  ;;  %22508 = vmatprep.mubr.bf16.mxu0 %v32227_v17 }
 0xd09   :  { %22592 = vmatprep.subr.bf16.mxu0 %v22570_v14  ;;  %v23412_v0 = vpop.permute.xlu0 %23411 }
 0xd0f   :  { %24455 = vmatmul.mubr.msk.bf16.vlgmr.msra.gmra.mrb[28].mxu0 %vm154_vm1, %v26193_v23  ;;  %v23132_v23 = vpop.permute.xlu1 %23131 }
 0xd10   :  { %22593 = vmatpush1.bf16.msra.mxu0 %v22569_v5  ;;  %22624 = vmatprep.mubr.bf16.mxu0 %v32227_v17  ;;  %v23148_v13 = vsel %vm7390_vm11, %v23130_v4, %v23132_v23  ;;  %v23149_v40 = vsel %vm7390_vm11, %v23132_v23, %v23134_v15 }
 0xd11   :  { %22635 = vmatprep.subr.bf16.mxu0 %v22572_v20  ;;  %v23420_v20 = vpop.permute.xlu0 %23419 }
 0xd13   :  { %v23136_v55 = vpop.permute.xlu1 %23135 }
 0xd14   :  { %v23150_v21 = vsel %vm7390_vm11, %v23134_v15, %v23136_v55  ;;  %v23151_v18 = vsel %vm7390_vm11, %v23136_v55, %v23138_v25 }
 0xd17   :  { %24459 = vmatmul.mubr.msk.bf16.vlgmr.msra.gmra.mrb[12].mxu0 %vm154_vm1, %v26194_v19  ;;  %v23140_v46 = vpop.permute.xlu1 %23139 }
 0xd18   :  { %22636 = vmatpush1.bf16.msra.mxu0 %v22571_v60  ;;  %22667 = vmatprep.mubr.bf16.mxu0 %v32227_v17  ;;  %v23152_v61 = vsel %vm7390_vm11, %v23138_v25, %v23140_v46  ;;  %v23153_v12 = vsel %vm7390_vm11, %v23140_v46, %v23142_v39  ;;  %v26197_v60 = vld [vmem:[%s32127_s1 + $0x280] sm:$0xff]  }
 0xd19   :  { %22678 = vmatprep.subr.bf16.mxu0 %v22574_v11  ;;  %v23424_v11 = vpop.permute.xlu0 %23423 }
 0xd1b   :  { %v23144_v24 = vpop.permute.xlu1 %23143 }
 0xd1c   :  { %v23154_v8 = vsel %vm7390_vm11, %v23142_v39, %v23144_v24  ;;  %v32545_v24 = vld [vmem:[#allocation8_spill] sm:$0xff] }
 0xd1f   :  { %24460 = vmatmul.mubr.msk.bf16.vlgmr.msra.gmra.mrb[16].mxu0 %vm154_vm1, %v26194_v19  ;;  %v23416_v14 = vpop.permute.xlu1 %23415 }
 0xd20   :  { %22679 = vmatpush1.bf16.msra.mxu0 %v22573_v59  ;;  %22710 = vmatprep.mubr.bf16.mxu0 %v32227_v17  ;;  %v23434_v5 = vsel %vm7679_vm13, %v23414_v38, %v23416_v14 }
 0xd21   :  { %22721 = vmatprep.subr.bf16.mxu0 %v22576_v50  ;;  %v23428_v50 = vpop.permute.xlu0 %23427 }
 0xd23   :  { %v23418_v51 = vpop.permute.xlu1 %23417 }
 0xd24   :  { %v23436_v1 = vsel %vm7679_vm13, %v23418_v51, %v23420_v20  ;;  %v23435_v54 = vsel %vm7679_vm13, %v23416_v14, %v23418_v51 }
 0xd27   :  { %24461 = vmatmul.mubr.msk.bf16.vlgmr.msra.gmra.mrb[20].mxu0 %vm154_vm1, %v26194_v19  ;;  %v23422_v29 = vpop.permute.xlu1 %23421 }
 0xd28   :  { %22722 = vmatpush1.bf16.msra.mxu0 %v22575_v49  ;;  %22753 = vmatprep.mubr.bf16.mxu0 %v32227_v17  ;;  %v23438_v59 = vsel %vm7679_vm13, %v23422_v29, %v23424_v11  ;;  %v23437_v22 = vsel %vm7679_vm13, %v23420_v20, %v23422_v29 }
 0xd29   :  { %22764 = vmatprep.subr.bf16.mxu0 %v22578_v63  ;;  %v23432_v63 = vpop.permute.xlu0 %23431 }
 0xd2b   :  { %v23426_v37 = vpop.permute.xlu1 %23425 }
 0xd2c   :  { %v23440_v49 = vsel %vm7679_vm13, %v23426_v37, %v23428_v50  ;;  %v23439_v45 = vsel %vm7679_vm13, %v23424_v11, %v23426_v37 }
 0xd2f   :  { %24462 = vmatmul.mubr.msk.bf16.vlgmr.msra.gmra.mrb[24].mxu0 %vm154_vm1, %v26194_v19  ;;  %v23430_v48 = vpop.permute.xlu1 %23429 }
 0xd30   :  { %22765 = vmatpush1.bf16.msra.mxu0 %v22577_v30  ;;  %22796 = vmatprep.mubr.bf16.mxu0 %v32227_v17  ;;  %v23442_v30 = vsel %vm7679_vm13, %v23430_v48, %v23432_v63  ;;  %v23441_v35 = vsel %vm7679_vm13, %v23428_v50, %v23430_v48 }
 0xd31   :  { %22880 = vmatprep.subr.bf16.mxu0 %v22858_v44 }
 0xd33   :  { %v32022_v44 = vpop.permute.xlu1 %23696 }
 0xd37   :  { %24463 = vmatmul.mubr.msk.bf16.vlgmr.msra.gmra.mrb[28].mxu0 %vm154_vm1, %v26194_v19  ;;  %v23433_v19 = vsel %vm7679_vm13, %v23412_v0, %v23414_v38  ;;  %v32546_v38 = vld [vmem:[#allocation9_spill] sm:$0xff] }
 0xd38   :  { %22881 = vmatpush1.bf16.msra.mxu0 %v22857_v41  ;;  %22912 = vmatprep.mubr.bf16.mxu0 %v32227_v17 }
 0xd39   :  { %22923 = vmatprep.subr.bf16.mxu0 %v22860_v52  ;;  %v32025_v52 = vpop.permute.xlu0 %23701 }
 0xd3f   :  { %24467 = vmatmul.mubr.msk.bf16.vlgmr.msra.gmra.mrb[12].mxu0 %vm154_vm1, %v26195_v16 }
 0xd40   :  { %22924 = vmatpush1.bf16.msra.mxu0 %v22859_v36  ;;  %22955 = vmatprep.mubr.bf16.mxu0 %v32227_v17 }
 0xd41   :  { %22966 = vmatprep.subr.bf16.mxu0 %v22862_v57 }
 0xd47   :  { %24468 = vmatmul.mubr.msk.bf16.vlgmr.msra.gmra.mrb[16].mxu0 %vm154_vm1, %v26195_v16 }
 0xd48   :  { %22967 = vmatpush1.bf16.msra.mxu0 %v22861_v27  ;;  %22998 = vmatprep.mubr.bf16.mxu0 %v32227_v17 }
 0xd49   :  { %23009 = vmatprep.subr.bf16.mxu0 %v22864_v43 }
 0xd4f   :  { %24469 = vmatmul.mubr.msk.bf16.vlgmr.msra.gmra.mrb[20].mxu0 %vm154_vm1, %v26195_v16 }
 0xd50   :  { %23010 = vmatpush1.bf16.msra.mxu0 %v22863_v28  ;;  %23041 = vmatprep.mubr.bf16.mxu0 %v32227_v17 }
 0xd51   :  { %23052 = vmatprep.subr.bf16.mxu0 %v22866_v53 }
 0xd57   :  { %24470 = vmatmul.mubr.msk.bf16.vlgmr.msra.gmra.mrb[24].mxu0 %vm154_vm1, %v26195_v16 }
 0xd58   :  { %23053 = vmatpush1.bf16.msra.mxu0 %v22865_v7  ;;  %23084 = vmatprep.mubr.bf16.mxu0 %v32227_v17 }
 0xd59   :  { %23168 = vmatprep.subr.bf16.mxu0 %v23146_v58 }
 0xd5f   :  { %24471 = vmatmul.mubr.msk.bf16.vlgmr.msra.gmra.mrb[28].mxu0 %vm154_vm1, %v26195_v16 }
 0xd60   :  { %23169 = vmatpush1.bf16.msra.mxu0 %v23145_v10  ;;  %23200 = vmatprep.mubr.bf16.mxu0 %v32227_v17 }
 0xd61   :  { %23211 = vmatprep.subr.bf16.mxu0 %v23148_v13 }
 0xd67   :  { %24475 = vmatmul.mubr.msk.bf16.vlgmr.msra.gmra.mrb[12].mxu0 %vm154_vm1, %v26196_v42 }
 0xd68   :  { %23212 = vmatpush1.bf16.msra.mxu0 %v23147_v34  ;;  %23243 = vmatprep.mubr.bf16.mxu0 %v32227_v17 }
 0xd69   :  { %23254 = vmatprep.subr.bf16.mxu0 %v23150_v21 }
 0xd6f   :  { %24476 = vmatmul.mubr.msk.bf16.vlgmr.msra.gmra.mrb[16].mxu0 %vm154_vm1, %v26196_v42 }
 0xd70   :  { %23255 = vmatpush1.bf16.msra.mxu0 %v23149_v40  ;;  %23286 = vmatprep.mubr.bf16.mxu0 %v32227_v17 }
 0xd71   :  { %23297 = vmatprep.subr.bf16.mxu0 %v23152_v61 }
 0xd77   :  { %24477 = vmatmul.mubr.msk.bf16.vlgmr.msra.gmra.mrb[20].mxu0 %vm154_vm1, %v26196_v42 }
 0xd78   :  { %23298 = vmatpush1.bf16.msra.mxu0 %v23151_v18  ;;  %23329 = vmatprep.mubr.bf16.mxu0 %v32227_v17 }
 0xd79   :  { %23340 = vmatprep.subr.bf16.mxu0 %v23154_v8 }
 0xd7f   :  { %24478 = vmatmul.mubr.msk.bf16.vlgmr.msra.gmra.mrb[24].mxu0 %vm154_vm1, %v26196_v42 }
 0xd80   :  { %23341 = vmatpush1.bf16.msra.mxu0 %v23153_v12  ;;  %23372 = vmatprep.mubr.bf16.mxu0 %v32227_v17 }
 0xd81   :  { %23456 = vmatprep.subr.bf16.mxu0 %v23434_v5 }
 0xd87   :  { %24479 = vmatmul.mubr.msk.bf16.vlgmr.msra.gmra.mrb[28].mxu0 %vm154_vm1, %v26196_v42 }
 0xd88   :  { %23457 = vmatpush1.bf16.msra.mxu0 %v23433_v19  ;;  %23488 = vmatprep.mubr.bf16.mxu0 %v32227_v17 }
 0xd89   :  { %23499 = vmatprep.subr.bf16.mxu0 %v23436_v1 }
 0xd8f   :  { %24483 = vmatmul.mubr.msk.bf16.vlgmr.msra.gmra.mrb[12].mxu0 %vm154_vm1, %v26197_v60 }
 0xd90   :  { %23500 = vmatpush1.bf16.msra.mxu0 %v23435_v54  ;;  %23531 = vmatprep.mubr.bf16.mxu0 %v32227_v17 }
 0xd91   :  { %23542 = vmatprep.subr.bf16.mxu0 %v23438_v59 }
 0xd97   :  { %24484 = vmatmul.mubr.msk.bf16.vlgmr.msra.gmra.mrb[16].mxu0 %vm154_vm1, %v26197_v60 }
 0xd98   :  { %23543 = vmatpush1.bf16.msra.mxu0 %v23437_v22  ;;  %23574 = vmatprep.mubr.bf16.mxu0 %v32227_v17 }
 0xd99   :  { %23585 = vmatprep.subr.bf16.mxu0 %v23440_v49 }
 0xd9f   :  { %24485 = vmatmul.mubr.msk.bf16.vlgmr.msra.gmra.mrb[20].mxu0 %vm154_vm1, %v26197_v60 }
 0xda0   :  { %23586 = vmatpush1.bf16.msra.mxu0 %v23439_v45  ;;  %23617 = vmatprep.mubr.bf16.mxu0 %v32227_v17  ;;  %v32547_v45 = vld [vmem:[#allocation6_spill] sm:$0xff] }
 0xda1   :  { %23628 = vmatprep.subr.bf16.mxu0 %v23442_v30 }
 0xda7   :  { %24486 = vmatmul.mubr.msk.bf16.vlgmr.msra.gmra.mrb[24].mxu0 %vm154_vm1, %v26197_v60 }
 0xda8   :  { %23629 = vmatpush1.bf16.msra.mxu0 %v23441_v35  ;;  %23660 = vmatprep.mubr.bf16.mxu0 %v32227_v17  ;;  %v32548_v35 = vld [vmem:[#allocation7_spill] sm:$0xff] }
 0xdaf   :  { %24487 = vmatmul.mubr.msk.bf16.vlgmr.msra.gmra.mrb[28].mxu0 %vm154_vm1, %v26197_v60 }
 0xe62   :  { %v23490_v2 = vpop.f32.mrb[12].mxu0 }
 0xe63   :  { %v23704_v41 = vadd.f32 %v32022_v44, %v23490_v2  ;;  %v23492_v9 = vpop.f32.mrb[13].mxu0 }
 0xe64   :  { %v23705_v16 = vadd.f32 %v32022_v44, %v23492_v9  ;;  %v23494_v62 = vpop.f32.mrb[14].mxu0 }
 0xe65   :  { %v23724_v36 = vmul.f32 0.01, %v23704_v41  ;;  %v23714_v32 = vadd.f32 %v32025_v52, %v23494_v62  ;;  %v23496_v57 = vpop.f32.mrb[15].mxu0 }
 0xe66   :  { %v23725_v26 = vmul.f32 0.01, %v23705_v16  ;;  %v23715_v17 = vadd.f32 %v32025_v52, %v23496_v57 }
 0xe67   :  { %v23744_v47 = vmax.f32 %v23704_v41, %v23724_v36  ;;  %v23734_v27 = vmul.f32 0.01, %v23714_v32 }
 0xe68   :  { %v23745_v43 = vmax.f32 %v23705_v16, %v23725_v26  ;;  %v23735_v6 = vmul.f32 0.01, %v23715_v17 }
 0xe69   :  { %v23764_v28 = vmul.f32 %v23744_v47, %v32543_v3  ;;  %v23754_v53 = vmax.f32 %v23714_v32, %v23734_v27 }
 0xe6a   :  { %v23765_v31 = vmul.f32 %v23745_v43, %v32544_v33  ;;  %v23755_v7 = vmax.f32 %v23715_v17, %v23735_v6  ;;  %v23533_v56 = vpop.f32.mrb[16].mxu0 }
 0xe6b   :  { %23784 = vst [vmem:[%s32130_s4] sm:$0xff] %v23764_v28  ;;  %v23774_v58 = vmul.f32 %v23754_v53, %v32543_v3  ;;  %v23706_v4 = vadd.f32 %v32022_v44, %v23533_v56  ;;  %v23535_v23 = vpop.f32.mrb[17].mxu0 }
 0xe6c   :  { %23785 = vst [vmem:[%s32130_s4 + $0x8] sm:$0xff] %v23765_v31  ;;  %v23775_v10 = vmul.f32 %v23755_v7, %v32544_v33  ;;  %v23707_v13 = vadd.f32 %v32022_v44, %v23535_v23  ;;  %v23537_v42 = vpop.f32.mrb[18].mxu0  ;;  %v32549_v31 = vld [vmem:[#allocation12_spill] sm:$0xff] }
 0xe6d   :  { %23794 = vst [vmem:[%s32130_s4 + $0x50] sm:$0xff] %v23774_v58  ;;  %v23726_v15 = vmul.f32 0.01, %v23706_v4  ;;  %v23716_v55 = vadd.f32 %v32025_v52, %v23537_v42  ;;  %v23539_v34 = vpop.f32.mrb[19].mxu0  ;;  %v32550_v58 = vld [vmem:[#allocation13_spill] sm:$0xff] }
 0xe6e   :  { %23795 = vst [vmem:[%s32130_s4 + $0x58] sm:$0xff] %v23775_v10  ;;  %v23727_v21 = vmul.f32 0.01, %v23707_v13  ;;  %v23717_v25 = vadd.f32 %v32025_v52, %v23539_v34 }
 0xe6f   :  { %v23746_v46 = vmax.f32 %v23706_v4, %v23726_v15  ;;  %v23736_v40 = vmul.f32 0.01, %v23716_v55 }
 0xe70   :  { %v23747_v61 = vmax.f32 %v23707_v13, %v23727_v21  ;;  %v23737_v39 = vmul.f32 0.01, %v23717_v25 }
 0xe71   :  { %v23766_v18 = vmul.f32 %v23746_v46, %v32545_v24  ;;  %v23756_v8 = vmax.f32 %v23716_v55, %v23736_v40 }
 0xe72   :  { %v23767_v14 = vmul.f32 %v23747_v61, %v32546_v38  ;;  %v23757_v12 = vmax.f32 %v23717_v25, %v23737_v39  ;;  %v23576_v0 = vpop.f32.mrb[20].mxu0 }
 0xe73   :  { %23786 = vst [vmem:[%s32130_s4 + $0x10] sm:$0xff] %v23766_v18  ;;  %v23776_v5 = vmul.f32 %v23756_v8, %v32545_v24  ;;  %v23708_v20 = vadd.f32 %v32022_v44, %v23576_v0  ;;  %v23578_v19 = vpop.f32.mrb[21].mxu0  ;;  %v32552_v0 = vld [vmem:[#allocation11_spill] sm:$0xff] }
 0xe74   :  { %23787 = vst [vmem:[%s32130_s4 + $0x18] sm:$0xff] %v23767_v14  ;;  %v23777_v51 = vmul.f32 %v23757_v12, %v32546_v38  ;;  %v23709_v1 = vadd.f32 %v32022_v44, %v23578_v19  ;;  %v23580_v60 = vpop.f32.mrb[22].mxu0  ;;  %v32551_v38 = vld [vmem:[#allocation10_spill] sm:$0xff] }
 0xe75   :  { %23796 = vst [vmem:[%s32130_s4 + $0x60] sm:$0xff] %v23776_v5  ;;  %v23728_v11 = vmul.f32 0.01, %v23708_v20  ;;  %v23718_v54 = vadd.f32 %v32025_v52, %v23580_v60  ;;  %v23582_v29 = vpop.f32.mrb[23].mxu0 }
 0xe76   :  { %23797 = vst [vmem:[%s32130_s4 + $0x68] sm:$0xff] %v23777_v51  ;;  %v23729_v59 = vmul.f32 0.01, %v23709_v1  ;;  %v23719_v50 = vadd.f32 %v32025_v52, %v23582_v29 }
 0xe77   :  { %v23748_v22 = vmax.f32 %v23708_v20, %v23728_v11  ;;  %v23738_v37 = vmul.f32 0.01, %v23718_v54 }
 0xe78   :  { %v23749_v49 = vmax.f32 %v23709_v1, %v23729_v59  ;;  %v23739_v63 = vmul.f32 0.01, %v23719_v50 }
 0xe79   :  { %v23768_v48 = vmul.f32 %v23748_v22, %v32547_v45  ;;  %v23758_v30 = vmax.f32 %v23718_v54, %v23738_v37 }
 0xe7a   :  { %v23769_v2 = vmul.f32 %v23749_v49, %v32548_v35  ;;  %v23759_v41 = vmax.f32 %v23719_v50, %v23739_v63  ;;  %v23619_v9 = vpop.f32.mrb[24].mxu0 }
 0xe7b   :  { %23788 = vst [vmem:[%s32130_s4 + $0x20] sm:$0xff] %v23768_v48  ;;  %v23778_v16 = vmul.f32 %v23758_v30, %v32547_v45  ;;  %v23710_v62 = vadd.f32 %v32022_v44, %v23619_v9  ;;  %v23621_v36 = vpop.f32.mrb[25].mxu0 }
 0xe7c   :  { %23789 = vst [vmem:[%s32130_s4 + $0x28] sm:$0xff] %v23769_v2  ;;  %v23779_v32 = vmul.f32 %v23759_v41, %v32548_v35  ;;  %v23711_v57 = vadd.f32 %v32022_v44, %v23621_v36  ;;  %v23623_v26 = vpop.f32.mrb[26].mxu0 }
 0xe7d   :  { %23798 = vst [vmem:[%s32130_s4 + $0x70] sm:$0xff] %v23778_v16  ;;  %v23730_v17 = vmul.f32 0.01, %v23710_v62  ;;  %v23720_v47 = vadd.f32 %v32025_v52, %v23623_v26  ;;  %v23625_v27 = vpop.f32.mrb[27].mxu0 }
 0xe7e   :  { %23799 = vst [vmem:[%s32130_s4 + $0x78] sm:$0xff] %v23779_v32  ;;  %v23731_v43 = vmul.f32 0.01, %v23711_v57  ;;  %v23721_v6 = vadd.f32 %v32025_v52, %v23625_v27 }
 0xe7f   :  { %v23750_v3 = vmax.f32 %v23710_v62, %v23730_v17  ;;  %v23740_v28 = vmul.f32 0.01, %v23720_v47 }
 0xe80   :  { %v23751_v53 = vmax.f32 %v23711_v57, %v23731_v43  ;;  %v23741_v33 = vmul.f32 0.01, %v23721_v6 }
 0xe81   :  { %v23770_v7 = vmul.f32 %v23750_v3, %v32549_v31  ;;  %v23760_v56 = vmax.f32 %v23720_v47, %v23740_v28 }
 0xe82   :  { %v23771_v4 = vmul.f32 %v23751_v53, %v32550_v58  ;;  %v23761_v23 = vmax.f32 %v23721_v6, %v23741_v33  ;;  %v23662_v10 = vpop.f32.mrb[28].mxu0 }
 0xe83   :  { %23790 = vst [vmem:[%s32130_s4 + $0x30] sm:$0xff] %v23770_v7  ;;  %v23780_v13 = vmul.f32 %v23760_v56, %v32549_v31  ;;  %v23712_v42 = vadd.f32 %v32022_v44, %v23662_v10  ;;  %v23664_v15 = vpop.f32.mrb[29].mxu0 }
 0xe84   :  { %23791 = vst [vmem:[%s32130_s4 + $0x38] sm:$0xff] %v23771_v4  ;;  %v23781_v55 = vmul.f32 %v23761_v23, %v32550_v58  ;;  %v23713_v34 = vadd.f32 %v32022_v44, %v23664_v15  ;;  %v23666_v21 = vpop.f32.mrb[30].mxu0 }
 0xe85   :  { %23800 = vst [vmem:[%s32130_s4 + $0x80] sm:$0xff] %v23780_v13  ;;  %v23732_v25 = vmul.f32 0.01, %v23712_v42  ;;  %v23722_v46 = vadd.f32 %v32025_v52, %v23666_v21  ;;  %v23668_v40 = vpop.f32.mrb[31].mxu0 }
 0xe86   :  { %23801 = vst [vmem:[%s32130_s4 + $0x88] sm:$0xff] %v23781_v55  ;;  %v23733_v61 = vmul.f32 0.01, %v23713_v34  ;;  %v23723_v39 = vadd.f32 %v32025_v52, %v23668_v40 }
 0xe87   :  { %v23752_v24 = vmax.f32 %v23712_v42, %v23732_v25  ;;  %v23742_v18 = vmul.f32 0.01, %v23722_v46 }
 0xe88   :  { %v23753_v8 = vmax.f32 %v23713_v34, %v23733_v61  ;;  %v23743_v44 = vmul.f32 0.01, %v23723_v39 }
 0xe89   :  { %v23772_v14 = vmul.f32 %v23752_v24, %v32551_v38  ;;  %v23762_v12 = vmax.f32 %v23722_v46, %v23742_v18 }
 0xe8a   :  { %v23773_v5 = vmul.f32 %v23753_v8, %v32552_v0  ;;  %v23763_v20 = vmax.f32 %v23723_v39, %v23743_v44 }
 0xe8b   :  { %23792 = vst [vmem:[%s32130_s4 + $0x40] sm:$0xff] %v23772_v14  ;;  %v23782_v19 = vmul.f32 %v23762_v12, %v32551_v38 }
 0xe8c   :  { %23793 = vst [vmem:[%s32130_s4 + $0x48] sm:$0xff] %v23773_v5  ;;  %v23783_v52 = vmul.f32 %v23763_v20, %v32552_v0 }
 0xe8d   :  { %23802 = vst [vmem:[%s32130_s4 + $0x90] sm:$0xff] %v23782_v19 }
 0xe8e   :  { %23803 = vst [vmem:[%s32130_s4 + $0x98] sm:$0xff] %v23783_v52 }

</bundles_post_ra>
